<compile_context>
chip_gen: v7x
topology: tpu7x:2x2x1
jax: 0.10.0
libtpu: 0.0.40
codegen_flags: <defaults>
</compile_context>

<pallas_src>
import functools
import math

import jax
import jax.numpy as jnp
from jax import lax
from jax.experimental import pallas as pl
from jax.experimental.pallas import tpu as pltpu

# ---------------- model config (small synthetic base model) ----------------
VOCAB = 64
D_MODEL = 32
N_HEADS = 2
HEAD_DIM = D_MODEL // N_HEADS      # 16
D_FF = 64
N_LAYERS = 2
EPS = 1e-6
TMAX = 16                          # padded KV-cache length (>= S + latent_steps)
NEG_INF = -1e30


# ------------------------------ kernel helpers ------------------------------
def _rmsnorm(x, w):
    var = jnp.mean(x * x, axis=-1, keepdims=True)
    return x * lax.rsqrt(var + EPS) * w.astype(jnp.float32)


def _rotate_half(x, n_heads, head_dim):
    """Per-head rotate_half built from static lane slices (no pltpu.roll)."""
    half = head_dim // 2
    parts = []
    for h in range(n_heads):
        base = h * head_dim
        parts.append(-x[..., base + half:base + head_dim])
        parts.append(x[..., base:base + half])
    return jnp.concatenate(parts, axis=-1)


# ------------------------------ fused kernel --------------------------------
def _coconut_kernel(emb_ref, cos_ref, sin_ref, bias_ref,
                    attn_ln_ref, wqkv_ref, wo_ref,
                    mlp_ln_ref, wgu_ref, wd_ref, fln_ref,
                    hid_ref, k_ref, v_ref,
                    *, seq_len, latent_steps, n_layers, n_heads, head_dim, tmax):
    D = n_heads * head_dim
    scale = 1.0 / math.sqrt(head_dim)

    # KV caches live entirely in VMEM; output refs double as working buffers.
    k_ref[...] = jnp.zeros_like(k_ref)
    v_ref[...] = jnp.zeros_like(v_ref)

    pad_bias = bias_ref[...].astype(jnp.float32)            # (1, 1, TMAX)

    def decoder_pass(x, cache_len, sn):
        """One base-model pass over `sn` tokens occupying cache slots
        [cache_len, cache_len + sn).  x: (1, sn, D) f32.  Returns final-normed
        hidden states (1, sn, D) f32 and appends K/V to the caches in place."""
        b = x.shape[0]

        cos = cos_ref[:, cache_len:cache_len + sn, :]        # (1, sn, Dh) f32
        sin = sin_ref[:, cache_len:cache_len + sn, :]
        cos_d = jnp.concatenate([cos] * n_heads, axis=-1)    # (1, sn, D)
        sin_d = jnp.concatenate([sin] * n_heads, axis=-1)

        # additive attention bias: causal (on cache indices) + padding mask,
        # computed once per pass and shared across layers and heads.
        qpos = cache_len + lax.broadcasted_iota(jnp.int32, (b, sn, tmax), 1)
        kpos = lax.broadcasted_iota(jnp.int32, (b, sn, tmax), 2)
        bias = jnp.where(kpos <= qpos, 0.0, NEG_INF) + pad_bias   # (1, sn, TMAX)

        for l in range(n_layers):
            # -------- attention block (pre-norm, fused QKV, RoPE, cached MHA) --------
            xn = _rmsnorm(x, attn_ln_ref[l])                          # (1, sn, D) f32
            xn2 = xn.reshape(b * sn, D).astype(jnp.bfloat16)
            qkv = jnp.dot(xn2, wqkv_ref[l],
                          preferred_element_type=jnp.float32)         # (sn, 3D) f32
            q = qkv[:, 0 * D:1 * D].reshape(b, sn, D)
            k = qkv[:, 1 * D:2 * D].reshape(b, sn, D)
            v = qkv[:, 2 * D:3 * D].reshape(b, sn, D)

            q = q * cos_d + _rotate_half(q, n_heads, head_dim) * sin_d
            k = k * cos_d + _rotate_half(k, n_heads, head_dim) * sin_d

            # append new K/V to the VMEM-resident cache (lane-dense H*Dh rows)
            k_ref[l, :, cache_len:cache_len + sn, :] = k.astype(k_ref.dtype)
            v_ref[l, :, cache_len:cache_len + sn, :] = v.astype(v_ref.dtype)
            k_all = k_ref[l]                                          # (1, TMAX, D) f32
            v_all = v_ref[l]

            q_bf = q.astype(jnp.bfloat16)
            ctx_heads = []
            for h in range(n_heads):
                lo, hi = h * head_dim, (h + 1) * head_dim
                s = jnp.einsum('bqd,bkd->bqk',
                               q_bf[..., lo:hi],
                               k_all[..., lo:hi].astype(jnp.bfloat16),
                               preferred_element_type=jnp.float32) * scale
                s = s + bias
                m = jnp.max(s, axis=-1, keepdims=True)
                p = jnp.exp(s - m)
                p = p / jnp.sum(p, axis=-1, keepdims=True)
                ctx_heads.append(
                    jnp.einsum('bqk,bkd->bqd',
                               p.astype(jnp.bfloat16),
                               v_all[..., lo:hi].astype(jnp.bfloat16),
                               preferred_element_type=jnp.float32))
            ctx = jnp.concatenate(ctx_heads, axis=-1).reshape(b * sn, D)
            attn_out = jnp.dot(ctx.astype(jnp.bfloat16), wo_ref[l],
                               preferred_element_type=jnp.float32)
            x = x + attn_out.reshape(b, sn, D)

            # -------- MLP block (pre-norm, fused gate|up, SwiGLU) --------
            xn = _rmsnorm(x, mlp_ln_ref[l]).reshape(b * sn, D).astype(jnp.bfloat16)
            gu = jnp.dot(xn, wgu_ref[l], preferred_element_type=jnp.float32)
            dff = gu.shape[1] // 2
            g = gu[:, :dff]
            u = gu[:, dff:]
            hact = (g / (1.0 + jnp.exp(-g))) * u                      # SiLU(g) * u
            mlp_out = jnp.dot(hact.astype(jnp.bfloat16), wd_ref[l],
                              preferred_element_type=jnp.float32)
            x = x + mlp_out.reshape(b, sn, D)

        return _rmsnorm(x, fln_ref[...])

    # ---- prefill ----
    x = emb_ref[...].astype(jnp.float32)                              # (1, S, D)
    hidden = decoder_pass(x, 0, seq_len)

    if latent_steps == 0:
        hid_ref[...] = hidden.astype(hid_ref.dtype)
    else:
        # ---- latent-thought loop: feed last (final-normed) hidden state back ----
        last = hidden[:, seq_len - 1:seq_len, :]                      # (1, 1, D)
        for t in range(latent_steps):
            last = decoder_pass(last, seq_len + t, 1)
        hid_ref[...] = last.astype(hid_ref.dtype)


# ------------------------------ glue / wrapper ------------------------------
def _build_rope_tables(positions, head_dim):
    inv_freq = 1.0 / (10000.0 ** (jnp.arange(0, head_dim, 2, dtype=jnp.float32) / head_dim))
    ang = positions.astype(jnp.float32)[:, :, None] * inv_freq[None, None, :]  # (B,T,Dh/2)
    cos = jnp.concatenate([jnp.cos(ang), jnp.cos(ang)], axis=-1)                # (B,T,Dh)
    sin = jnp.concatenate([jnp.sin(ang), jnp.sin(ang)], axis=-1)
    return cos, sin


def coconut_forward(params, input_ids, attention_mask, position_ids, latent_steps=0):
    """Mirrors CoconutModel.forward: prefill, then feed the last hidden state
    back `latent_steps` times with a growing mask / KV cache and incremented
    positions.  The whole thing runs inside one fused Pallas kernel."""
    B, S = input_ids.shape
    assert S + latent_steps <= TMAX
    D = D_MODEL
    s_out = S if latent_steps == 0 else 1

    # token-embedding gather is glue (data-dependent gather outside the kernel)
    inputs_embeds = params['tok_emb'][input_ids]                       # (B, S, D) bf16

    # positions for every cache slot (prefill positions, then +1 per latent step)
    n_extra = TMAX - S
    extra_pos = position_ids[:, -1:] + jnp.arange(1, n_extra + 1,
                                                  dtype=position_ids.dtype)[None, :]
    positions_full = jnp.concatenate([position_ids, extra_pos], axis=1)  # (B, TMAX)
    cos, sin = _build_rope_tables(positions_full, HEAD_DIM)             # (B, TMAX, Dh) f32

    # additive padding-mask bias over all cache slots (latent slots always valid)
    mask_full = jnp.concatenate(
        [attention_mask.astype(jnp.float32), jnp.ones((B, n_extra), jnp.float32)], axis=1)
    pad_bias = jnp.where(mask_full > 0.5, 0.0, NEG_INF).astype(jnp.float32)
    pad_bias = pad_bias.reshape(B, 1, TMAX)

    kernel = functools.partial(
        _coconut_kernel, seq_len=S, latent_steps=latent_steps,
        n_layers=N_LAYERS, n_heads=N_HEADS, head_dim=HEAD_DIM, tmax=TMAX)

    def replicated(a):  # full-array weight block, same for every batch program
        return pl.BlockSpec(a.shape, lambda b, _nd=a.ndim: (0,) * _nd)

    in_specs = [
        pl.BlockSpec((1, S, D), lambda b: (b, 0, 0)),                 # embeddings
        pl.BlockSpec((1, TMAX, HEAD_DIM), lambda b: (b, 0, 0)),       # cos
        pl.BlockSpec((1, TMAX, HEAD_DIM), lambda b: (b, 0, 0)),       # sin
        pl.BlockSpec((1, 1, TMAX), lambda b: (b, 0, 0)),              # padding bias
        replicated(params['attn_ln']),
        replicated(params['wqkv']),
        replicated(params['wo']),
        replicated(params['mlp_ln']),
        replicated(params['wgu']),
        replicated(params['wd']),
        replicated(params['final_ln']),
    ]
    out_specs = (
        pl.BlockSpec((1, s_out, D), lambda b: (b, 0, 0)),                       # hidden
        pl.BlockSpec((N_LAYERS, 1, TMAX, D), lambda b: (0, b, 0, 0)),           # K cache
        pl.BlockSpec((N_LAYERS, 1, TMAX, D), lambda b: (0, b, 0, 0)),           # V cache
    )
    out_shape = (
        jax.ShapeDtypeStruct((B, s_out, D), jnp.bfloat16),
        jax.ShapeDtypeStruct((N_LAYERS, B, TMAX, D), jnp.float32),
        jax.ShapeDtypeStruct((N_LAYERS, B, TMAX, D), jnp.float32),
    )

    hidden, k_cache, v_cache = pl.pallas_call(
        kernel,
        grid=(B,),                                 # batch elements are independent
        in_specs=in_specs,
        out_specs=out_specs,
        out_shape=out_shape,
        compiler_params=pltpu.CompilerParams(dimension_semantics=("parallel",)),
    )(inputs_embeds, cos, sin, pad_bias,
      params['attn_ln'], params['wqkv'], params['wo'],
      params['mlp_ln'], params['wgu'], params['wd'], params['final_ln'])

    kv_cache = (k_cache, v_cache, S + latent_steps)
    return hidden, kv_cache


# ------------------------------- param init ---------------------------------
def init_params(key):
    def nrm(k, shape, scl=0.02):
        return (scl * jax.random.normal(k, shape, jnp.float32)).astype(jnp.bfloat16)

    k_emb, k_qkv, k_o, k_gu, k_d = jax.random.split(key, 5)
    return {
        'tok_emb':  nrm(k_emb, (VOCAB, D_MODEL)),
        'attn_ln':  jnp.ones((N_LAYERS, 1, D_MODEL), jnp.bfloat16),
        'wqkv':     nrm(k_qkv, (N_LAYERS, D_MODEL, 3 * D_MODEL)),     # fused Q|K|V
        'wo':       nrm(k_o, (N_LAYERS, D_MODEL, D_MODEL)),
        'mlp_ln':   jnp.ones((N_LAYERS, 1, D_MODEL), jnp.bfloat16),
        'wgu':      nrm(k_gu, (N_LAYERS, D_MODEL, 2 * D_FF)),         # fused gate|up
        'wd':       nrm(k_d, (N_LAYERS, D_FF, D_MODEL)),
        'final_ln': jnp.ones((1, D_MODEL), jnp.bfloat16),
    }


# ----------------------------------- main ------------------------------------
if __name__ == "__main__":
    B, S, LATENT_STEPS = 2, 8, 3
    assert S + LATENT_STEPS <= TMAX

    key = jax.random.PRNGKey(0)
    kp, kids = jax.random.split(key)
    params = init_params(kp)

    input_ids = jax.random.randint(kids, (B, S), 0, VOCAB, dtype=jnp.int32)
    attention_mask = jnp.ones((B, S), jnp.int32).at[1, S - 1].set(0)   # exercise masking
    position_ids = jnp.broadcast_to(jnp.arange(S, dtype=jnp.int32), (B, S))

    hidden_states, (k_cache, v_cache, cache_len) = coconut_forward(
        params, input_ids, attention_mask, position_ids, latent_steps=LATENT_STEPS)

    jax.block_until_ready((hidden_states, k_cache, v_cache))

    assert hidden_states.shape == (B, 1, D_MODEL)
    assert k_cache.shape == (N_LAYERS, B, TMAX, D_MODEL)
    assert cache_len == S + LATENT_STEPS
    assert bool(jnp.all(jnp.isfinite(hidden_states.astype(jnp.float32))))
    print("KERNEL_OK")
</pallas_src>

<mosaic_0001>
module attributes {stable_mosaic.version = 11 : i64} {
  func.func @_coconut_kernel(%arg0: i32, %arg1: memref<1x8x32xbf16, #tpu.memory_space<vmem>>, %arg2: memref<1x16x16xf32, #tpu.memory_space<vmem>>, %arg3: memref<1x16x16xf32, #tpu.memory_space<vmem>>, %arg4: memref<1x1x16xf32, #tpu.memory_space<vmem>>, %arg5: memref<2x1x32xbf16, #tpu.memory_space<vmem>>, %arg6: memref<2x32x96xbf16, #tpu.memory_space<vmem>>, %arg7: memref<2x32x32xbf16, #tpu.memory_space<vmem>>, %arg8: memref<2x1x32xbf16, #tpu.memory_space<vmem>>, %arg9: memref<2x32x128xbf16, #tpu.memory_space<vmem>>, %arg10: memref<2x64x32xbf16, #tpu.memory_space<vmem>>, %arg11: memref<1x32xbf16, #tpu.memory_space<vmem>>, %arg12: memref<1x1x32xbf16, #tpu.memory_space<vmem>>, %arg13: memref<2x1x16x32xf32, #tpu.memory_space<vmem>>, %arg14: memref<2x1x16x32xf32, #tpu.memory_space<vmem>>) attributes {dimension_semantics = [#tpu.dimension_semantics<parallel>], iteration_bounds = array<i64: 2>, scalar_prefetch = 0 : i64, scratch_operands = 0 : i64, tpu.core_type = #tpu.core_type<tc>, window_params = [{transform_indices = @transform_0, window_bounds = array<i64: 1, 8, 32>}, {transform_indices = @transform_1, window_bounds = array<i64: 1, 16, 16>}, {transform_indices = @transform_2, window_bounds = array<i64: 1, 16, 16>}, {transform_indices = @transform_3, window_bounds = array<i64: 1, 1, 16>}, {pipeline_mode = #tpu.pipeline_mode<synchronous>, transform_indices = @transform_4, window_bounds = array<i64: 2, 1, 32>}, {pipeline_mode = #tpu.pipeline_mode<synchronous>, transform_indices = @transform_5, window_bounds = array<i64: 2, 32, 96>}, {pipeline_mode = #tpu.pipeline_mode<synchronous>, transform_indices = @transform_6, window_bounds = array<i64: 2, 32, 32>}, {pipeline_mode = #tpu.pipeline_mode<synchronous>, transform_indices = @transform_7, window_bounds = array<i64: 2, 1, 32>}, {pipeline_mode = #tpu.pipeline_mode<synchronous>, transform_indices = @transform_8, window_bounds = array<i64: 2, 32, 128>}, {pipeline_mode = #tpu.pipeline_mode<synchronous>, transform_indices = @transform_9, window_bounds = array<i64: 2, 64, 32>}, {pipeline_mode = #tpu.pipeline_mode<synchronous>, transform_indices = @transform_10, window_bounds = array<i64: 1, 32>}, {transform_indices = @transform_11, window_bounds = array<i64: 1, 1, 32>}, {transform_indices = @transform_12, window_bounds = array<i64: 2, 1, 16, 32>}, {transform_indices = @transform_13, window_bounds = array<i64: 2, 1, 16, 32>}]} {
    %cst = arith.constant 0.000000e+00 : f32
    %0 = vector.broadcast %cst : f32 to vector<2x1x16x32xf32>
    %c0 = arith.constant 0 : index
    %c0_0 = arith.constant 0 : index
    %c0_1 = arith.constant 0 : index
    %c0_2 = arith.constant 0 : index
    %1 = vector.load %arg13[%c0, %c0_0, %c0_1, %c0_2] : memref<2x1x16x32xf32, #tpu.memory_space<vmem>>, vector<2x1x16x32xf32>
    tpu.vector_store %arg13[%c0, %c0_0, %c0_1, %c0_2], %0 {strides = array<i32>} : memref<2x1x16x32xf32, #tpu.memory_space<vmem>>, vector<2x1x16x32xf32>,
    %cst_3 = arith.constant 0.000000e+00 : f32
    %2 = vector.broadcast %cst_3 : f32 to vector<2x1x16x32xf32>
    %c0_4 = arith.constant 0 : index
    %c0_5 = arith.constant 0 : index
    %c0_6 = arith.constant 0 : index
    %c0_7 = arith.constant 0 : index
    %3 = vector.load %arg14[%c0_4, %c0_5, %c0_6, %c0_7] : memref<2x1x16x32xf32, #tpu.memory_space<vmem>>, vector<2x1x16x32xf32>
    tpu.vector_store %arg14[%c0_4, %c0_5, %c0_6, %c0_7], %2 {strides = array<i32>} : memref<2x1x16x32xf32, #tpu.memory_space<vmem>>, vector<2x1x16x32xf32>,
    %c0_8 = arith.constant 0 : index
    %c0_9 = arith.constant 0 : index
    %c0_10 = arith.constant 0 : index
    %4 = vector.load %arg4[%c0_8, %c0_9, %c0_10] : memref<1x1x16xf32, #tpu.memory_space<vmem>>, vector<1x1x16xf32>
    %c0_11 = arith.constant 0 : index
    %c0_12 = arith.constant 0 : index
    %c0_13 = arith.constant 0 : index
    %5 = vector.load %arg1[%c0_11, %c0_12, %c0_13] : memref<1x8x32xbf16, #tpu.memory_space<vmem>>, vector<1x8x32xbf16>
    %6 = arith.extf %5 : vector<1x8x32xbf16> to vector<1x8x32xf32>
    %c0_14 = arith.constant 0 : index
    %c0_15 = arith.constant 0 : index
    %c0_16 = arith.constant 0 : index
    %7 = vector.load %arg2[%c0_14, %c0_15, %c0_16] : memref<1x16x16xf32, #tpu.memory_space<vmem>>, vector<1x8x16xf32>
    %c0_17 = arith.constant 0 : index
    %c0_18 = arith.constant 0 : index
    %c0_19 = arith.constant 0 : index
    %8 = vector.load %arg3[%c0_17, %c0_18, %c0_19] : memref<1x16x16xf32, #tpu.memory_space<vmem>>, vector<1x8x16xf32>
    %9 = tpu.concatenate %7, %7 in 2 : vector<1x8x16xf32>, vector<1x8x16xf32> -> vector<1x8x32xf32>
    %10 = tpu.concatenate %8, %8 in 2 : vector<1x8x16xf32>, vector<1x8x16xf32> -> vector<1x8x32xf32>
    %11 = tpu.iota {dimensions = array<i32: 1>} : vector<1x8x16xi32>
    %c0_i32 = arith.constant 0 : i32
    %12 = vector.broadcast %c0_i32 : i32 to vector<1x8x16xi32>
    %13 = arith.addi %12, %11 : vector<1x8x16xi32>
    %14 = tpu.iota {dimensions = array<i32: 2>} : vector<1x8x16xi32>
    %15 = arith.cmpi sle, %14, %13 : vector<1x8x16xi32>
    %cst_20 = arith.constant 0.000000e+00 : f32
    %cst_21 = arith.constant -1.000000e+30 : f32
    %16 = vector.broadcast %cst_20 : f32 to vector<1x8x16xf32>
    %17 = vector.broadcast %cst_21 : f32 to vector<1x8x16xf32>
    %18 = arith.select %15, %16, %17 : vector<1x8x16xi1>, vector<1x8x16xf32>
    %19 = vector.broadcast %4 : vector<1x1x16xf32> to vector<1x8x16xf32>
    %20 = arith.addf %18, %19 : vector<1x8x16xf32>
    %c0_22 = arith.constant 0 : index
    %c0_23 = arith.constant 0 : index
    %c0_24 = arith.constant 0 : index
    %21 = vector.load %arg5[%c0_22, %c0_23, %c0_24] : memref<2x1x32xbf16, #tpu.memory_space<vmem>>, vector<1x1x32xbf16>
    %22 = vector.shape_cast %21 : vector<1x1x32xbf16> to vector<1x32xbf16>
    %23 = arith.mulf %6, %6 : vector<1x8x32xf32>
    %cst_25 = arith.constant dense<0.000000e+00> : vector<1x8xf32>
    %24 = vector.multi_reduction <add>, %23, %cst_25 [2] : vector<1x8x32xf32> to vector<1x8xf32>
    %25 = vector.shape_cast %24 : vector<1x8xf32> to vector<1x8x1xf32>
    %cst_26 = arith.constant 3.200000e+01 : f32
    %26 = vector.broadcast %cst_26 : f32 to vector<1x8x1xf32>
    %27 = arith.divf %25, %26 : vector<1x8x1xf32>
    %cst_27 = arith.constant 9.99999997E-7 : f32
    %28 = vector.broadcast %cst_27 : f32 to vector<1x8x1xf32>
    %29 = arith.addf %27, %28 : vector<1x8x1xf32>
    %30 = math.rsqrt %29 : vector<1x8x1xf32>
    %31 = vector.broadcast %30 : vector<1x8x1xf32> to vector<1x8x32xf32>
    %32 = arith.mulf %6, %31 : vector<1x8x32xf32>
    %33 = arith.extf %22 : vector<1x32xbf16> to vector<1x32xf32>
    %34 = vector.shape_cast %33 : vector<1x32xf32> to vector<1x1x32xf32>
    %35 = vector.broadcast %34 : vector<1x1x32xf32> to vector<1x8x32xf32>
    %36 = arith.mulf %32, %35 : vector<1x8x32xf32>
    %37 = vector.shape_cast %36 : vector<1x8x32xf32> to vector<8x32xf32>
    %38 = arith.truncf %37 : vector<8x32xf32> to vector<8x32xbf16>
    %c0_28 = arith.constant 0 : index
    %c0_29 = arith.constant 0 : index
    %c0_30 = arith.constant 0 : index
    %39 = vector.load %arg6[%c0_28, %c0_29, %c0_30] : memref<2x32x96xbf16, #tpu.memory_space<vmem>>, vector<1x32x96xbf16>
    %40 = vector.shape_cast %39 : vector<1x32x96xbf16> to vector<32x96xbf16>
    %cst_31 = arith.constant dense<0.000000e+00> : vector<8x96xf32>
    %41 = tpu.matmul %38, %40, %cst_31 {dimension_numbers = #tpu.dot_dimension_numbers<[1], [0], [0], [1], [0, 0, 1, 1], [], []>} : vector<8x32xbf16>, vector<32x96xbf16>, vector<8x96xf32> -> vector<8x96xf32>
    %42 = vector.extract_strided_slice %41 {offsets = [0, 0], sizes = [8, 32], strides = [1, 1]} : vector<8x96xf32> to vector<8x32xf32>
    %43 = vector.shape_cast %42 : vector<8x32xf32> to vector<1x8x32xf32>
    %44 = vector.extract_strided_slice %41 {offsets = [0, 32], sizes = [8, 32], strides = [1, 1]} : vector<8x96xf32> to vector<8x32xf32>
    %45 = vector.shape_cast %44 : vector<8x32xf32> to vector<1x8x32xf32>
    %46 = vector.extract_strided_slice %41 {offsets = [0, 64], sizes = [8, 32], strides = [1, 1]} : vector<8x96xf32> to vector<8x32xf32>
    %47 = vector.shape_cast %46 : vector<8x32xf32> to vector<1x8x32xf32>
    %48 = arith.mulf %43, %9 : vector<1x8x32xf32>
    %49 = vector.extract_strided_slice %43 {offsets = [0, 0, 8], sizes = [1, 8, 8], strides = [1, 1, 1]} : vector<1x8x32xf32> to vector<1x8x8xf32>
    %cst_32 = arith.constant 0.000000e+00 : f32
    %50 = vector.broadcast %cst_32 : f32 to vector<1x8x8xf32>
    %51 = arith.subf %50, %49 : vector<1x8x8xf32>
    %52 = vector.extract_strided_slice %43 {offsets = [0, 0, 0], sizes = [1, 8, 8], strides = [1, 1, 1]} : vector<1x8x32xf32> to vector<1x8x8xf32>
    %53 = vector.extract_strided_slice %43 {offsets = [0, 0, 24], sizes = [1, 8, 8], strides = [1, 1, 1]} : vector<1x8x32xf32> to vector<1x8x8xf32>
    %cst_33 = arith.constant 0.000000e+00 : f32
    %54 = vector.broadcast %cst_33 : f32 to vector<1x8x8xf32>
    %55 = arith.subf %54, %53 : vector<1x8x8xf32>
    %56 = vector.extract_strided_slice %43 {offsets = [0, 0, 16], sizes = [1, 8, 8], strides = [1, 1, 1]} : vector<1x8x32xf32> to vector<1x8x8xf32>
    %57 = tpu.concatenate %51, %52, %55, %56 in 2 : vector<1x8x8xf32>, vector<1x8x8xf32>, vector<1x8x8xf32>, vector<1x8x8xf32> -> vector<1x8x32xf32>
    %58 = arith.mulf %57, %10 : vector<1x8x32xf32>
    %59 = arith.addf %48, %58 : vector<1x8x32xf32>
    %60 = arith.mulf %45, %9 : vector<1x8x32xf32>
    %61 = vector.extract_strided_slice %45 {offsets = [0, 0, 8], sizes = [1, 8, 8], strides = [1, 1, 1]} : vector<1x8x32xf32> to vector<1x8x8xf32>
    %cst_34 = arith.constant 0.000000e+00 : f32
    %62 = vector.broadcast %cst_34 : f32 to vector<1x8x8xf32>
    %63 = arith.subf %62, %61 : vector<1x8x8xf32>
    %64 = vector.extract_strided_slice %45 {offsets = [0, 0, 0], sizes = [1, 8, 8], strides = [1, 1, 1]} : vector<1x8x32xf32> to vector<1x8x8xf32>
    %65 = vector.extract_strided_slice %45 {offsets = [0, 0, 24], sizes = [1, 8, 8], strides = [1, 1, 1]} : vector<1x8x32xf32> to vector<1x8x8xf32>
    %cst_35 = arith.constant 0.000000e+00 : f32
    %66 = vector.broadcast %cst_35 : f32 to vector<1x8x8xf32>
    %67 = arith.subf %66, %65 : vector<1x8x8xf32>
    %68 = vector.extract_strided_slice %45 {offsets = [0, 0, 16], sizes = [1, 8, 8], strides = [1, 1, 1]} : vector<1x8x32xf32> to vector<1x8x8xf32>
    %69 = tpu.concatenate %63, %64, %67, %68 in 2 : vector<1x8x8xf32>, vector<1x8x8xf32>, vector<1x8x8xf32>, vector<1x8x8xf32> -> vector<1x8x32xf32>
    %70 = arith.mulf %69, %10 : vector<1x8x32xf32>
    %71 = arith.addf %60, %70 : vector<1x8x32xf32>
    %c0_36 = arith.constant 0 : index
    %c0_37 = arith.constant 0 : index
    %c0_38 = arith.constant 0 : index
    %c0_39 = arith.constant 0 : index
    %72 = vector.load %arg13[%c0_36, %c0_37, %c0_38, %c0_39] : memref<2x1x16x32xf32, #tpu.memory_space<vmem>>, vector<1x1x8x32xf32>
    %73 = vector.shape_cast %72 : vector<1x1x8x32xf32> to vector<1x8x32xf32>
    %74 = vector.shape_cast %71 : vector<1x8x32xf32> to vector<1x1x8x32xf32>
    tpu.vector_store %arg13[%c0_36, %c0_37, %c0_38, %c0_39], %74 {strides = array<i32>} : memref<2x1x16x32xf32, #tpu.memory_space<vmem>>, vector<1x1x8x32xf32>,
    %c0_40 = arith.constant 0 : index
    %c0_41 = arith.constant 0 : index
    %c0_42 = arith.constant 0 : index
    %c0_43 = arith.constant 0 : index
    %75 = vector.load %arg14[%c0_40, %c0_41, %c0_42, %c0_43] : memref<2x1x16x32xf32, #tpu.memory_space<vmem>>, vector<1x1x8x32xf32>
    %76 = vector.shape_cast %75 : vector<1x1x8x32xf32> to vector<1x8x32xf32>
    %77 = vector.shape_cast %47 : vector<1x8x32xf32> to vector<1x1x8x32xf32>
    tpu.vector_store %arg14[%c0_40, %c0_41, %c0_42, %c0_43], %77 {strides = array<i32>} : memref<2x1x16x32xf32, #tpu.memory_space<vmem>>, vector<1x1x8x32xf32>,
    %c0_44 = arith.constant 0 : index
    %c0_45 = arith.constant 0 : index
    %c0_46 = arith.constant 0 : index
    %c0_47 = arith.constant 0 : index
    %78 = vector.load %arg13[%c0_44, %c0_45, %c0_46, %c0_47] : memref<2x1x16x32xf32, #tpu.memory_space<vmem>>, vector<1x1x16x32xf32>
    %79 = vector.shape_cast %78 : vector<1x1x16x32xf32> to vector<1x16x32xf32>
    %c0_48 = arith.constant 0 : index
    %c0_49 = arith.constant 0 : index
    %c0_50 = arith.constant 0 : index
    %c0_51 = arith.constant 0 : index
    %80 = vector.load %arg14[%c0_48, %c0_49, %c0_50, %c0_51] : memref<2x1x16x32xf32, #tpu.memory_space<vmem>>, vector<1x1x16x32xf32>
    %81 = vector.shape_cast %80 : vector<1x1x16x32xf32> to vector<1x16x32xf32>
    %82 = arith.truncf %59 : vector<1x8x32xf32> to vector<1x8x32xbf16>
    %83 = vector.extract_strided_slice %82 {offsets = [0, 0, 0], sizes = [1, 8, 16], strides = [1, 1, 1]} : vector<1x8x32xbf16> to vector<1x8x16xbf16>
    %84 = vector.extract_strided_slice %79 {offsets = [0, 0, 0], sizes = [1, 16, 16], strides = [1, 1, 1]} : vector<1x16x32xf32> to vector<1x16x16xf32>
    %85 = arith.truncf %84 : vector<1x16x16xf32> to vector<1x16x16xbf16>
    "tpu.trace_start"() <{level = 10 : i32, message = "bqd,bkd->bqk"}> : () -> ()
    %cst_52 = arith.constant dense<0.000000e+00> : vector<1x8x16xf32>
    %86 = tpu.matmul %83, %85, %cst_52 {dimension_numbers = #tpu.dot_dimension_numbers<[2], [2], [1], [1], [0, 0, 0, 1, 1, 1], [0], [0]>} : vector<1x8x16xbf16>, vector<1x16x16xbf16>, vector<1x8x16xf32> -> vector<1x8x16xf32>
    "tpu.trace_stop"() : () -> ()
    %cst_53 = arith.constant 2.500000e-01 : f32
    %87 = vector.broadcast %cst_53 : f32 to vector<1x8x16xf32>
    %88 = arith.mulf %86, %87 : vector<1x8x16xf32>
    %89 = arith.addf %88, %20 : vector<1x8x16xf32>
    %cst_54 = arith.constant dense<0xFF800000> : vector<1x8xf32>
    %90 = vector.multi_reduction <maximumf>, %89, %cst_54 [2] : vector<1x8x16xf32> to vector<1x8xf32>
    %91 = vector.shape_cast %90 : vector<1x8xf32> to vector<1x8x1xf32>
    %92 = vector.broadcast %91 : vector<1x8x1xf32> to vector<1x8x16xf32>
    %93 = arith.subf %89, %92 : vector<1x8x16xf32>
    %94 = math.exp %93 : vector<1x8x16xf32>
    %cst_55 = arith.constant dense<0.000000e+00> : vector<1x8xf32>
    %95 = vector.multi_reduction <add>, %94, %cst_55 [2] : vector<1x8x16xf32> to vector<1x8xf32>
    %96 = vector.shape_cast %95 : vector<1x8xf32> to vector<1x8x1xf32>
    %97 = vector.broadcast %96 : vector<1x8x1xf32> to vector<1x8x16xf32>
    %98 = arith.divf %94, %97 : vector<1x8x16xf32>
    %99 = arith.truncf %98 : vector<1x8x16xf32> to vector<1x8x16xbf16>
    %100 = vector.extract_strided_slice %81 {offsets = [0, 0, 0], sizes = [1, 16, 16], strides = [1, 1, 1]} : vector<1x16x32xf32> to vector<1x16x16xf32>
    %101 = arith.truncf %100 : vector<1x16x16xf32> to vector<1x16x16xbf16>
    "tpu.trace_start"() <{level = 10 : i32, message = "bqk,bkd->bqd"}> : () -> ()
    %cst_56 = arith.constant dense<0.000000e+00> : vector<1x8x16xf32>
    %102 = tpu.matmul %99, %101, %cst_56 {dimension_numbers = #tpu.dot_dimension_numbers<[2], [1], [1], [2], [0, 0, 0, 1, 1, 2], [0], [0]>} : vector<1x8x16xbf16>, vector<1x16x16xbf16>, vector<1x8x16xf32> -> vector<1x8x16xf32>
    "tpu.trace_stop"() : () -> ()
    %103 = vector.extract_strided_slice %82 {offsets = [0, 0, 16], sizes = [1, 8, 16], strides = [1, 1, 1]} : vector<1x8x32xbf16> to vector<1x8x16xbf16>
    %104 = vector.extract_strided_slice %79 {offsets = [0, 0, 16], sizes = [1, 16, 16], strides = [1, 1, 1]} : vector<1x16x32xf32> to vector<1x16x16xf32>
    %105 = arith.truncf %104 : vector<1x16x16xf32> to vector<1x16x16xbf16>
    "tpu.trace_start"() <{level = 10 : i32, message = "bqd,bkd->bqk"}> : () -> ()
    %cst_57 = arith.constant dense<0.000000e+00> : vector<1x8x16xf32>
    %106 = tpu.matmul %103, %105, %cst_57 {dimension_numbers = #tpu.dot_dimension_numbers<[2], [2], [1], [1], [0, 0, 0, 1, 1, 1], [0], [0]>} : vector<1x8x16xbf16>, vector<1x16x16xbf16>, vector<1x8x16xf32> -> vector<1x8x16xf32>
    "tpu.trace_stop"() : () -> ()
    %cst_58 = arith.constant 2.500000e-01 : f32
    %107 = vector.broadcast %cst_58 : f32 to vector<1x8x16xf32>
    %108 = arith.mulf %106, %107 : vector<1x8x16xf32>
    %109 = arith.addf %108, %20 : vector<1x8x16xf32>
    %cst_59 = arith.constant dense<0xFF800000> : vector<1x8xf32>
    %110 = vector.multi_reduction <maximumf>, %109, %cst_59 [2] : vector<1x8x16xf32> to vector<1x8xf32>
    %111 = vector.shape_cast %110 : vector<1x8xf32> to vector<1x8x1xf32>
    %112 = vector.broadcast %111 : vector<1x8x1xf32> to vector<1x8x16xf32>
    %113 = arith.subf %109, %112 : vector<1x8x16xf32>
    %114 = math.exp %113 : vector<1x8x16xf32>
    %cst_60 = arith.constant dense<0.000000e+00> : vector<1x8xf32>
    %115 = vector.multi_reduction <add>, %114, %cst_60 [2] : vector<1x8x16xf32> to vector<1x8xf32>
    %116 = vector.shape_cast %115 : vector<1x8xf32> to vector<1x8x1xf32>
    %117 = vector.broadcast %116 : vector<1x8x1xf32> to vector<1x8x16xf32>
    %118 = arith.divf %114, %117 : vector<1x8x16xf32>
    %119 = arith.truncf %118 : vector<1x8x16xf32> to vector<1x8x16xbf16>
    %120 = vector.extract_strided_slice %81 {offsets = [0, 0, 16], sizes = [1, 16, 16], strides = [1, 1, 1]} : vector<1x16x32xf32> to vector<1x16x16xf32>
    %121 = arith.truncf %120 : vector<1x16x16xf32> to vector<1x16x16xbf16>
    "tpu.trace_start"() <{level = 10 : i32, message = "bqk,bkd->bqd"}> : () -> ()
    %cst_61 = arith.constant dense<0.000000e+00> : vector<1x8x16xf32>
    %122 = tpu.matmul %119, %121, %cst_61 {dimension_numbers = #tpu.dot_dimension_numbers<[2], [1], [1], [2], [0, 0, 0, 1, 1, 2], [0], [0]>} : vector<1x8x16xbf16>, vector<1x16x16xbf16>, vector<1x8x16xf32> -> vector<1x8x16xf32>
    "tpu.trace_stop"() : () -> ()
    %123 = tpu.concatenate %102, %122 in 2 : vector<1x8x16xf32>, vector<1x8x16xf32> -> vector<1x8x32xf32>
    %124 = vector.shape_cast %123 : vector<1x8x32xf32> to vector<8x32xf32>
    %125 = arith.truncf %124 : vector<8x32xf32> to vector<8x32xbf16>
    %c0_62 = arith.constant 0 : index
    %c0_63 = arith.constant 0 : index
    %c0_64 = arith.constant 0 : index
    %126 = vector.load %arg7[%c0_62, %c0_63, %c0_64] : memref<2x32x32xbf16, #tpu.memory_space<vmem>>, vector<1x32x32xbf16>
    %127 = vector.shape_cast %126 : vector<1x32x32xbf16> to vector<32x32xbf16>
    %cst_65 = arith.constant dense<0.000000e+00> : vector<8x32xf32>
    %128 = tpu.matmul %125, %127, %cst_65 {dimension_numbers = #tpu.dot_dimension_numbers<[1], [0], [0], [1], [0, 0, 1, 1], [], []>} : vector<8x32xbf16>, vector<32x32xbf16>, vector<8x32xf32> -> vector<8x32xf32>
    %129 = vector.shape_cast %128 : vector<8x32xf32> to vector<1x8x32xf32>
    %130 = arith.addf %6, %129 : vector<1x8x32xf32>
    %c0_66 = arith.constant 0 : index
    %c0_67 = arith.constant 0 : index
    %c0_68 = arith.constant 0 : index
    %131 = vector.load %arg8[%c0_66, %c0_67, %c0_68] : memref<2x1x32xbf16, #tpu.memory_space<vmem>>, vector<1x1x32xbf16>
    %132 = vector.shape_cast %131 : vector<1x1x32xbf16> to vector<1x32xbf16>
    %133 = arith.mulf %130, %130 : vector<1x8x32xf32>
    %cst_69 = arith.constant dense<0.000000e+00> : vector<1x8xf32>
    %134 = vector.multi_reduction <add>, %133, %cst_69 [2] : vector<1x8x32xf32> to vector<1x8xf32>
    %135 = vector.shape_cast %134 : vector<1x8xf32> to vector<1x8x1xf32>
    %cst_70 = arith.constant 3.200000e+01 : f32
    %136 = vector.broadcast %cst_70 : f32 to vector<1x8x1xf32>
    %137 = arith.divf %135, %136 : vector<1x8x1xf32>
    %cst_71 = arith.constant 9.99999997E-7 : f32
    %138 = vector.broadcast %cst_71 : f32 to vector<1x8x1xf32>
    %139 = arith.addf %137, %138 : vector<1x8x1xf32>
    %140 = math.rsqrt %139 : vector<1x8x1xf32>
    %141 = vector.broadcast %140 : vector<1x8x1xf32> to vector<1x8x32xf32>
    %142 = arith.mulf %130, %141 : vector<1x8x32xf32>
    %143 = arith.extf %132 : vector<1x32xbf16> to vector<1x32xf32>
    %144 = vector.shape_cast %143 : vector<1x32xf32> to vector<1x1x32xf32>
    %145 = vector.broadcast %144 : vector<1x1x32xf32> to vector<1x8x32xf32>
    %146 = arith.mulf %142, %145 : vector<1x8x32xf32>
    %147 = vector.shape_cast %146 : vector<1x8x32xf32> to vector<8x32xf32>
    %148 = arith.truncf %147 : vector<8x32xf32> to vector<8x32xbf16>
    %c0_72 = arith.constant 0 : index
    %c0_73 = arith.constant 0 : index
    %c0_74 = arith.constant 0 : index
    %149 = vector.load %arg9[%c0_72, %c0_73, %c0_74] : memref<2x32x128xbf16, #tpu.memory_space<vmem>>, vector<1x32x128xbf16>
    %150 = vector.shape_cast %149 : vector<1x32x128xbf16> to vector<32x128xbf16>
    %cst_75 = arith.constant dense<0.000000e+00> : vector<8x128xf32>
    %151 = tpu.matmul %148, %150, %cst_75 {dimension_numbers = #tpu.dot_dimension_numbers<[1], [0], [0], [1], [0, 0, 1, 1], [], []>} : vector<8x32xbf16>, vector<32x128xbf16>, vector<8x128xf32> -> vector<8x128xf32>
    %152 = vector.extract_strided_slice %151 {offsets = [0, 0], sizes = [8, 64], strides = [1, 1]} : vector<8x128xf32> to vector<8x64xf32>
    %153 = vector.extract_strided_slice %151 {offsets = [0, 64], sizes = [8, 64], strides = [1, 1]} : vector<8x128xf32> to vector<8x64xf32>
    %cst_76 = arith.constant 0.000000e+00 : f32
    %154 = vector.broadcast %cst_76 : f32 to vector<8x64xf32>
    %155 = arith.subf %154, %152 : vector<8x64xf32>
    %156 = math.exp %155 : vector<8x64xf32>
    %cst_77 = arith.constant 1.000000e+00 : f32
    %157 = vector.broadcast %cst_77 : f32 to vector<8x64xf32>
    %158 = arith.addf %157, %156 : vector<8x64xf32>
    %159 = arith.divf %152, %158 : vector<8x64xf32>
    %160 = arith.mulf %159, %153 : vector<8x64xf32>
    %161 = arith.truncf %160 : vector<8x64xf32> to vector<8x64xbf16>
    %c0_78 = arith.constant 0 : index
    %c0_79 = arith.constant 0 : index
    %c0_80 = arith.constant 0 : index
    %162 = vector.load %arg10[%c0_78, %c0_79, %c0_80] : memref<2x64x32xbf16, #tpu.memory_space<vmem>>, vector<1x64x32xbf16>
    %163 = vector.shape_cast %162 : vector<1x64x32xbf16> to vector<64x32xbf16>
    %cst_81 = arith.constant dense<0.000000e+00> : vector<8x32xf32>
    %164 = tpu.matmul %161, %163, %cst_81 {dimension_numbers = #tpu.dot_dimension_numbers<[1], [0], [0], [1], [0, 0, 1, 1], [], []>} : vector<8x64xbf16>, vector<64x32xbf16>, vector<8x32xf32> -> vector<8x32xf32>
    %165 = vector.shape_cast %164 : vector<8x32xf32> to vector<1x8x32xf32>
    %166 = arith.addf %130, %165 : vector<1x8x32xf32>
    %c1 = arith.constant 1 : index
    %c0_82 = arith.constant 0 : index
    %c0_83 = arith.constant 0 : index
    %167 = vector.load %arg5[%c1, %c0_82, %c0_83] : memref<2x1x32xbf16, #tpu.memory_space<vmem>>, vector<1x1x32xbf16>
    %168 = vector.shape_cast %167 : vector<1x1x32xbf16> to vector<1x32xbf16>
    %169 = arith.mulf %166, %166 : vector<1x8x32xf32>
    %cst_84 = arith.constant dense<0.000000e+00> : vector<1x8xf32>
    %170 = vector.multi_reduction <add>, %169, %cst_84 [2] : vector<1x8x32xf32> to vector<1x8xf32>
    %171 = vector.shape_cast %170 : vector<1x8xf32> to vector<1x8x1xf32>
    %cst_85 = arith.constant 3.200000e+01 : f32
    %172 = vector.broadcast %cst_85 : f32 to vector<1x8x1xf32>
    %173 = arith.divf %171, %172 : vector<1x8x1xf32>
    %cst_86 = arith.constant 9.99999997E-7 : f32
    %174 = vector.broadcast %cst_86 : f32 to vector<1x8x1xf32>
    %175 = arith.addf %173, %174 : vector<1x8x1xf32>
    %176 = math.rsqrt %175 : vector<1x8x1xf32>
    %177 = vector.broadcast %176 : vector<1x8x1xf32> to vector<1x8x32xf32>
    %178 = arith.mulf %166, %177 : vector<1x8x32xf32>
    %179 = arith.extf %168 : vector<1x32xbf16> to vector<1x32xf32>
    %180 = vector.shape_cast %179 : vector<1x32xf32> to vector<1x1x32xf32>
    %181 = vector.broadcast %180 : vector<1x1x32xf32> to vector<1x8x32xf32>
    %182 = arith.mulf %178, %181 : vector<1x8x32xf32>
    %183 = vector.shape_cast %182 : vector<1x8x32xf32> to vector<8x32xf32>
    %184 = arith.truncf %183 : vector<8x32xf32> to vector<8x32xbf16>
    %c1_87 = arith.constant 1 : index
    %c0_88 = arith.constant 0 : index
    %c0_89 = arith.constant 0 : index
    %185 = vector.load %arg6[%c1_87, %c0_88, %c0_89] : memref<2x32x96xbf16, #tpu.memory_space<vmem>>, vector<1x32x96xbf16>
    %186 = vector.shape_cast %185 : vector<1x32x96xbf16> to vector<32x96xbf16>
    %cst_90 = arith.constant dense<0.000000e+00> : vector<8x96xf32>
    %187 = tpu.matmul %184, %186, %cst_90 {dimension_numbers = #tpu.dot_dimension_numbers<[1], [0], [0], [1], [0, 0, 1, 1], [], []>} : vector<8x32xbf16>, vector<32x96xbf16>, vector<8x96xf32> -> vector<8x96xf32>
    %188 = vector.extract_strided_slice %187 {offsets = [0, 0], sizes = [8, 32], strides = [1, 1]} : vector<8x96xf32> to vector<8x32xf32>
    %189 = vector.shape_cast %188 : vector<8x32xf32> to vector<1x8x32xf32>
    %190 = vector.extract_strided_slice %187 {offsets = [0, 32], sizes = [8, 32], strides = [1, 1]} : vector<8x96xf32> to vector<8x32xf32>
    %191 = vector.shape_cast %190 : vector<8x32xf32> to vector<1x8x32xf32>
    %192 = vector.extract_strided_slice %187 {offsets = [0, 64], sizes = [8, 32], strides = [1, 1]} : vector<8x96xf32> to vector<8x32xf32>
    %193 = vector.shape_cast %192 : vector<8x32xf32> to vector<1x8x32xf32>
    %194 = arith.mulf %189, %9 : vector<1x8x32xf32>
    %195 = vector.extract_strided_slice %189 {offsets = [0, 0, 8], sizes = [1, 8, 8], strides = [1, 1, 1]} : vector<1x8x32xf32> to vector<1x8x8xf32>
    %cst_91 = arith.constant 0.000000e+00 : f32
    %196 = vector.broadcast %cst_91 : f32 to vector<1x8x8xf32>
    %197 = arith.subf %196, %195 : vector<1x8x8xf32>
    %198 = vector.extract_strided_slice %189 {offsets = [0, 0, 0], sizes = [1, 8, 8], strides = [1, 1, 1]} : vector<1x8x32xf32> to vector<1x8x8xf32>
    %199 = vector.extract_strided_slice %189 {offsets = [0, 0, 24], sizes = [1, 8, 8], strides = [1, 1, 1]} : vector<1x8x32xf32> to vector<1x8x8xf32>
    %cst_92 = arith.constant 0.000000e+00 : f32
    %200 = vector.broadcast %cst_92 : f32 to vector<1x8x8xf32>
    %201 = arith.subf %200, %199 : vector<1x8x8xf32>
    %202 = vector.extract_strided_slice %189 {offsets = [0, 0, 16], sizes = [1, 8, 8], strides = [1, 1, 1]} : vector<1x8x32xf32> to vector<1x8x8xf32>
    %203 = tpu.concatenate %197, %198, %201, %202 in 2 : vector<1x8x8xf32>, vector<1x8x8xf32>, vector<1x8x8xf32>, vector<1x8x8xf32> -> vector<1x8x32xf32>
    %204 = arith.mulf %203, %10 : vector<1x8x32xf32>
    %205 = arith.addf %194, %204 : vector<1x8x32xf32>
    %206 = arith.mulf %191, %9 : vector<1x8x32xf32>
    %207 = vector.extract_strided_slice %191 {offsets = [0, 0, 8], sizes = [1, 8, 8], strides = [1, 1, 1]} : vector<1x8x32xf32> to vector<1x8x8xf32>
    %cst_93 = arith.constant 0.000000e+00 : f32
    %208 = vector.broadcast %cst_93 : f32 to vector<1x8x8xf32>
    %209 = arith.subf %208, %207 : vector<1x8x8xf32>
    %210 = vector.extract_strided_slice %191 {offsets = [0, 0, 0], sizes = [1, 8, 8], strides = [1, 1, 1]} : vector<1x8x32xf32> to vector<1x8x8xf32>
    %211 = vector.extract_strided_slice %191 {offsets = [0, 0, 24], sizes = [1, 8, 8], strides = [1, 1, 1]} : vector<1x8x32xf32> to vector<1x8x8xf32>
    %cst_94 = arith.constant 0.000000e+00 : f32
    %212 = vector.broadcast %cst_94 : f32 to vector<1x8x8xf32>
    %213 = arith.subf %212, %211 : vector<1x8x8xf32>
    %214 = vector.extract_strided_slice %191 {offsets = [0, 0, 16], sizes = [1, 8, 8], strides = [1, 1, 1]} : vector<1x8x32xf32> to vector<1x8x8xf32>
    %215 = tpu.concatenate %209, %210, %213, %214 in 2 : vector<1x8x8xf32>, vector<1x8x8xf32>, vector<1x8x8xf32>, vector<1x8x8xf32> -> vector<1x8x32xf32>
    %216 = arith.mulf %215, %10 : vector<1x8x32xf32>
    %217 = arith.addf %206, %216 : vector<1x8x32xf32>
    %c1_95 = arith.constant 1 : index
    %c0_96 = arith.constant 0 : index
    %c0_97 = arith.constant 0 : index
    %c0_98 = arith.constant 0 : index
    %218 = vector.load %arg13[%c1_95, %c0_96, %c0_97, %c0_98] : memref<2x1x16x32xf32, #tpu.memory_space<vmem>>, vector<1x1x8x32xf32>
    %219 = vector.shape_cast %218 : vector<1x1x8x32xf32> to vector<1x8x32xf32>
    %220 = vector.shape_cast %217 : vector<1x8x32xf32> to vector<1x1x8x32xf32>
    tpu.vector_store %arg13[%c1_95, %c0_96, %c0_97, %c0_98], %220 {strides = array<i32>} : memref<2x1x16x32xf32, #tpu.memory_space<vmem>>, vector<1x1x8x32xf32>,
    %c1_99 = arith.constant 1 : index
    %c0_100 = arith.constant 0 : index
    %c0_101 = arith.constant 0 : index
    %c0_102 = arith.constant 0 : index
    %221 = vector.load %arg14[%c1_99, %c0_100, %c0_101, %c0_102] : memref<2x1x16x32xf32, #tpu.memory_space<vmem>>, vector<1x1x8x32xf32>
    %222 = vector.shape_cast %221 : vector<1x1x8x32xf32> to vector<1x8x32xf32>
    %223 = vector.shape_cast %193 : vector<1x8x32xf32> to vector<1x1x8x32xf32>
    tpu.vector_store %arg14[%c1_99, %c0_100, %c0_101, %c0_102], %223 {strides = array<i32>} : memref<2x1x16x32xf32, #tpu.memory_space<vmem>>, vector<1x1x8x32xf32>,
    %c1_103 = arith.constant 1 : index
    %c0_104 = arith.constant 0 : index
    %c0_105 = arith.constant 0 : index
    %c0_106 = arith.constant 0 : index
    %224 = vector.load %arg13[%c1_103, %c0_104, %c0_105, %c0_106] : memref<2x1x16x32xf32, #tpu.memory_space<vmem>>, vector<1x1x16x32xf32>
    %225 = vector.shape_cast %224 : vector<1x1x16x32xf32> to vector<1x16x32xf32>
    %c1_107 = arith.constant 1 : index
    %c0_108 = arith.constant 0 : index
    %c0_109 = arith.constant 0 : index
    %c0_110 = arith.constant 0 : index
    %226 = vector.load %arg14[%c1_107, %c0_108, %c0_109, %c0_110] : memref<2x1x16x32xf32, #tpu.memory_space<vmem>>, vector<1x1x16x32xf32>
    %227 = vector.shape_cast %226 : vector<1x1x16x32xf32> to vector<1x16x32xf32>
    %228 = arith.truncf %205 : vector<1x8x32xf32> to vector<1x8x32xbf16>
    %229 = vector.extract_strided_slice %228 {offsets = [0, 0, 0], sizes = [1, 8, 16], strides = [1, 1, 1]} : vector<1x8x32xbf16> to vector<1x8x16xbf16>
    %230 = vector.extract_strided_slice %225 {offsets = [0, 0, 0], sizes = [1, 16, 16], strides = [1, 1, 1]} : vector<1x16x32xf32> to vector<1x16x16xf32>
    %231 = arith.truncf %230 : vector<1x16x16xf32> to vector<1x16x16xbf16>
    "tpu.trace_start"() <{level = 10 : i32, message = "bqd,bkd->bqk"}> : () -> ()
    %cst_111 = arith.constant dense<0.000000e+00> : vector<1x8x16xf32>
    %232 = tpu.matmul %229, %231, %cst_111 {dimension_numbers = #tpu.dot_dimension_numbers<[2], [2], [1], [1], [0, 0, 0, 1, 1, 1], [0], [0]>} : vector<1x8x16xbf16>, vector<1x16x16xbf16>, vector<1x8x16xf32> -> vector<1x8x16xf32>
    "tpu.trace_stop"() : () -> ()
    %cst_112 = arith.constant 2.500000e-01 : f32
    %233 = vector.broadcast %cst_112 : f32 to vector<1x8x16xf32>
    %234 = arith.mulf %232, %233 : vector<1x8x16xf32>
    %235 = arith.addf %234, %20 : vector<1x8x16xf32>
    %cst_113 = arith.constant dense<0xFF800000> : vector<1x8xf32>
    %236 = vector.multi_reduction <maximumf>, %235, %cst_113 [2] : vector<1x8x16xf32> to vector<1x8xf32>
    %237 = vector.shape_cast %236 : vector<1x8xf32> to vector<1x8x1xf32>
    %238 = vector.broadcast %237 : vector<1x8x1xf32> to vector<1x8x16xf32>
    %239 = arith.subf %235, %238 : vector<1x8x16xf32>
    %240 = math.exp %239 : vector<1x8x16xf32>
    %cst_114 = arith.constant dense<0.000000e+00> : vector<1x8xf32>
    %241 = vector.multi_reduction <add>, %240, %cst_114 [2] : vector<1x8x16xf32> to vector<1x8xf32>
    %242 = vector.shape_cast %241 : vector<1x8xf32> to vector<1x8x1xf32>
    %243 = vector.broadcast %242 : vector<1x8x1xf32> to vector<1x8x16xf32>
    %244 = arith.divf %240, %243 : vector<1x8x16xf32>
    %245 = arith.truncf %244 : vector<1x8x16xf32> to vector<1x8x16xbf16>
    %246 = vector.extract_strided_slice %227 {offsets = [0, 0, 0], sizes = [1, 16, 16], strides = [1, 1, 1]} : vector<1x16x32xf32> to vector<1x16x16xf32>
    %247 = arith.truncf %246 : vector<1x16x16xf32> to vector<1x16x16xbf16>
    "tpu.trace_start"() <{level = 10 : i32, message = "bqk,bkd->bqd"}> : () -> ()
    %cst_115 = arith.constant dense<0.000000e+00> : vector<1x8x16xf32>
    %248 = tpu.matmul %245, %247, %cst_115 {dimension_numbers = #tpu.dot_dimension_numbers<[2], [1], [1], [2], [0, 0, 0, 1, 1, 2], [0], [0]>} : vector<1x8x16xbf16>, vector<1x16x16xbf16>, vector<1x8x16xf32> -> vector<1x8x16xf32>
    "tpu.trace_stop"() : () -> ()
    %249 = vector.extract_strided_slice %228 {offsets = [0, 0, 16], sizes = [1, 8, 16], strides = [1, 1, 1]} : vector<1x8x32xbf16> to vector<1x8x16xbf16>
    %250 = vector.extract_strided_slice %225 {offsets = [0, 0, 16], sizes = [1, 16, 16], strides = [1, 1, 1]} : vector<1x16x32xf32> to vector<1x16x16xf32>
    %251 = arith.truncf %250 : vector<1x16x16xf32> to vector<1x16x16xbf16>
    "tpu.trace_start"() <{level = 10 : i32, message = "bqd,bkd->bqk"}> : () -> ()
    %cst_116 = arith.constant dense<0.000000e+00> : vector<1x8x16xf32>
    %252 = tpu.matmul %249, %251, %cst_116 {dimension_numbers = #tpu.dot_dimension_numbers<[2], [2], [1], [1], [0, 0, 0, 1, 1, 1], [0], [0]>} : vector<1x8x16xbf16>, vector<1x16x16xbf16>, vector<1x8x16xf32> -> vector<1x8x16xf32>
    "tpu.trace_stop"() : () -> ()
    %cst_117 = arith.constant 2.500000e-01 : f32
    %253 = vector.broadcast %cst_117 : f32 to vector<1x8x16xf32>
    %254 = arith.mulf %252, %253 : vector<1x8x16xf32>
    %255 = arith.addf %254, %20 : vector<1x8x16xf32>
    %cst_118 = arith.constant dense<0xFF800000> : vector<1x8xf32>
    %256 = vector.multi_reduction <maximumf>, %255, %cst_118 [2] : vector<1x8x16xf32> to vector<1x8xf32>
    %257 = vector.shape_cast %256 : vector<1x8xf32> to vector<1x8x1xf32>
    %258 = vector.broadcast %257 : vector<1x8x1xf32> to vector<1x8x16xf32>
    %259 = arith.subf %255, %258 : vector<1x8x16xf32>
    %260 = math.exp %259 : vector<1x8x16xf32>
    %cst_119 = arith.constant dense<0.000000e+00> : vector<1x8xf32>
    %261 = vector.multi_reduction <add>, %260, %cst_119 [2] : vector<1x8x16xf32> to vector<1x8xf32>
    %262 = vector.shape_cast %261 : vector<1x8xf32> to vector<1x8x1xf32>
    %263 = vector.broadcast %262 : vector<1x8x1xf32> to vector<1x8x16xf32>
    %264 = arith.divf %260, %263 : vector<1x8x16xf32>
    %265 = arith.truncf %264 : vector<1x8x16xf32> to vector<1x8x16xbf16>
    %266 = vector.extract_strided_slice %227 {offsets = [0, 0, 16], sizes = [1, 16, 16], strides = [1, 1, 1]} : vector<1x16x32xf32> to vector<1x16x16xf32>
    %267 = arith.truncf %266 : vector<1x16x16xf32> to vector<1x16x16xbf16>
    "tpu.trace_start"() <{level = 10 : i32, message = "bqk,bkd->bqd"}> : () -> ()
    %cst_120 = arith.constant dense<0.000000e+00> : vector<1x8x16xf32>
    %268 = tpu.matmul %265, %267, %cst_120 {dimension_numbers = #tpu.dot_dimension_numbers<[2], [1], [1], [2], [0, 0, 0, 1, 1, 2], [0], [0]>} : vector<1x8x16xbf16>, vector<1x16x16xbf16>, vector<1x8x16xf32> -> vector<1x8x16xf32>
    "tpu.trace_stop"() : () -> ()
    %269 = tpu.concatenate %248, %268 in 2 : vector<1x8x16xf32>, vector<1x8x16xf32> -> vector<1x8x32xf32>
    %270 = vector.shape_cast %269 : vector<1x8x32xf32> to vector<8x32xf32>
    %271 = arith.truncf %270 : vector<8x32xf32> to vector<8x32xbf16>
    %c1_121 = arith.constant 1 : index
    %c0_122 = arith.constant 0 : index
    %c0_123 = arith.constant 0 : index
    %272 = vector.load %arg7[%c1_121, %c0_122, %c0_123] : memref<2x32x32xbf16, #tpu.memory_space<vmem>>, vector<1x32x32xbf16>
    %273 = vector.shape_cast %272 : vector<1x32x32xbf16> to vector<32x32xbf16>
    %cst_124 = arith.constant dense<0.000000e+00> : vector<8x32xf32>
    %274 = tpu.matmul %271, %273, %cst_124 {dimension_numbers = #tpu.dot_dimension_numbers<[1], [0], [0], [1], [0, 0, 1, 1], [], []>} : vector<8x32xbf16>, vector<32x32xbf16>, vector<8x32xf32> -> vector<8x32xf32>
    %275 = vector.shape_cast %274 : vector<8x32xf32> to vector<1x8x32xf32>
    %276 = arith.addf %166, %275 : vector<1x8x32xf32>
    %c1_125 = arith.constant 1 : index
    %c0_126 = arith.constant 0 : index
    %c0_127 = arith.constant 0 : index
    %277 = vector.load %arg8[%c1_125, %c0_126, %c0_127] : memref<2x1x32xbf16, #tpu.memory_space<vmem>>, vector<1x1x32xbf16>
    %278 = vector.shape_cast %277 : vector<1x1x32xbf16> to vector<1x32xbf16>
    %279 = arith.mulf %276, %276 : vector<1x8x32xf32>
    %cst_128 = arith.constant dense<0.000000e+00> : vector<1x8xf32>
    %280 = vector.multi_reduction <add>, %279, %cst_128 [2] : vector<1x8x32xf32> to vector<1x8xf32>
    %281 = vector.shape_cast %280 : vector<1x8xf32> to vector<1x8x1xf32>
    %cst_129 = arith.constant 3.200000e+01 : f32
    %282 = vector.broadcast %cst_129 : f32 to vector<1x8x1xf32>
    %283 = arith.divf %281, %282 : vector<1x8x1xf32>
    %cst_130 = arith.constant 9.99999997E-7 : f32
    %284 = vector.broadcast %cst_130 : f32 to vector<1x8x1xf32>
    %285 = arith.addf %283, %284 : vector<1x8x1xf32>
    %286 = math.rsqrt %285 : vector<1x8x1xf32>
    %287 = vector.broadcast %286 : vector<1x8x1xf32> to vector<1x8x32xf32>
    %288 = arith.mulf %276, %287 : vector<1x8x32xf32>
    %289 = arith.extf %278 : vector<1x32xbf16> to vector<1x32xf32>
    %290 = vector.shape_cast %289 : vector<1x32xf32> to vector<1x1x32xf32>
    %291 = vector.broadcast %290 : vector<1x1x32xf32> to vector<1x8x32xf32>
    %292 = arith.mulf %288, %291 : vector<1x8x32xf32>
    %293 = vector.shape_cast %292 : vector<1x8x32xf32> to vector<8x32xf32>
    %294 = arith.truncf %293 : vector<8x32xf32> to vector<8x32xbf16>
    %c1_131 = arith.constant 1 : index
    %c0_132 = arith.constant 0 : index
    %c0_133 = arith.constant 0 : index
    %295 = vector.load %arg9[%c1_131, %c0_132, %c0_133] : memref<2x32x128xbf16, #tpu.memory_space<vmem>>, vector<1x32x128xbf16>
    %296 = vector.shape_cast %295 : vector<1x32x128xbf16> to vector<32x128xbf16>
    %cst_134 = arith.constant dense<0.000000e+00> : vector<8x128xf32>
    %297 = tpu.matmul %294, %296, %cst_134 {dimension_numbers = #tpu.dot_dimension_numbers<[1], [0], [0], [1], [0, 0, 1, 1], [], []>} : vector<8x32xbf16>, vector<32x128xbf16>, vector<8x128xf32> -> vector<8x128xf32>
    %298 = vector.extract_strided_slice %297 {offsets = [0, 0], sizes = [8, 64], strides = [1, 1]} : vector<8x128xf32> to vector<8x64xf32>
    %299 = vector.extract_strided_slice %297 {offsets = [0, 64], sizes = [8, 64], strides = [1, 1]} : vector<8x128xf32> to vector<8x64xf32>
    %cst_135 = arith.constant 0.000000e+00 : f32
    %300 = vector.broadcast %cst_135 : f32 to vector<8x64xf32>
    %301 = arith.subf %300, %298 : vector<8x64xf32>
    %302 = math.exp %301 : vector<8x64xf32>
    %cst_136 = arith.constant 1.000000e+00 : f32
    %303 = vector.broadcast %cst_136 : f32 to vector<8x64xf32>
    %304 = arith.addf %303, %302 : vector<8x64xf32>
    %305 = arith.divf %298, %304 : vector<8x64xf32>
    %306 = arith.mulf %305, %299 : vector<8x64xf32>
    %307 = arith.truncf %306 : vector<8x64xf32> to vector<8x64xbf16>
    %c1_137 = arith.constant 1 : index
    %c0_138 = arith.constant 0 : index
    %c0_139 = arith.constant 0 : index
    %308 = vector.load %arg10[%c1_137, %c0_138, %c0_139] : memref<2x64x32xbf16, #tpu.memory_space<vmem>>, vector<1x64x32xbf16>
    %309 = vector.shape_cast %308 : vector<1x64x32xbf16> to vector<64x32xbf16>
    %cst_140 = arith.constant dense<0.000000e+00> : vector<8x32xf32>
    %310 = tpu.matmul %307, %309, %cst_140 {dimension_numbers = #tpu.dot_dimension_numbers<[1], [0], [0], [1], [0, 0, 1, 1], [], []>} : vector<8x64xbf16>, vector<64x32xbf16>, vector<8x32xf32> -> vector<8x32xf32>
    %311 = vector.shape_cast %310 : vector<8x32xf32> to vector<1x8x32xf32>
    %312 = arith.addf %276, %311 : vector<1x8x32xf32>
    %c0_141 = arith.constant 0 : index
    %c0_142 = arith.constant 0 : index
    %313 = vector.load %arg11[%c0_141, %c0_142] : memref<1x32xbf16, #tpu.memory_space<vmem>>, vector<1x32xbf16>
    %314 = arith.mulf %312, %312 : vector<1x8x32xf32>
    %cst_143 = arith.constant dense<0.000000e+00> : vector<1x8xf32>
    %315 = vector.multi_reduction <add>, %314, %cst_143 [2] : vector<1x8x32xf32> to vector<1x8xf32>
    %316 = vector.shape_cast %315 : vector<1x8xf32> to vector<1x8x1xf32>
    %cst_144 = arith.constant 3.200000e+01 : f32
    %317 = vector.broadcast %cst_144 : f32 to vector<1x8x1xf32>
    %318 = arith.divf %316, %317 : vector<1x8x1xf32>
    %cst_145 = arith.constant 9.99999997E-7 : f32
    %319 = vector.broadcast %cst_145 : f32 to vector<1x8x1xf32>
    %320 = arith.addf %318, %319 : vector<1x8x1xf32>
    %321 = math.rsqrt %320 : vector<1x8x1xf32>
    %322 = vector.broadcast %321 : vector<1x8x1xf32> to vector<1x8x32xf32>
    %323 = arith.mulf %312, %322 : vector<1x8x32xf32>
    %324 = arith.extf %313 : vector<1x32xbf16> to vector<1x32xf32>
    %325 = vector.shape_cast %324 : vector<1x32xf32> to vector<1x1x32xf32>
    %326 = vector.broadcast %325 : vector<1x1x32xf32> to vector<1x8x32xf32>
    %327 = arith.mulf %323, %326 : vector<1x8x32xf32>
    %328 = vector.extract_strided_slice %327 {offsets = [0, 7, 0], sizes = [1, 1, 32], strides = [1, 1, 1]} : vector<1x8x32xf32> to vector<1x1x32xf32>
    %c0_146 = arith.constant 0 : index
    %c8 = arith.constant 8 : index
    %c0_147 = arith.constant 0 : index
    %329 = vector.load %arg2[%c0_146, %c8, %c0_147] : memref<1x16x16xf32, #tpu.memory_space<vmem>>, vector<1x1x16xf32>
    %c0_148 = arith.constant 0 : index
    %c8_149 = arith.constant 8 : index
    %c0_150 = arith.constant 0 : index
    %330 = vector.load %arg3[%c0_148, %c8_149, %c0_150] : memref<1x16x16xf32, #tpu.memory_space<vmem>>, vector<1x1x16xf32>
    %331 = tpu.concatenate %329, %329 in 2 : vector<1x1x16xf32>, vector<1x1x16xf32> -> vector<1x1x32xf32>
    %332 = tpu.concatenate %330, %330 in 2 : vector<1x1x16xf32>, vector<1x1x16xf32> -> vector<1x1x32xf32>
    %333 = tpu.iota {dimensions = array<i32: 1>} : vector<1x1x16xi32>
    %c8_i32 = arith.constant 8 : i32
    %334 = vector.broadcast %c8_i32 : i32 to vector<1x1x16xi32>
    %335 = arith.addi %334, %333 : vector<1x1x16xi32>
    %336 = tpu.iota {dimensions = array<i32: 2>} : vector<1x1x16xi32>
    %337 = arith.cmpi sle, %336, %335 : vector<1x1x16xi32>
    %cst_151 = arith.constant 0.000000e+00 : f32
    %cst_152 = arith.constant -1.000000e+30 : f32
    %338 = vector.broadcast %cst_151 : f32 to vector<1x1x16xf32>
    %339 = vector.broadcast %cst_152 : f32 to vector<1x1x16xf32>
    %340 = arith.select %337, %338, %339 : vector<1x1x16xi1>, vector<1x1x16xf32>
    %341 = arith.addf %340, %4 : vector<1x1x16xf32>
    %c0_153 = arith.constant 0 : index
    %c0_154 = arith.constant 0 : index
    %c0_155 = arith.constant 0 : index
    %342 = vector.load %arg5[%c0_153, %c0_154, %c0_155] : memref<2x1x32xbf16, #tpu.memory_space<vmem>>, vector<1x1x32xbf16>
    %343 = vector.shape_cast %342 : vector<1x1x32xbf16> to vector<1x32xbf16>
    %344 = arith.mulf %328, %328 : vector<1x1x32xf32>
    %cst_156 = arith.constant dense<0.000000e+00> : vector<1x1xf32>
    %345 = vector.multi_reduction <add>, %344, %cst_156 [2] : vector<1x1x32xf32> to vector<1x1xf32>
    %346 = vector.shape_cast %345 : vector<1x1xf32> to vector<1x1x1xf32>
    %cst_157 = arith.constant 3.200000e+01 : f32
    %347 = vector.broadcast %cst_157 : f32 to vector<1x1x1xf32>
    %348 = arith.divf %346, %347 : vector<1x1x1xf32>
    %cst_158 = arith.constant 9.99999997E-7 : f32
    %349 = vector.broadcast %cst_158 : f32 to vector<1x1x1xf32>
    %350 = arith.addf %348, %349 : vector<1x1x1xf32>
    %351 = math.rsqrt %350 : vector<1x1x1xf32>
    %352 = vector.broadcast %351 : vector<1x1x1xf32> to vector<1x1x32xf32>
    %353 = arith.mulf %328, %352 : vector<1x1x32xf32>
    %354 = arith.extf %343 : vector<1x32xbf16> to vector<1x32xf32>
    %355 = vector.shape_cast %354 : vector<1x32xf32> to vector<1x1x32xf32>
    %356 = arith.mulf %353, %355 : vector<1x1x32xf32>
    %357 = vector.shape_cast %356 : vector<1x1x32xf32> to vector<1x32xf32>
    %358 = arith.truncf %357 : vector<1x32xf32> to vector<1x32xbf16>
    %c0_159 = arith.constant 0 : index
    %c0_160 = arith.constant 0 : index
    %c0_161 = arith.constant 0 : index
    %359 = vector.load %arg6[%c0_159, %c0_160, %c0_161] : memref<2x32x96xbf16, #tpu.memory_space<vmem>>, vector<1x32x96xbf16>
    %360 = vector.shape_cast %359 : vector<1x32x96xbf16> to vector<32x96xbf16>
    %cst_162 = arith.constant dense<0.000000e+00> : vector<1x96xf32>
    %361 = tpu.matmul %358, %360, %cst_162 {dimension_numbers = #tpu.dot_dimension_numbers<[1], [0], [0], [1], [0, 0, 1, 1], [], []>} : vector<1x32xbf16>, vector<32x96xbf16>, vector<1x96xf32> -> vector<1x96xf32>
    %362 = vector.extract_strided_slice %361 {offsets = [0, 0], sizes = [1, 32], strides = [1, 1]} : vector<1x96xf32> to vector<1x32xf32>
    %363 = vector.shape_cast %362 : vector<1x32xf32> to vector<1x1x32xf32>
    %364 = vector.extract_strided_slice %361 {offsets = [0, 32], sizes = [1, 32], strides = [1, 1]} : vector<1x96xf32> to vector<1x32xf32>
    %365 = vector.shape_cast %364 : vector<1x32xf32> to vector<1x1x32xf32>
    %366 = vector.extract_strided_slice %361 {offsets = [0, 64], sizes = [1, 32], strides = [1, 1]} : vector<1x96xf32> to vector<1x32xf32>
    %367 = vector.shape_cast %366 : vector<1x32xf32> to vector<1x1x32xf32>
    %368 = arith.mulf %363, %331 : vector<1x1x32xf32>
    %369 = vector.extract_strided_slice %363 {offsets = [0, 0, 8], sizes = [1, 1, 8], strides = [1, 1, 1]} : vector<1x1x32xf32> to vector<1x1x8xf32>
    %cst_163 = arith.constant 0.000000e+00 : f32
    %370 = vector.broadcast %cst_163 : f32 to vector<1x1x8xf32>
    %371 = arith.subf %370, %369 : vector<1x1x8xf32>
    %372 = vector.extract_strided_slice %363 {offsets = [0, 0, 0], sizes = [1, 1, 8], strides = [1, 1, 1]} : vector<1x1x32xf32> to vector<1x1x8xf32>
    %373 = vector.extract_strided_slice %363 {offsets = [0, 0, 24], sizes = [1, 1, 8], strides = [1, 1, 1]} : vector<1x1x32xf32> to vector<1x1x8xf32>
    %cst_164 = arith.constant 0.000000e+00 : f32
    %374 = vector.broadcast %cst_164 : f32 to vector<1x1x8xf32>
    %375 = arith.subf %374, %373 : vector<1x1x8xf32>
    %376 = vector.extract_strided_slice %363 {offsets = [0, 0, 16], sizes = [1, 1, 8], strides = [1, 1, 1]} : vector<1x1x32xf32> to vector<1x1x8xf32>
    %377 = tpu.concatenate %371, %372, %375, %376 in 2 : vector<1x1x8xf32>, vector<1x1x8xf32>, vector<1x1x8xf32>, vector<1x1x8xf32> -> vector<1x1x32xf32>
    %378 = arith.mulf %377, %332 : vector<1x1x32xf32>
    %379 = arith.addf %368, %378 : vector<1x1x32xf32>
    %380 = arith.mulf %365, %331 : vector<1x1x32xf32>
    %381 = vector.extract_strided_slice %365 {offsets = [0, 0, 8], sizes = [1, 1, 8], strides = [1, 1, 1]} : vector<1x1x32xf32> to vector<1x1x8xf32>
    %cst_165 = arith.constant 0.000000e+00 : f32
    %382 = vector.broadcast %cst_165 : f32 to vector<1x1x8xf32>
    %383 = arith.subf %382, %381 : vector<1x1x8xf32>
    %384 = vector.extract_strided_slice %365 {offsets = [0, 0, 0], sizes = [1, 1, 8], strides = [1, 1, 1]} : vector<1x1x32xf32> to vector<1x1x8xf32>
    %385 = vector.extract_strided_slice %365 {offsets = [0, 0, 24], sizes = [1, 1, 8], strides = [1, 1, 1]} : vector<1x1x32xf32> to vector<1x1x8xf32>
    %cst_166 = arith.constant 0.000000e+00 : f32
    %386 = vector.broadcast %cst_166 : f32 to vector<1x1x8xf32>
    %387 = arith.subf %386, %385 : vector<1x1x8xf32>
    %388 = vector.extract_strided_slice %365 {offsets = [0, 0, 16], sizes = [1, 1, 8], strides = [1, 1, 1]} : vector<1x1x32xf32> to vector<1x1x8xf32>
    %389 = tpu.concatenate %383, %384, %387, %388 in 2 : vector<1x1x8xf32>, vector<1x1x8xf32>, vector<1x1x8xf32>, vector<1x1x8xf32> -> vector<1x1x32xf32>
    %390 = arith.mulf %389, %332 : vector<1x1x32xf32>
    %391 = arith.addf %380, %390 : vector<1x1x32xf32>
    %c0_167 = arith.constant 0 : index
    %c0_168 = arith.constant 0 : index
    %c8_169 = arith.constant 8 : index
    %c0_170 = arith.constant 0 : index
    %392 = vector.load %arg13[%c0_167, %c0_168, %c8_169, %c0_170] : memref<2x1x16x32xf32, #tpu.memory_space<vmem>>, vector<1x1x1x32xf32>
    %393 = vector.shape_cast %392 : vector<1x1x1x32xf32> to vector<1x1x32xf32>
    %394 = vector.shape_cast %391 : vector<1x1x32xf32> to vector<1x1x1x32xf32>
    tpu.vector_store %arg13[%c0_167, %c0_168, %c8_169, %c0_170], %394 {strides = array<i32>} : memref<2x1x16x32xf32, #tpu.memory_space<vmem>>, vector<1x1x1x32xf32>,
    %c0_171 = arith.constant 0 : index
    %c0_172 = arith.constant 0 : index
    %c8_173 = arith.constant 8 : index
    %c0_174 = arith.constant 0 : index
    %395 = vector.load %arg14[%c0_171, %c0_172, %c8_173, %c0_174] : memref<2x1x16x32xf32, #tpu.memory_space<vmem>>, vector<1x1x1x32xf32>
    %396 = vector.shape_cast %395 : vector<1x1x1x32xf32> to vector<1x1x32xf32>
    %397 = vector.shape_cast %367 : vector<1x1x32xf32> to vector<1x1x1x32xf32>
    tpu.vector_store %arg14[%c0_171, %c0_172, %c8_173, %c0_174], %397 {strides = array<i32>} : memref<2x1x16x32xf32, #tpu.memory_space<vmem>>, vector<1x1x1x32xf32>,
    %c0_175 = arith.constant 0 : index
    %c0_176 = arith.constant 0 : index
    %c0_177 = arith.constant 0 : index
    %c0_178 = arith.constant 0 : index
    %398 = vector.load %arg13[%c0_175, %c0_176, %c0_177, %c0_178] : memref<2x1x16x32xf32, #tpu.memory_space<vmem>>, vector<1x1x16x32xf32>
    %399 = vector.shape_cast %398 : vector<1x1x16x32xf32> to vector<1x16x32xf32>
    %c0_179 = arith.constant 0 : index
    %c0_180 = arith.constant 0 : index
    %c0_181 = arith.constant 0 : index
    %c0_182 = arith.constant 0 : index
    %400 = vector.load %arg14[%c0_179, %c0_180, %c0_181, %c0_182] : memref<2x1x16x32xf32, #tpu.memory_space<vmem>>, vector<1x1x16x32xf32>
    %401 = vector.shape_cast %400 : vector<1x1x16x32xf32> to vector<1x16x32xf32>
    %402 = arith.truncf %379 : vector<1x1x32xf32> to vector<1x1x32xbf16>
    %403 = vector.extract_strided_slice %402 {offsets = [0, 0, 0], sizes = [1, 1, 16], strides = [1, 1, 1]} : vector<1x1x32xbf16> to vector<1x1x16xbf16>
    %404 = vector.extract_strided_slice %399 {offsets = [0, 0, 0], sizes = [1, 16, 16], strides = [1, 1, 1]} : vector<1x16x32xf32> to vector<1x16x16xf32>
    %405 = arith.truncf %404 : vector<1x16x16xf32> to vector<1x16x16xbf16>
    "tpu.trace_start"() <{level = 10 : i32, message = "bqd,bkd->bqk"}> : () -> ()
    %cst_183 = arith.constant dense<0.000000e+00> : vector<1x1x16xf32>
    %406 = tpu.matmul %403, %405, %cst_183 {dimension_numbers = #tpu.dot_dimension_numbers<[2], [2], [1], [1], [0, 0, 0, 1, 1, 1], [0], [0]>} : vector<1x1x16xbf16>, vector<1x16x16xbf16>, vector<1x1x16xf32> -> vector<1x1x16xf32>
    "tpu.trace_stop"() : () -> ()
    %cst_184 = arith.constant 2.500000e-01 : f32
    %407 = vector.broadcast %cst_184 : f32 to vector<1x1x16xf32>
    %408 = arith.mulf %406, %407 : vector<1x1x16xf32>
    %409 = arith.addf %408, %341 : vector<1x1x16xf32>
    %cst_185 = arith.constant dense<0xFF800000> : vector<1x1xf32>
    %410 = vector.multi_reduction <maximumf>, %409, %cst_185 [2] : vector<1x1x16xf32> to vector<1x1xf32>
    %411 = vector.shape_cast %410 : vector<1x1xf32> to vector<1x1x1xf32>
    %412 = vector.broadcast %411 : vector<1x1x1xf32> to vector<1x1x16xf32>
    %413 = arith.subf %409, %412 : vector<1x1x16xf32>
    %414 = math.exp %413 : vector<1x1x16xf32>
    %cst_186 = arith.constant dense<0.000000e+00> : vector<1x1xf32>
    %415 = vector.multi_reduction <add>, %414, %cst_186 [2] : vector<1x1x16xf32> to vector<1x1xf32>
    %416 = vector.shape_cast %415 : vector<1x1xf32> to vector<1x1x1xf32>
    %417 = vector.broadcast %416 : vector<1x1x1xf32> to vector<1x1x16xf32>
    %418 = arith.divf %414, %417 : vector<1x1x16xf32>
    %419 = arith.truncf %418 : vector<1x1x16xf32> to vector<1x1x16xbf16>
    %420 = vector.extract_strided_slice %401 {offsets = [0, 0, 0], sizes = [1, 16, 16], strides = [1, 1, 1]} : vector<1x16x32xf32> to vector<1x16x16xf32>
    %421 = arith.truncf %420 : vector<1x16x16xf32> to vector<1x16x16xbf16>
    "tpu.trace_start"() <{level = 10 : i32, message = "bqk,bkd->bqd"}> : () -> ()
    %cst_187 = arith.constant dense<0.000000e+00> : vector<1x1x16xf32>
    %422 = tpu.matmul %419, %421, %cst_187 {dimension_numbers = #tpu.dot_dimension_numbers<[2], [1], [1], [2], [0, 0, 0, 1, 1, 2], [0], [0]>} : vector<1x1x16xbf16>, vector<1x16x16xbf16>, vector<1x1x16xf32> -> vector<1x1x16xf32>
    "tpu.trace_stop"() : () -> ()
    %423 = vector.extract_strided_slice %402 {offsets = [0, 0, 16], sizes = [1, 1, 16], strides = [1, 1, 1]} : vector<1x1x32xbf16> to vector<1x1x16xbf16>
    %424 = vector.extract_strided_slice %399 {offsets = [0, 0, 16], sizes = [1, 16, 16], strides = [1, 1, 1]} : vector<1x16x32xf32> to vector<1x16x16xf32>
    %425 = arith.truncf %424 : vector<1x16x16xf32> to vector<1x16x16xbf16>
    "tpu.trace_start"() <{level = 10 : i32, message = "bqd,bkd->bqk"}> : () -> ()
    %cst_188 = arith.constant dense<0.000000e+00> : vector<1x1x16xf32>
    %426 = tpu.matmul %423, %425, %cst_188 {dimension_numbers = #tpu.dot_dimension_numbers<[2], [2], [1], [1], [0, 0, 0, 1, 1, 1], [0], [0]>} : vector<1x1x16xbf16>, vector<1x16x16xbf16>, vector<1x1x16xf32> -> vector<1x1x16xf32>
    "tpu.trace_stop"() : () -> ()
    %cst_189 = arith.constant 2.500000e-01 : f32
    %427 = vector.broadcast %cst_189 : f32 to vector<1x1x16xf32>
    %428 = arith.mulf %426, %427 : vector<1x1x16xf32>
    %429 = arith.addf %428, %341 : vector<1x1x16xf32>
    %cst_190 = arith.constant dense<0xFF800000> : vector<1x1xf32>
    %430 = vector.multi_reduction <maximumf>, %429, %cst_190 [2] : vector<1x1x16xf32> to vector<1x1xf32>
    %431 = vector.shape_cast %430 : vector<1x1xf32> to vector<1x1x1xf32>
    %432 = vector.broadcast %431 : vector<1x1x1xf32> to vector<1x1x16xf32>
    %433 = arith.subf %429, %432 : vector<1x1x16xf32>
    %434 = math.exp %433 : vector<1x1x16xf32>
    %cst_191 = arith.constant dense<0.000000e+00> : vector<1x1xf32>
    %435 = vector.multi_reduction <add>, %434, %cst_191 [2] : vector<1x1x16xf32> to vector<1x1xf32>
    %436 = vector.shape_cast %435 : vector<1x1xf32> to vector<1x1x1xf32>
    %437 = vector.broadcast %436 : vector<1x1x1xf32> to vector<1x1x16xf32>
    %438 = arith.divf %434, %437 : vector<1x1x16xf32>
    %439 = arith.truncf %438 : vector<1x1x16xf32> to vector<1x1x16xbf16>
    %440 = vector.extract_strided_slice %401 {offsets = [0, 0, 16], sizes = [1, 16, 16], strides = [1, 1, 1]} : vector<1x16x32xf32> to vector<1x16x16xf32>
    %441 = arith.truncf %440 : vector<1x16x16xf32> to vector<1x16x16xbf16>
    "tpu.trace_start"() <{level = 10 : i32, message = "bqk,bkd->bqd"}> : () -> ()
    %cst_192 = arith.constant dense<0.000000e+00> : vector<1x1x16xf32>
    %442 = tpu.matmul %439, %441, %cst_192 {dimension_numbers = #tpu.dot_dimension_numbers<[2], [1], [1], [2], [0, 0, 0, 1, 1, 2], [0], [0]>} : vector<1x1x16xbf16>, vector<1x16x16xbf16>, vector<1x1x16xf32> -> vector<1x1x16xf32>
    "tpu.trace_stop"() : () -> ()
    %443 = tpu.concatenate %422, %442 in 2 : vector<1x1x16xf32>, vector<1x1x16xf32> -> vector<1x1x32xf32>
    %444 = vector.shape_cast %443 : vector<1x1x32xf32> to vector<1x32xf32>
    %445 = arith.truncf %444 : vector<1x32xf32> to vector<1x32xbf16>
    %c0_193 = arith.constant 0 : index
    %c0_194 = arith.constant 0 : index
    %c0_195 = arith.constant 0 : index
    %446 = vector.load %arg7[%c0_193, %c0_194, %c0_195] : memref<2x32x32xbf16, #tpu.memory_space<vmem>>, vector<1x32x32xbf16>
    %447 = vector.shape_cast %446 : vector<1x32x32xbf16> to vector<32x32xbf16>
    %cst_196 = arith.constant dense<0.000000e+00> : vector<1x32xf32>
    %448 = tpu.matmul %445, %447, %cst_196 {dimension_numbers = #tpu.dot_dimension_numbers<[1], [0], [0], [1], [0, 0, 1, 1], [], []>} : vector<1x32xbf16>, vector<32x32xbf16>, vector<1x32xf32> -> vector<1x32xf32>
    %449 = vector.shape_cast %448 : vector<1x32xf32> to vector<1x1x32xf32>
    %450 = arith.addf %328, %449 : vector<1x1x32xf32>
    %c0_197 = arith.constant 0 : index
    %c0_198 = arith.constant 0 : index
    %c0_199 = arith.constant 0 : index
    %451 = vector.load %arg8[%c0_197, %c0_198, %c0_199] : memref<2x1x32xbf16, #tpu.memory_space<vmem>>, vector<1x1x32xbf16>
    %452 = vector.shape_cast %451 : vector<1x1x32xbf16> to vector<1x32xbf16>
    %453 = arith.mulf %450, %450 : vector<1x1x32xf32>
    %cst_200 = arith.constant dense<0.000000e+00> : vector<1x1xf32>
    %454 = vector.multi_reduction <add>, %453, %cst_200 [2] : vector<1x1x32xf32> to vector<1x1xf32>
    %455 = vector.shape_cast %454 : vector<1x1xf32> to vector<1x1x1xf32>
    %cst_201 = arith.constant 3.200000e+01 : f32
    %456 = vector.broadcast %cst_201 : f32 to vector<1x1x1xf32>
    %457 = arith.divf %455, %456 : vector<1x1x1xf32>
    %cst_202 = arith.constant 9.99999997E-7 : f32
    %458 = vector.broadcast %cst_202 : f32 to vector<1x1x1xf32>
    %459 = arith.addf %457, %458 : vector<1x1x1xf32>
    %460 = math.rsqrt %459 : vector<1x1x1xf32>
    %461 = vector.broadcast %460 : vector<1x1x1xf32> to vector<1x1x32xf32>
    %462 = arith.mulf %450, %461 : vector<1x1x32xf32>
    %463 = arith.extf %452 : vector<1x32xbf16> to vector<1x32xf32>
    %464 = vector.shape_cast %463 : vector<1x32xf32> to vector<1x1x32xf32>
    %465 = arith.mulf %462, %464 : vector<1x1x32xf32>
    %466 = vector.shape_cast %465 : vector<1x1x32xf32> to vector<1x32xf32>
    %467 = arith.truncf %466 : vector<1x32xf32> to vector<1x32xbf16>
    %c0_203 = arith.constant 0 : index
    %c0_204 = arith.constant 0 : index
    %c0_205 = arith.constant 0 : index
    %468 = vector.load %arg9[%c0_203, %c0_204, %c0_205] : memref<2x32x128xbf16, #tpu.memory_space<vmem>>, vector<1x32x128xbf16>
    %469 = vector.shape_cast %468 : vector<1x32x128xbf16> to vector<32x128xbf16>
    %cst_206 = arith.constant dense<0.000000e+00> : vector<1x128xf32>
    %470 = tpu.matmul %467, %469, %cst_206 {dimension_numbers = #tpu.dot_dimension_numbers<[1], [0], [0], [1], [0, 0, 1, 1], [], []>} : vector<1x32xbf16>, vector<32x128xbf16>, vector<1x128xf32> -> vector<1x128xf32>
    %471 = vector.extract_strided_slice %470 {offsets = [0, 0], sizes = [1, 64], strides = [1, 1]} : vector<1x128xf32> to vector<1x64xf32>
    %472 = vector.extract_strided_slice %470 {offsets = [0, 64], sizes = [1, 64], strides = [1, 1]} : vector<1x128xf32> to vector<1x64xf32>
    %cst_207 = arith.constant 0.000000e+00 : f32
    %473 = vector.broadcast %cst_207 : f32 to vector<1x64xf32>
    %474 = arith.subf %473, %471 : vector<1x64xf32>
    %475 = math.exp %474 : vector<1x64xf32>
    %cst_208 = arith.constant 1.000000e+00 : f32
    %476 = vector.broadcast %cst_208 : f32 to vector<1x64xf32>
    %477 = arith.addf %476, %475 : vector<1x64xf32>
    %478 = arith.divf %471, %477 : vector<1x64xf32>
    %479 = arith.mulf %478, %472 : vector<1x64xf32>
    %480 = arith.truncf %479 : vector<1x64xf32> to vector<1x64xbf16>
    %c0_209 = arith.constant 0 : index
    %c0_210 = arith.constant 0 : index
    %c0_211 = arith.constant 0 : index
    %481 = vector.load %arg10[%c0_209, %c0_210, %c0_211] : memref<2x64x32xbf16, #tpu.memory_space<vmem>>, vector<1x64x32xbf16>
    %482 = vector.shape_cast %481 : vector<1x64x32xbf16> to vector<64x32xbf16>
    %cst_212 = arith.constant dense<0.000000e+00> : vector<1x32xf32>
    %483 = tpu.matmul %480, %482, %cst_212 {dimension_numbers = #tpu.dot_dimension_numbers<[1], [0], [0], [1], [0, 0, 1, 1], [], []>} : vector<1x64xbf16>, vector<64x32xbf16>, vector<1x32xf32> -> vector<1x32xf32>
    %484 = vector.shape_cast %483 : vector<1x32xf32> to vector<1x1x32xf32>
    %485 = arith.addf %450, %484 : vector<1x1x32xf32>
    %c1_213 = arith.constant 1 : index
    %c0_214 = arith.constant 0 : index
    %c0_215 = arith.constant 0 : index
    %486 = vector.load %arg5[%c1_213, %c0_214, %c0_215] : memref<2x1x32xbf16, #tpu.memory_space<vmem>>, vector<1x1x32xbf16>
    %487 = vector.shape_cast %486 : vector<1x1x32xbf16> to vector<1x32xbf16>
    %488 = arith.mulf %485, %485 : vector<1x1x32xf32>
    %cst_216 = arith.constant dense<0.000000e+00> : vector<1x1xf32>
    %489 = vector.multi_reduction <add>, %488, %cst_216 [2] : vector<1x1x32xf32> to vector<1x1xf32>
    %490 = vector.shape_cast %489 : vector<1x1xf32> to vector<1x1x1xf32>
    %cst_217 = arith.constant 3.200000e+01 : f32
    %491 = vector.broadcast %cst_217 : f32 to vector<1x1x1xf32>
    %492 = arith.divf %490, %491 : vector<1x1x1xf32>
    %cst_218 = arith.constant 9.99999997E-7 : f32
    %493 = vector.broadcast %cst_218 : f32 to vector<1x1x1xf32>
    %494 = arith.addf %492, %493 : vector<1x1x1xf32>
    %495 = math.rsqrt %494 : vector<1x1x1xf32>
    %496 = vector.broadcast %495 : vector<1x1x1xf32> to vector<1x1x32xf32>
    %497 = arith.mulf %485, %496 : vector<1x1x32xf32>
    %498 = arith.extf %487 : vector<1x32xbf16> to vector<1x32xf32>
    %499 = vector.shape_cast %498 : vector<1x32xf32> to vector<1x1x32xf32>
    %500 = arith.mulf %497, %499 : vector<1x1x32xf32>
    %501 = vector.shape_cast %500 : vector<1x1x32xf32> to vector<1x32xf32>
    %502 = arith.truncf %501 : vector<1x32xf32> to vector<1x32xbf16>
    %c1_219 = arith.constant 1 : index
    %c0_220 = arith.constant 0 : index
    %c0_221 = arith.constant 0 : index
    %503 = vector.load %arg6[%c1_219, %c0_220, %c0_221] : memref<2x32x96xbf16, #tpu.memory_space<vmem>>, vector<1x32x96xbf16>
    %504 = vector.shape_cast %503 : vector<1x32x96xbf16> to vector<32x96xbf16>
    %cst_222 = arith.constant dense<0.000000e+00> : vector<1x96xf32>
    %505 = tpu.matmul %502, %504, %cst_222 {dimension_numbers = #tpu.dot_dimension_numbers<[1], [0], [0], [1], [0, 0, 1, 1], [], []>} : vector<1x32xbf16>, vector<32x96xbf16>, vector<1x96xf32> -> vector<1x96xf32>
    %506 = vector.extract_strided_slice %505 {offsets = [0, 0], sizes = [1, 32], strides = [1, 1]} : vector<1x96xf32> to vector<1x32xf32>
    %507 = vector.shape_cast %506 : vector<1x32xf32> to vector<1x1x32xf32>
    %508 = vector.extract_strided_slice %505 {offsets = [0, 32], sizes = [1, 32], strides = [1, 1]} : vector<1x96xf32> to vector<1x32xf32>
    %509 = vector.shape_cast %508 : vector<1x32xf32> to vector<1x1x32xf32>
    %510 = vector.extract_strided_slice %505 {offsets = [0, 64], sizes = [1, 32], strides = [1, 1]} : vector<1x96xf32> to vector<1x32xf32>
    %511 = vector.shape_cast %510 : vector<1x32xf32> to vector<1x1x32xf32>
    %512 = arith.mulf %507, %331 : vector<1x1x32xf32>
    %513 = vector.extract_strided_slice %507 {offsets = [0, 0, 8], sizes = [1, 1, 8], strides = [1, 1, 1]} : vector<1x1x32xf32> to vector<1x1x8xf32>
    %cst_223 = arith.constant 0.000000e+00 : f32
    %514 = vector.broadcast %cst_223 : f32 to vector<1x1x8xf32>
    %515 = arith.subf %514, %513 : vector<1x1x8xf32>
    %516 = vector.extract_strided_slice %507 {offsets = [0, 0, 0], sizes = [1, 1, 8], strides = [1, 1, 1]} : vector<1x1x32xf32> to vector<1x1x8xf32>
    %517 = vector.extract_strided_slice %507 {offsets = [0, 0, 24], sizes = [1, 1, 8], strides = [1, 1, 1]} : vector<1x1x32xf32> to vector<1x1x8xf32>
    %cst_224 = arith.constant 0.000000e+00 : f32
    %518 = vector.broadcast %cst_224 : f32 to vector<1x1x8xf32>
    %519 = arith.subf %518, %517 : vector<1x1x8xf32>
    %520 = vector.extract_strided_slice %507 {offsets = [0, 0, 16], sizes = [1, 1, 8], strides = [1, 1, 1]} : vector<1x1x32xf32> to vector<1x1x8xf32>
    %521 = tpu.concatenate %515, %516, %519, %520 in 2 : vector<1x1x8xf32>, vector<1x1x8xf32>, vector<1x1x8xf32>, vector<1x1x8xf32> -> vector<1x1x32xf32>
    %522 = arith.mulf %521, %332 : vector<1x1x32xf32>
    %523 = arith.addf %512, %522 : vector<1x1x32xf32>
    %524 = arith.mulf %509, %331 : vector<1x1x32xf32>
    %525 = vector.extract_strided_slice %509 {offsets = [0, 0, 8], sizes = [1, 1, 8], strides = [1, 1, 1]} : vector<1x1x32xf32> to vector<1x1x8xf32>
    %cst_225 = arith.constant 0.000000e+00 : f32
    %526 = vector.broadcast %cst_225 : f32 to vector<1x1x8xf32>
    %527 = arith.subf %526, %525 : vector<1x1x8xf32>
    %528 = vector.extract_strided_slice %509 {offsets = [0, 0, 0], sizes = [1, 1, 8], strides = [1, 1, 1]} : vector<1x1x32xf32> to vector<1x1x8xf32>
    %529 = vector.extract_strided_slice %509 {offsets = [0, 0, 24], sizes = [1, 1, 8], strides = [1, 1, 1]} : vector<1x1x32xf32> to vector<1x1x8xf32>
    %cst_226 = arith.constant 0.000000e+00 : f32
    %530 = vector.broadcast %cst_226 : f32 to vector<1x1x8xf32>
    %531 = arith.subf %530, %529 : vector<1x1x8xf32>
    %532 = vector.extract_strided_slice %509 {offsets = [0, 0, 16], sizes = [1, 1, 8], strides = [1, 1, 1]} : vector<1x1x32xf32> to vector<1x1x8xf32>
    %533 = tpu.concatenate %527, %528, %531, %532 in 2 : vector<1x1x8xf32>, vector<1x1x8xf32>, vector<1x1x8xf32>, vector<1x1x8xf32> -> vector<1x1x32xf32>
    %534 = arith.mulf %533, %332 : vector<1x1x32xf32>
    %535 = arith.addf %524, %534 : vector<1x1x32xf32>
    %c1_227 = arith.constant 1 : index
    %c0_228 = arith.constant 0 : index
    %c8_229 = arith.constant 8 : index
    %c0_230 = arith.constant 0 : index
    %536 = vector.load %arg13[%c1_227, %c0_228, %c8_229, %c0_230] : memref<2x1x16x32xf32, #tpu.memory_space<vmem>>, vector<1x1x1x32xf32>
    %537 = vector.shape_cast %536 : vector<1x1x1x32xf32> to vector<1x1x32xf32>
    %538 = vector.shape_cast %535 : vector<1x1x32xf32> to vector<1x1x1x32xf32>
    tpu.vector_store %arg13[%c1_227, %c0_228, %c8_229, %c0_230], %538 {strides = array<i32>} : memref<2x1x16x32xf32, #tpu.memory_space<vmem>>, vector<1x1x1x32xf32>,
    %c1_231 = arith.constant 1 : index
    %c0_232 = arith.constant 0 : index
    %c8_233 = arith.constant 8 : index
    %c0_234 = arith.constant 0 : index
    %539 = vector.load %arg14[%c1_231, %c0_232, %c8_233, %c0_234] : memref<2x1x16x32xf32, #tpu.memory_space<vmem>>, vector<1x1x1x32xf32>
    %540 = vector.shape_cast %539 : vector<1x1x1x32xf32> to vector<1x1x32xf32>
    %541 = vector.shape_cast %511 : vector<1x1x32xf32> to vector<1x1x1x32xf32>
    tpu.vector_store %arg14[%c1_231, %c0_232, %c8_233, %c0_234], %541 {strides = array<i32>} : memref<2x1x16x32xf32, #tpu.memory_space<vmem>>, vector<1x1x1x32xf32>,
    %c1_235 = arith.constant 1 : index
    %c0_236 = arith.constant 0 : index
    %c0_237 = arith.constant 0 : index
    %c0_238 = arith.constant 0 : index
    %542 = vector.load %arg13[%c1_235, %c0_236, %c0_237, %c0_238] : memref<2x1x16x32xf32, #tpu.memory_space<vmem>>, vector<1x1x16x32xf32>
    %543 = vector.shape_cast %542 : vector<1x1x16x32xf32> to vector<1x16x32xf32>
    %c1_239 = arith.constant 1 : index
    %c0_240 = arith.constant 0 : index
    %c0_241 = arith.constant 0 : index
    %c0_242 = arith.constant 0 : index
    %544 = vector.load %arg14[%c1_239, %c0_240, %c0_241, %c0_242] : memref<2x1x16x32xf32, #tpu.memory_space<vmem>>, vector<1x1x16x32xf32>
    %545 = vector.shape_cast %544 : vector<1x1x16x32xf32> to vector<1x16x32xf32>
    %546 = arith.truncf %523 : vector<1x1x32xf32> to vector<1x1x32xbf16>
    %547 = vector.extract_strided_slice %546 {offsets = [0, 0, 0], sizes = [1, 1, 16], strides = [1, 1, 1]} : vector<1x1x32xbf16> to vector<1x1x16xbf16>
    %548 = vector.extract_strided_slice %543 {offsets = [0, 0, 0], sizes = [1, 16, 16], strides = [1, 1, 1]} : vector<1x16x32xf32> to vector<1x16x16xf32>
    %549 = arith.truncf %548 : vector<1x16x16xf32> to vector<1x16x16xbf16>
    "tpu.trace_start"() <{level = 10 : i32, message = "bqd,bkd->bqk"}> : () -> ()
    %cst_243 = arith.constant dense<0.000000e+00> : vector<1x1x16xf32>
    %550 = tpu.matmul %547, %549, %cst_243 {dimension_numbers = #tpu.dot_dimension_numbers<[2], [2], [1], [1], [0, 0, 0, 1, 1, 1], [0], [0]>} : vector<1x1x16xbf16>, vector<1x16x16xbf16>, vector<1x1x16xf32> -> vector<1x1x16xf32>
    "tpu.trace_stop"() : () -> ()
    %cst_244 = arith.constant 2.500000e-01 : f32
    %551 = vector.broadcast %cst_244 : f32 to vector<1x1x16xf32>
    %552 = arith.mulf %550, %551 : vector<1x1x16xf32>
    %553 = arith.addf %552, %341 : vector<1x1x16xf32>
    %cst_245 = arith.constant dense<0xFF800000> : vector<1x1xf32>
    %554 = vector.multi_reduction <maximumf>, %553, %cst_245 [2] : vector<1x1x16xf32> to vector<1x1xf32>
    %555 = vector.shape_cast %554 : vector<1x1xf32> to vector<1x1x1xf32>
    %556 = vector.broadcast %555 : vector<1x1x1xf32> to vector<1x1x16xf32>
    %557 = arith.subf %553, %556 : vector<1x1x16xf32>
    %558 = math.exp %557 : vector<1x1x16xf32>
    %cst_246 = arith.constant dense<0.000000e+00> : vector<1x1xf32>
    %559 = vector.multi_reduction <add>, %558, %cst_246 [2] : vector<1x1x16xf32> to vector<1x1xf32>
    %560 = vector.shape_cast %559 : vector<1x1xf32> to vector<1x1x1xf32>
    %561 = vector.broadcast %560 : vector<1x1x1xf32> to vector<1x1x16xf32>
    %562 = arith.divf %558, %561 : vector<1x1x16xf32>
    %563 = arith.truncf %562 : vector<1x1x16xf32> to vector<1x1x16xbf16>
    %564 = vector.extract_strided_slice %545 {offsets = [0, 0, 0], sizes = [1, 16, 16], strides = [1, 1, 1]} : vector<1x16x32xf32> to vector<1x16x16xf32>
    %565 = arith.truncf %564 : vector<1x16x16xf32> to vector<1x16x16xbf16>
    "tpu.trace_start"() <{level = 10 : i32, message = "bqk,bkd->bqd"}> : () -> ()
    %cst_247 = arith.constant dense<0.000000e+00> : vector<1x1x16xf32>
    %566 = tpu.matmul %563, %565, %cst_247 {dimension_numbers = #tpu.dot_dimension_numbers<[2], [1], [1], [2], [0, 0, 0, 1, 1, 2], [0], [0]>} : vector<1x1x16xbf16>, vector<1x16x16xbf16>, vector<1x1x16xf32> -> vector<1x1x16xf32>
    "tpu.trace_stop"() : () -> ()
    %567 = vector.extract_strided_slice %546 {offsets = [0, 0, 16], sizes = [1, 1, 16], strides = [1, 1, 1]} : vector<1x1x32xbf16> to vector<1x1x16xbf16>
    %568 = vector.extract_strided_slice %543 {offsets = [0, 0, 16], sizes = [1, 16, 16], strides = [1, 1, 1]} : vector<1x16x32xf32> to vector<1x16x16xf32>
    %569 = arith.truncf %568 : vector<1x16x16xf32> to vector<1x16x16xbf16>
    "tpu.trace_start"() <{level = 10 : i32, message = "bqd,bkd->bqk"}> : () -> ()
    %cst_248 = arith.constant dense<0.000000e+00> : vector<1x1x16xf32>
    %570 = tpu.matmul %567, %569, %cst_248 {dimension_numbers = #tpu.dot_dimension_numbers<[2], [2], [1], [1], [0, 0, 0, 1, 1, 1], [0], [0]>} : vector<1x1x16xbf16>, vector<1x16x16xbf16>, vector<1x1x16xf32> -> vector<1x1x16xf32>
    "tpu.trace_stop"() : () -> ()
    %cst_249 = arith.constant 2.500000e-01 : f32
    %571 = vector.broadcast %cst_249 : f32 to vector<1x1x16xf32>
    %572 = arith.mulf %570, %571 : vector<1x1x16xf32>
    %573 = arith.addf %572, %341 : vector<1x1x16xf32>
    %cst_250 = arith.constant dense<0xFF800000> : vector<1x1xf32>
    %574 = vector.multi_reduction <maximumf>, %573, %cst_250 [2] : vector<1x1x16xf32> to vector<1x1xf32>
    %575 = vector.shape_cast %574 : vector<1x1xf32> to vector<1x1x1xf32>
    %576 = vector.broadcast %575 : vector<1x1x1xf32> to vector<1x1x16xf32>
    %577 = arith.subf %573, %576 : vector<1x1x16xf32>
    %578 = math.exp %577 : vector<1x1x16xf32>
    %cst_251 = arith.constant dense<0.000000e+00> : vector<1x1xf32>
    %579 = vector.multi_reduction <add>, %578, %cst_251 [2] : vector<1x1x16xf32> to vector<1x1xf32>
    %580 = vector.shape_cast %579 : vector<1x1xf32> to vector<1x1x1xf32>
    %581 = vector.broadcast %580 : vector<1x1x1xf32> to vector<1x1x16xf32>
    %582 = arith.divf %578, %581 : vector<1x1x16xf32>
    %583 = arith.truncf %582 : vector<1x1x16xf32> to vector<1x1x16xbf16>
    %584 = vector.extract_strided_slice %545 {offsets = [0, 0, 16], sizes = [1, 16, 16], strides = [1, 1, 1]} : vector<1x16x32xf32> to vector<1x16x16xf32>
    %585 = arith.truncf %584 : vector<1x16x16xf32> to vector<1x16x16xbf16>
    "tpu.trace_start"() <{level = 10 : i32, message = "bqk,bkd->bqd"}> : () -> ()
    %cst_252 = arith.constant dense<0.000000e+00> : vector<1x1x16xf32>
    %586 = tpu.matmul %583, %585, %cst_252 {dimension_numbers = #tpu.dot_dimension_numbers<[2], [1], [1], [2], [0, 0, 0, 1, 1, 2], [0], [0]>} : vector<1x1x16xbf16>, vector<1x16x16xbf16>, vector<1x1x16xf32> -> vector<1x1x16xf32>
    "tpu.trace_stop"() : () -> ()
    %587 = tpu.concatenate %566, %586 in 2 : vector<1x1x16xf32>, vector<1x1x16xf32> -> vector<1x1x32xf32>
    %588 = vector.shape_cast %587 : vector<1x1x32xf32> to vector<1x32xf32>
    %589 = arith.truncf %588 : vector<1x32xf32> to vector<1x32xbf16>
    %c1_253 = arith.constant 1 : index
    %c0_254 = arith.constant 0 : index
    %c0_255 = arith.constant 0 : index
    %590 = vector.load %arg7[%c1_253, %c0_254, %c0_255] : memref<2x32x32xbf16, #tpu.memory_space<vmem>>, vector<1x32x32xbf16>
    %591 = vector.shape_cast %590 : vector<1x32x32xbf16> to vector<32x32xbf16>
    %cst_256 = arith.constant dense<0.000000e+00> : vector<1x32xf32>
    %592 = tpu.matmul %589, %591, %cst_256 {dimension_numbers = #tpu.dot_dimension_numbers<[1], [0], [0], [1], [0, 0, 1, 1], [], []>} : vector<1x32xbf16>, vector<32x32xbf16>, vector<1x32xf32> -> vector<1x32xf32>
    %593 = vector.shape_cast %592 : vector<1x32xf32> to vector<1x1x32xf32>
    %594 = arith.addf %485, %593 : vector<1x1x32xf32>
    %c1_257 = arith.constant 1 : index
    %c0_258 = arith.constant 0 : index
    %c0_259 = arith.constant 0 : index
    %595 = vector.load %arg8[%c1_257, %c0_258, %c0_259] : memref<2x1x32xbf16, #tpu.memory_space<vmem>>, vector<1x1x32xbf16>
    %596 = vector.shape_cast %595 : vector<1x1x32xbf16> to vector<1x32xbf16>
    %597 = arith.mulf %594, %594 : vector<1x1x32xf32>
    %cst_260 = arith.constant dense<0.000000e+00> : vector<1x1xf32>
    %598 = vector.multi_reduction <add>, %597, %cst_260 [2] : vector<1x1x32xf32> to vector<1x1xf32>
    %599 = vector.shape_cast %598 : vector<1x1xf32> to vector<1x1x1xf32>
    %cst_261 = arith.constant 3.200000e+01 : f32
    %600 = vector.broadcast %cst_261 : f32 to vector<1x1x1xf32>
    %601 = arith.divf %599, %600 : vector<1x1x1xf32>
    %cst_262 = arith.constant 9.99999997E-7 : f32
    %602 = vector.broadcast %cst_262 : f32 to vector<1x1x1xf32>
    %603 = arith.addf %601, %602 : vector<1x1x1xf32>
    %604 = math.rsqrt %603 : vector<1x1x1xf32>
    %605 = vector.broadcast %604 : vector<1x1x1xf32> to vector<1x1x32xf32>
    %606 = arith.mulf %594, %605 : vector<1x1x32xf32>
    %607 = arith.extf %596 : vector<1x32xbf16> to vector<1x32xf32>
    %608 = vector.shape_cast %607 : vector<1x32xf32> to vector<1x1x32xf32>
    %609 = arith.mulf %606, %608 : vector<1x1x32xf32>
    %610 = vector.shape_cast %609 : vector<1x1x32xf32> to vector<1x32xf32>
    %611 = arith.truncf %610 : vector<1x32xf32> to vector<1x32xbf16>
    %c1_263 = arith.constant 1 : index
    %c0_264 = arith.constant 0 : index
    %c0_265 = arith.constant 0 : index
    %612 = vector.load %arg9[%c1_263, %c0_264, %c0_265] : memref<2x32x128xbf16, #tpu.memory_space<vmem>>, vector<1x32x128xbf16>
    %613 = vector.shape_cast %612 : vector<1x32x128xbf16> to vector<32x128xbf16>
    %cst_266 = arith.constant dense<0.000000e+00> : vector<1x128xf32>
    %614 = tpu.matmul %611, %613, %cst_266 {dimension_numbers = #tpu.dot_dimension_numbers<[1], [0], [0], [1], [0, 0, 1, 1], [], []>} : vector<1x32xbf16>, vector<32x128xbf16>, vector<1x128xf32> -> vector<1x128xf32>
    %615 = vector.extract_strided_slice %614 {offsets = [0, 0], sizes = [1, 64], strides = [1, 1]} : vector<1x128xf32> to vector<1x64xf32>
    %616 = vector.extract_strided_slice %614 {offsets = [0, 64], sizes = [1, 64], strides = [1, 1]} : vector<1x128xf32> to vector<1x64xf32>
    %cst_267 = arith.constant 0.000000e+00 : f32
    %617 = vector.broadcast %cst_267 : f32 to vector<1x64xf32>
    %618 = arith.subf %617, %615 : vector<1x64xf32>
    %619 = math.exp %618 : vector<1x64xf32>
    %cst_268 = arith.constant 1.000000e+00 : f32
    %620 = vector.broadcast %cst_268 : f32 to vector<1x64xf32>
    %621 = arith.addf %620, %619 : vector<1x64xf32>
    %622 = arith.divf %615, %621 : vector<1x64xf32>
    %623 = arith.mulf %622, %616 : vector<1x64xf32>
    %624 = arith.truncf %623 : vector<1x64xf32> to vector<1x64xbf16>
    %c1_269 = arith.constant 1 : index
    %c0_270 = arith.constant 0 : index
    %c0_271 = arith.constant 0 : index
    %625 = vector.load %arg10[%c1_269, %c0_270, %c0_271] : memref<2x64x32xbf16, #tpu.memory_space<vmem>>, vector<1x64x32xbf16>
    %626 = vector.shape_cast %625 : vector<1x64x32xbf16> to vector<64x32xbf16>
    %cst_272 = arith.constant dense<0.000000e+00> : vector<1x32xf32>
    %627 = tpu.matmul %624, %626, %cst_272 {dimension_numbers = #tpu.dot_dimension_numbers<[1], [0], [0], [1], [0, 0, 1, 1], [], []>} : vector<1x64xbf16>, vector<64x32xbf16>, vector<1x32xf32> -> vector<1x32xf32>
    %628 = vector.shape_cast %627 : vector<1x32xf32> to vector<1x1x32xf32>
    %629 = arith.addf %594, %628 : vector<1x1x32xf32>
    %c0_273 = arith.constant 0 : index
    %c0_274 = arith.constant 0 : index
    %630 = vector.load %arg11[%c0_273, %c0_274] : memref<1x32xbf16, #tpu.memory_space<vmem>>, vector<1x32xbf16>
    %631 = arith.mulf %629, %629 : vector<1x1x32xf32>
    %cst_275 = arith.constant dense<0.000000e+00> : vector<1x1xf32>
    %632 = vector.multi_reduction <add>, %631, %cst_275 [2] : vector<1x1x32xf32> to vector<1x1xf32>
    %633 = vector.shape_cast %632 : vector<1x1xf32> to vector<1x1x1xf32>
    %cst_276 = arith.constant 3.200000e+01 : f32
    %634 = vector.broadcast %cst_276 : f32 to vector<1x1x1xf32>
    %635 = arith.divf %633, %634 : vector<1x1x1xf32>
    %cst_277 = arith.constant 9.99999997E-7 : f32
    %636 = vector.broadcast %cst_277 : f32 to vector<1x1x1xf32>
    %637 = arith.addf %635, %636 : vector<1x1x1xf32>
    %638 = math.rsqrt %637 : vector<1x1x1xf32>
    %639 = vector.broadcast %638 : vector<1x1x1xf32> to vector<1x1x32xf32>
    %640 = arith.mulf %629, %639 : vector<1x1x32xf32>
    %641 = arith.extf %630 : vector<1x32xbf16> to vector<1x32xf32>
    %642 = vector.shape_cast %641 : vector<1x32xf32> to vector<1x1x32xf32>
    %643 = arith.mulf %640, %642 : vector<1x1x32xf32>
    %c0_278 = arith.constant 0 : index
    %c9 = arith.constant 9 : index
    %c0_279 = arith.constant 0 : index
    %644 = vector.load %arg2[%c0_278, %c9, %c0_279] : memref<1x16x16xf32, #tpu.memory_space<vmem>>, vector<1x1x16xf32>
    %c0_280 = arith.constant 0 : index
    %c9_281 = arith.constant 9 : index
    %c0_282 = arith.constant 0 : index
    %645 = vector.load %arg3[%c0_280, %c9_281, %c0_282] : memref<1x16x16xf32, #tpu.memory_space<vmem>>, vector<1x1x16xf32>
    %646 = tpu.concatenate %644, %644 in 2 : vector<1x1x16xf32>, vector<1x1x16xf32> -> vector<1x1x32xf32>
    %647 = tpu.concatenate %645, %645 in 2 : vector<1x1x16xf32>, vector<1x1x16xf32> -> vector<1x1x32xf32>
    %648 = tpu.iota {dimensions = array<i32: 1>} : vector<1x1x16xi32>
    %c9_i32 = arith.constant 9 : i32
    %649 = vector.broadcast %c9_i32 : i32 to vector<1x1x16xi32>
    %650 = arith.addi %649, %648 : vector<1x1x16xi32>
    %651 = tpu.iota {dimensions = array<i32: 2>} : vector<1x1x16xi32>
    %652 = arith.cmpi sle, %651, %650 : vector<1x1x16xi32>
    %cst_283 = arith.constant 0.000000e+00 : f32
    %cst_284 = arith.constant -1.000000e+30 : f32
    %653 = vector.broadcast %cst_283 : f32 to vector<1x1x16xf32>
    %654 = vector.broadcast %cst_284 : f32 to vector<1x1x16xf32>
    %655 = arith.select %652, %653, %654 : vector<1x1x16xi1>, vector<1x1x16xf32>
    %656 = arith.addf %655, %4 : vector<1x1x16xf32>
    %c0_285 = arith.constant 0 : index
    %c0_286 = arith.constant 0 : index
    %c0_287 = arith.constant 0 : index
    %657 = vector.load %arg5[%c0_285, %c0_286, %c0_287] : memref<2x1x32xbf16, #tpu.memory_space<vmem>>, vector<1x1x32xbf16>
    %658 = vector.shape_cast %657 : vector<1x1x32xbf16> to vector<1x32xbf16>
    %659 = arith.mulf %643, %643 : vector<1x1x32xf32>
    %cst_288 = arith.constant dense<0.000000e+00> : vector<1x1xf32>
    %660 = vector.multi_reduction <add>, %659, %cst_288 [2] : vector<1x1x32xf32> to vector<1x1xf32>
    %661 = vector.shape_cast %660 : vector<1x1xf32> to vector<1x1x1xf32>
    %cst_289 = arith.constant 3.200000e+01 : f32
    %662 = vector.broadcast %cst_289 : f32 to vector<1x1x1xf32>
    %663 = arith.divf %661, %662 : vector<1x1x1xf32>
    %cst_290 = arith.constant 9.99999997E-7 : f32
    %664 = vector.broadcast %cst_290 : f32 to vector<1x1x1xf32>
    %665 = arith.addf %663, %664 : vector<1x1x1xf32>
    %666 = math.rsqrt %665 : vector<1x1x1xf32>
    %667 = vector.broadcast %666 : vector<1x1x1xf32> to vector<1x1x32xf32>
    %668 = arith.mulf %643, %667 : vector<1x1x32xf32>
    %669 = arith.extf %658 : vector<1x32xbf16> to vector<1x32xf32>
    %670 = vector.shape_cast %669 : vector<1x32xf32> to vector<1x1x32xf32>
    %671 = arith.mulf %668, %670 : vector<1x1x32xf32>
    %672 = vector.shape_cast %671 : vector<1x1x32xf32> to vector<1x32xf32>
    %673 = arith.truncf %672 : vector<1x32xf32> to vector<1x32xbf16>
    %c0_291 = arith.constant 0 : index
    %c0_292 = arith.constant 0 : index
    %c0_293 = arith.constant 0 : index
    %674 = vector.load %arg6[%c0_291, %c0_292, %c0_293] : memref<2x32x96xbf16, #tpu.memory_space<vmem>>, vector<1x32x96xbf16>
    %675 = vector.shape_cast %674 : vector<1x32x96xbf16> to vector<32x96xbf16>
    %cst_294 = arith.constant dense<0.000000e+00> : vector<1x96xf32>
    %676 = tpu.matmul %673, %675, %cst_294 {dimension_numbers = #tpu.dot_dimension_numbers<[1], [0], [0], [1], [0, 0, 1, 1], [], []>} : vector<1x32xbf16>, vector<32x96xbf16>, vector<1x96xf32> -> vector<1x96xf32>
    %677 = vector.extract_strided_slice %676 {offsets = [0, 0], sizes = [1, 32], strides = [1, 1]} : vector<1x96xf32> to vector<1x32xf32>
    %678 = vector.shape_cast %677 : vector<1x32xf32> to vector<1x1x32xf32>
    %679 = vector.extract_strided_slice %676 {offsets = [0, 32], sizes = [1, 32], strides = [1, 1]} : vector<1x96xf32> to vector<1x32xf32>
    %680 = vector.shape_cast %679 : vector<1x32xf32> to vector<1x1x32xf32>
    %681 = vector.extract_strided_slice %676 {offsets = [0, 64], sizes = [1, 32], strides = [1, 1]} : vector<1x96xf32> to vector<1x32xf32>
    %682 = vector.shape_cast %681 : vector<1x32xf32> to vector<1x1x32xf32>
    %683 = arith.mulf %678, %646 : vector<1x1x32xf32>
    %684 = vector.extract_strided_slice %678 {offsets = [0, 0, 8], sizes = [1, 1, 8], strides = [1, 1, 1]} : vector<1x1x32xf32> to vector<1x1x8xf32>
    %cst_295 = arith.constant 0.000000e+00 : f32
    %685 = vector.broadcast %cst_295 : f32 to vector<1x1x8xf32>
    %686 = arith.subf %685, %684 : vector<1x1x8xf32>
    %687 = vector.extract_strided_slice %678 {offsets = [0, 0, 0], sizes = [1, 1, 8], strides = [1, 1, 1]} : vector<1x1x32xf32> to vector<1x1x8xf32>
    %688 = vector.extract_strided_slice %678 {offsets = [0, 0, 24], sizes = [1, 1, 8], strides = [1, 1, 1]} : vector<1x1x32xf32> to vector<1x1x8xf32>
    %cst_296 = arith.constant 0.000000e+00 : f32
    %689 = vector.broadcast %cst_296 : f32 to vector<1x1x8xf32>
    %690 = arith.subf %689, %688 : vector<1x1x8xf32>
    %691 = vector.extract_strided_slice %678 {offsets = [0, 0, 16], sizes = [1, 1, 8], strides = [1, 1, 1]} : vector<1x1x32xf32> to vector<1x1x8xf32>
    %692 = tpu.concatenate %686, %687, %690, %691 in 2 : vector<1x1x8xf32>, vector<1x1x8xf32>, vector<1x1x8xf32>, vector<1x1x8xf32> -> vector<1x1x32xf32>
    %693 = arith.mulf %692, %647 : vector<1x1x32xf32>
    %694 = arith.addf %683, %693 : vector<1x1x32xf32>
    %695 = arith.mulf %680, %646 : vector<1x1x32xf32>
    %696 = vector.extract_strided_slice %680 {offsets = [0, 0, 8], sizes = [1, 1, 8], strides = [1, 1, 1]} : vector<1x1x32xf32> to vector<1x1x8xf32>
    %cst_297 = arith.constant 0.000000e+00 : f32
    %697 = vector.broadcast %cst_297 : f32 to vector<1x1x8xf32>
    %698 = arith.subf %697, %696 : vector<1x1x8xf32>
    %699 = vector.extract_strided_slice %680 {offsets = [0, 0, 0], sizes = [1, 1, 8], strides = [1, 1, 1]} : vector<1x1x32xf32> to vector<1x1x8xf32>
    %700 = vector.extract_strided_slice %680 {offsets = [0, 0, 24], sizes = [1, 1, 8], strides = [1, 1, 1]} : vector<1x1x32xf32> to vector<1x1x8xf32>
    %cst_298 = arith.constant 0.000000e+00 : f32
    %701 = vector.broadcast %cst_298 : f32 to vector<1x1x8xf32>
    %702 = arith.subf %701, %700 : vector<1x1x8xf32>
    %703 = vector.extract_strided_slice %680 {offsets = [0, 0, 16], sizes = [1, 1, 8], strides = [1, 1, 1]} : vector<1x1x32xf32> to vector<1x1x8xf32>
    %704 = tpu.concatenate %698, %699, %702, %703 in 2 : vector<1x1x8xf32>, vector<1x1x8xf32>, vector<1x1x8xf32>, vector<1x1x8xf32> -> vector<1x1x32xf32>
    %705 = arith.mulf %704, %647 : vector<1x1x32xf32>
    %706 = arith.addf %695, %705 : vector<1x1x32xf32>
    %c0_299 = arith.constant 0 : index
    %c0_300 = arith.constant 0 : index
    %c9_301 = arith.constant 9 : index
    %c0_302 = arith.constant 0 : index
    %707 = vector.load %arg13[%c0_299, %c0_300, %c9_301, %c0_302] : memref<2x1x16x32xf32, #tpu.memory_space<vmem>>, vector<1x1x1x32xf32>
    %708 = vector.shape_cast %707 : vector<1x1x1x32xf32> to vector<1x1x32xf32>
    %709 = vector.shape_cast %706 : vector<1x1x32xf32> to vector<1x1x1x32xf32>
    tpu.vector_store %arg13[%c0_299, %c0_300, %c9_301, %c0_302], %709 {strides = array<i32>} : memref<2x1x16x32xf32, #tpu.memory_space<vmem>>, vector<1x1x1x32xf32>,
    %c0_303 = arith.constant 0 : index
    %c0_304 = arith.constant 0 : index
    %c9_305 = arith.constant 9 : index
    %c0_306 = arith.constant 0 : index
    %710 = vector.load %arg14[%c0_303, %c0_304, %c9_305, %c0_306] : memref<2x1x16x32xf32, #tpu.memory_space<vmem>>, vector<1x1x1x32xf32>
    %711 = vector.shape_cast %710 : vector<1x1x1x32xf32> to vector<1x1x32xf32>
    %712 = vector.shape_cast %682 : vector<1x1x32xf32> to vector<1x1x1x32xf32>
    tpu.vector_store %arg14[%c0_303, %c0_304, %c9_305, %c0_306], %712 {strides = array<i32>} : memref<2x1x16x32xf32, #tpu.memory_space<vmem>>, vector<1x1x1x32xf32>,
    %c0_307 = arith.constant 0 : index
    %c0_308 = arith.constant 0 : index
    %c0_309 = arith.constant 0 : index
    %c0_310 = arith.constant 0 : index
    %713 = vector.load %arg13[%c0_307, %c0_308, %c0_309, %c0_310] : memref<2x1x16x32xf32, #tpu.memory_space<vmem>>, vector<1x1x16x32xf32>
    %714 = vector.shape_cast %713 : vector<1x1x16x32xf32> to vector<1x16x32xf32>
    %c0_311 = arith.constant 0 : index
    %c0_312 = arith.constant 0 : index
    %c0_313 = arith.constant 0 : index
    %c0_314 = arith.constant 0 : index
    %715 = vector.load %arg14[%c0_311, %c0_312, %c0_313, %c0_314] : memref<2x1x16x32xf32, #tpu.memory_space<vmem>>, vector<1x1x16x32xf32>
    %716 = vector.shape_cast %715 : vector<1x1x16x32xf32> to vector<1x16x32xf32>
    %717 = arith.truncf %694 : vector<1x1x32xf32> to vector<1x1x32xbf16>
    %718 = vector.extract_strided_slice %717 {offsets = [0, 0, 0], sizes = [1, 1, 16], strides = [1, 1, 1]} : vector<1x1x32xbf16> to vector<1x1x16xbf16>
    %719 = vector.extract_strided_slice %714 {offsets = [0, 0, 0], sizes = [1, 16, 16], strides = [1, 1, 1]} : vector<1x16x32xf32> to vector<1x16x16xf32>
    %720 = arith.truncf %719 : vector<1x16x16xf32> to vector<1x16x16xbf16>
    "tpu.trace_start"() <{level = 10 : i32, message = "bqd,bkd->bqk"}> : () -> ()
    %cst_315 = arith.constant dense<0.000000e+00> : vector<1x1x16xf32>
    %721 = tpu.matmul %718, %720, %cst_315 {dimension_numbers = #tpu.dot_dimension_numbers<[2], [2], [1], [1], [0, 0, 0, 1, 1, 1], [0], [0]>} : vector<1x1x16xbf16>, vector<1x16x16xbf16>, vector<1x1x16xf32> -> vector<1x1x16xf32>
    "tpu.trace_stop"() : () -> ()
    %cst_316 = arith.constant 2.500000e-01 : f32
    %722 = vector.broadcast %cst_316 : f32 to vector<1x1x16xf32>
    %723 = arith.mulf %721, %722 : vector<1x1x16xf32>
    %724 = arith.addf %723, %656 : vector<1x1x16xf32>
    %cst_317 = arith.constant dense<0xFF800000> : vector<1x1xf32>
    %725 = vector.multi_reduction <maximumf>, %724, %cst_317 [2] : vector<1x1x16xf32> to vector<1x1xf32>
    %726 = vector.shape_cast %725 : vector<1x1xf32> to vector<1x1x1xf32>
    %727 = vector.broadcast %726 : vector<1x1x1xf32> to vector<1x1x16xf32>
    %728 = arith.subf %724, %727 : vector<1x1x16xf32>
    %729 = math.exp %728 : vector<1x1x16xf32>
    %cst_318 = arith.constant dense<0.000000e+00> : vector<1x1xf32>
    %730 = vector.multi_reduction <add>, %729, %cst_318 [2] : vector<1x1x16xf32> to vector<1x1xf32>
    %731 = vector.shape_cast %730 : vector<1x1xf32> to vector<1x1x1xf32>
    %732 = vector.broadcast %731 : vector<1x1x1xf32> to vector<1x1x16xf32>
    %733 = arith.divf %729, %732 : vector<1x1x16xf32>
    %734 = arith.truncf %733 : vector<1x1x16xf32> to vector<1x1x16xbf16>
    %735 = vector.extract_strided_slice %716 {offsets = [0, 0, 0], sizes = [1, 16, 16], strides = [1, 1, 1]} : vector<1x16x32xf32> to vector<1x16x16xf32>
    %736 = arith.truncf %735 : vector<1x16x16xf32> to vector<1x16x16xbf16>
    "tpu.trace_start"() <{level = 10 : i32, message = "bqk,bkd->bqd"}> : () -> ()
    %cst_319 = arith.constant dense<0.000000e+00> : vector<1x1x16xf32>
    %737 = tpu.matmul %734, %736, %cst_319 {dimension_numbers = #tpu.dot_dimension_numbers<[2], [1], [1], [2], [0, 0, 0, 1, 1, 2], [0], [0]>} : vector<1x1x16xbf16>, vector<1x16x16xbf16>, vector<1x1x16xf32> -> vector<1x1x16xf32>
    "tpu.trace_stop"() : () -> ()
    %738 = vector.extract_strided_slice %717 {offsets = [0, 0, 16], sizes = [1, 1, 16], strides = [1, 1, 1]} : vector<1x1x32xbf16> to vector<1x1x16xbf16>
    %739 = vector.extract_strided_slice %714 {offsets = [0, 0, 16], sizes = [1, 16, 16], strides = [1, 1, 1]} : vector<1x16x32xf32> to vector<1x16x16xf32>
    %740 = arith.truncf %739 : vector<1x16x16xf32> to vector<1x16x16xbf16>
    "tpu.trace_start"() <{level = 10 : i32, message = "bqd,bkd->bqk"}> : () -> ()
    %cst_320 = arith.constant dense<0.000000e+00> : vector<1x1x16xf32>
    %741 = tpu.matmul %738, %740, %cst_320 {dimension_numbers = #tpu.dot_dimension_numbers<[2], [2], [1], [1], [0, 0, 0, 1, 1, 1], [0], [0]>} : vector<1x1x16xbf16>, vector<1x16x16xbf16>, vector<1x1x16xf32> -> vector<1x1x16xf32>
    "tpu.trace_stop"() : () -> ()
    %cst_321 = arith.constant 2.500000e-01 : f32
    %742 = vector.broadcast %cst_321 : f32 to vector<1x1x16xf32>
    %743 = arith.mulf %741, %742 : vector<1x1x16xf32>
    %744 = arith.addf %743, %656 : vector<1x1x16xf32>
    %cst_322 = arith.constant dense<0xFF800000> : vector<1x1xf32>
    %745 = vector.multi_reduction <maximumf>, %744, %cst_322 [2] : vector<1x1x16xf32> to vector<1x1xf32>
    %746 = vector.shape_cast %745 : vector<1x1xf32> to vector<1x1x1xf32>
    %747 = vector.broadcast %746 : vector<1x1x1xf32> to vector<1x1x16xf32>
    %748 = arith.subf %744, %747 : vector<1x1x16xf32>
    %749 = math.exp %748 : vector<1x1x16xf32>
    %cst_323 = arith.constant dense<0.000000e+00> : vector<1x1xf32>
    %750 = vector.multi_reduction <add>, %749, %cst_323 [2] : vector<1x1x16xf32> to vector<1x1xf32>
    %751 = vector.shape_cast %750 : vector<1x1xf32> to vector<1x1x1xf32>
    %752 = vector.broadcast %751 : vector<1x1x1xf32> to vector<1x1x16xf32>
    %753 = arith.divf %749, %752 : vector<1x1x16xf32>
    %754 = arith.truncf %753 : vector<1x1x16xf32> to vector<1x1x16xbf16>
    %755 = vector.extract_strided_slice %716 {offsets = [0, 0, 16], sizes = [1, 16, 16], strides = [1, 1, 1]} : vector<1x16x32xf32> to vector<1x16x16xf32>
    %756 = arith.truncf %755 : vector<1x16x16xf32> to vector<1x16x16xbf16>
    "tpu.trace_start"() <{level = 10 : i32, message = "bqk,bkd->bqd"}> : () -> ()
    %cst_324 = arith.constant dense<0.000000e+00> : vector<1x1x16xf32>
    %757 = tpu.matmul %754, %756, %cst_324 {dimension_numbers = #tpu.dot_dimension_numbers<[2], [1], [1], [2], [0, 0, 0, 1, 1, 2], [0], [0]>} : vector<1x1x16xbf16>, vector<1x16x16xbf16>, vector<1x1x16xf32> -> vector<1x1x16xf32>
    "tpu.trace_stop"() : () -> ()
    %758 = tpu.concatenate %737, %757 in 2 : vector<1x1x16xf32>, vector<1x1x16xf32> -> vector<1x1x32xf32>
    %759 = vector.shape_cast %758 : vector<1x1x32xf32> to vector<1x32xf32>
    %760 = arith.truncf %759 : vector<1x32xf32> to vector<1x32xbf16>
    %c0_325 = arith.constant 0 : index
    %c0_326 = arith.constant 0 : index
    %c0_327 = arith.constant 0 : index
    %761 = vector.load %arg7[%c0_325, %c0_326, %c0_327] : memref<2x32x32xbf16, #tpu.memory_space<vmem>>, vector<1x32x32xbf16>
    %762 = vector.shape_cast %761 : vector<1x32x32xbf16> to vector<32x32xbf16>
    %cst_328 = arith.constant dense<0.000000e+00> : vector<1x32xf32>
    %763 = tpu.matmul %760, %762, %cst_328 {dimension_numbers = #tpu.dot_dimension_numbers<[1], [0], [0], [1], [0, 0, 1, 1], [], []>} : vector<1x32xbf16>, vector<32x32xbf16>, vector<1x32xf32> -> vector<1x32xf32>
    %764 = vector.shape_cast %763 : vector<1x32xf32> to vector<1x1x32xf32>
    %765 = arith.addf %643, %764 : vector<1x1x32xf32>
    %c0_329 = arith.constant 0 : index
    %c0_330 = arith.constant 0 : index
    %c0_331 = arith.constant 0 : index
    %766 = vector.load %arg8[%c0_329, %c0_330, %c0_331] : memref<2x1x32xbf16, #tpu.memory_space<vmem>>, vector<1x1x32xbf16>
    %767 = vector.shape_cast %766 : vector<1x1x32xbf16> to vector<1x32xbf16>
    %768 = arith.mulf %765, %765 : vector<1x1x32xf32>
    %cst_332 = arith.constant dense<0.000000e+00> : vector<1x1xf32>
    %769 = vector.multi_reduction <add>, %768, %cst_332 [2] : vector<1x1x32xf32> to vector<1x1xf32>
    %770 = vector.shape_cast %769 : vector<1x1xf32> to vector<1x1x1xf32>
    %cst_333 = arith.constant 3.200000e+01 : f32
    %771 = vector.broadcast %cst_333 : f32 to vector<1x1x1xf32>
    %772 = arith.divf %770, %771 : vector<1x1x1xf32>
    %cst_334 = arith.constant 9.99999997E-7 : f32
    %773 = vector.broadcast %cst_334 : f32 to vector<1x1x1xf32>
    %774 = arith.addf %772, %773 : vector<1x1x1xf32>
    %775 = math.rsqrt %774 : vector<1x1x1xf32>
    %776 = vector.broadcast %775 : vector<1x1x1xf32> to vector<1x1x32xf32>
    %777 = arith.mulf %765, %776 : vector<1x1x32xf32>
    %778 = arith.extf %767 : vector<1x32xbf16> to vector<1x32xf32>
    %779 = vector.shape_cast %778 : vector<1x32xf32> to vector<1x1x32xf32>
    %780 = arith.mulf %777, %779 : vector<1x1x32xf32>
    %781 = vector.shape_cast %780 : vector<1x1x32xf32> to vector<1x32xf32>
    %782 = arith.truncf %781 : vector<1x32xf32> to vector<1x32xbf16>
    %c0_335 = arith.constant 0 : index
    %c0_336 = arith.constant 0 : index
    %c0_337 = arith.constant 0 : index
    %783 = vector.load %arg9[%c0_335, %c0_336, %c0_337] : memref<2x32x128xbf16, #tpu.memory_space<vmem>>, vector<1x32x128xbf16>
    %784 = vector.shape_cast %783 : vector<1x32x128xbf16> to vector<32x128xbf16>
    %cst_338 = arith.constant dense<0.000000e+00> : vector<1x128xf32>
    %785 = tpu.matmul %782, %784, %cst_338 {dimension_numbers = #tpu.dot_dimension_numbers<[1], [0], [0], [1], [0, 0, 1, 1], [], []>} : vector<1x32xbf16>, vector<32x128xbf16>, vector<1x128xf32> -> vector<1x128xf32>
    %786 = vector.extract_strided_slice %785 {offsets = [0, 0], sizes = [1, 64], strides = [1, 1]} : vector<1x128xf32> to vector<1x64xf32>
    %787 = vector.extract_strided_slice %785 {offsets = [0, 64], sizes = [1, 64], strides = [1, 1]} : vector<1x128xf32> to vector<1x64xf32>
    %cst_339 = arith.constant 0.000000e+00 : f32
    %788 = vector.broadcast %cst_339 : f32 to vector<1x64xf32>
    %789 = arith.subf %788, %786 : vector<1x64xf32>
    %790 = math.exp %789 : vector<1x64xf32>
    %cst_340 = arith.constant 1.000000e+00 : f32
    %791 = vector.broadcast %cst_340 : f32 to vector<1x64xf32>
    %792 = arith.addf %791, %790 : vector<1x64xf32>
    %793 = arith.divf %786, %792 : vector<1x64xf32>
    %794 = arith.mulf %793, %787 : vector<1x64xf32>
    %795 = arith.truncf %794 : vector<1x64xf32> to vector<1x64xbf16>
    %c0_341 = arith.constant 0 : index
    %c0_342 = arith.constant 0 : index
    %c0_343 = arith.constant 0 : index
    %796 = vector.load %arg10[%c0_341, %c0_342, %c0_343] : memref<2x64x32xbf16, #tpu.memory_space<vmem>>, vector<1x64x32xbf16>
    %797 = vector.shape_cast %796 : vector<1x64x32xbf16> to vector<64x32xbf16>
    %cst_344 = arith.constant dense<0.000000e+00> : vector<1x32xf32>
    %798 = tpu.matmul %795, %797, %cst_344 {dimension_numbers = #tpu.dot_dimension_numbers<[1], [0], [0], [1], [0, 0, 1, 1], [], []>} : vector<1x64xbf16>, vector<64x32xbf16>, vector<1x32xf32> -> vector<1x32xf32>
    %799 = vector.shape_cast %798 : vector<1x32xf32> to vector<1x1x32xf32>
    %800 = arith.addf %765, %799 : vector<1x1x32xf32>
    %c1_345 = arith.constant 1 : index
    %c0_346 = arith.constant 0 : index
    %c0_347 = arith.constant 0 : index
    %801 = vector.load %arg5[%c1_345, %c0_346, %c0_347] : memref<2x1x32xbf16, #tpu.memory_space<vmem>>, vector<1x1x32xbf16>
    %802 = vector.shape_cast %801 : vector<1x1x32xbf16> to vector<1x32xbf16>
    %803 = arith.mulf %800, %800 : vector<1x1x32xf32>
    %cst_348 = arith.constant dense<0.000000e+00> : vector<1x1xf32>
    %804 = vector.multi_reduction <add>, %803, %cst_348 [2] : vector<1x1x32xf32> to vector<1x1xf32>
    %805 = vector.shape_cast %804 : vector<1x1xf32> to vector<1x1x1xf32>
    %cst_349 = arith.constant 3.200000e+01 : f32
    %806 = vector.broadcast %cst_349 : f32 to vector<1x1x1xf32>
    %807 = arith.divf %805, %806 : vector<1x1x1xf32>
    %cst_350 = arith.constant 9.99999997E-7 : f32
    %808 = vector.broadcast %cst_350 : f32 to vector<1x1x1xf32>
    %809 = arith.addf %807, %808 : vector<1x1x1xf32>
    %810 = math.rsqrt %809 : vector<1x1x1xf32>
    %811 = vector.broadcast %810 : vector<1x1x1xf32> to vector<1x1x32xf32>
    %812 = arith.mulf %800, %811 : vector<1x1x32xf32>
    %813 = arith.extf %802 : vector<1x32xbf16> to vector<1x32xf32>
    %814 = vector.shape_cast %813 : vector<1x32xf32> to vector<1x1x32xf32>
    %815 = arith.mulf %812, %814 : vector<1x1x32xf32>
    %816 = vector.shape_cast %815 : vector<1x1x32xf32> to vector<1x32xf32>
    %817 = arith.truncf %816 : vector<1x32xf32> to vector<1x32xbf16>
    %c1_351 = arith.constant 1 : index
    %c0_352 = arith.constant 0 : index
    %c0_353 = arith.constant 0 : index
    %818 = vector.load %arg6[%c1_351, %c0_352, %c0_353] : memref<2x32x96xbf16, #tpu.memory_space<vmem>>, vector<1x32x96xbf16>
    %819 = vector.shape_cast %818 : vector<1x32x96xbf16> to vector<32x96xbf16>
    %cst_354 = arith.constant dense<0.000000e+00> : vector<1x96xf32>
    %820 = tpu.matmul %817, %819, %cst_354 {dimension_numbers = #tpu.dot_dimension_numbers<[1], [0], [0], [1], [0, 0, 1, 1], [], []>} : vector<1x32xbf16>, vector<32x96xbf16>, vector<1x96xf32> -> vector<1x96xf32>
    %821 = vector.extract_strided_slice %820 {offsets = [0, 0], sizes = [1, 32], strides = [1, 1]} : vector<1x96xf32> to vector<1x32xf32>
    %822 = vector.shape_cast %821 : vector<1x32xf32> to vector<1x1x32xf32>
    %823 = vector.extract_strided_slice %820 {offsets = [0, 32], sizes = [1, 32], strides = [1, 1]} : vector<1x96xf32> to vector<1x32xf32>
    %824 = vector.shape_cast %823 : vector<1x32xf32> to vector<1x1x32xf32>
    %825 = vector.extract_strided_slice %820 {offsets = [0, 64], sizes = [1, 32], strides = [1, 1]} : vector<1x96xf32> to vector<1x32xf32>
    %826 = vector.shape_cast %825 : vector<1x32xf32> to vector<1x1x32xf32>
    %827 = arith.mulf %822, %646 : vector<1x1x32xf32>
    %828 = vector.extract_strided_slice %822 {offsets = [0, 0, 8], sizes = [1, 1, 8], strides = [1, 1, 1]} : vector<1x1x32xf32> to vector<1x1x8xf32>
    %cst_355 = arith.constant 0.000000e+00 : f32
    %829 = vector.broadcast %cst_355 : f32 to vector<1x1x8xf32>
    %830 = arith.subf %829, %828 : vector<1x1x8xf32>
    %831 = vector.extract_strided_slice %822 {offsets = [0, 0, 0], sizes = [1, 1, 8], strides = [1, 1, 1]} : vector<1x1x32xf32> to vector<1x1x8xf32>
    %832 = vector.extract_strided_slice %822 {offsets = [0, 0, 24], sizes = [1, 1, 8], strides = [1, 1, 1]} : vector<1x1x32xf32> to vector<1x1x8xf32>
    %cst_356 = arith.constant 0.000000e+00 : f32
    %833 = vector.broadcast %cst_356 : f32 to vector<1x1x8xf32>
    %834 = arith.subf %833, %832 : vector<1x1x8xf32>
    %835 = vector.extract_strided_slice %822 {offsets = [0, 0, 16], sizes = [1, 1, 8], strides = [1, 1, 1]} : vector<1x1x32xf32> to vector<1x1x8xf32>
    %836 = tpu.concatenate %830, %831, %834, %835 in 2 : vector<1x1x8xf32>, vector<1x1x8xf32>, vector<1x1x8xf32>, vector<1x1x8xf32> -> vector<1x1x32xf32>
    %837 = arith.mulf %836, %647 : vector<1x1x32xf32>
    %838 = arith.addf %827, %837 : vector<1x1x32xf32>
    %839 = arith.mulf %824, %646 : vector<1x1x32xf32>
    %840 = vector.extract_strided_slice %824 {offsets = [0, 0, 8], sizes = [1, 1, 8], strides = [1, 1, 1]} : vector<1x1x32xf32> to vector<1x1x8xf32>
    %cst_357 = arith.constant 0.000000e+00 : f32
    %841 = vector.broadcast %cst_357 : f32 to vector<1x1x8xf32>
    %842 = arith.subf %841, %840 : vector<1x1x8xf32>
    %843 = vector.extract_strided_slice %824 {offsets = [0, 0, 0], sizes = [1, 1, 8], strides = [1, 1, 1]} : vector<1x1x32xf32> to vector<1x1x8xf32>
    %844 = vector.extract_strided_slice %824 {offsets = [0, 0, 24], sizes = [1, 1, 8], strides = [1, 1, 1]} : vector<1x1x32xf32> to vector<1x1x8xf32>
    %cst_358 = arith.constant 0.000000e+00 : f32
    %845 = vector.broadcast %cst_358 : f32 to vector<1x1x8xf32>
    %846 = arith.subf %845, %844 : vector<1x1x8xf32>
    %847 = vector.extract_strided_slice %824 {offsets = [0, 0, 16], sizes = [1, 1, 8], strides = [1, 1, 1]} : vector<1x1x32xf32> to vector<1x1x8xf32>
    %848 = tpu.concatenate %842, %843, %846, %847 in 2 : vector<1x1x8xf32>, vector<1x1x8xf32>, vector<1x1x8xf32>, vector<1x1x8xf32> -> vector<1x1x32xf32>
    %849 = arith.mulf %848, %647 : vector<1x1x32xf32>
    %850 = arith.addf %839, %849 : vector<1x1x32xf32>
    %c1_359 = arith.constant 1 : index
    %c0_360 = arith.constant 0 : index
    %c9_361 = arith.constant 9 : index
    %c0_362 = arith.constant 0 : index
    %851 = vector.load %arg13[%c1_359, %c0_360, %c9_361, %c0_362] : memref<2x1x16x32xf32, #tpu.memory_space<vmem>>, vector<1x1x1x32xf32>
    %852 = vector.shape_cast %851 : vector<1x1x1x32xf32> to vector<1x1x32xf32>
    %853 = vector.shape_cast %850 : vector<1x1x32xf32> to vector<1x1x1x32xf32>
    tpu.vector_store %arg13[%c1_359, %c0_360, %c9_361, %c0_362], %853 {strides = array<i32>} : memref<2x1x16x32xf32, #tpu.memory_space<vmem>>, vector<1x1x1x32xf32>,
    %c1_363 = arith.constant 1 : index
    %c0_364 = arith.constant 0 : index
    %c9_365 = arith.constant 9 : index
    %c0_366 = arith.constant 0 : index
    %854 = vector.load %arg14[%c1_363, %c0_364, %c9_365, %c0_366] : memref<2x1x16x32xf32, #tpu.memory_space<vmem>>, vector<1x1x1x32xf32>
    %855 = vector.shape_cast %854 : vector<1x1x1x32xf32> to vector<1x1x32xf32>
    %856 = vector.shape_cast %826 : vector<1x1x32xf32> to vector<1x1x1x32xf32>
    tpu.vector_store %arg14[%c1_363, %c0_364, %c9_365, %c0_366], %856 {strides = array<i32>} : memref<2x1x16x32xf32, #tpu.memory_space<vmem>>, vector<1x1x1x32xf32>,
    %c1_367 = arith.constant 1 : index
    %c0_368 = arith.constant 0 : index
    %c0_369 = arith.constant 0 : index
    %c0_370 = arith.constant 0 : index
    %857 = vector.load %arg13[%c1_367, %c0_368, %c0_369, %c0_370] : memref<2x1x16x32xf32, #tpu.memory_space<vmem>>, vector<1x1x16x32xf32>
    %858 = vector.shape_cast %857 : vector<1x1x16x32xf32> to vector<1x16x32xf32>
    %c1_371 = arith.constant 1 : index
    %c0_372 = arith.constant 0 : index
    %c0_373 = arith.constant 0 : index
    %c0_374 = arith.constant 0 : index
    %859 = vector.load %arg14[%c1_371, %c0_372, %c0_373, %c0_374] : memref<2x1x16x32xf32, #tpu.memory_space<vmem>>, vector<1x1x16x32xf32>
    %860 = vector.shape_cast %859 : vector<1x1x16x32xf32> to vector<1x16x32xf32>
    %861 = arith.truncf %838 : vector<1x1x32xf32> to vector<1x1x32xbf16>
    %862 = vector.extract_strided_slice %861 {offsets = [0, 0, 0], sizes = [1, 1, 16], strides = [1, 1, 1]} : vector<1x1x32xbf16> to vector<1x1x16xbf16>
    %863 = vector.extract_strided_slice %858 {offsets = [0, 0, 0], sizes = [1, 16, 16], strides = [1, 1, 1]} : vector<1x16x32xf32> to vector<1x16x16xf32>
    %864 = arith.truncf %863 : vector<1x16x16xf32> to vector<1x16x16xbf16>
    "tpu.trace_start"() <{level = 10 : i32, message = "bqd,bkd->bqk"}> : () -> ()
    %cst_375 = arith.constant dense<0.000000e+00> : vector<1x1x16xf32>
    %865 = tpu.matmul %862, %864, %cst_375 {dimension_numbers = #tpu.dot_dimension_numbers<[2], [2], [1], [1], [0, 0, 0, 1, 1, 1], [0], [0]>} : vector<1x1x16xbf16>, vector<1x16x16xbf16>, vector<1x1x16xf32> -> vector<1x1x16xf32>
    "tpu.trace_stop"() : () -> ()
    %cst_376 = arith.constant 2.500000e-01 : f32
    %866 = vector.broadcast %cst_376 : f32 to vector<1x1x16xf32>
    %867 = arith.mulf %865, %866 : vector<1x1x16xf32>
    %868 = arith.addf %867, %656 : vector<1x1x16xf32>
    %cst_377 = arith.constant dense<0xFF800000> : vector<1x1xf32>
    %869 = vector.multi_reduction <maximumf>, %868, %cst_377 [2] : vector<1x1x16xf32> to vector<1x1xf32>
    %870 = vector.shape_cast %869 : vector<1x1xf32> to vector<1x1x1xf32>
    %871 = vector.broadcast %870 : vector<1x1x1xf32> to vector<1x1x16xf32>
    %872 = arith.subf %868, %871 : vector<1x1x16xf32>
    %873 = math.exp %872 : vector<1x1x16xf32>
    %cst_378 = arith.constant dense<0.000000e+00> : vector<1x1xf32>
    %874 = vector.multi_reduction <add>, %873, %cst_378 [2] : vector<1x1x16xf32> to vector<1x1xf32>
    %875 = vector.shape_cast %874 : vector<1x1xf32> to vector<1x1x1xf32>
    %876 = vector.broadcast %875 : vector<1x1x1xf32> to vector<1x1x16xf32>
    %877 = arith.divf %873, %876 : vector<1x1x16xf32>
    %878 = arith.truncf %877 : vector<1x1x16xf32> to vector<1x1x16xbf16>
    %879 = vector.extract_strided_slice %860 {offsets = [0, 0, 0], sizes = [1, 16, 16], strides = [1, 1, 1]} : vector<1x16x32xf32> to vector<1x16x16xf32>
    %880 = arith.truncf %879 : vector<1x16x16xf32> to vector<1x16x16xbf16>
    "tpu.trace_start"() <{level = 10 : i32, message = "bqk,bkd->bqd"}> : () -> ()
    %cst_379 = arith.constant dense<0.000000e+00> : vector<1x1x16xf32>
    %881 = tpu.matmul %878, %880, %cst_379 {dimension_numbers = #tpu.dot_dimension_numbers<[2], [1], [1], [2], [0, 0, 0, 1, 1, 2], [0], [0]>} : vector<1x1x16xbf16>, vector<1x16x16xbf16>, vector<1x1x16xf32> -> vector<1x1x16xf32>
    "tpu.trace_stop"() : () -> ()
    %882 = vector.extract_strided_slice %861 {offsets = [0, 0, 16], sizes = [1, 1, 16], strides = [1, 1, 1]} : vector<1x1x32xbf16> to vector<1x1x16xbf16>
    %883 = vector.extract_strided_slice %858 {offsets = [0, 0, 16], sizes = [1, 16, 16], strides = [1, 1, 1]} : vector<1x16x32xf32> to vector<1x16x16xf32>
    %884 = arith.truncf %883 : vector<1x16x16xf32> to vector<1x16x16xbf16>
    "tpu.trace_start"() <{level = 10 : i32, message = "bqd,bkd->bqk"}> : () -> ()
    %cst_380 = arith.constant dense<0.000000e+00> : vector<1x1x16xf32>
    %885 = tpu.matmul %882, %884, %cst_380 {dimension_numbers = #tpu.dot_dimension_numbers<[2], [2], [1], [1], [0, 0, 0, 1, 1, 1], [0], [0]>} : vector<1x1x16xbf16>, vector<1x16x16xbf16>, vector<1x1x16xf32> -> vector<1x1x16xf32>
    "tpu.trace_stop"() : () -> ()
    %cst_381 = arith.constant 2.500000e-01 : f32
    %886 = vector.broadcast %cst_381 : f32 to vector<1x1x16xf32>
    %887 = arith.mulf %885, %886 : vector<1x1x16xf32>
    %888 = arith.addf %887, %656 : vector<1x1x16xf32>
    %cst_382 = arith.constant dense<0xFF800000> : vector<1x1xf32>
    %889 = vector.multi_reduction <maximumf>, %888, %cst_382 [2] : vector<1x1x16xf32> to vector<1x1xf32>
    %890 = vector.shape_cast %889 : vector<1x1xf32> to vector<1x1x1xf32>
    %891 = vector.broadcast %890 : vector<1x1x1xf32> to vector<1x1x16xf32>
    %892 = arith.subf %888, %891 : vector<1x1x16xf32>
    %893 = math.exp %892 : vector<1x1x16xf32>
    %cst_383 = arith.constant dense<0.000000e+00> : vector<1x1xf32>
    %894 = vector.multi_reduction <add>, %893, %cst_383 [2] : vector<1x1x16xf32> to vector<1x1xf32>
    %895 = vector.shape_cast %894 : vector<1x1xf32> to vector<1x1x1xf32>
    %896 = vector.broadcast %895 : vector<1x1x1xf32> to vector<1x1x16xf32>
    %897 = arith.divf %893, %896 : vector<1x1x16xf32>
    %898 = arith.truncf %897 : vector<1x1x16xf32> to vector<1x1x16xbf16>
    %899 = vector.extract_strided_slice %860 {offsets = [0, 0, 16], sizes = [1, 16, 16], strides = [1, 1, 1]} : vector<1x16x32xf32> to vector<1x16x16xf32>
    %900 = arith.truncf %899 : vector<1x16x16xf32> to vector<1x16x16xbf16>
    "tpu.trace_start"() <{level = 10 : i32, message = "bqk,bkd->bqd"}> : () -> ()
    %cst_384 = arith.constant dense<0.000000e+00> : vector<1x1x16xf32>
    %901 = tpu.matmul %898, %900, %cst_384 {dimension_numbers = #tpu.dot_dimension_numbers<[2], [1], [1], [2], [0, 0, 0, 1, 1, 2], [0], [0]>} : vector<1x1x16xbf16>, vector<1x16x16xbf16>, vector<1x1x16xf32> -> vector<1x1x16xf32>
    "tpu.trace_stop"() : () -> ()
    %902 = tpu.concatenate %881, %901 in 2 : vector<1x1x16xf32>, vector<1x1x16xf32> -> vector<1x1x32xf32>
    %903 = vector.shape_cast %902 : vector<1x1x32xf32> to vector<1x32xf32>
    %904 = arith.truncf %903 : vector<1x32xf32> to vector<1x32xbf16>
    %c1_385 = arith.constant 1 : index
    %c0_386 = arith.constant 0 : index
    %c0_387 = arith.constant 0 : index
    %905 = vector.load %arg7[%c1_385, %c0_386, %c0_387] : memref<2x32x32xbf16, #tpu.memory_space<vmem>>, vector<1x32x32xbf16>
    %906 = vector.shape_cast %905 : vector<1x32x32xbf16> to vector<32x32xbf16>
    %cst_388 = arith.constant dense<0.000000e+00> : vector<1x32xf32>
    %907 = tpu.matmul %904, %906, %cst_388 {dimension_numbers = #tpu.dot_dimension_numbers<[1], [0], [0], [1], [0, 0, 1, 1], [], []>} : vector<1x32xbf16>, vector<32x32xbf16>, vector<1x32xf32> -> vector<1x32xf32>
    %908 = vector.shape_cast %907 : vector<1x32xf32> to vector<1x1x32xf32>
    %909 = arith.addf %800, %908 : vector<1x1x32xf32>
    %c1_389 = arith.constant 1 : index
    %c0_390 = arith.constant 0 : index
    %c0_391 = arith.constant 0 : index
    %910 = vector.load %arg8[%c1_389, %c0_390, %c0_391] : memref<2x1x32xbf16, #tpu.memory_space<vmem>>, vector<1x1x32xbf16>
    %911 = vector.shape_cast %910 : vector<1x1x32xbf16> to vector<1x32xbf16>
    %912 = arith.mulf %909, %909 : vector<1x1x32xf32>
    %cst_392 = arith.constant dense<0.000000e+00> : vector<1x1xf32>
    %913 = vector.multi_reduction <add>, %912, %cst_392 [2] : vector<1x1x32xf32> to vector<1x1xf32>
    %914 = vector.shape_cast %913 : vector<1x1xf32> to vector<1x1x1xf32>
    %cst_393 = arith.constant 3.200000e+01 : f32
    %915 = vector.broadcast %cst_393 : f32 to vector<1x1x1xf32>
    %916 = arith.divf %914, %915 : vector<1x1x1xf32>
    %cst_394 = arith.constant 9.99999997E-7 : f32
    %917 = vector.broadcast %cst_394 : f32 to vector<1x1x1xf32>
    %918 = arith.addf %916, %917 : vector<1x1x1xf32>
    %919 = math.rsqrt %918 : vector<1x1x1xf32>
    %920 = vector.broadcast %919 : vector<1x1x1xf32> to vector<1x1x32xf32>
    %921 = arith.mulf %909, %920 : vector<1x1x32xf32>
    %922 = arith.extf %911 : vector<1x32xbf16> to vector<1x32xf32>
    %923 = vector.shape_cast %922 : vector<1x32xf32> to vector<1x1x32xf32>
    %924 = arith.mulf %921, %923 : vector<1x1x32xf32>
    %925 = vector.shape_cast %924 : vector<1x1x32xf32> to vector<1x32xf32>
    %926 = arith.truncf %925 : vector<1x32xf32> to vector<1x32xbf16>
    %c1_395 = arith.constant 1 : index
    %c0_396 = arith.constant 0 : index
    %c0_397 = arith.constant 0 : index
    %927 = vector.load %arg9[%c1_395, %c0_396, %c0_397] : memref<2x32x128xbf16, #tpu.memory_space<vmem>>, vector<1x32x128xbf16>
    %928 = vector.shape_cast %927 : vector<1x32x128xbf16> to vector<32x128xbf16>
    %cst_398 = arith.constant dense<0.000000e+00> : vector<1x128xf32>
    %929 = tpu.matmul %926, %928, %cst_398 {dimension_numbers = #tpu.dot_dimension_numbers<[1], [0], [0], [1], [0, 0, 1, 1], [], []>} : vector<1x32xbf16>, vector<32x128xbf16>, vector<1x128xf32> -> vector<1x128xf32>
    %930 = vector.extract_strided_slice %929 {offsets = [0, 0], sizes = [1, 64], strides = [1, 1]} : vector<1x128xf32> to vector<1x64xf32>
    %931 = vector.extract_strided_slice %929 {offsets = [0, 64], sizes = [1, 64], strides = [1, 1]} : vector<1x128xf32> to vector<1x64xf32>
    %cst_399 = arith.constant 0.000000e+00 : f32
    %932 = vector.broadcast %cst_399 : f32 to vector<1x64xf32>
    %933 = arith.subf %932, %930 : vector<1x64xf32>
    %934 = math.exp %933 : vector<1x64xf32>
    %cst_400 = arith.constant 1.000000e+00 : f32
    %935 = vector.broadcast %cst_400 : f32 to vector<1x64xf32>
    %936 = arith.addf %935, %934 : vector<1x64xf32>
    %937 = arith.divf %930, %936 : vector<1x64xf32>
    %938 = arith.mulf %937, %931 : vector<1x64xf32>
    %939 = arith.truncf %938 : vector<1x64xf32> to vector<1x64xbf16>
    %c1_401 = arith.constant 1 : index
    %c0_402 = arith.constant 0 : index
    %c0_403 = arith.constant 0 : index
    %940 = vector.load %arg10[%c1_401, %c0_402, %c0_403] : memref<2x64x32xbf16, #tpu.memory_space<vmem>>, vector<1x64x32xbf16>
    %941 = vector.shape_cast %940 : vector<1x64x32xbf16> to vector<64x32xbf16>
    %cst_404 = arith.constant dense<0.000000e+00> : vector<1x32xf32>
    %942 = tpu.matmul %939, %941, %cst_404 {dimension_numbers = #tpu.dot_dimension_numbers<[1], [0], [0], [1], [0, 0, 1, 1], [], []>} : vector<1x64xbf16>, vector<64x32xbf16>, vector<1x32xf32> -> vector<1x32xf32>
    %943 = vector.shape_cast %942 : vector<1x32xf32> to vector<1x1x32xf32>
    %944 = arith.addf %909, %943 : vector<1x1x32xf32>
    %c0_405 = arith.constant 0 : index
    %c0_406 = arith.constant 0 : index
    %945 = vector.load %arg11[%c0_405, %c0_406] : memref<1x32xbf16, #tpu.memory_space<vmem>>, vector<1x32xbf16>
    %946 = arith.mulf %944, %944 : vector<1x1x32xf32>
    %cst_407 = arith.constant dense<0.000000e+00> : vector<1x1xf32>
    %947 = vector.multi_reduction <add>, %946, %cst_407 [2] : vector<1x1x32xf32> to vector<1x1xf32>
    %948 = vector.shape_cast %947 : vector<1x1xf32> to vector<1x1x1xf32>
    %cst_408 = arith.constant 3.200000e+01 : f32
    %949 = vector.broadcast %cst_408 : f32 to vector<1x1x1xf32>
    %950 = arith.divf %948, %949 : vector<1x1x1xf32>
    %cst_409 = arith.constant 9.99999997E-7 : f32
    %951 = vector.broadcast %cst_409 : f32 to vector<1x1x1xf32>
    %952 = arith.addf %950, %951 : vector<1x1x1xf32>
    %953 = math.rsqrt %952 : vector<1x1x1xf32>
    %954 = vector.broadcast %953 : vector<1x1x1xf32> to vector<1x1x32xf32>
    %955 = arith.mulf %944, %954 : vector<1x1x32xf32>
    %956 = arith.extf %945 : vector<1x32xbf16> to vector<1x32xf32>
    %957 = vector.shape_cast %956 : vector<1x32xf32> to vector<1x1x32xf32>
    %958 = arith.mulf %955, %957 : vector<1x1x32xf32>
    %c0_410 = arith.constant 0 : index
    %c10 = arith.constant 10 : index
    %c0_411 = arith.constant 0 : index
    %959 = vector.load %arg2[%c0_410, %c10, %c0_411] : memref<1x16x16xf32, #tpu.memory_space<vmem>>, vector<1x1x16xf32>
    %c0_412 = arith.constant 0 : index
    %c10_413 = arith.constant 10 : index
    %c0_414 = arith.constant 0 : index
    %960 = vector.load %arg3[%c0_412, %c10_413, %c0_414] : memref<1x16x16xf32, #tpu.memory_space<vmem>>, vector<1x1x16xf32>
    %961 = tpu.concatenate %959, %959 in 2 : vector<1x1x16xf32>, vector<1x1x16xf32> -> vector<1x1x32xf32>
    %962 = tpu.concatenate %960, %960 in 2 : vector<1x1x16xf32>, vector<1x1x16xf32> -> vector<1x1x32xf32>
    %963 = tpu.iota {dimensions = array<i32: 1>} : vector<1x1x16xi32>
    %c10_i32 = arith.constant 10 : i32
    %964 = vector.broadcast %c10_i32 : i32 to vector<1x1x16xi32>
    %965 = arith.addi %964, %963 : vector<1x1x16xi32>
    %966 = tpu.iota {dimensions = array<i32: 2>} : vector<1x1x16xi32>
    %967 = arith.cmpi sle, %966, %965 : vector<1x1x16xi32>
    %cst_415 = arith.constant 0.000000e+00 : f32
    %cst_416 = arith.constant -1.000000e+30 : f32
    %968 = vector.broadcast %cst_415 : f32 to vector<1x1x16xf32>
    %969 = vector.broadcast %cst_416 : f32 to vector<1x1x16xf32>
    %970 = arith.select %967, %968, %969 : vector<1x1x16xi1>, vector<1x1x16xf32>
    %971 = arith.addf %970, %4 : vector<1x1x16xf32>
    %c0_417 = arith.constant 0 : index
    %c0_418 = arith.constant 0 : index
    %c0_419 = arith.constant 0 : index
    %972 = vector.load %arg5[%c0_417, %c0_418, %c0_419] : memref<2x1x32xbf16, #tpu.memory_space<vmem>>, vector<1x1x32xbf16>
    %973 = vector.shape_cast %972 : vector<1x1x32xbf16> to vector<1x32xbf16>
    %974 = arith.mulf %958, %958 : vector<1x1x32xf32>
    %cst_420 = arith.constant dense<0.000000e+00> : vector<1x1xf32>
    %975 = vector.multi_reduction <add>, %974, %cst_420 [2] : vector<1x1x32xf32> to vector<1x1xf32>
    %976 = vector.shape_cast %975 : vector<1x1xf32> to vector<1x1x1xf32>
    %cst_421 = arith.constant 3.200000e+01 : f32
    %977 = vector.broadcast %cst_421 : f32 to vector<1x1x1xf32>
    %978 = arith.divf %976, %977 : vector<1x1x1xf32>
    %cst_422 = arith.constant 9.99999997E-7 : f32
    %979 = vector.broadcast %cst_422 : f32 to vector<1x1x1xf32>
    %980 = arith.addf %978, %979 : vector<1x1x1xf32>
    %981 = math.rsqrt %980 : vector<1x1x1xf32>
    %982 = vector.broadcast %981 : vector<1x1x1xf32> to vector<1x1x32xf32>
    %983 = arith.mulf %958, %982 : vector<1x1x32xf32>
    %984 = arith.extf %973 : vector<1x32xbf16> to vector<1x32xf32>
    %985 = vector.shape_cast %984 : vector<1x32xf32> to vector<1x1x32xf32>
    %986 = arith.mulf %983, %985 : vector<1x1x32xf32>
    %987 = vector.shape_cast %986 : vector<1x1x32xf32> to vector<1x32xf32>
    %988 = arith.truncf %987 : vector<1x32xf32> to vector<1x32xbf16>
    %c0_423 = arith.constant 0 : index
    %c0_424 = arith.constant 0 : index
    %c0_425 = arith.constant 0 : index
    %989 = vector.load %arg6[%c0_423, %c0_424, %c0_425] : memref<2x32x96xbf16, #tpu.memory_space<vmem>>, vector<1x32x96xbf16>
    %990 = vector.shape_cast %989 : vector<1x32x96xbf16> to vector<32x96xbf16>
    %cst_426 = arith.constant dense<0.000000e+00> : vector<1x96xf32>
    %991 = tpu.matmul %988, %990, %cst_426 {dimension_numbers = #tpu.dot_dimension_numbers<[1], [0], [0], [1], [0, 0, 1, 1], [], []>} : vector<1x32xbf16>, vector<32x96xbf16>, vector<1x96xf32> -> vector<1x96xf32>
    %992 = vector.extract_strided_slice %991 {offsets = [0, 0], sizes = [1, 32], strides = [1, 1]} : vector<1x96xf32> to vector<1x32xf32>
    %993 = vector.shape_cast %992 : vector<1x32xf32> to vector<1x1x32xf32>
    %994 = vector.extract_strided_slice %991 {offsets = [0, 32], sizes = [1, 32], strides = [1, 1]} : vector<1x96xf32> to vector<1x32xf32>
    %995 = vector.shape_cast %994 : vector<1x32xf32> to vector<1x1x32xf32>
    %996 = vector.extract_strided_slice %991 {offsets = [0, 64], sizes = [1, 32], strides = [1, 1]} : vector<1x96xf32> to vector<1x32xf32>
    %997 = vector.shape_cast %996 : vector<1x32xf32> to vector<1x1x32xf32>
    %998 = arith.mulf %993, %961 : vector<1x1x32xf32>
    %999 = vector.extract_strided_slice %993 {offsets = [0, 0, 8], sizes = [1, 1, 8], strides = [1, 1, 1]} : vector<1x1x32xf32> to vector<1x1x8xf32>
    %cst_427 = arith.constant 0.000000e+00 : f32
    %1000 = vector.broadcast %cst_427 : f32 to vector<1x1x8xf32>
    %1001 = arith.subf %1000, %999 : vector<1x1x8xf32>
    %1002 = vector.extract_strided_slice %993 {offsets = [0, 0, 0], sizes = [1, 1, 8], strides = [1, 1, 1]} : vector<1x1x32xf32> to vector<1x1x8xf32>
    %1003 = vector.extract_strided_slice %993 {offsets = [0, 0, 24], sizes = [1, 1, 8], strides = [1, 1, 1]} : vector<1x1x32xf32> to vector<1x1x8xf32>
    %cst_428 = arith.constant 0.000000e+00 : f32
    %1004 = vector.broadcast %cst_428 : f32 to vector<1x1x8xf32>
    %1005 = arith.subf %1004, %1003 : vector<1x1x8xf32>
    %1006 = vector.extract_strided_slice %993 {offsets = [0, 0, 16], sizes = [1, 1, 8], strides = [1, 1, 1]} : vector<1x1x32xf32> to vector<1x1x8xf32>
    %1007 = tpu.concatenate %1001, %1002, %1005, %1006 in 2 : vector<1x1x8xf32>, vector<1x1x8xf32>, vector<1x1x8xf32>, vector<1x1x8xf32> -> vector<1x1x32xf32>
    %1008 = arith.mulf %1007, %962 : vector<1x1x32xf32>
    %1009 = arith.addf %998, %1008 : vector<1x1x32xf32>
    %1010 = arith.mulf %995, %961 : vector<1x1x32xf32>
    %1011 = vector.extract_strided_slice %995 {offsets = [0, 0, 8], sizes = [1, 1, 8], strides = [1, 1, 1]} : vector<1x1x32xf32> to vector<1x1x8xf32>
    %cst_429 = arith.constant 0.000000e+00 : f32
    %1012 = vector.broadcast %cst_429 : f32 to vector<1x1x8xf32>
    %1013 = arith.subf %1012, %1011 : vector<1x1x8xf32>
    %1014 = vector.extract_strided_slice %995 {offsets = [0, 0, 0], sizes = [1, 1, 8], strides = [1, 1, 1]} : vector<1x1x32xf32> to vector<1x1x8xf32>
    %1015 = vector.extract_strided_slice %995 {offsets = [0, 0, 24], sizes = [1, 1, 8], strides = [1, 1, 1]} : vector<1x1x32xf32> to vector<1x1x8xf32>
    %cst_430 = arith.constant 0.000000e+00 : f32
    %1016 = vector.broadcast %cst_430 : f32 to vector<1x1x8xf32>
    %1017 = arith.subf %1016, %1015 : vector<1x1x8xf32>
    %1018 = vector.extract_strided_slice %995 {offsets = [0, 0, 16], sizes = [1, 1, 8], strides = [1, 1, 1]} : vector<1x1x32xf32> to vector<1x1x8xf32>
    %1019 = tpu.concatenate %1013, %1014, %1017, %1018 in 2 : vector<1x1x8xf32>, vector<1x1x8xf32>, vector<1x1x8xf32>, vector<1x1x8xf32> -> vector<1x1x32xf32>
    %1020 = arith.mulf %1019, %962 : vector<1x1x32xf32>
    %1021 = arith.addf %1010, %1020 : vector<1x1x32xf32>
    %c0_431 = arith.constant 0 : index
    %c0_432 = arith.constant 0 : index
    %c10_433 = arith.constant 10 : index
    %c0_434 = arith.constant 0 : index
    %1022 = vector.load %arg13[%c0_431, %c0_432, %c10_433, %c0_434] : memref<2x1x16x32xf32, #tpu.memory_space<vmem>>, vector<1x1x1x32xf32>
    %1023 = vector.shape_cast %1022 : vector<1x1x1x32xf32> to vector<1x1x32xf32>
    %1024 = vector.shape_cast %1021 : vector<1x1x32xf32> to vector<1x1x1x32xf32>
    tpu.vector_store %arg13[%c0_431, %c0_432, %c10_433, %c0_434], %1024 {strides = array<i32>} : memref<2x1x16x32xf32, #tpu.memory_space<vmem>>, vector<1x1x1x32xf32>,
    %c0_435 = arith.constant 0 : index
    %c0_436 = arith.constant 0 : index
    %c10_437 = arith.constant 10 : index
    %c0_438 = arith.constant 0 : index
    %1025 = vector.load %arg14[%c0_435, %c0_436, %c10_437, %c0_438] : memref<2x1x16x32xf32, #tpu.memory_space<vmem>>, vector<1x1x1x32xf32>
    %1026 = vector.shape_cast %1025 : vector<1x1x1x32xf32> to vector<1x1x32xf32>
    %1027 = vector.shape_cast %997 : vector<1x1x32xf32> to vector<1x1x1x32xf32>
    tpu.vector_store %arg14[%c0_435, %c0_436, %c10_437, %c0_438], %1027 {strides = array<i32>} : memref<2x1x16x32xf32, #tpu.memory_space<vmem>>, vector<1x1x1x32xf32>,
    %c0_439 = arith.constant 0 : index
    %c0_440 = arith.constant 0 : index
    %c0_441 = arith.constant 0 : index
    %c0_442 = arith.constant 0 : index
    %1028 = vector.load %arg13[%c0_439, %c0_440, %c0_441, %c0_442] : memref<2x1x16x32xf32, #tpu.memory_space<vmem>>, vector<1x1x16x32xf32>
    %1029 = vector.shape_cast %1028 : vector<1x1x16x32xf32> to vector<1x16x32xf32>
    %c0_443 = arith.constant 0 : index
    %c0_444 = arith.constant 0 : index
    %c0_445 = arith.constant 0 : index
    %c0_446 = arith.constant 0 : index
    %1030 = vector.load %arg14[%c0_443, %c0_444, %c0_445, %c0_446] : memref<2x1x16x32xf32, #tpu.memory_space<vmem>>, vector<1x1x16x32xf32>
    %1031 = vector.shape_cast %1030 : vector<1x1x16x32xf32> to vector<1x16x32xf32>
    %1032 = arith.truncf %1009 : vector<1x1x32xf32> to vector<1x1x32xbf16>
    %1033 = vector.extract_strided_slice %1032 {offsets = [0, 0, 0], sizes = [1, 1, 16], strides = [1, 1, 1]} : vector<1x1x32xbf16> to vector<1x1x16xbf16>
    %1034 = vector.extract_strided_slice %1029 {offsets = [0, 0, 0], sizes = [1, 16, 16], strides = [1, 1, 1]} : vector<1x16x32xf32> to vector<1x16x16xf32>
    %1035 = arith.truncf %1034 : vector<1x16x16xf32> to vector<1x16x16xbf16>
    "tpu.trace_start"() <{level = 10 : i32, message = "bqd,bkd->bqk"}> : () -> ()
    %cst_447 = arith.constant dense<0.000000e+00> : vector<1x1x16xf32>
    %1036 = tpu.matmul %1033, %1035, %cst_447 {dimension_numbers = #tpu.dot_dimension_numbers<[2], [2], [1], [1], [0, 0, 0, 1, 1, 1], [0], [0]>} : vector<1x1x16xbf16>, vector<1x16x16xbf16>, vector<1x1x16xf32> -> vector<1x1x16xf32>
    "tpu.trace_stop"() : () -> ()
    %cst_448 = arith.constant 2.500000e-01 : f32
    %1037 = vector.broadcast %cst_448 : f32 to vector<1x1x16xf32>
    %1038 = arith.mulf %1036, %1037 : vector<1x1x16xf32>
    %1039 = arith.addf %1038, %971 : vector<1x1x16xf32>
    %cst_449 = arith.constant dense<0xFF800000> : vector<1x1xf32>
    %1040 = vector.multi_reduction <maximumf>, %1039, %cst_449 [2] : vector<1x1x16xf32> to vector<1x1xf32>
    %1041 = vector.shape_cast %1040 : vector<1x1xf32> to vector<1x1x1xf32>
    %1042 = vector.broadcast %1041 : vector<1x1x1xf32> to vector<1x1x16xf32>
    %1043 = arith.subf %1039, %1042 : vector<1x1x16xf32>
    %1044 = math.exp %1043 : vector<1x1x16xf32>
    %cst_450 = arith.constant dense<0.000000e+00> : vector<1x1xf32>
    %1045 = vector.multi_reduction <add>, %1044, %cst_450 [2] : vector<1x1x16xf32> to vector<1x1xf32>
    %1046 = vector.shape_cast %1045 : vector<1x1xf32> to vector<1x1x1xf32>
    %1047 = vector.broadcast %1046 : vector<1x1x1xf32> to vector<1x1x16xf32>
    %1048 = arith.divf %1044, %1047 : vector<1x1x16xf32>
    %1049 = arith.truncf %1048 : vector<1x1x16xf32> to vector<1x1x16xbf16>
    %1050 = vector.extract_strided_slice %1031 {offsets = [0, 0, 0], sizes = [1, 16, 16], strides = [1, 1, 1]} : vector<1x16x32xf32> to vector<1x16x16xf32>
    %1051 = arith.truncf %1050 : vector<1x16x16xf32> to vector<1x16x16xbf16>
    "tpu.trace_start"() <{level = 10 : i32, message = "bqk,bkd->bqd"}> : () -> ()
    %cst_451 = arith.constant dense<0.000000e+00> : vector<1x1x16xf32>
    %1052 = tpu.matmul %1049, %1051, %cst_451 {dimension_numbers = #tpu.dot_dimension_numbers<[2], [1], [1], [2], [0, 0, 0, 1, 1, 2], [0], [0]>} : vector<1x1x16xbf16>, vector<1x16x16xbf16>, vector<1x1x16xf32> -> vector<1x1x16xf32>
    "tpu.trace_stop"() : () -> ()
    %1053 = vector.extract_strided_slice %1032 {offsets = [0, 0, 16], sizes = [1, 1, 16], strides = [1, 1, 1]} : vector<1x1x32xbf16> to vector<1x1x16xbf16>
    %1054 = vector.extract_strided_slice %1029 {offsets = [0, 0, 16], sizes = [1, 16, 16], strides = [1, 1, 1]} : vector<1x16x32xf32> to vector<1x16x16xf32>
    %1055 = arith.truncf %1054 : vector<1x16x16xf32> to vector<1x16x16xbf16>
    "tpu.trace_start"() <{level = 10 : i32, message = "bqd,bkd->bqk"}> : () -> ()
    %cst_452 = arith.constant dense<0.000000e+00> : vector<1x1x16xf32>
    %1056 = tpu.matmul %1053, %1055, %cst_452 {dimension_numbers = #tpu.dot_dimension_numbers<[2], [2], [1], [1], [0, 0, 0, 1, 1, 1], [0], [0]>} : vector<1x1x16xbf16>, vector<1x16x16xbf16>, vector<1x1x16xf32> -> vector<1x1x16xf32>
    "tpu.trace_stop"() : () -> ()
    %cst_453 = arith.constant 2.500000e-01 : f32
    %1057 = vector.broadcast %cst_453 : f32 to vector<1x1x16xf32>
    %1058 = arith.mulf %1056, %1057 : vector<1x1x16xf32>
    %1059 = arith.addf %1058, %971 : vector<1x1x16xf32>
    %cst_454 = arith.constant dense<0xFF800000> : vector<1x1xf32>
    %1060 = vector.multi_reduction <maximumf>, %1059, %cst_454 [2] : vector<1x1x16xf32> to vector<1x1xf32>
    %1061 = vector.shape_cast %1060 : vector<1x1xf32> to vector<1x1x1xf32>
    %1062 = vector.broadcast %1061 : vector<1x1x1xf32> to vector<1x1x16xf32>
    %1063 = arith.subf %1059, %1062 : vector<1x1x16xf32>
    %1064 = math.exp %1063 : vector<1x1x16xf32>
    %cst_455 = arith.constant dense<0.000000e+00> : vector<1x1xf32>
    %1065 = vector.multi_reduction <add>, %1064, %cst_455 [2] : vector<1x1x16xf32> to vector<1x1xf32>
    %1066 = vector.shape_cast %1065 : vector<1x1xf32> to vector<1x1x1xf32>
    %1067 = vector.broadcast %1066 : vector<1x1x1xf32> to vector<1x1x16xf32>
    %1068 = arith.divf %1064, %1067 : vector<1x1x16xf32>
    %1069 = arith.truncf %1068 : vector<1x1x16xf32> to vector<1x1x16xbf16>
    %1070 = vector.extract_strided_slice %1031 {offsets = [0, 0, 16], sizes = [1, 16, 16], strides = [1, 1, 1]} : vector<1x16x32xf32> to vector<1x16x16xf32>
    %1071 = arith.truncf %1070 : vector<1x16x16xf32> to vector<1x16x16xbf16>
    "tpu.trace_start"() <{level = 10 : i32, message = "bqk,bkd->bqd"}> : () -> ()
    %cst_456 = arith.constant dense<0.000000e+00> : vector<1x1x16xf32>
    %1072 = tpu.matmul %1069, %1071, %cst_456 {dimension_numbers = #tpu.dot_dimension_numbers<[2], [1], [1], [2], [0, 0, 0, 1, 1, 2], [0], [0]>} : vector<1x1x16xbf16>, vector<1x16x16xbf16>, vector<1x1x16xf32> -> vector<1x1x16xf32>
    "tpu.trace_stop"() : () -> ()
    %1073 = tpu.concatenate %1052, %1072 in 2 : vector<1x1x16xf32>, vector<1x1x16xf32> -> vector<1x1x32xf32>
    %1074 = vector.shape_cast %1073 : vector<1x1x32xf32> to vector<1x32xf32>
    %1075 = arith.truncf %1074 : vector<1x32xf32> to vector<1x32xbf16>
    %c0_457 = arith.constant 0 : index
    %c0_458 = arith.constant 0 : index
    %c0_459 = arith.constant 0 : index
    %1076 = vector.load %arg7[%c0_457, %c0_458, %c0_459] : memref<2x32x32xbf16, #tpu.memory_space<vmem>>, vector<1x32x32xbf16>
    %1077 = vector.shape_cast %1076 : vector<1x32x32xbf16> to vector<32x32xbf16>
    %cst_460 = arith.constant dense<0.000000e+00> : vector<1x32xf32>
    %1078 = tpu.matmul %1075, %1077, %cst_460 {dimension_numbers = #tpu.dot_dimension_numbers<[1], [0], [0], [1], [0, 0, 1, 1], [], []>} : vector<1x32xbf16>, vector<32x32xbf16>, vector<1x32xf32> -> vector<1x32xf32>
    %1079 = vector.shape_cast %1078 : vector<1x32xf32> to vector<1x1x32xf32>
    %1080 = arith.addf %958, %1079 : vector<1x1x32xf32>
    %c0_461 = arith.constant 0 : index
    %c0_462 = arith.constant 0 : index
    %c0_463 = arith.constant 0 : index
    %1081 = vector.load %arg8[%c0_461, %c0_462, %c0_463] : memref<2x1x32xbf16, #tpu.memory_space<vmem>>, vector<1x1x32xbf16>
    %1082 = vector.shape_cast %1081 : vector<1x1x32xbf16> to vector<1x32xbf16>
    %1083 = arith.mulf %1080, %1080 : vector<1x1x32xf32>
    %cst_464 = arith.constant dense<0.000000e+00> : vector<1x1xf32>
    %1084 = vector.multi_reduction <add>, %1083, %cst_464 [2] : vector<1x1x32xf32> to vector<1x1xf32>
    %1085 = vector.shape_cast %1084 : vector<1x1xf32> to vector<1x1x1xf32>
    %cst_465 = arith.constant 3.200000e+01 : f32
    %1086 = vector.broadcast %cst_465 : f32 to vector<1x1x1xf32>
    %1087 = arith.divf %1085, %1086 : vector<1x1x1xf32>
    %cst_466 = arith.constant 9.99999997E-7 : f32
    %1088 = vector.broadcast %cst_466 : f32 to vector<1x1x1xf32>
    %1089 = arith.addf %1087, %1088 : vector<1x1x1xf32>
    %1090 = math.rsqrt %1089 : vector<1x1x1xf32>
    %1091 = vector.broadcast %1090 : vector<1x1x1xf32> to vector<1x1x32xf32>
    %1092 = arith.mulf %1080, %1091 : vector<1x1x32xf32>
    %1093 = arith.extf %1082 : vector<1x32xbf16> to vector<1x32xf32>
    %1094 = vector.shape_cast %1093 : vector<1x32xf32> to vector<1x1x32xf32>
    %1095 = arith.mulf %1092, %1094 : vector<1x1x32xf32>
    %1096 = vector.shape_cast %1095 : vector<1x1x32xf32> to vector<1x32xf32>
    %1097 = arith.truncf %1096 : vector<1x32xf32> to vector<1x32xbf16>
    %c0_467 = arith.constant 0 : index
    %c0_468 = arith.constant 0 : index
    %c0_469 = arith.constant 0 : index
    %1098 = vector.load %arg9[%c0_467, %c0_468, %c0_469] : memref<2x32x128xbf16, #tpu.memory_space<vmem>>, vector<1x32x128xbf16>
    %1099 = vector.shape_cast %1098 : vector<1x32x128xbf16> to vector<32x128xbf16>
    %cst_470 = arith.constant dense<0.000000e+00> : vector<1x128xf32>
    %1100 = tpu.matmul %1097, %1099, %cst_470 {dimension_numbers = #tpu.dot_dimension_numbers<[1], [0], [0], [1], [0, 0, 1, 1], [], []>} : vector<1x32xbf16>, vector<32x128xbf16>, vector<1x128xf32> -> vector<1x128xf32>
    %1101 = vector.extract_strided_slice %1100 {offsets = [0, 0], sizes = [1, 64], strides = [1, 1]} : vector<1x128xf32> to vector<1x64xf32>
    %1102 = vector.extract_strided_slice %1100 {offsets = [0, 64], sizes = [1, 64], strides = [1, 1]} : vector<1x128xf32> to vector<1x64xf32>
    %cst_471 = arith.constant 0.000000e+00 : f32
    %1103 = vector.broadcast %cst_471 : f32 to vector<1x64xf32>
    %1104 = arith.subf %1103, %1101 : vector<1x64xf32>
    %1105 = math.exp %1104 : vector<1x64xf32>
    %cst_472 = arith.constant 1.000000e+00 : f32
    %1106 = vector.broadcast %cst_472 : f32 to vector<1x64xf32>
    %1107 = arith.addf %1106, %1105 : vector<1x64xf32>
    %1108 = arith.divf %1101, %1107 : vector<1x64xf32>
    %1109 = arith.mulf %1108, %1102 : vector<1x64xf32>
    %1110 = arith.truncf %1109 : vector<1x64xf32> to vector<1x64xbf16>
    %c0_473 = arith.constant 0 : index
    %c0_474 = arith.constant 0 : index
    %c0_475 = arith.constant 0 : index
    %1111 = vector.load %arg10[%c0_473, %c0_474, %c0_475] : memref<2x64x32xbf16, #tpu.memory_space<vmem>>, vector<1x64x32xbf16>
    %1112 = vector.shape_cast %1111 : vector<1x64x32xbf16> to vector<64x32xbf16>
    %cst_476 = arith.constant dense<0.000000e+00> : vector<1x32xf32>
    %1113 = tpu.matmul %1110, %1112, %cst_476 {dimension_numbers = #tpu.dot_dimension_numbers<[1], [0], [0], [1], [0, 0, 1, 1], [], []>} : vector<1x64xbf16>, vector<64x32xbf16>, vector<1x32xf32> -> vector<1x32xf32>
    %1114 = vector.shape_cast %1113 : vector<1x32xf32> to vector<1x1x32xf32>
    %1115 = arith.addf %1080, %1114 : vector<1x1x32xf32>
    %c1_477 = arith.constant 1 : index
    %c0_478 = arith.constant 0 : index
    %c0_479 = arith.constant 0 : index
    %1116 = vector.load %arg5[%c1_477, %c0_478, %c0_479] : memref<2x1x32xbf16, #tpu.memory_space<vmem>>, vector<1x1x32xbf16>
    %1117 = vector.shape_cast %1116 : vector<1x1x32xbf16> to vector<1x32xbf16>
    %1118 = arith.mulf %1115, %1115 : vector<1x1x32xf32>
    %cst_480 = arith.constant dense<0.000000e+00> : vector<1x1xf32>
    %1119 = vector.multi_reduction <add>, %1118, %cst_480 [2] : vector<1x1x32xf32> to vector<1x1xf32>
    %1120 = vector.shape_cast %1119 : vector<1x1xf32> to vector<1x1x1xf32>
    %cst_481 = arith.constant 3.200000e+01 : f32
    %1121 = vector.broadcast %cst_481 : f32 to vector<1x1x1xf32>
    %1122 = arith.divf %1120, %1121 : vector<1x1x1xf32>
    %cst_482 = arith.constant 9.99999997E-7 : f32
    %1123 = vector.broadcast %cst_482 : f32 to vector<1x1x1xf32>
    %1124 = arith.addf %1122, %1123 : vector<1x1x1xf32>
    %1125 = math.rsqrt %1124 : vector<1x1x1xf32>
    %1126 = vector.broadcast %1125 : vector<1x1x1xf32> to vector<1x1x32xf32>
    %1127 = arith.mulf %1115, %1126 : vector<1x1x32xf32>
    %1128 = arith.extf %1117 : vector<1x32xbf16> to vector<1x32xf32>
    %1129 = vector.shape_cast %1128 : vector<1x32xf32> to vector<1x1x32xf32>
    %1130 = arith.mulf %1127, %1129 : vector<1x1x32xf32>
    %1131 = vector.shape_cast %1130 : vector<1x1x32xf32> to vector<1x32xf32>
    %1132 = arith.truncf %1131 : vector<1x32xf32> to vector<1x32xbf16>
    %c1_483 = arith.constant 1 : index
    %c0_484 = arith.constant 0 : index
    %c0_485 = arith.constant 0 : index
    %1133 = vector.load %arg6[%c1_483, %c0_484, %c0_485] : memref<2x32x96xbf16, #tpu.memory_space<vmem>>, vector<1x32x96xbf16>
    %1134 = vector.shape_cast %1133 : vector<1x32x96xbf16> to vector<32x96xbf16>
    %cst_486 = arith.constant dense<0.000000e+00> : vector<1x96xf32>
    %1135 = tpu.matmul %1132, %1134, %cst_486 {dimension_numbers = #tpu.dot_dimension_numbers<[1], [0], [0], [1], [0, 0, 1, 1], [], []>} : vector<1x32xbf16>, vector<32x96xbf16>, vector<1x96xf32> -> vector<1x96xf32>
    %1136 = vector.extract_strided_slice %1135 {offsets = [0, 0], sizes = [1, 32], strides = [1, 1]} : vector<1x96xf32> to vector<1x32xf32>
    %1137 = vector.shape_cast %1136 : vector<1x32xf32> to vector<1x1x32xf32>
    %1138 = vector.extract_strided_slice %1135 {offsets = [0, 32], sizes = [1, 32], strides = [1, 1]} : vector<1x96xf32> to vector<1x32xf32>
    %1139 = vector.shape_cast %1138 : vector<1x32xf32> to vector<1x1x32xf32>
    %1140 = vector.extract_strided_slice %1135 {offsets = [0, 64], sizes = [1, 32], strides = [1, 1]} : vector<1x96xf32> to vector<1x32xf32>
    %1141 = vector.shape_cast %1140 : vector<1x32xf32> to vector<1x1x32xf32>
    %1142 = arith.mulf %1137, %961 : vector<1x1x32xf32>
    %1143 = vector.extract_strided_slice %1137 {offsets = [0, 0, 8], sizes = [1, 1, 8], strides = [1, 1, 1]} : vector<1x1x32xf32> to vector<1x1x8xf32>
    %cst_487 = arith.constant 0.000000e+00 : f32
    %1144 = vector.broadcast %cst_487 : f32 to vector<1x1x8xf32>
    %1145 = arith.subf %1144, %1143 : vector<1x1x8xf32>
    %1146 = vector.extract_strided_slice %1137 {offsets = [0, 0, 0], sizes = [1, 1, 8], strides = [1, 1, 1]} : vector<1x1x32xf32> to vector<1x1x8xf32>
    %1147 = vector.extract_strided_slice %1137 {offsets = [0, 0, 24], sizes = [1, 1, 8], strides = [1, 1, 1]} : vector<1x1x32xf32> to vector<1x1x8xf32>
    %cst_488 = arith.constant 0.000000e+00 : f32
    %1148 = vector.broadcast %cst_488 : f32 to vector<1x1x8xf32>
    %1149 = arith.subf %1148, %1147 : vector<1x1x8xf32>
    %1150 = vector.extract_strided_slice %1137 {offsets = [0, 0, 16], sizes = [1, 1, 8], strides = [1, 1, 1]} : vector<1x1x32xf32> to vector<1x1x8xf32>
    %1151 = tpu.concatenate %1145, %1146, %1149, %1150 in 2 : vector<1x1x8xf32>, vector<1x1x8xf32>, vector<1x1x8xf32>, vector<1x1x8xf32> -> vector<1x1x32xf32>
    %1152 = arith.mulf %1151, %962 : vector<1x1x32xf32>
    %1153 = arith.addf %1142, %1152 : vector<1x1x32xf32>
    %1154 = arith.mulf %1139, %961 : vector<1x1x32xf32>
    %1155 = vector.extract_strided_slice %1139 {offsets = [0, 0, 8], sizes = [1, 1, 8], strides = [1, 1, 1]} : vector<1x1x32xf32> to vector<1x1x8xf32>
    %cst_489 = arith.constant 0.000000e+00 : f32
    %1156 = vector.broadcast %cst_489 : f32 to vector<1x1x8xf32>
    %1157 = arith.subf %1156, %1155 : vector<1x1x8xf32>
    %1158 = vector.extract_strided_slice %1139 {offsets = [0, 0, 0], sizes = [1, 1, 8], strides = [1, 1, 1]} : vector<1x1x32xf32> to vector<1x1x8xf32>
    %1159 = vector.extract_strided_slice %1139 {offsets = [0, 0, 24], sizes = [1, 1, 8], strides = [1, 1, 1]} : vector<1x1x32xf32> to vector<1x1x8xf32>
    %cst_490 = arith.constant 0.000000e+00 : f32
    %1160 = vector.broadcast %cst_490 : f32 to vector<1x1x8xf32>
    %1161 = arith.subf %1160, %1159 : vector<1x1x8xf32>
    %1162 = vector.extract_strided_slice %1139 {offsets = [0, 0, 16], sizes = [1, 1, 8], strides = [1, 1, 1]} : vector<1x1x32xf32> to vector<1x1x8xf32>
    %1163 = tpu.concatenate %1157, %1158, %1161, %1162 in 2 : vector<1x1x8xf32>, vector<1x1x8xf32>, vector<1x1x8xf32>, vector<1x1x8xf32> -> vector<1x1x32xf32>
    %1164 = arith.mulf %1163, %962 : vector<1x1x32xf32>
    %1165 = arith.addf %1154, %1164 : vector<1x1x32xf32>
    %c1_491 = arith.constant 1 : index
    %c0_492 = arith.constant 0 : index
    %c10_493 = arith.constant 10 : index
    %c0_494 = arith.constant 0 : index
    %1166 = vector.load %arg13[%c1_491, %c0_492, %c10_493, %c0_494] : memref<2x1x16x32xf32, #tpu.memory_space<vmem>>, vector<1x1x1x32xf32>
    %1167 = vector.shape_cast %1166 : vector<1x1x1x32xf32> to vector<1x1x32xf32>
    %1168 = vector.shape_cast %1165 : vector<1x1x32xf32> to vector<1x1x1x32xf32>
    tpu.vector_store %arg13[%c1_491, %c0_492, %c10_493, %c0_494], %1168 {strides = array<i32>} : memref<2x1x16x32xf32, #tpu.memory_space<vmem>>, vector<1x1x1x32xf32>,
    %c1_495 = arith.constant 1 : index
    %c0_496 = arith.constant 0 : index
    %c10_497 = arith.constant 10 : index
    %c0_498 = arith.constant 0 : index
    %1169 = vector.load %arg14[%c1_495, %c0_496, %c10_497, %c0_498] : memref<2x1x16x32xf32, #tpu.memory_space<vmem>>, vector<1x1x1x32xf32>
    %1170 = vector.shape_cast %1169 : vector<1x1x1x32xf32> to vector<1x1x32xf32>
    %1171 = vector.shape_cast %1141 : vector<1x1x32xf32> to vector<1x1x1x32xf32>
    tpu.vector_store %arg14[%c1_495, %c0_496, %c10_497, %c0_498], %1171 {strides = array<i32>} : memref<2x1x16x32xf32, #tpu.memory_space<vmem>>, vector<1x1x1x32xf32>,
    %c1_499 = arith.constant 1 : index
    %c0_500 = arith.constant 0 : index
    %c0_501 = arith.constant 0 : index
    %c0_502 = arith.constant 0 : index
    %1172 = vector.load %arg13[%c1_499, %c0_500, %c0_501, %c0_502] : memref<2x1x16x32xf32, #tpu.memory_space<vmem>>, vector<1x1x16x32xf32>
    %1173 = vector.shape_cast %1172 : vector<1x1x16x32xf32> to vector<1x16x32xf32>
    %c1_503 = arith.constant 1 : index
    %c0_504 = arith.constant 0 : index
    %c0_505 = arith.constant 0 : index
    %c0_506 = arith.constant 0 : index
    %1174 = vector.load %arg14[%c1_503, %c0_504, %c0_505, %c0_506] : memref<2x1x16x32xf32, #tpu.memory_space<vmem>>, vector<1x1x16x32xf32>
    %1175 = vector.shape_cast %1174 : vector<1x1x16x32xf32> to vector<1x16x32xf32>
    %1176 = arith.truncf %1153 : vector<1x1x32xf32> to vector<1x1x32xbf16>
    %1177 = vector.extract_strided_slice %1176 {offsets = [0, 0, 0], sizes = [1, 1, 16], strides = [1, 1, 1]} : vector<1x1x32xbf16> to vector<1x1x16xbf16>
    %1178 = vector.extract_strided_slice %1173 {offsets = [0, 0, 0], sizes = [1, 16, 16], strides = [1, 1, 1]} : vector<1x16x32xf32> to vector<1x16x16xf32>
    %1179 = arith.truncf %1178 : vector<1x16x16xf32> to vector<1x16x16xbf16>
    "tpu.trace_start"() <{level = 10 : i32, message = "bqd,bkd->bqk"}> : () -> ()
    %cst_507 = arith.constant dense<0.000000e+00> : vector<1x1x16xf32>
    %1180 = tpu.matmul %1177, %1179, %cst_507 {dimension_numbers = #tpu.dot_dimension_numbers<[2], [2], [1], [1], [0, 0, 0, 1, 1, 1], [0], [0]>} : vector<1x1x16xbf16>, vector<1x16x16xbf16>, vector<1x1x16xf32> -> vector<1x1x16xf32>
    "tpu.trace_stop"() : () -> ()
    %cst_508 = arith.constant 2.500000e-01 : f32
    %1181 = vector.broadcast %cst_508 : f32 to vector<1x1x16xf32>
    %1182 = arith.mulf %1180, %1181 : vector<1x1x16xf32>
    %1183 = arith.addf %1182, %971 : vector<1x1x16xf32>
    %cst_509 = arith.constant dense<0xFF800000> : vector<1x1xf32>
    %1184 = vector.multi_reduction <maximumf>, %1183, %cst_509 [2] : vector<1x1x16xf32> to vector<1x1xf32>
    %1185 = vector.shape_cast %1184 : vector<1x1xf32> to vector<1x1x1xf32>
    %1186 = vector.broadcast %1185 : vector<1x1x1xf32> to vector<1x1x16xf32>
    %1187 = arith.subf %1183, %1186 : vector<1x1x16xf32>
    %1188 = math.exp %1187 : vector<1x1x16xf32>
    %cst_510 = arith.constant dense<0.000000e+00> : vector<1x1xf32>
    %1189 = vector.multi_reduction <add>, %1188, %cst_510 [2] : vector<1x1x16xf32> to vector<1x1xf32>
    %1190 = vector.shape_cast %1189 : vector<1x1xf32> to vector<1x1x1xf32>
    %1191 = vector.broadcast %1190 : vector<1x1x1xf32> to vector<1x1x16xf32>
    %1192 = arith.divf %1188, %1191 : vector<1x1x16xf32>
    %1193 = arith.truncf %1192 : vector<1x1x16xf32> to vector<1x1x16xbf16>
    %1194 = vector.extract_strided_slice %1175 {offsets = [0, 0, 0], sizes = [1, 16, 16], strides = [1, 1, 1]} : vector<1x16x32xf32> to vector<1x16x16xf32>
    %1195 = arith.truncf %1194 : vector<1x16x16xf32> to vector<1x16x16xbf16>
    "tpu.trace_start"() <{level = 10 : i32, message = "bqk,bkd->bqd"}> : () -> ()
    %cst_511 = arith.constant dense<0.000000e+00> : vector<1x1x16xf32>
    %1196 = tpu.matmul %1193, %1195, %cst_511 {dimension_numbers = #tpu.dot_dimension_numbers<[2], [1], [1], [2], [0, 0, 0, 1, 1, 2], [0], [0]>} : vector<1x1x16xbf16>, vector<1x16x16xbf16>, vector<1x1x16xf32> -> vector<1x1x16xf32>
    "tpu.trace_stop"() : () -> ()
    %1197 = vector.extract_strided_slice %1176 {offsets = [0, 0, 16], sizes = [1, 1, 16], strides = [1, 1, 1]} : vector<1x1x32xbf16> to vector<1x1x16xbf16>
    %1198 = vector.extract_strided_slice %1173 {offsets = [0, 0, 16], sizes = [1, 16, 16], strides = [1, 1, 1]} : vector<1x16x32xf32> to vector<1x16x16xf32>
    %1199 = arith.truncf %1198 : vector<1x16x16xf32> to vector<1x16x16xbf16>
    "tpu.trace_start"() <{level = 10 : i32, message = "bqd,bkd->bqk"}> : () -> ()
    %cst_512 = arith.constant dense<0.000000e+00> : vector<1x1x16xf32>
    %1200 = tpu.matmul %1197, %1199, %cst_512 {dimension_numbers = #tpu.dot_dimension_numbers<[2], [2], [1], [1], [0, 0, 0, 1, 1, 1], [0], [0]>} : vector<1x1x16xbf16>, vector<1x16x16xbf16>, vector<1x1x16xf32> -> vector<1x1x16xf32>
    "tpu.trace_stop"() : () -> ()
    %cst_513 = arith.constant 2.500000e-01 : f32
    %1201 = vector.broadcast %cst_513 : f32 to vector<1x1x16xf32>
    %1202 = arith.mulf %1200, %1201 : vector<1x1x16xf32>
    %1203 = arith.addf %1202, %971 : vector<1x1x16xf32>
    %cst_514 = arith.constant dense<0xFF800000> : vector<1x1xf32>
    %1204 = vector.multi_reduction <maximumf>, %1203, %cst_514 [2] : vector<1x1x16xf32> to vector<1x1xf32>
    %1205 = vector.shape_cast %1204 : vector<1x1xf32> to vector<1x1x1xf32>
    %1206 = vector.broadcast %1205 : vector<1x1x1xf32> to vector<1x1x16xf32>
    %1207 = arith.subf %1203, %1206 : vector<1x1x16xf32>
    %1208 = math.exp %1207 : vector<1x1x16xf32>
    %cst_515 = arith.constant dense<0.000000e+00> : vector<1x1xf32>
    %1209 = vector.multi_reduction <add>, %1208, %cst_515 [2] : vector<1x1x16xf32> to vector<1x1xf32>
    %1210 = vector.shape_cast %1209 : vector<1x1xf32> to vector<1x1x1xf32>
    %1211 = vector.broadcast %1210 : vector<1x1x1xf32> to vector<1x1x16xf32>
    %1212 = arith.divf %1208, %1211 : vector<1x1x16xf32>
    %1213 = arith.truncf %1212 : vector<1x1x16xf32> to vector<1x1x16xbf16>
    %1214 = vector.extract_strided_slice %1175 {offsets = [0, 0, 16], sizes = [1, 16, 16], strides = [1, 1, 1]} : vector<1x16x32xf32> to vector<1x16x16xf32>
    %1215 = arith.truncf %1214 : vector<1x16x16xf32> to vector<1x16x16xbf16>
    "tpu.trace_start"() <{level = 10 : i32, message = "bqk,bkd->bqd"}> : () -> ()
    %cst_516 = arith.constant dense<0.000000e+00> : vector<1x1x16xf32>
    %1216 = tpu.matmul %1213, %1215, %cst_516 {dimension_numbers = #tpu.dot_dimension_numbers<[2], [1], [1], [2], [0, 0, 0, 1, 1, 2], [0], [0]>} : vector<1x1x16xbf16>, vector<1x16x16xbf16>, vector<1x1x16xf32> -> vector<1x1x16xf32>
    "tpu.trace_stop"() : () -> ()
    %1217 = tpu.concatenate %1196, %1216 in 2 : vector<1x1x16xf32>, vector<1x1x16xf32> -> vector<1x1x32xf32>
    %1218 = vector.shape_cast %1217 : vector<1x1x32xf32> to vector<1x32xf32>
    %1219 = arith.truncf %1218 : vector<1x32xf32> to vector<1x32xbf16>
    %c1_517 = arith.constant 1 : index
    %c0_518 = arith.constant 0 : index
    %c0_519 = arith.constant 0 : index
    %1220 = vector.load %arg7[%c1_517, %c0_518, %c0_519] : memref<2x32x32xbf16, #tpu.memory_space<vmem>>, vector<1x32x32xbf16>
    %1221 = vector.shape_cast %1220 : vector<1x32x32xbf16> to vector<32x32xbf16>
    %cst_520 = arith.constant dense<0.000000e+00> : vector<1x32xf32>
    %1222 = tpu.matmul %1219, %1221, %cst_520 {dimension_numbers = #tpu.dot_dimension_numbers<[1], [0], [0], [1], [0, 0, 1, 1], [], []>} : vector<1x32xbf16>, vector<32x32xbf16>, vector<1x32xf32> -> vector<1x32xf32>
    %1223 = vector.shape_cast %1222 : vector<1x32xf32> to vector<1x1x32xf32>
    %1224 = arith.addf %1115, %1223 : vector<1x1x32xf32>
    %c1_521 = arith.constant 1 : index
    %c0_522 = arith.constant 0 : index
    %c0_523 = arith.constant 0 : index
    %1225 = vector.load %arg8[%c1_521, %c0_522, %c0_523] : memref<2x1x32xbf16, #tpu.memory_space<vmem>>, vector<1x1x32xbf16>
    %1226 = vector.shape_cast %1225 : vector<1x1x32xbf16> to vector<1x32xbf16>
    %1227 = arith.mulf %1224, %1224 : vector<1x1x32xf32>
    %cst_524 = arith.constant dense<0.000000e+00> : vector<1x1xf32>
    %1228 = vector.multi_reduction <add>, %1227, %cst_524 [2] : vector<1x1x32xf32> to vector<1x1xf32>
    %1229 = vector.shape_cast %1228 : vector<1x1xf32> to vector<1x1x1xf32>
    %cst_525 = arith.constant 3.200000e+01 : f32
    %1230 = vector.broadcast %cst_525 : f32 to vector<1x1x1xf32>
    %1231 = arith.divf %1229, %1230 : vector<1x1x1xf32>
    %cst_526 = arith.constant 9.99999997E-7 : f32
    %1232 = vector.broadcast %cst_526 : f32 to vector<1x1x1xf32>
    %1233 = arith.addf %1231, %1232 : vector<1x1x1xf32>
    %1234 = math.rsqrt %1233 : vector<1x1x1xf32>
    %1235 = vector.broadcast %1234 : vector<1x1x1xf32> to vector<1x1x32xf32>
    %1236 = arith.mulf %1224, %1235 : vector<1x1x32xf32>
    %1237 = arith.extf %1226 : vector<1x32xbf16> to vector<1x32xf32>
    %1238 = vector.shape_cast %1237 : vector<1x32xf32> to vector<1x1x32xf32>
    %1239 = arith.mulf %1236, %1238 : vector<1x1x32xf32>
    %1240 = vector.shape_cast %1239 : vector<1x1x32xf32> to vector<1x32xf32>
    %1241 = arith.truncf %1240 : vector<1x32xf32> to vector<1x32xbf16>
    %c1_527 = arith.constant 1 : index
    %c0_528 = arith.constant 0 : index
    %c0_529 = arith.constant 0 : index
    %1242 = vector.load %arg9[%c1_527, %c0_528, %c0_529] : memref<2x32x128xbf16, #tpu.memory_space<vmem>>, vector<1x32x128xbf16>
    %1243 = vector.shape_cast %1242 : vector<1x32x128xbf16> to vector<32x128xbf16>
    %cst_530 = arith.constant dense<0.000000e+00> : vector<1x128xf32>
    %1244 = tpu.matmul %1241, %1243, %cst_530 {dimension_numbers = #tpu.dot_dimension_numbers<[1], [0], [0], [1], [0, 0, 1, 1], [], []>} : vector<1x32xbf16>, vector<32x128xbf16>, vector<1x128xf32> -> vector<1x128xf32>
    %1245 = vector.extract_strided_slice %1244 {offsets = [0, 0], sizes = [1, 64], strides = [1, 1]} : vector<1x128xf32> to vector<1x64xf32>
    %1246 = vector.extract_strided_slice %1244 {offsets = [0, 64], sizes = [1, 64], strides = [1, 1]} : vector<1x128xf32> to vector<1x64xf32>
    %cst_531 = arith.constant 0.000000e+00 : f32
    %1247 = vector.broadcast %cst_531 : f32 to vector<1x64xf32>
    %1248 = arith.subf %1247, %1245 : vector<1x64xf32>
    %1249 = math.exp %1248 : vector<1x64xf32>
    %cst_532 = arith.constant 1.000000e+00 : f32
    %1250 = vector.broadcast %cst_532 : f32 to vector<1x64xf32>
    %1251 = arith.addf %1250, %1249 : vector<1x64xf32>
    %1252 = arith.divf %1245, %1251 : vector<1x64xf32>
    %1253 = arith.mulf %1252, %1246 : vector<1x64xf32>
    %1254 = arith.truncf %1253 : vector<1x64xf32> to vector<1x64xbf16>
    %c1_533 = arith.constant 1 : index
    %c0_534 = arith.constant 0 : index
    %c0_535 = arith.constant 0 : index
    %1255 = vector.load %arg10[%c1_533, %c0_534, %c0_535] : memref<2x64x32xbf16, #tpu.memory_space<vmem>>, vector<1x64x32xbf16>
    %1256 = vector.shape_cast %1255 : vector<1x64x32xbf16> to vector<64x32xbf16>
    %cst_536 = arith.constant dense<0.000000e+00> : vector<1x32xf32>
    %1257 = tpu.matmul %1254, %1256, %cst_536 {dimension_numbers = #tpu.dot_dimension_numbers<[1], [0], [0], [1], [0, 0, 1, 1], [], []>} : vector<1x64xbf16>, vector<64x32xbf16>, vector<1x32xf32> -> vector<1x32xf32>
    %1258 = vector.shape_cast %1257 : vector<1x32xf32> to vector<1x1x32xf32>
    %1259 = arith.addf %1224, %1258 : vector<1x1x32xf32>
    %c0_537 = arith.constant 0 : index
    %c0_538 = arith.constant 0 : index
    %1260 = vector.load %arg11[%c0_537, %c0_538] : memref<1x32xbf16, #tpu.memory_space<vmem>>, vector<1x32xbf16>
    %1261 = arith.mulf %1259, %1259 : vector<1x1x32xf32>
    %cst_539 = arith.constant dense<0.000000e+00> : vector<1x1xf32>
    %1262 = vector.multi_reduction <add>, %1261, %cst_539 [2] : vector<1x1x32xf32> to vector<1x1xf32>
    %1263 = vector.shape_cast %1262 : vector<1x1xf32> to vector<1x1x1xf32>
    %cst_540 = arith.constant 3.200000e+01 : f32
    %1264 = vector.broadcast %cst_540 : f32 to vector<1x1x1xf32>
    %1265 = arith.divf %1263, %1264 : vector<1x1x1xf32>
    %cst_541 = arith.constant 9.99999997E-7 : f32
    %1266 = vector.broadcast %cst_541 : f32 to vector<1x1x1xf32>
    %1267 = arith.addf %1265, %1266 : vector<1x1x1xf32>
    %1268 = math.rsqrt %1267 : vector<1x1x1xf32>
    %1269 = vector.broadcast %1268 : vector<1x1x1xf32> to vector<1x1x32xf32>
    %1270 = arith.mulf %1259, %1269 : vector<1x1x32xf32>
    %1271 = arith.extf %1260 : vector<1x32xbf16> to vector<1x32xf32>
    %1272 = vector.shape_cast %1271 : vector<1x32xf32> to vector<1x1x32xf32>
    %1273 = arith.mulf %1270, %1272 : vector<1x1x32xf32>
    %1274 = arith.truncf %1273 : vector<1x1x32xf32> to vector<1x1x32xbf16>
    %c0_542 = arith.constant 0 : index
    %c0_543 = arith.constant 0 : index
    %c0_544 = arith.constant 0 : index
    %1275 = vector.load %arg12[%c0_542, %c0_543, %c0_544] : memref<1x1x32xbf16, #tpu.memory_space<vmem>>, vector<1x1x32xbf16>
    tpu.vector_store %arg12[%c0_542, %c0_543, %c0_544], %1274 {strides = array<i32>} : memref<1x1x32xbf16, #tpu.memory_space<vmem>>, vector<1x1x32xbf16>,
    return
  }
  func.func @transform_0(%arg0: i32) -> (i32, i32, i32) {
    %c0_i32 = arith.constant 0 : i32
    %c0_i32_0 = arith.constant 0 : i32
    %c0_i32_1 = arith.constant 0 : i32
    return %arg0, %c0_i32, %c0_i32_0 : i32, i32, i32
  }
  func.func @transform_1(%arg0: i32) -> (i32, i32, i32) {
    %c0_i32 = arith.constant 0 : i32
    %c0_i32_0 = arith.constant 0 : i32
    %c0_i32_1 = arith.constant 0 : i32
    return %arg0, %c0_i32, %c0_i32_0 : i32, i32, i32
  }
  func.func @transform_2(%arg0: i32) -> (i32, i32, i32) {
    %c0_i32 = arith.constant 0 : i32
    %c0_i32_0 = arith.constant 0 : i32
    %c0_i32_1 = arith.constant 0 : i32
    return %arg0, %c0_i32, %c0_i32_0 : i32, i32, i32
  }
  func.func @transform_3(%arg0: i32) -> (i32, i32, i32) {
    %c0_i32 = arith.constant 0 : i32
    %c0_i32_0 = arith.constant 0 : i32
    %c0_i32_1 = arith.constant 0 : i32
    return %arg0, %c0_i32, %c0_i32_0 : i32, i32, i32
  }
  func.func @transform_4(%arg0: i32) -> (i32, i32, i32) {
    %c0_i32 = arith.constant 0 : i32
    %c0_i32_0 = arith.constant 0 : i32
    %c0_i32_1 = arith.constant 0 : i32
    %c0_i32_2 = arith.constant 0 : i32
    return %c0_i32, %c0_i32_0, %c0_i32_1 : i32, i32, i32
  }
  func.func @transform_5(%arg0: i32) -> (i32, i32, i32) {
    %c0_i32 = arith.constant 0 : i32
    %c0_i32_0 = arith.constant 0 : i32
    %c0_i32_1 = arith.constant 0 : i32
    %c0_i32_2 = arith.constant 0 : i32
    return %c0_i32, %c0_i32_0, %c0_i32_1 : i32, i32, i32
  }
  func.func @transform_6(%arg0: i32) -> (i32, i32, i32) {
    %c0_i32 = arith.constant 0 : i32
    %c0_i32_0 = arith.constant 0 : i32
    %c0_i32_1 = arith.constant 0 : i32
    %c0_i32_2 = arith.constant 0 : i32
    return %c0_i32, %c0_i32_0, %c0_i32_1 : i32, i32, i32
  }
  func.func @transform_7(%arg0: i32) -> (i32, i32, i32) {
    %c0_i32 = arith.constant 0 : i32
    %c0_i32_0 = arith.constant 0 : i32
    %c0_i32_1 = arith.constant 0 : i32
    %c0_i32_2 = arith.constant 0 : i32
    return %c0_i32, %c0_i32_0, %c0_i32_1 : i32, i32, i32
  }
  func.func @transform_8(%arg0: i32) -> (i32, i32, i32) {
    %c0_i32 = arith.constant 0 : i32
    %c0_i32_0 = arith.constant 0 : i32
    %c0_i32_1 = arith.constant 0 : i32
    %c0_i32_2 = arith.constant 0 : i32
    return %c0_i32, %c0_i32_0, %c0_i32_1 : i32, i32, i32
  }
  func.func @transform_9(%arg0: i32) -> (i32, i32, i32) {
    %c0_i32 = arith.constant 0 : i32
    %c0_i32_0 = arith.constant 0 : i32
    %c0_i32_1 = arith.constant 0 : i32
    %c0_i32_2 = arith.constant 0 : i32
    return %c0_i32, %c0_i32_0, %c0_i32_1 : i32, i32, i32
  }
  func.func @transform_10(%arg0: i32) -> (i32, i32) {
    %c0_i32 = arith.constant 0 : i32
    %c0_i32_0 = arith.constant 0 : i32
    %c0_i32_1 = arith.constant 0 : i32
    return %c0_i32, %c0_i32_0 : i32, i32
  }
  func.func @transform_11(%arg0: i32) -> (i32, i32, i32) {
    %c0_i32 = arith.constant 0 : i32
    %c0_i32_0 = arith.constant 0 : i32
    %c0_i32_1 = arith.constant 0 : i32
    return %arg0, %c0_i32, %c0_i32_0 : i32, i32, i32
  }
  func.func @transform_12(%arg0: i32) -> (i32, i32, i32, i32) {
    %c0_i32 = arith.constant 0 : i32
    %c0_i32_0 = arith.constant 0 : i32
    %c0_i32_1 = arith.constant 0 : i32
    %c0_i32_2 = arith.constant 0 : i32
    return %c0_i32, %arg0, %c0_i32_0, %c0_i32_1 : i32, i32, i32, i32
  }
  func.func @transform_13(%arg0: i32) -> (i32, i32, i32, i32) {
    %c0_i32 = arith.constant 0 : i32
    %c0_i32_0 = arith.constant 0 : i32
    %c0_i32_1 = arith.constant 0 : i32
    %c0_i32_2 = arith.constant 0 : i32
    return %c0_i32, %arg0, %c0_i32_0, %c0_i32_1 : i32, i32, i32, i32
  }
}

</mosaic_0001>

<bundles_post_ra>
// kernel: tpu_custom_call.1
= control target key start
LH: loop header
LB: loop body
LE: loop exit
PB: predicated region body
PF: predicated region fallthrough
CT: control target
= control target key end

     0   :  { %s8543_s0 = inlined_call_operand.hbm [shape: bf16[2,8,32], index: 0, kind: input, shape index: {}]   ;;  %s8544_s1 = inlined_call_operand.vmem [shape: f32[2,16,16], index: 1, kind: input, shape index: {}]   ;;  %s8545_s2 = inlined_call_operand.vmem [shape: f32[2,16,16], index: 2, kind: input, shape index: {}]   ;;  %s8546_s3 = inlined_call_operand.vmem [shape: f32[2,1,16], index: 3, kind: input, shape index: {}]   ;;  %s8547_s4 = inlined_call_operand.vmem [shape: bf16[2,1,32], index: 4, kind: input, shape index: {}]   ;;  %s8548_s5 = inlined_call_operand.vmem [shape: bf16[2,32,96], index: 5, kind: input, shape index: {}]   ;;  %s8549_s6 = inlined_call_operand.hbm [shape: bf16[2,32,32], index: 6, kind: input, shape index: {}]   ;;  %s8550_s7 = inlined_call_operand.vmem [shape: bf16[2,1,32], index: 7, kind: input, shape index: {}]   ;;  %s8551_s8 = inlined_call_operand.hbm [shape: bf16[2,32,128], index: 8, kind: input, shape index: {}]   ;;  %s8552_s9 = inlined_call_operand.vmem [shape: bf16[2,64,32], index: 9, kind: input, shape index: {}]   ;;  %s8553_s10 = inlined_call_operand.vmem [shape: bf16[1,32], index: 10, kind: input, shape index: {}]   ;;  %s8554_s11 = inlined_call_operand.vmem [shape: bf16[2,1,32], index: 11, kind: output, shape index: {0}]   ;;  %s8555_s12 = inlined_call_operand.hbm [shape: f32[2,2,16,32], index: 12, kind: output, shape index: {1}]   ;;  %s8556_s13 = inlined_call_operand.hbm [shape: f32[2,2,16,32], index: 13, kind: output, shape index: {2}]  }
   0x1   :  { %8584 = sst [smem:[#allocation25_spill]] %s8543_s0 }
   0x2   :  { %8585 = sst [smem:[#allocation26_spill]] %s8544_s1 }
   0x3   :  { %8586 = sst [smem:[#allocation27_spill]] %s8545_s2 }
   0x4   :  { %8587 = sst [smem:[#allocation28_spill]] %s8546_s3 }
   0x5   :  { %8588 = sst [smem:[#allocation29_spill]] %s8549_s6 }
   0x6   :  { %8589 = sst [smem:[#allocation30_spill]] %s8551_s8 }
   0x7   :  { %8590 = sst [smem:[#allocation31_spill]] %s8554_s11 }
   0x8   :  { %8591 = sst [smem:[#allocation32_spill]] %s8555_s12 }
   0x9   :  { %8592 = sst [smem:[#allocation33_spill]] %s8556_s13 }
   0xa   :  { %19 = vsyncpa [#allocation3], 0 }
   0xb   :  { %21 = vsyncpa [#allocation3 + $0x1], 0 }
   0xc   :  { %22 = vsyncpa [#allocation6], 0 }
   0xd   :  { %23 = vsyncpa [#allocation4], 0 }
   0xe   :  { %25 = vsyncpa [#allocation4 + $0x1], 0 }
   0xf   :  { %26 = vsyncpa [#allocation10], 0 }
  0x10   :  { %28 = vsyncpa [#allocation10 + $0x1], 0  ;;  %s7167_s25 = smov 0   ;;  %s7169_s26 = smov 0  }
  0x11   :  { %s7171_s27 = smov 0   ;;  %s7173_s28 = smov 0  }
  0x12 LB: > { %8593 = sst [smem:[#allocation19_spill]] %s7051_s25  ;;  %s7188_s29 = sadd.s32 4294967295, %s7063_s28   ;;  %s7063_s28 = sphi %s7173_s28, %s8632_s28   ;;  %s7059_s27 = sphi %s7171_s27, %s8635_s27   ;;  %s7055_s26 = sphi %s7169_s26, %s8634_s26   ;;  %s7051_s25 = sphi %s7167_s25, %s8633_s25  }
  0x13   : > { %8594 = sst [smem:[#allocation20_spill]] %s7055_s26  ;;  %s5691_s30 = sadd.s32 4294967294, %s7063_s28  }
  0x14   : > { %8595 = sst [smem:[#allocation21_spill]] %s7059_s27  ;;  %p54_p0 = scmp.ne.s32.totalorder %s7055_s26, %s7051_s25 }
  0x15   : > { %p8559_p1 = scmp.eq.s32.totalorder %s7188_s29, 0  ;;  %p335_p3 = scmp.eq.s32.totalorder %s5691_s30, 1 }
  0x16   : > { %p5692_p5 = scmp.ge.s32.totalorder %s7063_s28, 1  ;;  %p368_p7 = scmp.lt.s32.totalorder %s7063_s28, 3 }
  0x17   : > { %p7197_p4 = por %p8559_p1, %p54_p0  ;;  %p7202_p6 = por %p335_p3, %p54_p0 }
  0x18   : > { %p7207_p8 = pnand %p5692_p5, %p368_p7  ;;  %s7065_s17 = smov [#allocation5]  }
  0x19   : > { %s8596_s14 = scalar_select %p7197_p4, 1, 0 }
  0x1a   : > { %s8597_s15 = scalar_select %p7202_p6, 1, 0 }
  0x1b   : > { %s386_s18 = sshll.u32 %s7065_s17, 4  ;;  %p6627_p9 = pneg %p7207_p8  ;;  %s7211_s18 = int_to_ptr.vmem [resolvable:$true] %s386_s18 }
  0x1c   : > { %8598 = sst [smem:[#allocation22_spill]] %s8597_s15  ;;  %s7066_s20 = smov [#allocation7]  }
  0x1d   : > { %p7218_p11 = pnand %p6627_p9, %p8559_p1  ;;  %s402_s21 = sshll.u32 %s7066_s20, 4  ;;  %s7222_s21 = int_to_ptr.vmem [resolvable:$true] %s402_s21 }
  0x1e   : > { %s8601_s6 = sld [smem:[#allocation29_spill]] }
  0x1f   : > { %p6933_p13 = pneg %p7218_p11 }
  0x24   : > { %s6931_s24 = scalar_lea.hbm %s8601_s6, 512 }
  0x25   : > { %p6932_p12 = scmp.ne.s32.totalorder %s8601_s6, %s6931_s24  ;;  %p6938_p5 = scmp.lt.u32.totalorder %s6931_s24, %s8601_s6 }
  0x27   : > { %p6934_p0 = pnand %p6933_p13, %p6932_p12 }
  0x29   : > { %p6935_p3 = pneg %p6934_p0 }
  0x2b   : > { %p6940_p7 = pnand %p6938_p5, %p6935_p3 }
  0x2d   : > { %6943 = shalt.err (!%p6940_p7)
}
  0x2e   : > { %s6944_s20 = scalar_lea.vmem %s7211_s18, 512  ;;  %p6952_p2 = scmp.lt.s32.totalorder %s7211_s18, %s7211_s18 }
  0x2f   : > { %p6945_p9 = scmp.ne.s32.totalorder %s7211_s18, %s6944_s20  ;;  %p6953_p12 = scmp.lt.s32.totalorder %s6944_s20, %s6944_s20 }
  0x31   : > { %p6947_p10 = pnand %p6945_p9, %p6933_p13  ;;  %p6954_p0 = por %p6953_p12, %p6952_p2 }
  0x33   : > { %p6948_p1 = pneg %p6947_p10 }
  0x35   : > { %p6955_p6 = pnand %p6954_p0, %p6948_p1 }
  0x37   : > { %6958 = shalt.err (!%p6955_p6)
}
  0x38   : > { %s7067_s25 = smov 64   ;;  %s7068_s15 = smov 4  }
  0x39   : > { %6630 = dma.hbm_to_vmem [thread:$0]  (!%p7218_p11), %s8601_s6, 512, %s7211_s18, [#allocation6], %s7067_s25, %s7067_s25, %s7068_s15  }
  0x3a   : > { %s8602_s8 = sld [smem:[#allocation30_spill]] }
  0x40   : > { %s6959_s17 = scalar_lea.hbm %s8602_s8, 512 }
  0x41   : > { %p6960_p2 = scmp.ne.s32.totalorder %s8602_s8, %s6959_s17  ;;  %p6966_p10 = scmp.lt.u32.totalorder %s6959_s17, %s8602_s8 }
  0x43   : > { %p6962_p1 = pnand %p6960_p2, %p6933_p13 }
  0x45   : > { %p6963_p6 = pneg %p6962_p1 }
  0x47   : > { %p6968_p3 = pnand %p6966_p10, %p6963_p6 }
  0x49   : > { %6971 = shalt.err (!%p6968_p3)
}
  0x4a   : > { %s6972_s18 = scalar_lea.vmem %s7222_s21, 512  ;;  %p6980_p12 = scmp.lt.s32.totalorder %s7222_s21, %s7222_s21 }
  0x4b   : > { %p6973_p5 = scmp.ne.s32.totalorder %s7222_s21, %s6972_s18  ;;  %p6981_p0 = scmp.lt.s32.totalorder %s6972_s18, %s6972_s18 }
  0x4d   : > { %p6975_p7 = pnand %p6973_p5, %p6933_p13  ;;  %p6982_p2 = por %p6981_p0, %p6980_p12 }
  0x4f   : > { %p6976_p9 = pneg %p6975_p7 }
  0x51   : > { %p6983_p1 = pnand %p6982_p2, %p6976_p9 }
  0x53   : > { %6986 = shalt.err (!%p6983_p1)
}
  0x54   : > { %6633 = dma.hbm_to_vmem [thread:$0]  (!%p7218_p11), %s8602_s8, 512, %s7222_s21, [#allocation6], %s7067_s25, %s7067_s25, %s7068_s15  }
  0x55   : > { %s7277_s13 = sadd.s32 1, %s7063_s28   ;;  %s41_s19 = sadd.s32 1, %s7059_s27 }
  0x56   : > { %8603 = sst [smem:[#allocation23_spill]] %s7277_s13  ;;  %s38_s22 = ssub.s32 %s7063_s28, %s7277_s13 }
  0x57   : > { %p48_p13 = scmp.ne.s32.totalorder %s7059_s27, %s7055_s26  ;;  %p39_p6 = scmp.eq.s32.totalorder %s38_s22, 0 }
  0x58   : > { %p49_p10 = scmp.eq.s32.totalorder %s7063_s28, 0  ;;  %p8604_p3 = scmp.eq.s32.totalorder %s7188_s29, 1 }
  0x59   : > { %p6647_p7 = scmp.lt.s32.totalorder %s7063_s28, 2  ;;  %s422_s30 = sand.u32 1, %s7059_s27  }
  0x5a   : > { %p7287_p5 = por %p8604_p3, %p48_p13  ;;  %p50_p9 = por %p49_p10, %p48_p13 }
  0x5b   : > { %s7293_s24 = scalar_select %p39_p6, %s7059_s27, %s41_s19  }
  0x5c   : > { %s8605_s23 = scalar_select %p7287_p5, 1, 0 }
  0x5d   : > { %8606 = sst [smem:[#allocation24_spill]] %s7293_s24  ;;  %s5696_s17 = sshll.u32 %s422_s30, 2 }
  0x5e   : > { %s5697_s21 = sshll.u32 %s7063_s28, 6  ;;  %s8607_s0 = sld [smem:[#allocation25_spill]] }
  0x5f   : > { %s426_s18 = scalar_lea.vmem [#allocation2], %s5696_s17  ;;  %p7304_p11 = pnand %p6647_p7, %p50_p9 }
  0x60   : > { %s433_s11 = sshll.u32 %s426_s18, 4  ;;  %s423_s19 = scalar_lea.sflag [#allocation3], %s422_s30  ;;  %s7302_s11 = int_to_ptr.vmem [resolvable:$true] %s433_s11 }
  0x61   : > { %p6989_p0 = pneg %p7304_p11 }
  0x64   : > { %s7300_s20 = scalar_lea.hbm %s8607_s0, %s5697_s21  ;;  %s6992_s25 = scalar_lea.hbm %s8607_s0, 128 }
  0x65   : > { %s6987_s22 = scalar_lea.hbm %s7300_s20, 64  ;;  %p6993_p13 = scmp.lt.u32.totalorder %s7300_s20, %s8607_s0 }
  0x66   : > { %p6988_p12 = scmp.ne.s32.totalorder %s7300_s20, %s6987_s22  ;;  %p6994_p6 = scmp.lt.u32.totalorder %s6992_s25, %s6987_s22 }
  0x67   : > { %p6996_p3 = scmp.lt.u32.totalorder %s6987_s22, %s7300_s20 }
  0x68   : > { %p6990_p2 = pnand %p6989_p0, %p6988_p12  ;;  %p6995_p10 = por %p6994_p6, %p6993_p13 }
  0x6a   : > { %p6991_p1 = pneg %p6990_p2  ;;  %p6997_p7 = por %p6996_p3, %p6995_p10 }
  0x6c   : > { %p6998_p9 = pnand %p6997_p7, %p6991_p1 }
  0x6e   : > { %7001 = shalt.err (!%p6998_p9)
}
  0x6f   : > { %s7002_s30 = scalar_lea.vmem %s7302_s11, 64  ;;  %s7069_s21 = smov [#allocation2]  }
  0x70   : > { %p7003_p12 = scmp.ne.s32.totalorder %s7302_s11, %s7002_s30  ;;  %s7007_s17 = sshll.u32 %s7069_s21, 4  ;;  %s7008_s17 = int_to_ptr.vmem [resolvable:$false] %s7007_s17 }
  0x71   : > { %s7009_s15 = scalar_lea.vmem %s7008_s17, 128  ;;  %p7010_p4 = scmp.lt.s32.totalorder %s7302_s11, %s7008_s17 }
  0x72   : > { %p7005_p2 = pnand %p7003_p12, %p6989_p0  ;;  %p7011_p13 = scmp.lt.s32.totalorder %s7009_s15, %s7002_s30 }
  0x74   : > { %p7006_p5 = pneg %p7005_p2  ;;  %p7012_p6 = por %p7011_p13, %p7010_p4 }
  0x76   : > { %p7013_p10 = pnand %p7012_p6, %p7006_p5 }
  0x78   : > { %7016 = shalt.err (!%p7013_p10)
}
  0x79   : > { %6637 = dma.hbm_to_vmem [thread:$0]  (!%p7304_p11), %s7300_s20, 64, %s7302_s11, %s423_s19  }
  0x7a   : > { %464 = sbr.rel (%p7207_p8) target bundleno = 22124 (0x566c), region = 64  ;;  %s7336_s22 = sand.u32 (!%p7207_p8), 1, %s7055_s26  }
  0x7b   : > { %s5699_s25 = sshll.u32 (!%p7207_p8), %s7336_s22, 2  ;;  %s467_s18 = scalar_lea.sflag (!%p7207_p8), [#allocation3], %s7336_s22 }
  0x7c   : > { %s470_s30 = scalar_lea.vmem (!%p7207_p8), [#allocation2], %s5699_s25  ;;  %p8609_p4 = scmp.ne.s32.totalorder (!%p7207_p8), %s8596_s14, 0 }
  0x81   : > { %7034 = dma.done.wait (%p8609_p4), %s467_s18, 64  }
  0x82   : > { %7036 = vsyncadd (%p8609_p4), %s467_s18, 4294967232  ;;  %p8610_p5 = scmp.eq.s32.totalorder %s7188_s29, 0 }
  0x84   : > { %7038 = dma.done.wait (%p8610_p5), [#allocation6], 1024   ;;  %p8611_p11 = pmov %p8610_p5 }
  0x85   : > { %vm559_vm0 = vcmask 261120   ;;  %v569_v0 = vld [vmem:[%s470_s30] sm:$0xf]  ;;  %v7070_v5 = vmov 0.0   ;;  %vm7071_vm1 = vmmov 0   ;;  %v6715_v6 = vld [vmem:[%s8548_s5 + $0x8] sm:$0xff]   ;;  %v584_v9 = vlaneseq }
  0x86   : > { %7040 = vsyncadd (%p8611_p11), [#allocation6], 4294966272  ;;  %v7348_v1 = vunpack.c.l.bf16 %v569_v0  ;;  %v6714_v4 = vld [vmem:[%s8548_s5] sm:$0xff]   ;;  %6121 = vmatprep.subr.bf16.mxu1 %v7070_v5  ;;  %6125 = vmatprep.mubr.msk.bf16.mxu1 %vm7071_vm1, %v7070_v5  ;;  %p542_p8 = scmp.lt.s32.totalorder %s7188_s29, 1  ;;  %s8612_s1 = sld [smem:[#allocation26_spill]]  ;;  %vm683_vm2 = vcmask 64512  }
  0x87   : > { %6122 = vmatpush3.bf16.msra.mxu1 %v6714_v4  ;;  %6135 = vmatprep.subr.bf16.mxu0 %v7070_v5  ;;  %v7368_v11 = vshrl.u32 %v584_v9, 7  ;;  %v597_v12 = vld [vmem:[%s8547_s4] sm:$0x1]  ;;  %s8576_s30 = smov 104   ;;  %s8574_s16 = smov 88   ;;  %vm577_vm3 = vcmask 130048  }
  0x88   : > { %v598_v2 = vmul.f32 %v7348_v1, %v7348_v1  ;;  %6123 = vmatprep.subr.bf16.mxu1 %v7070_v5  ;;  %6137 = vmatprep.mubr.msk.bf16.mxu0 %vm7071_vm1, %v7070_v5  ;;  %v607_v14 = vunpack.c.l.bf16 %v597_v12  ;;  %s7383_s21 = scalar_select %p542_p8, %s7188_s29, 1  ;;  %vm686_vm4 = vcmask 195584   ;;  %v7476_v58 = vand.u32 127, %v584_v9 }
  0x89   : > { %v7374_v13 = vsub.s32 0, %v7368_v11  ;;  %s8613_s2 = sld [smem:[#allocation27_spill]]  ;;  %s8570_s12 = smov 16   ;;  %v7080_v61 = vmov -1e+30   ;;  %vm1127_vm6 = vcmask 523264  }
  0x8a   : > { %v599_v3 = vsel %vm559_vm0, %v598_v2, 0.0  ;;  %s5941_s17 = sshll.u32 %s7383_s21, 4  ;;  %s8562_s19 = smov 8   ;;  %vm588_vm5 = vcmp.le.s32.totalorder %v7476_v58, %v7368_v11  ;;  %vm1780_vm7 = vcmask 261127   ;;  %vm1899_vm8 = vcmask 253952  }
  0x8b   : > { %600 = vadd.xlane.f32.xlu0 %v599_v3  ;;  %6124 = vmatpush3.bf16.msra.mxu1 %v6715_v6  ;;  %v611_v15 = vrot.slane %v607_v14, %v7374_v13  ;;  %s8566_s15 = smov 32   ;;  %s8564_s20 = smov 96   ;;  %v589_v62 = vsel %vm588_vm5, 0.0, %v7080_v61  ;;  %vm1959_vm10 = vcmask 122880   ;;  %vm5411_vm13 = vsmask.f32 256 }
  0x8c   : > { %6129 = vmatprep.subr.bf16.mxu1 %v7070_v5  ;;  %s7389_s18 = scalar_lea.vmem %s8612_s1, %s5941_s17  ;;  %s8568_s14 = smov 120   ;;  %vm5412_vm14 = vmand %vm1899_vm8, %vm5411_vm13 }
  0x8d   : > { %v571_v24 = vld [vmem:[%s7389_s18] sm:$0xff]  ;;  %s8614_s3 = sld [smem:[#allocation28_spill]]  ;;  %s8616_s0 = smov 104  }
  0x8e   : > { %s8622_s1 = smov 112   ;;  %s5420_s13 = scalar_lea.sflag [#allocation4], %s7336_s22 }
  0x8f   : > { %s7401_s11 = scalar_lea.vmem %s8613_s2, %s5941_s17  ;;  %s5702_s17 = sshll.u32 %s7336_s22, 5 }
  0x90   : > { %v572_v26 = vld [vmem:[%s7401_s11] sm:$0xff]  ;;  %s7418_s25 = scalar_lea.vmem [#allocation8], %s5702_s17  ;;  %s8623_s2 = smov 16  }
  0x91   : > { %560 = vst.msk [vmem:[%s7418_s25] sm:$0xff] %vm559_vm0, %v7070_v5  ;;  %561 = vst.msk [vmem:[%s7418_s25 + $0x8] sm:$0xff] %vm559_vm0, %v7070_v5  ;;  %s5425_s24 = scalar_lea.sflag [#allocation10], %s7336_s22 }
  0x92   : > { %562 = vst.msk [vmem:[%s7418_s25 + $0x10] sm:$0xff] %vm559_vm0, %v7070_v5  ;;  %563 = vst.msk [vmem:[%s7418_s25 + $0x18] sm:$0xff] %vm559_vm0, %v7070_v5 }
  0x98   : > { %v720_v46 = vld [vmem:[%s7418_s25 + $0x8] sm:$0xff] }
 0x118   : > { %v601_v7 = vpop.xlane.xlu0 %600 }
 0x119   : > { %v603_v8 = vmul.f32 0.03125, %v601_v7 }
 0x11b   : > { %v604_v10 = vadd.f32 1e-06, %v603_v8 }
 0x11d   : > { %6794 = vrsqrt.f32 %v604_v10 }
 0x127   : > { %v6795_v16 = vpop.eup %6794 }
 0x128   : > { %v606_v17 = vmul.f32 %v6795_v16, %v7348_v1 }
 0x12a   : > { %v612_v18 = vmul.f32 %v611_v15, %v606_v17 }
 0x12c   : > { %v613_v19 = vpack.c.bf16 %v612_v18, %v612_v18 }
 0x12e   : > { %6126 = vmatmul.mubr.msk.bf16.vlgmr.msra.gmra.mrb[0].mxu1 %vm559_vm0, %v613_v19 }
 0x12f   : > { %6131 = vmatprep.mubr.msk.bf16.mxu1 %vm7071_vm1, %v7070_v5 }
 0x201   : > { %v7391_v20 = vpop.f32.mrb[0].mxu1 }
 0x202   : > { %698 = vrot.lane.b32.xlu1 %v7391_v20, %s8576_s30  ;;  %v6127_v21 = vpop.f32.mrb[1].mxu1  ;;  %v674_v22 = vsub.f32 0.0, %v7391_v20  ;;  %s8615_s30 = smov 64  }
 0x203   : > { %v670_v23 = vpop.f32.mrb[2].mxu1 }
 0x204   : > { %695 = vrot.lane.b32.xlu0 %v674_v22, %s8574_s16  ;;  %v6128_v25 = vpop.f32.mrb[3].mxu1  ;;  %s8621_s16 = smov 8  }
 0x206   : > { %574 = vrot.lane.b32.xlu1 %v571_v24, %s8570_s12 }
 0x208   : > { %680 = vrot.lane.b32.xlu0 %v7391_v20, %s8562_s19  ;;  %s8572_s19 = smov 112  }
 0x20a   : > { %580 = vrot.lane.b32.xlu1 %v572_v26, %s8570_s12 }
 0x274   : > { %v699_v27 = vpop.permute.xlu1 %698 }
 0x276   : > { %v696_v28 = vpop.permute.xlu0 %695 }
 0x277   : > { %v701_v29 = vsel %vm683_vm2, %v696_v28, %v699_v27 }
 0x278   : > { %v575_v30 = vpop.permute.xlu1 %574  ;;  %v702_v32 = vsel %vm577_vm3, %v701_v29, %v696_v28 }
 0x279   : > { %v7410_v31 = vsel %vm577_vm3, %v571_v24, %v575_v30  ;;  %v703_v35 = vsel %vm686_vm4, %v702_v32, %v699_v27 }
 0x27a   : > { %691 = vrot.lane.b32.xlu1 %v7410_v31, %s8566_s15  ;;  %v681_v42 = vpop.permute.xlu0 %680  ;;  %v673_v48 = vmul.f32 %v7391_v20, %v7410_v31 }
 0x27c   : > { %v581_v33 = vpop.permute.xlu1 %580 }
 0x27d   : > { %v7433_v34 = vsel %vm577_vm3, %v572_v26, %v581_v33 }
 0x27e   : > { %v704_v36 = vmul.f32 %v703_v35, %v7433_v34 }
 0x280   : > { %706 = vrot.lane.b32.xlu1 %v704_v36, %s8566_s15  ;;  %s7494_s15 = scalar_lea.vmem [#allocation9], %s5702_s17  ;;  %s8578_s17 = smov 64  }
 0x281   : > { %564 = vst.msk [vmem:[%s7494_s15] sm:$0xff] %vm559_vm0, %v7070_v5  ;;  %565 = vst.msk [vmem:[%s7494_s15 + $0x8] sm:$0xff] %vm559_vm0, %v7070_v5 }
 0x282   : > { %566 = vst.msk [vmem:[%s7494_s15 + $0x10] sm:$0xff] %vm559_vm0, %v7070_v5  ;;  %567 = vst.msk [vmem:[%s7494_s15 + $0x18] sm:$0xff] %vm559_vm0, %v7070_v5 }
 0x288   : > { %v722_v28 = vld [vmem:[%s7494_s15 + $0x8] sm:$0xff] }
 0x2ec   : > { %v7438_v37 = vpop.permute.xlu1 %691 }
 0x2ed   : > { %v694_v38 = vmul.f32 %v7438_v37, %v7391_v20 }
 0x2f2   : > { %v707_v39 = vpop.permute.xlu1 %706 }
 0x2f3   : > { %v709_v40 = vadd.f32 %v707_v39, %v694_v38 }
 0x2f5   : > { %711 = vrot.lane.b32.xlu1 %v709_v40, %s8564_s20  ;;  %s8620_s20 = smov 96  }
 0x2f9   : > { %676 = vrot.lane.b32.xlu1 %v674_v22, %s8568_s14  ;;  %s7473_s14 = scalar_lea.vmem %s8614_s3, %s7383_s21 }
 0x2fa   : > { %v7479_v59 = vld [vmem:[%s7473_s14] sm:$0x1] }
 0x2fb   : > { %v594_v60 = vrot.slane %v7479_v59, %v7374_v13 }
 0x2fd   : > { %v7486_v63 = vadd.f32 %v594_v60, %v589_v62 }
 0x367   : > { %v712_v41 = vpop.permute.xlu1 %711 }
 0x368   : > { %714 = vst.msk [vmem:[%s7418_s25] sm:$0xff] %vm559_vm0, %v712_v41 }
 0x36b   : > { %v677_v43 = vpop.permute.xlu1 %676 }
 0x36c   : > { %v684_v44 = vsel %vm683_vm2, %v677_v43, %v681_v42 }
 0x36d   : > { %v685_v45 = vsel %vm577_vm3, %v684_v44, %v677_v43  ;;  %v6716_v44 = vld [vmem:[#allocation5] sm:$0xff]  }
 0x36e   : > { %v687_v47 = vsel %vm686_vm4, %v685_v45, %v681_v42 }
 0x36f   : > { %v7453_v49 = vld [vmem:[%s7418_s25] sm:$0xff]  ;;  %v688_v50 = vmul.f32 %v687_v47, %v7433_v34 }
 0x370   : > { %v724_v51 = vpack.c.bf16 %v720_v46, %v7453_v49 }
 0x371   : > { %v689_v52 = vadd.f32 %v688_v50, %v673_v48  ;;  %v6717_v50 = vld [vmem:[#allocation5 + $0x8] sm:$0xff]  }
 0x372   : > { %833 = vrot.lane.b32.xlu1 %v724_v51, %s8572_s19  ;;  %v729_v53 = vsel %vm577_vm3, %v724_v51, 0 }
 0x373   : > { %6130 = vmatpush3.bf16.xpose.msra.mxu1 %v729_v53  ;;  %v723_v54 = vpack.c.bf16 %v689_v52, %v689_v52 }
 0x374   : > { %6141 = vmatprep.subr.bf16.mxu1 %v7070_v5 }
 0x375   : > { %830 = vrot.lane.b32.xlu0 %v723_v54, %s8572_s19 }
 0x37a   : > { %6132 = vmatmul.mubr.msk.bf16.vlgmr.msra.gmra.mrb[4].mxu1 %vm577_vm3, %v723_v54 }
 0x37b   : > { %6143 = vmatprep.mubr.msk.bf16.mxu1 %vm7071_vm1, %v7070_v5 }
 0x3e4   : > { %v834_v55 = vpop.permute.xlu1 %833 }
 0x3e5   : > { %v839_v56 = vsel %vm577_vm3, %v834_v55, 0 }
 0x3e6   : > { %6142 = vmatpush3.bf16.xpose.msra.mxu1 %v839_v56 }
 0x3e7   : > { %6153 = vmatprep.subr.bf16.mxu1 %v7070_v5  ;;  %v831_v57 = vpop.permute.xlu0 %830 }
 0x3ed   : > { %6144 = vmatmul.mubr.msk.bf16.vlgmr.msra.gmra.mrb[8].mxu1 %vm577_vm3, %v831_v57 }
 0x3ee   : > { %6157 = vmatprep.mubr.msk.bf16.mxu1 %vm7071_vm1, %v7070_v5  ;;  %6154 = vmatpush3.bf16.msra.mxu1 %v6716_v44 }
 0x3ef   : > { %6155 = vmatprep.subr.bf16.mxu1 %v7070_v5 }
 0x3f2   : > { %6156 = vmatpush3.bf16.msra.mxu1 %v6717_v50  ;;  %v6725_v50 = vld [vmem:[%s8548_s5 + $0x18] sm:$0xff]  }
 0x3f3   : > { %6169 = vmatprep.subr.bf16.mxu1 %v7070_v5 }
 0x44d   : > { %v765_v0 = vpop.f32.mrb[4].mxu1 }
 0x44e   : > { %v771_v2 = vmul.f32 0.25, %v765_v0  ;;  %v6133_v3 = vpop.f32.mrb[5].mxu1 }
 0x44f   : > { %v768_v4 = vpop.f32.mrb[6].mxu1 }
 0x450   : > { %v6134_v6 = vpop.f32.mrb[7].mxu1  ;;  %v772_v7 = vadd.f32 %v771_v2, %v7486_v63 }
 0x452   : > { %v773_v8 = vsel %vm577_vm3, %v772_v7, -inf }
 0x453   : > { %774 = vmax.xlane.f32.xlu1 %v773_v8  ;;  %v6719_v8 = vld [vmem:[#allocation7 + $0x8] sm:$0xff]  }
 0x4c0   : > { %v875_v9 = vpop.f32.mrb[8].mxu1 }
 0x4c1   : > { %v881_v10 = vmul.f32 0.25, %v875_v9  ;;  %v6145_v12 = vpop.f32.mrb[9].mxu1 }
 0x4c2   : > { %v878_v14 = vpop.f32.mrb[10].mxu1 }
 0x4c3   : > { %v6146_v15 = vpop.f32.mrb[11].mxu1  ;;  %v882_v16 = vadd.f32 %v881_v10, %v7486_v63 }
 0x4c5   : > { %v883_v17 = vsel %vm577_vm3, %v882_v16, -inf }
 0x4c6   : > { %884 = vmax.xlane.f32.xlu0 %v883_v17 }
 0x4dc   : > { %715 = vrot.lane.b32.xlu0 %v7391_v20, %s8578_s17  ;;  %s8618_s17 = smov 120  }
 0x4e0   : > { %v775_v18 = vpop.xlane.xlu1 %774 }
 0x4e1   : > { %v776_v19 = vsub.f32 %v772_v7, %v775_v18  ;;  %v6718_v7 = vld [vmem:[#allocation7] sm:$0xff]  }
 0x4e3   : > { %v777_v21 = vmul.f32 1.442695, %v776_v19 }
 0x4e5   : > { %6796 = vpow2.f32 %v777_v21  ;;  %v6720_v21 = vld [vmem:[%s8552_s9] sm:$0xff]  }
 0x4ef   : > { %v6797_v22 = vpop.eup %6796 }
 0x4f0   : > { %v779_v23 = vsel %vm577_vm3, %v6797_v22, 0.0 }
 0x4f1   : > { %780 = vadd.xlane.f32.xlu1 %v779_v23  ;;  %v6722_v23 = vld [vmem:[%s8552_s9 + $0x10] sm:$0xff]  }
 0x553   : > { %v885_v24 = vpop.xlane.xlu0 %884 }
 0x554   : > { %v886_v25 = vsub.f32 %v882_v16, %v885_v24  ;;  %v6723_v24 = vld [vmem:[%s8552_s9 + $0x18] sm:$0xff]  }
 0x556   : > { %v887_v26 = vmul.f32 1.442695, %v886_v25 }
 0x557   : > { %v716_v27 = vpop.permute.xlu0 %715 }
 0x558   : > { %6798 = vpow2.f32 %v887_v26  ;;  %718 = vst.msk [vmem:[%s7494_s15] sm:$0xff] %vm559_vm0, %v716_v27 }
 0x55f   : > { %v7515_v29 = vld [vmem:[%s7494_s15] sm:$0xff] }
 0x560   : > { %v785_v20 = vpack.c.bf16 %v722_v28, %v7515_v29 }
 0x562   : > { %v6799_v30 = vpop.eup %6798  ;;  %6136 = vmatpush3.bf16.msra.mxu0 %v785_v20 }
 0x563   : > { %v889_v32 = vsel %vm577_vm3, %v6799_v30, 0.0  ;;  %6147 = vmatprep.subr.bf16.mxu0 %v7070_v5 }
 0x564   : > { %890 = vadd.xlane.f32.xlu1 %v889_v32 }
 0x575   : > { %896 = vrot.lane.b32.xlu1 %v785_v20, %s8572_s19  ;;  %s8617_s19 = smov 88  }
 0x57e   : > { %v781_v33 = vpop.xlane.xlu1 %780 }
 0x57f   : > { %6800 = vrcp.f32 %v781_v33 }
 0x589   : > { %v6801_v35 = vpop.eup %6800 }
 0x58a   : > { %v783_v36 = vmul.f32 %v6801_v35, %v6797_v22  ;;  %v6721_v22 = vld [vmem:[%s8552_s9 + $0x8] sm:$0xff]  }
 0x58c   : > { %v784_v38 = vpack.c.bf16 %v783_v36, %v783_v36 }
 0x58e   : > { %6138 = vmatmul.mubr.msk.bf16.vlgmr.msra.gmra.mrb[0].mxu0 %vm577_vm3, %v784_v38 }
 0x58f   : > { %6149 = vmatprep.mubr.msk.bf16.mxu0 %vm7071_vm1, %v7070_v5 }
 0x5f1   : > { %v891_v39 = vpop.xlane.xlu1 %890 }
 0x5f2   : > { %6802 = vrcp.f32 %v891_v39 }
 0x5f5   : > { %v897_v40 = vpop.permute.xlu1 %896 }
 0x5f6   : > { %6148 = vmatpush3.bf16.msra.mxu0 %v897_v40 }
 0x5f7   : > { %6161 = vmatprep.subr.bf16.mxu0 %v7070_v5 }
 0x5fc   : > { %v6803_v41 = vpop.eup %6802 }
 0x5fd   : > { %v893_v42 = vmul.f32 %v6803_v41, %v6799_v30 }
 0x5ff   : > { %v894_v43 = vpack.c.bf16 %v893_v42, %v893_v42 }
 0x601   : > { %6150 = vmatmul.mubr.msk.bf16.vlgmr.msra.gmra.mrb[4].mxu0 %vm577_vm3, %v894_v43 }
 0x602   : > { %6165 = vmatprep.mubr.msk.bf16.mxu0 %vm7071_vm1, %v7070_v5  ;;  %6162 = vmatpush3.bf16.msra.mxu0 %v6718_v7 }
 0x603   : > { %6163 = vmatprep.subr.bf16.mxu0 %v7070_v5 }
 0x606   : > { %6164 = vmatpush3.bf16.msra.mxu0 %v6719_v8 }
 0x607   : > { %6181 = vmatprep.subr.bf16.mxu0 %v7070_v5 }
 0x661   : > { %v823_v45 = vpop.f32.mrb[0].mxu0 }
 0x662   : > { %v6139_v46 = vpop.f32.mrb[1].mxu0 }
 0x663   : > { %v826_v47 = vpop.f32.mrb[2].mxu0 }
 0x664   : > { %v6140_v48 = vpop.f32.mrb[3].mxu0 }
 0x665   : > { %v6724_v48 = vld [vmem:[%s8548_s5 + $0x10] sm:$0xff]  }
 0x6d4   : > { %v936_v51 = vpop.f32.mrb[4].mxu0 }
 0x6d5   : > { %943 = vrot.lane.b32.xlu0 %v936_v51, %s8570_s12  ;;  %v6151_v52 = vpop.f32.mrb[5].mxu0  ;;  %s8619_s12 = smov 32  }
 0x6d6   : > { %v939_v53 = vpop.f32.mrb[6].mxu0 }
 0x6d7   : > { %v6152_v54 = vpop.f32.mrb[7].mxu0 }
 0x6d8   : > { %v5726_v54 = vld [vmem:[%s8547_s4 + $0x1] sm:$0x1] }
 0x747   : > { %v944_v55 = vpop.permute.xlu0 %943 }
 0x748   : > { %v946_v56 = vsel %vm577_vm3, %v823_v45, %v944_v55  ;;  %v1182_v55 = vunpack.c.l.bf16 %v5726_v54 }
 0x749   : > { %v947_v57 = vpack.c.bf16 %v946_v56, %v946_v56 }
 0x74a   : > { %v1186_v56 = vrot.slane %v1182_v55, %v7374_v13 }
 0x74b   : > { %6158 = vmatmul.mubr.msk.bf16.vlgmr.msra.gmra.mrb[12].mxu1 %vm559_vm0, %v947_v57 }
 0x74c   : > { %6177 = vmatprep.mubr.msk.bf16.mxu1 %vm7071_vm1, %v7070_v5  ;;  %6170 = vmatpush3.bf16.msra.mxu1 %v6720_v21 }
 0x74d   : > { %6171 = vmatprep.subr.bf16.mxu1 %v7070_v5 }
 0x750   : > { %6172 = vmatpush3.bf16.msra.mxu1 %v6721_v22 }
 0x751   : > { %6173 = vmatprep.subr.bf16.mxu1 %v7070_v5 }
 0x754   : > { %6174 = vmatpush3.bf16.msra.mxu1 %v6722_v23 }
 0x755   : > { %6175 = vmatprep.subr.bf16.mxu1 %v7070_v5 }
 0x758   : > { %6176 = vmatpush3.bf16.msra.mxu1 %v6723_v24  ;;  %v5737_v24 = vld [vmem:[%s7418_s25 + $0x18] sm:$0xff] }
 0x759   : > { %6195 = vmatprep.subr.bf16.mxu1 %v7070_v5 }
 0x81e   : > { %v1001_v60 = vpop.f32.mrb[12].mxu1 }
 0x81f   : > { %v1007_v62 = vadd.f32 %v1001_v60, %v7348_v1  ;;  %v6159_v0 = vpop.f32.mrb[13].mxu1  ;;  %v1008_v1 = vld [vmem:[%s8550_s7] sm:$0x1] }
 0x820   : > { %v1004_v2 = vpop.f32.mrb[14].mxu1  ;;  %v1017_v14 = vunpack.c.l.bf16 %v1008_v1 }
 0x821   : > { %v6160_v3 = vpop.f32.mrb[15].mxu1  ;;  %v1009_v4 = vmul.f32 %v1007_v62, %v1007_v62 }
 0x822   : > { %v1021_v15 = vrot.slane %v1017_v14, %v7374_v13 }
 0x823   : > { %v1010_v6 = vsel %vm559_vm0, %v1009_v4, 0.0 }
 0x824   : > { %1011 = vadd.xlane.f32.xlu0 %v1010_v6 }
 0x8b1   : > { %v1012_v9 = vpop.xlane.xlu0 %1011 }
 0x8b2   : > { %v1013_v10 = vmul.f32 0.03125, %v1012_v9 }
 0x8b4   : > { %v1014_v12 = vadd.f32 1e-06, %v1013_v10 }
 0x8b6   : > { %6804 = vrsqrt.f32 %v1014_v12 }
 0x8c0   : > { %v6805_v16 = vpop.eup %6804 }
 0x8c1   : > { %v1016_v17 = vmul.f32 %v6805_v16, %v1007_v62 }
 0x8c3   : > { %v1022_v18 = vmul.f32 %v1021_v15, %v1016_v17 }
 0x8c5   : > { %v1023_v19 = vpack.c.bf16 %v1022_v18, %v1022_v18 }
 0x8c7   : > { %6166 = vmatmul.mubr.msk.bf16.vlgmr.msra.gmra.mrb[8].mxu0 %vm559_vm0, %v1023_v19 }
 0x8c8   : > { %6185 = vmatprep.mubr.msk.bf16.mxu0 %vm7071_vm1, %v7070_v5  ;;  %6182 = vmatpush3.bf16.msra.mxu0 %v6724_v48 }
 0x8c9   : > { %6183 = vmatprep.subr.bf16.mxu0 %v7070_v5 }
 0x8cc   : > { %6184 = vmatpush3.bf16.msra.mxu0 %v6725_v50 }
 0x8cd   : > { %6189 = vmatprep.subr.bf16.mxu0 %v7070_v5 }
 0x99a   : > { %v1077_v25 = vpop.f32.mrb[8].mxu0 }
 0x99b   : > { %1090 = vrot.lane.b32.xlu1 %v1077_v25, %s8615_s30  ;;  %v6167_v26 = vpop.f32.mrb[9].mxu0  ;;  %v1083_v20 = vsub.f32 0.0, %v1077_v25 }
 0x99c   : > { %v1080_v27 = vpop.f32.mrb[10].mxu0 }
 0x99d   : > { %v6168_v28 = vpop.f32.mrb[11].mxu0  ;;  %v1084_v30 = vmul.f32 1.442695, %v1083_v20 }
 0x99f   : > { %6806 = vpow2.f32 %v1084_v30 }
 0x9a9   : > { %v6807_v32 = vpop.eup %6806 }
 0x9aa   : > { %v1086_v33 = vadd.f32 1.0, %v6807_v32 }
 0x9ac   : > { %6808 = vrcp.f32 %v1086_v33 }
 0x9b6   : > { %v6809_v35 = vpop.eup %6808 }
 0x9b7   : > { %v1088_v36 = vmul.f32 %v6809_v35, %v1077_v25 }
 0xa0d   : > { %v1091_v38 = vpop.permute.xlu1 %1090 }
 0xa0e   : > { %v1093_v39 = vmul.f32 %v1091_v38, %v1088_v36 }
 0xa10   : > { %v1094_v40 = vpack.c.bf16 %v1093_v39, %v1093_v39 }
 0xa12   : > { %6178 = vmatmul.mubr.msk.bf16.vlgmr.msra.gmra.mrb[16].mxu1 %vm1127_vm6, %v1094_v40 }
 0xa13   : > { %6197 = vmatprep.mubr.msk.bf16.mxu1 %vm7071_vm1, %v7070_v5 }
 0xae5   : > { %v1165_v41 = vpop.f32.mrb[16].mxu1 }
 0xae6   : > { %v7566_v42 = vadd.f32 %v1165_v41, %v1007_v62  ;;  %v6179_v43 = vpop.f32.mrb[17].mxu1 }
 0xae7   : > { %v1168_v44 = vpop.f32.mrb[18].mxu1 }
 0xae8   : > { %v6180_v45 = vpop.f32.mrb[19].mxu1  ;;  %v1174_v46 = vmul.f32 %v7566_v42, %v7566_v42 }
 0xaea   : > { %v1175_v47 = vsel %vm559_vm0, %v1174_v46, 0.0 }
 0xaeb   : > { %1176 = vadd.xlane.f32.xlu1 %v1175_v47 }
 0xb78   : > { %v1177_v51 = vpop.xlane.xlu1 %1176 }
 0xb79   : > { %v1178_v52 = vmul.f32 0.03125, %v1177_v51 }
 0xb7b   : > { %v1179_v53 = vadd.f32 1e-06, %v1178_v52 }
 0xb7d   : > { %6810 = vrsqrt.f32 %v1179_v53 }
 0xb87   : > { %v6811_v57 = vpop.eup %6810 }
 0xb88   : > { %v1181_v60 = vmul.f32 %v6811_v57, %v7566_v42 }
 0xb8a   : > { %v1187_v62 = vmul.f32 %v1186_v56, %v1181_v60 }
 0xb8c   : > { %v1188_v0 = vpack.c.bf16 %v1187_v62, %v1187_v62 }
 0xb8e   : > { %6186 = vmatmul.mubr.msk.bf16.vlgmr.msra.gmra.mrb[12].mxu0 %vm559_vm0, %v1188_v0  ;;  %v5739_v0 = vld [vmem:[%s7494_s15 + $0x18] sm:$0xff] }
 0xb8f   : > { %6191 = vmatprep.mubr.msk.bf16.mxu0 %vm7071_vm1, %v7070_v5 }
 0xc61   : > { %v7587_v2 = vpop.f32.mrb[12].mxu0 }
 0xc62   : > { %1268 = vrot.lane.b32.xlu1 %v7587_v2, %s8616_s0  ;;  %v6187_v3 = vpop.f32.mrb[13].mxu0  ;;  %v1250_v4 = vsub.f32 0.0, %v7587_v2  ;;  %v1264_v15 = vmul.f32 %v7587_v2, %v7438_v37  ;;  %v1249_v27 = vmul.f32 %v7587_v2, %v7410_v31 }
 0xc63   : > { %v1246_v6 = vpop.f32.mrb[14].mxu0 }
 0xc64   : > { %1265 = vrot.lane.b32.xlu0 %v1250_v4, %s8617_s19  ;;  %v6188_v7 = vpop.f32.mrb[15].mxu0 }
 0xc66   : > { %1252 = vrot.lane.b32.xlu1 %v1250_v4, %s8618_s17 }
 0xcd4   : > { %v1269_v8 = vpop.permute.xlu1 %1268 }
 0xcd6   : > { %v1266_v9 = vpop.permute.xlu0 %1265 }
 0xcd7   : > { %v1271_v10 = vsel %vm683_vm2, %v1266_v9, %v1269_v8 }
 0xcd8   : > { %v1272_v12 = vsel %vm577_vm3, %v1271_v10, %v1266_v9  ;;  %v1253_v19 = vpop.permute.xlu1 %1252 }
 0xcd9   : > { %v1273_v1 = vsel %vm686_vm4, %v1272_v12, %v1269_v8 }
 0xcda   : > { %v1274_v14 = vmul.f32 %v1273_v1, %v7433_v34 }
 0xcdc   : > { %1276 = vrot.lane.b32.xlu0 %v1274_v14, %s8619_s12 }
 0xd4e   : > { %v1277_v16 = vpop.permute.xlu0 %1276 }
 0xd4f   : > { %v1279_v17 = vadd.f32 %v1277_v16, %v1264_v15 }
 0xd51   : > { %1281 = vrot.lane.b32.xlu0 %v1279_v17, %s8620_s20  ;;  %v6726_v17 = vld [vmem:[#allocation5 + $0x10] sm:$0xff]  }
 0xd55   : > { %1256 = vrot.lane.b32.xlu0 %v7587_v2, %s8621_s16 }
 0xdc3   : > { %v1282_v18 = vpop.permute.xlu0 %1281 }
 0xdc4   : > { %5734 = vst.msk [vmem:[%s7418_s25 + $0x10] sm:$0xff] %vm559_vm0, %v1282_v18 }
 0xdc7   : > { %v1257_v21 = vpop.permute.xlu0 %1256 }
 0xdc8   : > { %v1259_v22 = vsel %vm683_vm2, %v1253_v19, %v1257_v21 }
 0xdc9   : > { %v1260_v23 = vsel %vm577_vm3, %v1259_v22, %v1253_v19 }
 0xdca   : > { %v1261_v25 = vsel %vm686_vm4, %v1260_v23, %v1257_v21  ;;  %v6727_v23 = vld [vmem:[#allocation5 + $0x18] sm:$0xff]  }
 0xdcb   : > { %v1262_v37 = vmul.f32 %v1261_v25, %v7433_v34  ;;  %v7612_v26 = vld [vmem:[%s7418_s25 + $0x10] sm:$0xff] }
 0xdcc   : > { %v1296_v28 = vpack.c.bf16 %v5737_v24, %v7612_v26 }
 0xdcd   : > { %v1263_v20 = vadd.f32 %v1262_v37, %v1249_v27 }
 0xdce   : > { %1405 = vrot.lane.b32.xlu1 %v1296_v28, %s8622_s1  ;;  %v1301_v30 = vsel %vm577_vm3, %v1296_v28, 0 }
 0xdcf   : > { %6190 = vmatpush3.bf16.xpose.msra.mxu0 %v1301_v30  ;;  %v1295_v32 = vpack.c.bf16 %v1263_v20, %v1263_v20 }
 0xdd0   : > { %6201 = vmatprep.subr.bf16.mxu0 %v7070_v5 }
 0xdd1   : > { %1402 = vrot.lane.b32.xlu0 %v1295_v32, %s8622_s1 }
 0xdd6   : > { %6192 = vmatmul.mubr.msk.bf16.vlgmr.msra.gmra.mrb[16].mxu0 %vm577_vm3, %v1295_v32 }
 0xdd7   : > { %6203 = vmatprep.mubr.msk.bf16.mxu0 %vm7071_vm1, %v7070_v5 }
 0xe40   : > { %v1406_v34 = vpop.permute.xlu1 %1405 }
 0xe41   : > { %v1411_v31 = vsel %vm577_vm3, %v1406_v34, 0 }
 0xe42   : > { %6202 = vmatpush3.bf16.xpose.msra.mxu0 %v1411_v31 }
 0xe43   : > { %6213 = vmatprep.subr.bf16.mxu0 %v7070_v5  ;;  %v1403_v33 = vpop.permute.xlu0 %1402 }
 0xe49   : > { %6204 = vmatmul.mubr.msk.bf16.vlgmr.msra.gmra.mrb[20].mxu0 %vm577_vm3, %v1403_v33 }
 0xe4a   : > { %6217 = vmatprep.mubr.msk.bf16.mxu0 %vm7071_vm1, %v7070_v5  ;;  %6214 = vmatpush3.bf16.msra.mxu0 %v6726_v17 }
 0xe4b   : > { %6215 = vmatprep.subr.bf16.mxu0 %v7070_v5 }
 0xe4e   : > { %6216 = vmatpush3.bf16.msra.mxu0 %v6727_v23  ;;  %v1747_v23 = vld [vmem:[%s8553_s10] sm:$0x1] }
 0xe4f   : > { %6229 = vmatprep.subr.bf16.mxu0 %v7070_v5 }
 0xea9   : > { %v1337_v35 = vpop.f32.mrb[16].mxu0 }
 0xeaa   : > { %v1343_v36 = vmul.f32 0.25, %v1337_v35  ;;  %v6193_v38 = vpop.f32.mrb[17].mxu0 }
 0xeab   : > { %v1340_v39 = vpop.f32.mrb[18].mxu0 }
 0xeac   : > { %v6194_v40 = vpop.f32.mrb[19].mxu0  ;;  %v1344_v41 = vadd.f32 %v1343_v36, %v7486_v63  ;;  %v6728_v39 = vld [vmem:[#allocation7 + $0x10] sm:$0xff]  }
 0xead   : > { %v6729_v40 = vld [vmem:[#allocation7 + $0x18] sm:$0xff]  }
 0xeae   : > { %v1345_v43 = vsel %vm577_vm3, %v1344_v41, -inf }
 0xeaf   : > { %1346 = vmax.xlane.f32.xlu1 %v1345_v43 }
 0xf1c   : > { %v1447_v44 = vpop.f32.mrb[20].mxu0 }
 0xf1d   : > { %v1453_v45 = vmul.f32 0.25, %v1447_v44  ;;  %v6205_v46 = vpop.f32.mrb[21].mxu0 }
 0xf1e   : > { %v1450_v47 = vpop.f32.mrb[22].mxu0 }
 0xf1f   : > { %v6206_v48 = vpop.f32.mrb[23].mxu0  ;;  %v1454_v50 = vadd.f32 %v1453_v45, %v7486_v63 }
 0xf21   : > { %v1455_v51 = vsel %vm577_vm3, %v1454_v50, -inf }
 0xf22   : > { %1456 = vmax.xlane.f32.xlu0 %v1455_v51 }
 0xf38   : > { %1286 = vrot.lane.b32.xlu0 %v7587_v2, %s8615_s30 }
 0xf3c   : > { %v1347_v52 = vpop.xlane.xlu1 %1346 }
 0xf3d   : > { %v1348_v53 = vsub.f32 %v1344_v41, %v1347_v52  ;;  %v6730_v52 = vld [vmem:[%s8552_s9 + $0x20] sm:$0xff]  }
 0xf3f   : > { %v1349_v54 = vmul.f32 1.442695, %v1348_v53  ;;  %v6731_v53 = vld [vmem:[%s8552_s9 + $0x28] sm:$0xff]  }
 0xf41   : > { %6812 = vpow2.f32 %v1349_v54  ;;  %v6732_v54 = vld [vmem:[%s8552_s9 + $0x30] sm:$0xff]  }
 0xf4b   : > { %v6813_v55 = vpop.eup %6812 }
 0xf4c   : > { %v1351_v56 = vsel %vm577_vm3, %v6813_v55, 0.0 }
 0xf4d   : > { %1352 = vadd.xlane.f32.xlu1 %v1351_v56 }
 0xfaf   : > { %v1457_v57 = vpop.xlane.xlu0 %1456 }
 0xfb0   : > { %v1458_v60 = vsub.f32 %v1454_v50, %v1457_v57 }
 0xfb2   : > { %v1459_v63 = vmul.f32 1.442695, %v1458_v60 }
 0xfb3   : > { %v1287_v62 = vpop.permute.xlu0 %1286 }
 0xfb4   : > { %6814 = vpow2.f32 %v1459_v63  ;;  %5735 = vst.msk [vmem:[%s7494_s15 + $0x10] sm:$0xff] %vm559_vm0, %v1287_v62 }
 0xfbb   : > { %v7640_v3 = vld [vmem:[%s7494_s15 + $0x10] sm:$0xff] }
 0xfbc   : > { %v1357_v2 = vpack.c.bf16 %v5739_v0, %v7640_v3 }
 0xfbe   : > { %v6815_v4 = vpop.eup %6814  ;;  %6196 = vmatpush3.bf16.msra.mxu1 %v1357_v2 }
 0xfbf   : > { %v1461_v6 = vsel %vm577_vm3, %v6815_v4, 0.0  ;;  %6207 = vmatprep.subr.bf16.mxu1 %v7070_v5 }
 0xfc0   : > { %1462 = vadd.xlane.f32.xlu1 %v1461_v6 }
 0xfd1   : > { %1468 = vrot.lane.b32.xlu1 %v1357_v2, %s8622_s1 }
 0xfda   : > { %v1353_v7 = vpop.xlane.xlu1 %1352 }
 0xfdb   : > { %6816 = vrcp.f32 %v1353_v7 }
 0xfe5   : > { %v6817_v8 = vpop.eup %6816 }
 0xfe6   : > { %v1355_v9 = vmul.f32 %v6817_v8, %v6813_v55  ;;  %v6733_v55 = vld [vmem:[%s8552_s9 + $0x38] sm:$0xff]  }
 0xfe8   : > { %v1356_v10 = vpack.c.bf16 %v1355_v9, %v1355_v9 }
 0xfea   : > { %6198 = vmatmul.mubr.msk.bf16.vlgmr.msra.gmra.mrb[20].mxu1 %vm577_vm3, %v1356_v10 }
 0xfeb   : > { %6209 = vmatprep.mubr.msk.bf16.mxu1 %vm7071_vm1, %v7070_v5 }
0x104d   : > { %v1463_v12 = vpop.xlane.xlu1 %1462 }
0x104e   : > { %6818 = vrcp.f32 %v1463_v12 }
0x1051   : > { %v1469_v1 = vpop.permute.xlu1 %1468 }
0x1052   : > { %6208 = vmatpush3.bf16.msra.mxu1 %v1469_v1 }
0x1053   : > { %6221 = vmatprep.subr.bf16.mxu1 %v7070_v5 }
0x1058   : > { %v6819_v14 = vpop.eup %6818 }
0x1059   : > { %v1465_v15 = vmul.f32 %v6819_v14, %v6815_v4 }
0x105b   : > { %v1466_v16 = vpack.c.bf16 %v1465_v15, %v1465_v15 }
0x105d   : > { %6210 = vmatmul.mubr.msk.bf16.vlgmr.msra.gmra.mrb[24].mxu1 %vm577_vm3, %v1466_v16 }
0x105e   : > { %6225 = vmatprep.mubr.msk.bf16.mxu1 %vm7071_vm1, %v7070_v5  ;;  %6222 = vmatpush3.bf16.msra.mxu1 %v6728_v39 }
0x105f   : > { %6223 = vmatprep.subr.bf16.mxu1 %v7070_v5 }
0x1062   : > { %6224 = vmatpush3.bf16.msra.mxu1 %v6729_v40 }
0x1063   : > { %6241 = vmatprep.subr.bf16.mxu1 %v7070_v5 }
0x10bd   : > { %v1395_v18 = vpop.f32.mrb[20].mxu1 }
0x10be   : > { %v6199_v19 = vpop.f32.mrb[21].mxu1 }
0x10bf   : > { %v1398_v21 = vpop.f32.mrb[22].mxu1 }
0x10c0   : > { %v6200_v22 = vpop.f32.mrb[23].mxu1 }
0x1130   : > { %v1508_v24 = vpop.f32.mrb[24].mxu1 }
0x1131   : > { %1515 = vrot.lane.b32.xlu0 %v1508_v24, %s8623_s2  ;;  %v6211_v25 = vpop.f32.mrb[25].mxu1  ;;  %v1756_v24 = vunpack.c.l.bf16 %v1747_v23 }
0x1132   : > { %v1511_v37 = vpop.f32.mrb[26].mxu1 }
0x1133   : > { %v6212_v27 = vpop.f32.mrb[27].mxu1  ;;  %v1760_v25 = vrot.slane %v1756_v24, %v7374_v13 }
0x11a3   : > { %v1516_v28 = vpop.permute.xlu0 %1515 }
0x11a4   : > { %v1518_v20 = vsel %vm577_vm3, %v1395_v18, %v1516_v28 }
0x11a5   : > { %v1519_v30 = vpack.c.bf16 %v1518_v20, %v1518_v20 }
0x11a7   : > { %6218 = vmatmul.mubr.msk.bf16.vlgmr.msra.gmra.mrb[24].mxu0 %vm559_vm0, %v1519_v30 }
0x11a8   : > { %6237 = vmatprep.mubr.msk.bf16.mxu0 %vm7071_vm1, %v7070_v5  ;;  %6230 = vmatpush3.bf16.msra.mxu0 %v6730_v52 }
0x11a9   : > { %6231 = vmatprep.subr.bf16.mxu0 %v7070_v5 }
0x11ac   : > { %6232 = vmatpush3.bf16.msra.mxu0 %v6731_v53  ;;  %v1762_v53 = vld [vmem:[%s7389_s18 + $0x8] sm:$0x1] }
0x11ad   : > { %6233 = vmatprep.subr.bf16.mxu0 %v7070_v5 }
0x11b0   : > { %6234 = vmatpush3.bf16.msra.mxu0 %v6732_v54 }
0x11b1   : > { %6235 = vmatprep.subr.bf16.mxu0 %v7070_v5 }
0x11b4   : > { %6236 = vmatpush3.bf16.msra.mxu0 %v6733_v55 }
0x11b5   : > { %6255 = vmatprep.subr.bf16.mxu0 %v7070_v5 }
0x127a   : > { %v1574_v32 = vpop.f32.mrb[24].mxu0 }
0x127b   : > { %v1580_v34 = vadd.f32 %v1574_v32, %v7566_v42  ;;  %v6219_v31 = vpop.f32.mrb[25].mxu0  ;;  %v5747_v42 = vld [vmem:[%s8550_s7 + $0x1] sm:$0x1] }
0x127c   : > { %v1577_v33 = vpop.f32.mrb[26].mxu0  ;;  %v1591_v45 = vunpack.c.l.bf16 %v5747_v42  ;;  %v6734_v32 = vld [vmem:[%s8548_s5] sm:$0xff]  }
0x127d   : > { %v6220_v35 = vpop.f32.mrb[27].mxu0  ;;  %v1583_v36 = vmul.f32 %v1580_v34, %v1580_v34 }
0x127e   : > { %v1595_v46 = vrot.slane %v1591_v45, %v7374_v13 }
0x127f   : > { %v1584_v38 = vsel %vm559_vm0, %v1583_v36, 0.0  ;;  %v1778_v36 = vld [vmem:[%s8547_s4] sm:$0x1] }
0x1280   : > { %1585 = vadd.xlane.f32.xlu0 %v1584_v38  ;;  %v1788_v38 = vunpack.c.l.bf16 %v1778_v36 }
0x1282   : > { %v1793_v39 = vrot.slane %v1788_v38, %v7374_v13 }
0x130d   : > { %v1586_v41 = vpop.xlane.xlu0 %1585 }
0x130e   : > { %v1587_v43 = vmul.f32 0.03125, %v1586_v41 }
0x1310   : > { %v1588_v44 = vadd.f32 1e-06, %v1587_v43 }
0x1312   : > { %6820 = vrsqrt.f32 %v1588_v44 }
0x131c   : > { %v6821_v47 = vpop.eup %6820 }
0x131d   : > { %v1590_v48 = vmul.f32 %v6821_v47, %v1580_v34 }
0x131f   : > { %v1596_v50 = vmul.f32 %v1595_v46, %v1590_v48 }
0x1321   : > { %v1597_v51 = vpack.c.bf16 %v1596_v50, %v1596_v50 }
0x1323   : > { %6226 = vmatmul.mubr.msk.bf16.vlgmr.msra.gmra.mrb[28].mxu1 %vm559_vm0, %v1597_v51  ;;  %v1763_v51 = vld [vmem:[%s7401_s11 + $0x8] sm:$0x1] }
0x1324   : > { %6245 = vmatprep.mubr.msk.bf16.mxu1 %vm7071_vm1, %v7070_v5  ;;  %6242 = vmatpush3.bf16.msra.mxu1 %v6734_v32 }
0x1325   : > { %6243 = vmatprep.subr.bf16.mxu1 %v7070_v5 }
0x13f6   : > { %v1652_v56 = vpop.f32.mrb[28].mxu1 }
0x13f7   : > { %1665 = vrot.lane.b32.xlu1 %v1652_v56, %s8615_s30  ;;  %v6227_v57 = vpop.f32.mrb[29].mxu1  ;;  %v1658_v62 = vsub.f32 0.0, %v1652_v56 }
0x13f8   : > { %v1655_v60 = vpop.f32.mrb[30].mxu1 }
0x13f9   : > { %v6228_v63 = vpop.f32.mrb[31].mxu1  ;;  %v1659_v0 = vmul.f32 1.442695, %v1658_v62 }
0x13fb   : > { %6822 = vpow2.f32 %v1659_v0 }
0x1405   : > { %v6823_v2 = vpop.eup %6822 }
0x1406   : > { %v1661_v4 = vadd.f32 1.0, %v6823_v2 }
0x1408   : > { %6824 = vrcp.f32 %v1661_v4 }
0x1412   : > { %v6825_v6 = vpop.eup %6824 }
0x1413   : > { %v1663_v7 = vmul.f32 %v6825_v6, %v1652_v56 }
0x1469   : > { %v1666_v8 = vpop.permute.xlu1 %1665 }
0x146a   : > { %v1668_v9 = vmul.f32 %v1666_v8, %v1663_v7 }
0x146c   : > { %v1669_v10 = vpack.c.bf16 %v1668_v9, %v1668_v9 }
0x146e   : > { %6238 = vmatmul.mubr.msk.bf16.vlgmr.msra.gmra.mrb[28].mxu0 %vm1127_vm6, %v1669_v10 }
0x146f   : > { %6257 = vmatprep.mubr.msk.bf16.mxu0 %vm7071_vm1, %v7070_v5 }
0x1541   : > { %v1740_v12 = vpop.f32.mrb[28].mxu0 }
0x1542   : > { %v1746_v1 = vadd.f32 %v1740_v12, %v1580_v34  ;;  %v6239_v14 = vpop.f32.mrb[29].mxu0  ;;  %v6735_v34 = vld [vmem:[%s8548_s5 + $0x8] sm:$0xff]  }
0x1543   : > { %v1743_v15 = vpop.f32.mrb[30].mxu0  ;;  %6244 = vmatpush3.bf16.msra.mxu1 %v6735_v34 }
0x1544   : > { %v6240_v16 = vpop.f32.mrb[31].mxu0  ;;  %v1748_v17 = vmul.f32 %v1746_v1, %v1746_v1  ;;  %6249 = vmatprep.subr.bf16.mxu1 %v7070_v5 }
0x1546   : > { %v1749_v18 = vsel %vm559_vm0, %v1748_v17, 0.0 }
0x1547   : > { %1750 = vadd.xlane.f32.xlu1 %v1749_v18 }
0x15d4   : > { %v1751_v19 = vpop.xlane.xlu1 %1750 }
0x15d5   : > { %v1752_v21 = vmul.f32 0.03125, %v1751_v19 }
0x15d7   : > { %v1753_v22 = vadd.f32 1e-06, %v1752_v21 }
0x15d9   : > { %6826 = vrsqrt.f32 %v1753_v22 }
0x15e3   : > { %v6827_v37 = vpop.eup %6826 }
0x15e4   : > { %v1755_v27 = vmul.f32 %v6827_v37, %v1746_v1 }
0x15e6   : > { %v7696_v28 = vmul.f32 %v1760_v25, %v1755_v27  ;;  %v1774_v27 = vadd.s32 8, %v7368_v11 }
0x15e8   : > { %v1779_v20 = vmul.f32 %v7696_v28, %v7696_v28  ;;  %vm1775_vm9 = vcmp.le.s32.totalorder %v7476_v58, %v1774_v27 }
0x15ea   : > { %v1781_v30 = vsel %vm1780_vm7, %v1779_v20, 0.0  ;;  %v1776_v20 = vsel %vm1775_vm9, 0.0, %v7080_v61 }
0x15eb   : > { %1782 = vadd.xlane.f32.xlu0 %v1781_v30  ;;  %v7774_v30 = vadd.f32 %v1776_v20, %v7479_v59 }
0x1678   : > { %v1783_v31 = vpop.xlane.xlu0 %1782 }
0x1679   : > { %v1784_v33 = vmul.f32 0.03125, %v1783_v31 }
0x167b   : > { %v1785_v35 = vadd.f32 1e-06, %v1784_v33 }
0x167d   : > { %6828 = vrsqrt.f32 %v1785_v35 }
0x1687   : > { %v6829_v40 = vpop.eup %6828 }
0x1688   : > { %v1787_v41 = vmul.f32 %v6829_v40, %v7696_v28 }
0x168a   : > { %v1795_v43 = vmul.f32 %v1793_v39, %v1787_v41 }
0x168c   : > { %v1796_v44 = vpack.c.bf16 %v1795_v43, %v1795_v43 }
0x168e   : > { %v1802_v42 = vshrl.u32 %v1796_v44, 16 }
0x1690   : > { %v1804_v45 = vrot.slane %v1802_v42, 3 }
0x1692   : > { %6246 = vmatmul.mubr.msk.bf16.vlgmr.msra.gmra.mrb[32].mxu1 %vm559_vm0, %v1804_v45 }
0x1693   : > { %6251 = vmatprep.mubr.msk.bf16.mxu1 %vm7071_vm1, %v7070_v5 }
0x1765   : > { %v7717_v46 = vpop.f32.mrb[32].mxu1 }
0x1766   : > { %1883 = vrot.lane.b32.xlu1 %v7717_v46, %s8616_s0  ;;  %v6247_v47 = vpop.f32.mrb[33].mxu1  ;;  %v1861_v48 = vsub.f32 0.0, %v7717_v46 }
0x1767   : > { %v1857_v50 = vpop.f32.mrb[34].mxu1 }
0x1768   : > { %1880 = vrot.lane.b32.xlu0 %v1861_v48, %s8617_s19  ;;  %v6248_v52 = vpop.f32.mrb[35].mxu1 }
0x176a   : > { %1770 = vrot.lane.b32.xlu1 %v1763_v51, %s8623_s2 }
0x176c   : > { %1765 = vrot.lane.b32.xlu0 %v1762_v53, %s8623_s2 }
0x17d8   : > { %v1884_v54 = vpop.permute.xlu1 %1883 }
0x17da   : > { %v1881_v55 = vpop.permute.xlu0 %1880 }
0x17db   : > { %v1886_v56 = vsel %vm683_vm2, %v1881_v55, %v1884_v54 }
0x17dc   : > { %v1887_v57 = vsel %vm577_vm3, %v1886_v56, %v1881_v55  ;;  %v1771_v60 = vpop.permute.xlu1 %1770 }
0x17dd   : > { %v7730_v63 = vsel %vm577_vm3, %v1763_v51, %v1771_v60  ;;  %v1888_v62 = vsel %vm686_vm4, %v1887_v57, %v1884_v54 }
0x17de   : > { %v1766_v0 = vpop.permute.xlu0 %1765  ;;  %v1889_v2 = vmul.f32 %v1888_v62, %v7730_v63 }
0x17df   : > { %v7735_v4 = vsel %vm577_vm3, %v1762_v53, %v1766_v0 }
0x17e0   : > { %1891 = vrot.lane.b32.xlu1 %v1889_v2, %s8619_s12  ;;  %1876 = vrot.lane.b32.xlu0 %v7735_v4, %s8619_s12  ;;  %v1860_v17 = vmul.f32 %v7717_v46, %v7735_v4 }
0x17e4   : > { %1863 = vrot.lane.b32.xlu1 %v1861_v48, %s8618_s17 }
0x1852   : > { %v7741_v6 = vpop.permute.xlu0 %1876  ;;  %v1892_v8 = vpop.permute.xlu1 %1891 }
0x1853   : > { %v1879_v7 = vmul.f32 %v7741_v6, %v7717_v46 }
0x1855   : > { %v1894_v9 = vadd.f32 %v1892_v8, %v1879_v7 }
0x1856   : > { %v1864_v12 = vpop.permute.xlu1 %1863 }
0x1857   : > { %1896 = vrot.lane.b32.xlu0 %v1894_v9, %s8620_s20 }
0x185b   : > { %1867 = vrot.lane.b32.xlu0 %v7717_v46, %s8621_s16 }
0x18c9   : > { %v1897_v10 = vpop.permute.xlu0 %1896 }
0x18ca   : > { %1900 = vst.msk [vmem:[%s7418_s25 + $0x8] sm:$0x1] %vm1899_vm8, %v1897_v10 }
0x18cd   : > { %v1868_v1 = vpop.permute.xlu0 %1867 }
0x18ce   : > { %v1870_v14 = vsel %vm683_vm2, %v1864_v12, %v1868_v1 }
0x18cf   : > { %v1871_v15 = vsel %vm577_vm3, %v1870_v14, %v1864_v12 }
0x18d0   : > { %v1872_v16 = vsel %vm686_vm4, %v1871_v15, %v1868_v1  ;;  %v6736_v1 = vld [vmem:[#allocation5] sm:$0xff]  }
0x18d1   : > { %v1873_v18 = vmul.f32 %v1872_v16, %v7730_v63  ;;  %v1906_v19 = vld [vmem:[%s7418_s25 + $0x8] sm:$0xff] }
0x18d2   : > { %v1910_v21 = vpack.c.bf16 %v1906_v19, %v7453_v49 }
0x18d3   : > { %v1874_v22 = vadd.f32 %v1873_v18, %v1860_v17  ;;  %v6737_v18 = vld [vmem:[#allocation5 + $0x8] sm:$0xff]  }
0x18d4   : > { %2020 = vrot.lane.b32.xlu1 %v1910_v21, %s8622_s1  ;;  %v1915_v23 = vsel %vm577_vm3, %v1910_v21, 0 }
0x18d5   : > { %6250 = vmatpush3.bf16.xpose.msra.mxu1 %v1915_v23  ;;  %v1909_v24 = vpack.c.bf16 %v1874_v22, %v1874_v22 }
0x18d6   : > { %6261 = vmatprep.subr.bf16.mxu1 %v7070_v5 }
0x18d7   : > { %2017 = vrot.lane.b32.xlu0 %v1909_v24, %s8622_s1 }
0x18dc   : > { %6252 = vmatmul.mubr.msk.bf16.vlgmr.msra.gmra.mrb[36].mxu1 %vm577_vm3, %v1909_v24 }
0x18dd   : > { %6263 = vmatprep.mubr.msk.bf16.mxu1 %vm7071_vm1, %v7070_v5 }
0x1946   : > { %v2021_v25 = vpop.permute.xlu1 %2020 }
0x1947   : > { %v2026_v37 = vsel %vm577_vm3, %v2021_v25, 0 }
0x1948   : > { %6262 = vmatpush3.bf16.xpose.msra.mxu1 %v2026_v37 }
0x1949   : > { %6273 = vmatprep.subr.bf16.mxu1 %v7070_v5  ;;  %v2018_v49 = vpop.permute.xlu0 %2017 }
0x194f   : > { %6264 = vmatmul.mubr.msk.bf16.vlgmr.msra.gmra.mrb[40].mxu1 %vm577_vm3, %v2018_v49 }
0x1950   : > { %6277 = vmatprep.mubr.msk.bf16.mxu1 %vm7071_vm1, %v7070_v5  ;;  %6274 = vmatpush3.bf16.msra.mxu1 %v6736_v1 }
0x1951   : > { %6275 = vmatprep.subr.bf16.mxu1 %v7070_v5 }
0x1954   : > { %6276 = vmatpush3.bf16.msra.mxu1 %v6737_v18 }
0x1955   : > { %6289 = vmatprep.subr.bf16.mxu1 %v7070_v5 }
0x19af   : > { %v1951_v32 = vpop.f32.mrb[36].mxu1 }
0x19b0   : > { %v1957_v34 = vmul.f32 0.25, %v1951_v32  ;;  %v6253_v31 = vpop.f32.mrb[37].mxu1 }
0x19b1   : > { %v1954_v33 = vpop.f32.mrb[38].mxu1 }
0x19b2   : > { %v6254_v35 = vpop.f32.mrb[39].mxu1  ;;  %v1958_v36 = vadd.f32 %v1957_v34, %v7774_v30 }
0x19b4   : > { %v1960_v38 = vsel %vm1959_vm10, %v1958_v36, -inf }
0x19b5   : > { %1961 = vmax.xlane.f32.xlu1 %v1960_v38  ;;  %v6739_v38 = vld [vmem:[#allocation7 + $0x8] sm:$0xff]  }
0x1a22   : > { %v2062_v39 = vpop.f32.mrb[40].mxu1 }
0x1a23   : > { %v2068_v40 = vmul.f32 0.25, %v2062_v39  ;;  %v6265_v41 = vpop.f32.mrb[41].mxu1 }
0x1a24   : > { %v2065_v43 = vpop.f32.mrb[42].mxu1 }
0x1a25   : > { %v6266_v44 = vpop.f32.mrb[43].mxu1  ;;  %v2069_v42 = vadd.f32 %v2068_v40, %v7774_v30 }
0x1a27   : > { %v2070_v59 = vsel %vm1959_vm10, %v2069_v42, -inf }
0x1a28   : > { %2071 = vmax.xlane.f32.xlu0 %v2070_v59 }
0x1a3e   : > { %1901 = vrot.lane.b32.xlu0 %v7717_v46, %s8615_s30 }
0x1a42   : > { %v1962_v45 = vpop.xlane.xlu1 %1961 }
0x1a43   : > { %v1963_v47 = vsub.f32 %v1958_v36, %v1962_v45  ;;  %v6738_v36 = vld [vmem:[#allocation7] sm:$0xff]  }
0x1a45   : > { %v1964_v48 = vmul.f32 1.442695, %v1963_v47 }
0x1a47   : > { %6830 = vpow2.f32 %v1964_v48 }
0x1a51   : > { %v6831_v50 = vpop.eup %6830 }
0x1a52   : > { %v1966_v51 = vsel %vm1959_vm10, %v6831_v50, 0.0 }
0x1a53   : > { %1967 = vadd.xlane.f32.xlu1 %v1966_v51  ;;  %v6740_v51 = vld [vmem:[%s8552_s9] sm:$0xff]  }
0x1ab5   : > { %v2072_v52 = vpop.xlane.xlu0 %2071 }
0x1ab6   : > { %v2073_v53 = vsub.f32 %v2069_v42, %v2072_v52  ;;  %v6741_v52 = vld [vmem:[%s8552_s9 + $0x8] sm:$0xff]  }
0x1ab8   : > { %v2074_v54 = vmul.f32 1.442695, %v2073_v53  ;;  %v6742_v53 = vld [vmem:[%s8552_s9 + $0x10] sm:$0xff]  }
0x1ab9   : > { %v1902_v55 = vpop.permute.xlu0 %1901 }
0x1aba   : > { %6832 = vpow2.f32 %v2074_v54  ;;  %1904 = vst.msk [vmem:[%s7494_s15 + $0x8] sm:$0x1] %vm1899_vm8, %v1902_v55  ;;  %v6743_v54 = vld [vmem:[%s8552_s9 + $0x18] sm:$0xff]  }
0x1ac1   : > { %v1908_v56 = vld [vmem:[%s7494_s15 + $0x8] sm:$0xff] }
0x1ac2   : > { %v1972_v57 = vpack.c.bf16 %v1908_v56, %v7515_v29 }
0x1ac4   : > { %v6833_v60 = vpop.eup %6832  ;;  %6256 = vmatpush3.bf16.msra.mxu0 %v1972_v57 }
0x1ac5   : > { %v2076_v46 = vsel %vm1959_vm10, %v6833_v60, 0.0  ;;  %6267 = vmatprep.subr.bf16.mxu0 %v7070_v5 }
0x1ac6   : > { %2077 = vadd.xlane.f32.xlu1 %v2076_v46 }
0x1ad7   : > { %2083 = vrot.lane.b32.xlu1 %v1972_v57, %s8622_s1 }
0x1ae0   : > { %v1968_v62 = vpop.xlane.xlu1 %1967 }
0x1ae1   : > { %6834 = vrcp.f32 %v1968_v62 }
0x1aeb   : > { %v6835_v0 = vpop.eup %6834 }
0x1aec   : > { %v1970_v2 = vmul.f32 %v6835_v0, %v6831_v50 }
0x1aee   : > { %v1971_v7 = vpack.c.bf16 %v1970_v2, %v1970_v2 }
0x1af0   : > { %6258 = vmatmul.mubr.msk.bf16.vlgmr.msra.gmra.mrb[32].mxu0 %vm577_vm3, %v1971_v7 }
0x1af1   : > { %6269 = vmatprep.mubr.msk.bf16.mxu0 %vm7071_vm1, %v7070_v5 }
0x1b53   : > { %v2078_v29 = vpop.xlane.xlu1 %2077 }
0x1b54   : > { %6836 = vrcp.f32 %v2078_v29 }
0x1b57   : > { %v2084_v8 = vpop.permute.xlu1 %2083 }
0x1b58   : > { %6268 = vmatpush3.bf16.msra.mxu0 %v2084_v8 }
0x1b59   : > { %6281 = vmatprep.subr.bf16.mxu0 %v7070_v5 }
0x1b5e   : > { %v6837_v9 = vpop.eup %6836 }
0x1b5f   : > { %v2080_v10 = vmul.f32 %v6837_v9, %v6833_v60 }
0x1b61   : > { %v2081_v12 = vpack.c.bf16 %v2080_v10, %v2080_v10 }
0x1b63   : > { %6270 = vmatmul.mubr.msk.bf16.vlgmr.msra.gmra.mrb[36].mxu0 %vm577_vm3, %v2081_v12 }
0x1b64   : > { %6285 = vmatprep.mubr.msk.bf16.mxu0 %vm7071_vm1, %v7070_v5  ;;  %6282 = vmatpush3.bf16.msra.mxu0 %v6738_v36 }
0x1b65   : > { %6283 = vmatprep.subr.bf16.mxu0 %v7070_v5 }
0x1b68   : > { %6284 = vmatpush3.bf16.msra.mxu0 %v6739_v38 }
0x1b69   : > { %6301 = vmatprep.subr.bf16.mxu0 %v7070_v5 }
0x1bc3   : > { %v2010_v14 = vpop.f32.mrb[32].mxu0 }
0x1bc4   : > { %v6259_v15 = vpop.f32.mrb[33].mxu0 }
0x1bc5   : > { %v2013_v16 = vpop.f32.mrb[34].mxu0 }
0x1bc6   : > { %v6260_v17 = vpop.f32.mrb[35].mxu0 }
0x1c36   : > { %v2123_v19 = vpop.f32.mrb[36].mxu0 }
0x1c37   : > { %2130 = vrot.lane.b32.xlu0 %v2123_v19, %s8623_s2  ;;  %v6271_v21 = vpop.f32.mrb[37].mxu0 }
0x1c38   : > { %v2126_v22 = vpop.f32.mrb[38].mxu0  ;;  %v6744_v21 = vld [vmem:[%s8548_s5 + $0x10] sm:$0xff]  }
0x1c39   : > { %v6272_v23 = vpop.f32.mrb[39].mxu0  ;;  %v6745_v22 = vld [vmem:[%s8548_s5 + $0x18] sm:$0xff]  }
0x1ca9   : > { %v2131_v24 = vpop.permute.xlu0 %2130 }
0x1caa   : > { %v2133_v25 = vsel %vm577_vm3, %v2010_v14, %v2131_v24 }
0x1cab   : > { %v2134_v37 = vpack.c.bf16 %v2133_v25, %v2133_v25 }
0x1cad   : > { %6278 = vmatmul.mubr.msk.bf16.vlgmr.msra.gmra.mrb[44].mxu1 %vm559_vm0, %v2134_v37  ;;  %v5782_v37 = vld [vmem:[%s8547_s4 + $0x1] sm:$0x1] }
0x1cae   : > { %6297 = vmatprep.mubr.msk.bf16.mxu1 %vm7071_vm1, %v7070_v5  ;;  %6290 = vmatpush3.bf16.msra.mxu1 %v6740_v51 }
0x1caf   : > { %6291 = vmatprep.subr.bf16.mxu1 %v7070_v5 }
0x1cb2   : > { %6292 = vmatpush3.bf16.msra.mxu1 %v6741_v52 }
0x1cb3   : > { %6293 = vmatprep.subr.bf16.mxu1 %v7070_v5 }
0x1cb6   : > { %6294 = vmatpush3.bf16.msra.mxu1 %v6742_v53 }
0x1cb7   : > { %6295 = vmatprep.subr.bf16.mxu1 %v7070_v5 }
0x1cba   : > { %6296 = vmatpush3.bf16.msra.mxu1 %v6743_v54 }
0x1cbb   : > { %6315 = vmatprep.subr.bf16.mxu1 %v7070_v5 }
0x1d80   : > { %v2188_v49 = vpop.f32.mrb[44].mxu1 }
0x1d81   : > { %v2195_v27 = vrot.slane %v2188_v49, 1  ;;  %v6279_v20 = vpop.f32.mrb[45].mxu1  ;;  %v2379_v49 = vunpack.c.l.bf16 %v5782_v37 }
0x1d82   : > { %v2191_v32 = vpop.f32.mrb[46].mxu1 }
0x1d83   : > { %v2197_v34 = vadd.f32 %v2195_v27, %v7696_v28  ;;  %v6280_v31 = vpop.f32.mrb[47].mxu1  ;;  %v2198_v28 = vld [vmem:[%s8550_s7] sm:$0x1]  ;;  %v2384_v27 = vrot.slane %v2379_v49, %v7374_v13 }
0x1d84   : > { %v2207_v43 = vunpack.c.l.bf16 %v2198_v28 }
0x1d85   : > { %v2199_v33 = vmul.f32 %v2197_v34, %v2197_v34 }
0x1d86   : > { %v2212_v44 = vrot.slane %v2207_v43, %v7374_v13 }
0x1d87   : > { %v2200_v35 = vsel %vm1780_vm7, %v2199_v33, 0.0 }
0x1d88   : > { %2201 = vadd.xlane.f32.xlu0 %v2200_v35 }
0x1e15   : > { %v2202_v39 = vpop.xlane.xlu0 %2201 }
0x1e16   : > { %v2203_v40 = vmul.f32 0.03125, %v2202_v39 }
0x1e18   : > { %v2204_v41 = vadd.f32 1e-06, %v2203_v40 }
0x1e1a   : > { %6838 = vrsqrt.f32 %v2204_v41 }
0x1e24   : > { %v6839_v42 = vpop.eup %6838 }
0x1e25   : > { %v2206_v59 = vmul.f32 %v6839_v42, %v2197_v34 }
0x1e27   : > { %v2214_v45 = vmul.f32 %v2212_v44, %v2206_v59 }
0x1e29   : > { %v2215_v47 = vpack.c.bf16 %v2214_v45, %v2214_v45 }
0x1e2b   : > { %v2221_v48 = vshrl.u32 %v2215_v47, 16 }
0x1e2d   : > { %v2223_v50 = vrot.slane %v2221_v48, 3 }
0x1e2f   : > { %6286 = vmatmul.mubr.msk.bf16.vlgmr.msra.gmra.mrb[40].mxu0 %vm559_vm0, %v2223_v50 }
0x1e30   : > { %6305 = vmatprep.mubr.msk.bf16.mxu0 %vm7071_vm1, %v7070_v5  ;;  %6302 = vmatpush3.bf16.msra.mxu0 %v6744_v21 }
0x1e31   : > { %6303 = vmatprep.subr.bf16.mxu0 %v7070_v5 }
0x1e34   : > { %6304 = vmatpush3.bf16.msra.mxu0 %v6745_v22 }
0x1e35   : > { %6309 = vmatprep.subr.bf16.mxu0 %v7070_v5 }
0x1f02   : > { %v2273_v55 = vpop.f32.mrb[40].mxu0 }
0x1f03   : > { %2286 = vrot.lane.b32.xlu1 %v2273_v55, %s8615_s30  ;;  %v6287_v56 = vpop.f32.mrb[41].mxu0  ;;  %v2279_v46 = vsub.f32 0.0, %v2273_v55 }
0x1f04   : > { %v2276_v57 = vpop.f32.mrb[42].mxu0 }
0x1f05   : > { %v6288_v60 = vpop.f32.mrb[43].mxu0  ;;  %v2280_v62 = vmul.f32 1.442695, %v2279_v46 }
0x1f07   : > { %6840 = vpow2.f32 %v2280_v62 }
0x1f11   : > { %v6841_v0 = vpop.eup %6840 }
0x1f12   : > { %v2282_v2 = vadd.f32 1.0, %v6841_v0 }
0x1f14   : > { %6842 = vrcp.f32 %v2282_v2 }
0x1f1e   : > { %v6843_v7 = vpop.eup %6842 }
0x1f1f   : > { %v2284_v29 = vmul.f32 %v6843_v7, %v2273_v55 }
0x1f75   : > { %v2287_v8 = vpop.permute.xlu1 %2286 }
0x1f76   : > { %v2289_v9 = vmul.f32 %v2287_v8, %v2284_v29 }
0x1f78   : > { %v2290_v10 = vpack.c.bf16 %v2289_v9, %v2289_v9 }
0x1f7a   : > { %6298 = vmatmul.mubr.msk.bf16.vlgmr.msra.gmra.mrb[48].mxu1 %vm1127_vm6, %v2290_v10 }
0x1f7b   : > { %6317 = vmatprep.mubr.msk.bf16.mxu1 %vm7071_vm1, %v7070_v5 }
0x204d   : > { %v2360_v12 = vpop.f32.mrb[48].mxu1 }
0x204e   : > { %v2367_v1 = vrot.slane %v2360_v12, 1  ;;  %v6299_v14 = vpop.f32.mrb[49].mxu1 }
0x204f   : > { %v2363_v15 = vpop.f32.mrb[50].mxu1 }
0x2050   : > { %v7835_v16 = vadd.f32 %v2367_v1, %v2197_v34  ;;  %v6300_v17 = vpop.f32.mrb[51].mxu1 }
0x2052   : > { %v2371_v18 = vmul.f32 %v7835_v16, %v7835_v16 }
0x2054   : > { %v2372_v19 = vsel %vm1780_vm7, %v2371_v18, 0.0 }
0x2055   : > { %2373 = vadd.xlane.f32.xlu1 %v2372_v19 }
0x20e2   : > { %v2374_v23 = vpop.xlane.xlu1 %2373 }
0x20e3   : > { %v2375_v24 = vmul.f32 0.03125, %v2374_v23 }
0x20e5   : > { %v2376_v25 = vadd.f32 1e-06, %v2375_v24 }
0x20e7   : > { %6844 = vrsqrt.f32 %v2376_v25 }
0x20f1   : > { %v6845_v20 = vpop.eup %6844 }
0x20f2   : > { %v2378_v32 = vmul.f32 %v6845_v20, %v7835_v16 }
0x20f4   : > { %v2386_v34 = vmul.f32 %v2384_v27, %v2378_v32 }
0x20f6   : > { %v2387_v31 = vpack.c.bf16 %v2386_v34, %v2386_v34 }
0x20f8   : > { %v2393_v33 = vshrl.u32 %v2387_v31, 16 }
0x20fa   : > { %v2395_v35 = vrot.slane %v2393_v33, 3 }
0x20fc   : > { %6306 = vmatmul.mubr.msk.bf16.vlgmr.msra.gmra.mrb[44].mxu0 %vm559_vm0, %v2395_v35 }
0x20fd   : > { %6311 = vmatprep.mubr.msk.bf16.mxu0 %vm7071_vm1, %v7070_v5 }
0x21cf   : > { %v2445_v36 = vpop.f32.mrb[44].mxu0 }
0x21d0   : > { %2470 = vrot.lane.b32.xlu1 %v2445_v36, %s8616_s0  ;;  %v6307_v38 = vpop.f32.mrb[45].mxu0  ;;  %v2452_v39 = vsub.f32 0.0, %v2445_v36  ;;  %v2466_v47 = vmul.f32 %v2445_v36, %v7741_v6  ;;  %v2451_v60 = vmul.f32 %v2445_v36, %v7735_v4 }
0x21d1   : > { %v2448_v40 = vpop.f32.mrb[46].mxu0 }
0x21d2   : > { %2467 = vrot.lane.b32.xlu0 %v2452_v39, %s8617_s19  ;;  %v6308_v41 = vpop.f32.mrb[47].mxu0 }
0x21d4   : > { %2454 = vrot.lane.b32.xlu1 %v2452_v39, %s8618_s17 }
0x2242   : > { %v2471_v28 = vpop.permute.xlu1 %2470 }
0x2244   : > { %v2468_v43 = vpop.permute.xlu0 %2467 }
0x2245   : > { %v2473_v44 = vsel %vm683_vm2, %v2468_v43, %v2471_v28 }
0x2246   : > { %v2474_v42 = vsel %vm577_vm3, %v2473_v44, %v2468_v43  ;;  %v2455_v52 = vpop.permute.xlu1 %2454 }
0x2247   : > { %v2475_v59 = vsel %vm686_vm4, %v2474_v42, %v2471_v28  ;;  %v6746_v42 = vld [vmem:[#allocation5 + $0x10] sm:$0xff]  }
0x2248   : > { %v2476_v45 = vmul.f32 %v2475_v59, %v7730_v63 }
0x224a   : > { %2478 = vrot.lane.b32.xlu0 %v2476_v45, %s8619_s12 }
0x22bc   : > { %v2479_v48 = vpop.permute.xlu0 %2478 }
0x22bd   : > { %v2481_v50 = vadd.f32 %v2479_v48, %v2466_v47 }
0x22bf   : > { %2483 = vrot.lane.b32.xlu0 %v2481_v50, %s8620_s20  ;;  %v6747_v50 = vld [vmem:[#allocation5 + $0x18] sm:$0xff]  }
0x22c3   : > { %2458 = vrot.lane.b32.xlu0 %v2445_v36, %s8621_s16 }
0x2331   : > { %v2484_v51 = vpop.permute.xlu0 %2483 }
0x2332   : > { %5790 = vst.msk [vmem:[%s7418_s25 + $0x18] sm:$0x1] %vm1899_vm8, %v2484_v51 }
0x2335   : > { %v2459_v53 = vpop.permute.xlu0 %2458 }
0x2336   : > { %v2461_v54 = vsel %vm683_vm2, %v2455_v52, %v2459_v53 }
0x2337   : > { %v2462_v55 = vsel %vm577_vm3, %v2461_v54, %v2455_v52 }
0x2338   : > { %v2463_v56 = vsel %vm686_vm4, %v2462_v55, %v2459_v53 }
0x2339   : > { %v2464_v57 = vmul.f32 %v2463_v56, %v7730_v63  ;;  %v5793_v6 = vld [vmem:[%s7418_s25 + $0x18] sm:$0xff] }
0x233a   : > { %v2496_v46 = vpack.c.bf16 %v5793_v6, %v7612_v26 }
0x233b   : > { %v2465_v62 = vadd.f32 %v2464_v57, %v2451_v60 }
0x233c   : > { %2605 = vrot.lane.b32.xlu1 %v2496_v46, %s8622_s1  ;;  %v2501_v0 = vsel %vm577_vm3, %v2496_v46, 0 }
0x233d   : > { %6310 = vmatpush3.bf16.xpose.msra.mxu0 %v2501_v0  ;;  %v2495_v2 = vpack.c.bf16 %v2465_v62, %v2465_v62 }
0x233e   : > { %6321 = vmatprep.subr.bf16.mxu0 %v7070_v5 }
0x233f   : > { %2602 = vrot.lane.b32.xlu0 %v2495_v2, %s8622_s1 }
0x2344   : > { %6312 = vmatmul.mubr.msk.bf16.vlgmr.msra.gmra.mrb[48].mxu0 %vm577_vm3, %v2495_v2 }
0x2345   : > { %6323 = vmatprep.mubr.msk.bf16.mxu0 %vm7071_vm1, %v7070_v5 }
0x23ae   : > { %v2606_v63 = vpop.permute.xlu1 %2605 }
0x23af   : > { %v2611_v4 = vsel %vm577_vm3, %v2606_v63, 0 }
0x23b0   : > { %6322 = vmatpush3.bf16.xpose.msra.mxu0 %v2611_v4 }
0x23b1   : > { %6333 = vmatprep.subr.bf16.mxu0 %v7070_v5  ;;  %v2603_v26 = vpop.permute.xlu0 %2602 }
0x23b7   : > { %6324 = vmatmul.mubr.msk.bf16.vlgmr.msra.gmra.mrb[52].mxu0 %vm577_vm3, %v2603_v26  ;;  %v6748_v26 = vld [vmem:[#allocation7 + $0x10] sm:$0xff]  }
0x23b8   : > { %6337 = vmatprep.mubr.msk.bf16.mxu0 %vm7071_vm1, %v7070_v5  ;;  %6334 = vmatpush3.bf16.msra.mxu0 %v6746_v42 }
0x23b9   : > { %6335 = vmatprep.subr.bf16.mxu0 %v7070_v5 }
0x23bc   : > { %6336 = vmatpush3.bf16.msra.mxu0 %v6747_v50 }
0x23bd   : > { %6349 = vmatprep.subr.bf16.mxu0 %v7070_v5 }
0x2417   : > { %v2537_v7 = vpop.f32.mrb[48].mxu0 }
0x2418   : > { %v2543_v29 = vmul.f32 0.25, %v2537_v7  ;;  %v6313_v8 = vpop.f32.mrb[49].mxu0  ;;  %v6749_v7 = vld [vmem:[#allocation7 + $0x18] sm:$0xff]  }
0x2419   : > { %v2540_v9 = vpop.f32.mrb[50].mxu0 }
0x241a   : > { %v6314_v10 = vpop.f32.mrb[51].mxu0  ;;  %v2544_v12 = vadd.f32 %v2543_v29, %v7774_v30 }
0x241c   : > { %v2545_v1 = vsel %vm1959_vm10, %v2544_v12, -inf }
0x241d   : > { %2546 = vmax.xlane.f32.xlu1 %v2545_v1 }
0x248a   : > { %v2647_v14 = vpop.f32.mrb[52].mxu0 }
0x248b   : > { %v2653_v15 = vmul.f32 0.25, %v2647_v14  ;;  %v6325_v17 = vpop.f32.mrb[53].mxu0 }
0x248c   : > { %v2650_v18 = vpop.f32.mrb[54].mxu0 }
0x248d   : > { %v6326_v19 = vpop.f32.mrb[55].mxu0  ;;  %v2654_v21 = vadd.f32 %v2653_v15, %v7774_v30 }
0x248f   : > { %v2655_v22 = vsel %vm1959_vm10, %v2654_v21, -inf }
0x2490   : > { %2656 = vmax.xlane.f32.xlu0 %v2655_v22  ;;  %v6751_v22 = vld [vmem:[%s8552_s9 + $0x28] sm:$0xff]  }
0x24a6   : > { %2487 = vrot.lane.b32.xlu0 %v2445_v36, %s8615_s30 }
0x24aa   : > { %v2547_v23 = vpop.xlane.xlu1 %2546 }
0x24ab   : > { %v2548_v24 = vsub.f32 %v2544_v12, %v2547_v23  ;;  %v6752_v23 = vld [vmem:[%s8552_s9 + $0x30] sm:$0xff]  }
0x24ad   : > { %v2549_v25 = vmul.f32 1.442695, %v2548_v24  ;;  %v6753_v24 = vld [vmem:[%s8552_s9 + $0x38] sm:$0xff]  }
0x24af   : > { %6846 = vpow2.f32 %v2549_v25 }
0x24b9   : > { %v6847_v37 = vpop.eup %6846 }
0x24ba   : > { %v2551_v49 = vsel %vm1959_vm10, %v6847_v37, 0.0 }
0x24bb   : > { %2552 = vadd.xlane.f32.xlu1 %v2551_v49 }
0x251d   : > { %v2657_v27 = vpop.xlane.xlu0 %2656 }
0x251e   : > { %v2658_v20 = vsub.f32 %v2654_v21, %v2657_v27  ;;  %v6750_v21 = vld [vmem:[%s8552_s9 + $0x20] sm:$0xff]  }
0x2520   : > { %v2659_v32 = vmul.f32 1.442695, %v2658_v20 }
0x2521   : > { %v2488_v34 = vpop.permute.xlu0 %2487 }
0x2522   : > { %6848 = vpow2.f32 %v2659_v32  ;;  %5791 = vst.msk [vmem:[%s7494_s15 + $0x18] sm:$0x1] %vm1899_vm8, %v2488_v34 }
0x2529   : > { %v5795_v30 = vld [vmem:[%s7494_s15 + $0x18] sm:$0xff] }
0x252a   : > { %v2557_v31 = vpack.c.bf16 %v5795_v30, %v7640_v3 }
0x252c   : > { %v6849_v33 = vpop.eup %6848  ;;  %6316 = vmatpush3.bf16.msra.mxu1 %v2557_v31 }
0x252d   : > { %v2661_v35 = vsel %vm1959_vm10, %v6849_v33, 0.0  ;;  %6327 = vmatprep.subr.bf16.mxu1 %v7070_v5 }
0x252e   : > { %2662 = vadd.xlane.f32.xlu1 %v2661_v35 }
0x253f   : > { %2668 = vrot.lane.b32.xlu1 %v2557_v31, %s8622_s1 }
0x2548   : > { %v2553_v36 = vpop.xlane.xlu1 %2552 }
0x2549   : > { %6850 = vrcp.f32 %v2553_v36 }
0x2553   : > { %v6851_v38 = vpop.eup %6850 }
0x2554   : > { %v2555_v39 = vmul.f32 %v6851_v38, %v6847_v37 }
0x2556   : > { %v2556_v40 = vpack.c.bf16 %v2555_v39, %v2555_v39 }
0x2558   : > { %6318 = vmatmul.mubr.msk.bf16.vlgmr.msra.gmra.mrb[52].mxu1 %vm577_vm3, %v2556_v40 }
0x2559   : > { %6329 = vmatprep.mubr.msk.bf16.mxu1 %vm7071_vm1, %v7070_v5 }
0x25bb   : > { %v2663_v3 = vpop.xlane.xlu1 %2662 }
0x25bc   : > { %6852 = vrcp.f32 %v2663_v3 }
0x25bf   : > { %v2669_v41 = vpop.permute.xlu1 %2668 }
0x25c0   : > { %6328 = vmatpush3.bf16.msra.mxu1 %v2669_v41 }
0x25c1   : > { %6341 = vmatprep.subr.bf16.mxu1 %v7070_v5 }
0x25c6   : > { %v6853_v28 = vpop.eup %6852 }
0x25c7   : > { %v2665_v43 = vmul.f32 %v6853_v28, %v6849_v33 }
0x25c9   : > { %v2666_v44 = vpack.c.bf16 %v2665_v43, %v2665_v43 }
0x25cb   : > { %6330 = vmatmul.mubr.msk.bf16.vlgmr.msra.gmra.mrb[56].mxu1 %vm577_vm3, %v2666_v44 }
0x25cc   : > { %6345 = vmatprep.mubr.msk.bf16.mxu1 %vm7071_vm1, %v7070_v5  ;;  %6342 = vmatpush3.bf16.msra.mxu1 %v6748_v26 }
0x25cd   : > { %6343 = vmatprep.subr.bf16.mxu1 %v7070_v5 }
0x25d0   : > { %6344 = vmatpush3.bf16.msra.mxu1 %v6749_v7 }
0x25d1   : > { %6361 = vmatprep.subr.bf16.mxu1 %v7070_v5 }
0x262b   : > { %v2595_v59 = vpop.f32.mrb[52].mxu1 }
0x262c   : > { %v6319_v45 = vpop.f32.mrb[53].mxu1 }
0x262d   : > { %v2598_v47 = vpop.f32.mrb[54].mxu1 }
0x262e   : > { %v6320_v48 = vpop.f32.mrb[55].mxu1 }
0x262f   : > { %v2955_v48 = vld [vmem:[%s8553_s10] sm:$0x1] }
0x2630   : > { %v2964_v50 = vunpack.c.l.bf16 %v2955_v48 }
0x269e   : > { %v2708_v51 = vpop.f32.mrb[56].mxu1 }
0x269f   : > { %2715 = vrot.lane.b32.xlu0 %v2708_v51, %s8623_s2  ;;  %v6331_v52 = vpop.f32.mrb[57].mxu1  ;;  %v2969_v51 = vrot.slane %v2964_v50, %v7374_v13  ;;  %v2984_v50 = vadd.s32 9, %v7368_v11 }
0x26a0   : > { %v2711_v53 = vpop.f32.mrb[58].mxu1 }
0x26a1   : > { %v6332_v54 = vpop.f32.mrb[59].mxu1  ;;  %vm2985_vm11 = vcmp.le.s32.totalorder %v7476_v58, %v2984_v50 }
0x2711   : > { %v2716_v55 = vpop.permute.xlu0 %2715 }
0x2712   : > { %v2718_v56 = vsel %vm577_vm3, %v2595_v59, %v2716_v55 }
0x2713   : > { %v2719_v57 = vpack.c.bf16 %v2718_v56, %v2718_v56 }
0x2715   : > { %6338 = vmatmul.mubr.msk.bf16.vlgmr.msra.gmra.mrb[56].mxu0 %vm559_vm0, %v2719_v57  ;;  %v6754_v57 = vld [vmem:[%s8548_s5] sm:$0xff]  }
0x2716   : > { %6357 = vmatprep.mubr.msk.bf16.mxu0 %vm7071_vm1, %v7070_v5  ;;  %6350 = vmatpush3.bf16.msra.mxu0 %v6750_v21 }
0x2717   : > { %6351 = vmatprep.subr.bf16.mxu0 %v7070_v5 }
0x271a   : > { %6352 = vmatpush3.bf16.msra.mxu0 %v6751_v22 }
0x271b   : > { %6353 = vmatprep.subr.bf16.mxu0 %v7070_v5 }
0x271e   : > { %6354 = vmatpush3.bf16.msra.mxu0 %v6752_v23 }
0x271f   : > { %6355 = vmatprep.subr.bf16.mxu0 %v7070_v5 }
0x2722   : > { %6356 = vmatpush3.bf16.msra.mxu0 %v6753_v24 }
0x2723   : > { %6375 = vmatprep.subr.bf16.mxu0 %v7070_v5 }
0x27e8   : > { %v2773_v6 = vpop.f32.mrb[56].mxu0 }
0x27e9   : > { %v2780_v60 = vrot.slane %v2773_v6, 1  ;;  %v6339_v46 = vpop.f32.mrb[57].mxu0  ;;  %v6755_v6 = vld [vmem:[%s8548_s5 + $0x8] sm:$0xff]  }
0x27ea   : > { %v2776_v62 = vpop.f32.mrb[58].mxu0 }
0x27eb   : > { %v2782_v0 = vadd.f32 %v2780_v60, %v7835_v16  ;;  %v6340_v2 = vpop.f32.mrb[59].mxu0  ;;  %v5803_v16 = vld [vmem:[%s8550_s7 + $0x1] sm:$0x1] }
0x27ec   : > { %v2792_v10 = vunpack.c.l.bf16 %v5803_v16 }
0x27ed   : > { %v2784_v63 = vmul.f32 %v2782_v0, %v2782_v0 }
0x27ee   : > { %v2797_v12 = vrot.slane %v2792_v10, %v7374_v13 }
0x27ef   : > { %v2785_v4 = vsel %vm1780_vm7, %v2784_v63, 0.0 }
0x27f0   : > { %2786 = vadd.xlane.f32.xlu0 %v2785_v4 }
0x287d   : > { %v2787_v29 = vpop.xlane.xlu0 %2786 }
0x287e   : > { %v2788_v8 = vmul.f32 0.03125, %v2787_v29 }
0x2880   : > { %v2789_v9 = vadd.f32 1e-06, %v2788_v8 }
0x2882   : > { %6854 = vrsqrt.f32 %v2789_v9 }
0x288c   : > { %v6855_v1 = vpop.eup %6854 }
0x288d   : > { %v2791_v14 = vmul.f32 %v6855_v1, %v2782_v0 }
0x288f   : > { %v2799_v15 = vmul.f32 %v2797_v12, %v2791_v14  ;;  %v2973_v14 = vld [vmem:[%s7401_s11 + $0x9] sm:$0x1] }
0x2891   : > { %v2800_v17 = vpack.c.bf16 %v2799_v15, %v2799_v15 }
0x2893   : > { %v2806_v18 = vshrl.u32 %v2800_v17, 16  ;;  %v2972_v17 = vld [vmem:[%s7389_s18 + $0x9] sm:$0x1] }
0x2895   : > { %v2808_v19 = vrot.slane %v2806_v18, 3 }
0x2897   : > { %6346 = vmatmul.mubr.msk.bf16.vlgmr.msra.gmra.mrb[60].mxu1 %vm559_vm0, %v2808_v19 }
0x2898   : > { %6365 = vmatprep.mubr.msk.bf16.mxu1 %vm7071_vm1, %v7070_v5  ;;  %6362 = vmatpush3.bf16.msra.mxu1 %v6754_v57 }
0x2899   : > { %6363 = vmatprep.subr.bf16.mxu1 %v7070_v5 }
0x289c   : > { %6364 = vmatpush3.bf16.msra.mxu1 %v6755_v6 }
0x289d   : > { %6369 = vmatprep.subr.bf16.mxu1 %v7070_v5 }
0x296a   : > { %v2858_v25 = vpop.f32.mrb[60].mxu1 }
0x296b   : > { %2871 = vrot.lane.b32.xlu1 %v2858_v25, %s8615_s30  ;;  %v6347_v37 = vpop.f32.mrb[61].mxu1  ;;  %v2864_v20 = vsub.f32 0.0, %v2858_v25 }
0x296c   : > { %v2861_v49 = vpop.f32.mrb[62].mxu1 }
0x296d   : > { %v6348_v27 = vpop.f32.mrb[63].mxu1  ;;  %v2865_v32 = vmul.f32 1.442695, %v2864_v20 }
0x296f   : > { %6856 = vpow2.f32 %v2865_v32 }
0x2979   : > { %v6857_v34 = vpop.eup %6856 }
0x297a   : > { %v2867_v30 = vadd.f32 1.0, %v6857_v34 }
0x297c   : > { %6858 = vrcp.f32 %v2867_v30 }
0x2986   : > { %v6859_v31 = vpop.eup %6858 }
0x2987   : > { %v2869_v33 = vmul.f32 %v6859_v31, %v2858_v25 }
0x29dd   : > { %v2872_v35 = vpop.permute.xlu1 %2871 }
0x29de   : > { %v2874_v36 = vmul.f32 %v2872_v35, %v2869_v33 }
0x29e0   : > { %v2875_v38 = vpack.c.bf16 %v2874_v36, %v2874_v36 }
0x29e2   : > { %6358 = vmatmul.mubr.msk.bf16.vlgmr.msra.gmra.mrb[60].mxu0 %vm1127_vm6, %v2875_v38 }
0x29e3   : > { %6377 = vmatprep.mubr.msk.bf16.mxu0 %vm7071_vm1, %v7070_v5 }
0x2ab5   : > { %v2945_v39 = vpop.f32.mrb[60].mxu0 }
0x2ab6   : > { %v2952_v40 = vrot.slane %v2945_v39, 1  ;;  %v6359_v3 = vpop.f32.mrb[61].mxu0 }
0x2ab7   : > { %v2948_v41 = vpop.f32.mrb[62].mxu0 }
0x2ab8   : > { %v2954_v28 = vadd.f32 %v2952_v40, %v2782_v0  ;;  %v6360_v43 = vpop.f32.mrb[63].mxu0  ;;  %v2988_v0 = vld [vmem:[%s8547_s4] sm:$0x1]  ;;  %v8012_v41 = vld [vmem:[%s7418_s25] sm:$0xff] }
0x2ab9   : > { %v2997_v2 = vunpack.c.l.bf16 %v2988_v0 }
0x2aba   : > { %v2956_v44 = vmul.f32 %v2954_v28, %v2954_v28 }
0x2abb   : > { %v3002_v63 = vrot.slane %v2997_v2, %v7374_v13 }
0x2abc   : > { %v2957_v42 = vsel %vm1780_vm7, %v2956_v44, 0.0 }
0x2abd   : > { %2958 = vadd.xlane.f32.xlu1 %v2957_v42 }
0x2b4a   : > { %v2959_v59 = vpop.xlane.xlu1 %2958 }
0x2b4b   : > { %v2960_v45 = vmul.f32 0.03125, %v2959_v59 }
0x2b4d   : > { %v2961_v47 = vadd.f32 1e-06, %v2960_v45 }
0x2b4f   : > { %6860 = vrsqrt.f32 %v2961_v47 }
0x2b59   : > { %v6861_v52 = vpop.eup %6860 }
0x2b5a   : > { %v2963_v53 = vmul.f32 %v6861_v52, %v2954_v28  ;;  %v8032_v52 = vld [vmem:[%s7473_s14] sm:$0x1] }
0x2b5c   : > { %v7951_v54 = vmul.f32 %v2969_v51, %v2963_v53  ;;  %v2986_v51 = vsel %vm2985_vm11, 0.0, %v7080_v61 }
0x2b5d   : > { %v8035_v53 = vadd.f32 %v8032_v52, %v2986_v51 }
0x2b5e   : > { %v2989_v55 = vmul.f32 %v7951_v54, %v7951_v54 }
0x2b60   : > { %v2990_v56 = vsel %vm1780_vm7, %v2989_v55, 0.0 }
0x2b61   : > { %2991 = vadd.xlane.f32.xlu0 %v2990_v56 }
0x2bee   : > { %v2992_v60 = vpop.xlane.xlu0 %2991 }
0x2bef   : > { %v2993_v46 = vmul.f32 0.03125, %v2992_v60 }
0x2bf1   : > { %v2994_v62 = vadd.f32 1e-06, %v2993_v46 }
0x2bf3   : > { %6862 = vrsqrt.f32 %v2994_v62 }
0x2bfd   : > { %v6863_v4 = vpop.eup %6862 }
0x2bfe   : > { %v2996_v26 = vmul.f32 %v6863_v4, %v7951_v54 }
0x2c00   : > { %v3004_v7 = vmul.f32 %v3002_v63, %v2996_v26 }
0x2c02   : > { %v3005_v29 = vpack.c.bf16 %v3004_v7, %v3004_v7 }
0x2c04   : > { %v3011_v8 = vshrl.u32 %v3005_v29, 16 }
0x2c06   : > { %v3013_v9 = vrot.slane %v3011_v8, 3 }
0x2c08   : > { %6366 = vmatmul.mubr.msk.bf16.vlgmr.msra.gmra.mrb[64].mxu1 %vm559_vm0, %v3013_v9 }
0x2c09   : > { %6371 = vmatprep.mubr.msk.bf16.mxu1 %vm7071_vm1, %v7070_v5 }
0x2cdb   : > { %v7972_v16 = vpop.f32.mrb[64].mxu1 }
0x2cdc   : > { %3092 = vrot.lane.b32.xlu1 %v7972_v16, %s8616_s0  ;;  %v6367_v10 = vpop.f32.mrb[65].mxu1  ;;  %v3070_v12 = vsub.f32 0.0, %v7972_v16 }
0x2cdd   : > { %v3066_v1 = vpop.f32.mrb[66].mxu1 }
0x2cde   : > { %3089 = vrot.lane.b32.xlu0 %v3070_v12, %s8617_s19  ;;  %v6368_v15 = vpop.f32.mrb[67].mxu1 }
0x2ce0   : > { %2980 = vrot.lane.b32.xlu1 %v2973_v14, %s8623_s2 }
0x2ce2   : > { %2975 = vrot.lane.b32.xlu0 %v2972_v17, %s8623_s2 }
0x2d4e   : > { %v3093_v18 = vpop.permute.xlu1 %3092 }
0x2d50   : > { %v3090_v19 = vpop.permute.xlu0 %3089 }
0x2d51   : > { %v3095_v21 = vsel %vm683_vm2, %v3090_v19, %v3093_v18 }
0x2d52   : > { %v3096_v22 = vsel %vm577_vm3, %v3095_v21, %v3090_v19  ;;  %v2981_v23 = vpop.permute.xlu1 %2980  ;;  %v8047_v19 = vld [vmem:[%s7494_s15] sm:$0xff] }
0x2d53   : > { %v3097_v24 = vsel %vm686_vm4, %v3096_v22, %v3093_v18  ;;  %v7986_v25 = vsel %vm577_vm3, %v2973_v14, %v2981_v23 }
0x2d54   : > { %v2976_v37 = vpop.permute.xlu0 %2975  ;;  %v3098_v49 = vmul.f32 %v3097_v24, %v7986_v25 }
0x2d55   : > { %v7990_v27 = vsel %vm577_vm3, %v2972_v17, %v2976_v37 }
0x2d56   : > { %3100 = vrot.lane.b32.xlu1 %v3098_v49, %s8619_s12  ;;  %3085 = vrot.lane.b32.xlu0 %v7990_v27, %s8619_s12  ;;  %v3069_v40 = vmul.f32 %v7972_v16, %v7990_v27 }
0x2d5a   : > { %3072 = vrot.lane.b32.xlu1 %v3070_v12, %s8618_s17 }
0x2dc8   : > { %v7996_v20 = vpop.permute.xlu0 %3085  ;;  %v3101_v34 = vpop.permute.xlu1 %3100 }
0x2dc9   : > { %v3088_v32 = vmul.f32 %v7996_v20, %v7972_v16 }
0x2dcb   : > { %v3103_v30 = vadd.f32 %v3101_v34, %v3088_v32 }
0x2dcc   : > { %v3073_v33 = vpop.permute.xlu1 %3072 }
0x2dcd   : > { %3105 = vrot.lane.b32.xlu0 %v3103_v30, %s8620_s20 }
0x2dd1   : > { %3076 = vrot.lane.b32.xlu0 %v7972_v16, %s8621_s16 }
0x2e3f   : > { %v3106_v31 = vpop.permute.xlu0 %3105 }
0x2e40   : > { %3108 = vst.msk [vmem:[%s7418_s25 + $0x9] sm:$0x1] %vm1899_vm8, %v3106_v31 }
0x2e43   : > { %v3077_v35 = vpop.permute.xlu0 %3076 }
0x2e44   : > { %v3079_v36 = vsel %vm683_vm2, %v3073_v33, %v3077_v35 }
0x2e45   : > { %v3080_v38 = vsel %vm577_vm3, %v3079_v36, %v3073_v33  ;;  %v6756_v36 = vld [vmem:[#allocation5] sm:$0xff]  }
0x2e46   : > { %v3081_v39 = vsel %vm686_vm4, %v3080_v38, %v3077_v35 }
0x2e47   : > { %v3082_v3 = vmul.f32 %v3081_v39, %v7986_v25  ;;  %v3114_v28 = vld [vmem:[%s7418_s25 + $0x8] sm:$0xff] }
0x2e48   : > { %v3118_v43 = vpack.c.bf16 %v3114_v28, %v8012_v41  ;;  %v6757_v28 = vld [vmem:[#allocation5 + $0x8] sm:$0xff]  }
0x2e49   : > { %v3083_v44 = vadd.f32 %v3082_v3, %v3069_v40 }
0x2e4a   : > { %3227 = vrot.lane.b32.xlu1 %v3118_v43, %s8622_s1  ;;  %v3123_v42 = vsel %vm577_vm3, %v3118_v43, 0 }
0x2e4b   : > { %6370 = vmatpush3.bf16.xpose.msra.mxu1 %v3123_v42  ;;  %v3117_v59 = vpack.c.bf16 %v3083_v44, %v3083_v44 }
0x2e4c   : > { %6381 = vmatprep.subr.bf16.mxu1 %v7070_v5 }
0x2e4d   : > { %3224 = vrot.lane.b32.xlu0 %v3117_v59, %s8622_s1 }
0x2e52   : > { %6372 = vmatmul.mubr.msk.bf16.vlgmr.msra.gmra.mrb[68].mxu1 %vm577_vm3, %v3117_v59 }
0x2e53   : > { %6383 = vmatprep.mubr.msk.bf16.mxu1 %vm7071_vm1, %v7070_v5 }
0x2ebc   : > { %v3228_v45 = vpop.permute.xlu1 %3227 }
0x2ebd   : > { %v3233_v47 = vsel %vm577_vm3, %v3228_v45, 0 }
0x2ebe   : > { %6382 = vmatpush3.bf16.xpose.msra.mxu1 %v3233_v47 }
0x2ebf   : > { %6393 = vmatprep.subr.bf16.mxu1 %v7070_v5  ;;  %v3225_v48 = vpop.permute.xlu0 %3224 }
0x2ec5   : > { %6384 = vmatmul.mubr.msk.bf16.vlgmr.msra.gmra.mrb[72].mxu1 %vm577_vm3, %v3225_v48 }
0x2ec6   : > { %6397 = vmatprep.mubr.msk.bf16.mxu1 %vm7071_vm1, %v7070_v5  ;;  %6394 = vmatpush3.bf16.msra.mxu1 %v6756_v36 }
0x2ec7   : > { %6395 = vmatprep.subr.bf16.mxu1 %v7070_v5 }
0x2eca   : > { %6396 = vmatpush3.bf16.msra.mxu1 %v6757_v28 }
0x2ecb   : > { %6409 = vmatprep.subr.bf16.mxu1 %v7070_v5 }
0x2f25   : > { %v3159_v55 = vpop.f32.mrb[68].mxu1 }
0x2f26   : > { %v3165_v56 = vmul.f32 0.25, %v3159_v55  ;;  %v6373_v57 = vpop.f32.mrb[69].mxu1 }
0x2f27   : > { %v3162_v6 = vpop.f32.mrb[70].mxu1 }
0x2f28   : > { %v6374_v60 = vpop.f32.mrb[71].mxu1  ;;  %v3166_v46 = vadd.f32 %v3165_v56, %v8035_v53 }
0x2f2a   : > { %v3167_v62 = vsel %vm1959_vm10, %v3166_v46, -inf }
0x2f2b   : > { %3168 = vmax.xlane.f32.xlu1 %v3167_v62  ;;  %v6758_v62 = vld [vmem:[#allocation7] sm:$0xff]  }
0x2f98   : > { %v3269_v0 = vpop.f32.mrb[72].mxu1 }
0x2f99   : > { %v3275_v2 = vmul.f32 0.25, %v3269_v0  ;;  %v6385_v63 = vpop.f32.mrb[73].mxu1  ;;  %v6759_v0 = vld [vmem:[#allocation7 + $0x8] sm:$0xff]  }
0x2f9a   : > { %v3272_v4 = vpop.f32.mrb[74].mxu1 }
0x2f9b   : > { %v6386_v26 = vpop.f32.mrb[75].mxu1  ;;  %v3276_v7 = vadd.f32 %v3275_v2, %v8035_v53 }
0x2f9d   : > { %v3277_v29 = vsel %vm1959_vm10, %v3276_v7, -inf }
0x2f9e   : > { %3278 = vmax.xlane.f32.xlu0 %v3277_v29 }
0x2fb4   : > { %3109 = vrot.lane.b32.xlu0 %v7972_v16, %s8615_s30 }
0x2fb8   : > { %v3169_v8 = vpop.xlane.xlu1 %3168 }
0x2fb9   : > { %v3170_v9 = vsub.f32 %v3166_v46, %v3169_v8 }
0x2fbb   : > { %v3171_v10 = vmul.f32 1.442695, %v3170_v9 }
0x2fbd   : > { %6864 = vpow2.f32 %v3171_v10 }
0x2fc7   : > { %v6865_v12 = vpop.eup %6864 }
0x2fc8   : > { %v3173_v1 = vsel %vm1959_vm10, %v6865_v12, 0.0 }
0x2fc9   : > { %3174 = vadd.xlane.f32.xlu1 %v3173_v1 }
0x302b   : > { %v3279_v14 = vpop.xlane.xlu0 %3278 }
0x302c   : > { %v3280_v15 = vsub.f32 %v3276_v7, %v3279_v14  ;;  %v6760_v14 = vld [vmem:[%s8552_s9] sm:$0xff]  }
0x302e   : > { %v3281_v17 = vmul.f32 1.442695, %v3280_v15  ;;  %v6761_v15 = vld [vmem:[%s8552_s9 + $0x8] sm:$0xff]  }
0x302f   : > { %v3110_v18 = vpop.permute.xlu0 %3109 }
0x3030   : > { %6866 = vpow2.f32 %v3281_v17  ;;  %3112 = vst.msk [vmem:[%s7494_s15 + $0x9] sm:$0x1] %vm1899_vm8, %v3110_v18  ;;  %v6762_v17 = vld [vmem:[%s8552_s9 + $0x10] sm:$0xff]   ;;  %v6763_v18 = vld [vmem:[%s8552_s9 + $0x18] sm:$0xff]  }
0x3037   : > { %v3116_v21 = vld [vmem:[%s7494_s15 + $0x8] sm:$0xff] }
0x3038   : > { %v3179_v16 = vpack.c.bf16 %v3116_v21, %v8047_v19 }
0x303a   : > { %v6867_v22 = vpop.eup %6866  ;;  %6376 = vmatpush3.bf16.msra.mxu0 %v3179_v16 }
0x303b   : > { %v3283_v23 = vsel %vm1959_vm10, %v6867_v22, 0.0  ;;  %6387 = vmatprep.subr.bf16.mxu0 %v7070_v5 }
0x303c   : > { %3284 = vadd.xlane.f32.xlu1 %v3283_v23 }
0x304d   : > { %3290 = vrot.lane.b32.xlu1 %v3179_v16, %s8622_s1 }
0x3056   : > { %v3175_v24 = vpop.xlane.xlu1 %3174 }
0x3057   : > { %6868 = vrcp.f32 %v3175_v24 }
0x3061   : > { %v6869_v37 = vpop.eup %6868 }
0x3062   : > { %v3177_v49 = vmul.f32 %v6869_v37, %v6865_v12 }
0x3064   : > { %v3178_v32 = vpack.c.bf16 %v3177_v49, %v3177_v49 }
0x3066   : > { %6378 = vmatmul.mubr.msk.bf16.vlgmr.msra.gmra.mrb[64].mxu0 %vm577_vm3, %v3178_v32 }
0x3067   : > { %6389 = vmatprep.mubr.msk.bf16.mxu0 %vm7071_vm1, %v7070_v5 }
0x30c9   : > { %v3285_v34 = vpop.xlane.xlu1 %3284 }
0x30ca   : > { %6870 = vrcp.f32 %v3285_v34 }
0x30cd   : > { %v3291_v30 = vpop.permute.xlu1 %3290 }
0x30ce   : > { %6388 = vmatpush3.bf16.msra.mxu0 %v3291_v30 }
0x30cf   : > { %6401 = vmatprep.subr.bf16.mxu0 %v7070_v5 }
0x30d4   : > { %v6871_v31 = vpop.eup %6870 }
0x30d5   : > { %v3287_v33 = vmul.f32 %v6871_v31, %v6867_v22 }
0x30d7   : > { %v3288_v35 = vpack.c.bf16 %v3287_v33, %v3287_v33 }
0x30d9   : > { %6390 = vmatmul.mubr.msk.bf16.vlgmr.msra.gmra.mrb[68].mxu0 %vm577_vm3, %v3288_v35 }
0x30da   : > { %6405 = vmatprep.mubr.msk.bf16.mxu0 %vm7071_vm1, %v7070_v5  ;;  %6402 = vmatpush3.bf16.msra.mxu0 %v6758_v62 }
0x30db   : > { %6403 = vmatprep.subr.bf16.mxu0 %v7070_v5 }
0x30de   : > { %6404 = vmatpush3.bf16.msra.mxu0 %v6759_v0 }
0x30df   : > { %6421 = vmatprep.subr.bf16.mxu0 %v7070_v5 }
0x3139   : > { %v3217_v38 = vpop.f32.mrb[64].mxu0 }
0x313a   : > { %v6379_v39 = vpop.f32.mrb[65].mxu0 }
0x313b   : > { %v3220_v40 = vpop.f32.mrb[66].mxu0 }
0x313c   : > { %v6380_v3 = vpop.f32.mrb[67].mxu0 }
0x31ac   : > { %v3330_v43 = vpop.f32.mrb[68].mxu0 }
0x31ad   : > { %3337 = vrot.lane.b32.xlu0 %v3330_v43, %s8623_s2  ;;  %v6391_v44 = vpop.f32.mrb[69].mxu0 }
0x31ae   : > { %v3333_v42 = vpop.f32.mrb[70].mxu0 }
0x31af   : > { %v6392_v59 = vpop.f32.mrb[71].mxu0  ;;  %v6764_v42 = vld [vmem:[%s8548_s5 + $0x10] sm:$0xff]  }
0x31b0   : > { %v6765_v59 = vld [vmem:[%s8548_s5 + $0x18] sm:$0xff]  }
0x321f   : > { %v3338_v45 = vpop.permute.xlu0 %3337 }
0x3220   : > { %v3340_v47 = vsel %vm577_vm3, %v3217_v38, %v3338_v45 }
0x3221   : > { %v3341_v48 = vpack.c.bf16 %v3340_v47, %v3340_v47 }
0x3223   : > { %6398 = vmatmul.mubr.msk.bf16.vlgmr.msra.gmra.mrb[76].mxu1 %vm559_vm0, %v3341_v48 }
0x3224   : > { %6417 = vmatprep.mubr.msk.bf16.mxu1 %vm7071_vm1, %v7070_v5  ;;  %6410 = vmatpush3.bf16.msra.mxu1 %v6760_v14 }
0x3225   : > { %6411 = vmatprep.subr.bf16.mxu1 %v7070_v5 }
0x3228   : > { %6412 = vmatpush3.bf16.msra.mxu1 %v6761_v15 }
0x3229   : > { %6413 = vmatprep.subr.bf16.mxu1 %v7070_v5 }
0x322c   : > { %6414 = vmatpush3.bf16.msra.mxu1 %v6762_v17 }
0x322d   : > { %6415 = vmatprep.subr.bf16.mxu1 %v7070_v5 }
0x3230   : > { %6416 = vmatpush3.bf16.msra.mxu1 %v6763_v18 }
0x3231   : > { %6435 = vmatprep.subr.bf16.mxu1 %v7070_v5 }
0x32f6   : > { %v3395_v50 = vpop.f32.mrb[76].mxu1 }
0x32f7   : > { %v3402_v51 = vrot.slane %v3395_v50, 1  ;;  %v6399_v55 = vpop.f32.mrb[77].mxu1  ;;  %v5838_v50 = vld [vmem:[%s8547_s4 + $0x1] sm:$0x1] }
0x32f8   : > { %v3398_v56 = vpop.f32.mrb[78].mxu1 }
0x32f9   : > { %v3404_v57 = vadd.f32 %v3402_v51, %v7951_v54  ;;  %v6400_v6 = vpop.f32.mrb[79].mxu1  ;;  %v3405_v54 = vld [vmem:[%s8550_s7] sm:$0x1]  ;;  %v3586_v51 = vunpack.c.l.bf16 %v5838_v50 }
0x32fa   : > { %v3414_v26 = vunpack.c.l.bf16 %v3405_v54 }
0x32fb   : > { %v3406_v60 = vmul.f32 %v3404_v57, %v3404_v57  ;;  %v3591_v55 = vrot.slane %v3586_v51, %v7374_v13 }
0x32fc   : > { %v3419_v7 = vrot.slane %v3414_v26, %v7374_v13 }
0x32fd   : > { %v3407_v46 = vsel %vm1780_vm7, %v3406_v60, 0.0 }
0x32fe   : > { %3408 = vadd.xlane.f32.xlu0 %v3407_v46 }
0x338b   : > { %v3409_v2 = vpop.xlane.xlu0 %3408 }
0x338c   : > { %v3410_v63 = vmul.f32 0.03125, %v3409_v2 }
0x338e   : > { %v3411_v4 = vadd.f32 1e-06, %v3410_v63 }
0x3390   : > { %6872 = vrsqrt.f32 %v3411_v4 }
0x339a   : > { %v6873_v29 = vpop.eup %6872 }
0x339b   : > { %v3413_v8 = vmul.f32 %v6873_v29, %v3404_v57 }
0x339d   : > { %v3421_v9 = vmul.f32 %v3419_v7, %v3413_v8 }
0x339f   : > { %v3422_v10 = vpack.c.bf16 %v3421_v9, %v3421_v9 }
0x33a1   : > { %v3428_v12 = vshrl.u32 %v3422_v10, 16 }
0x33a3   : > { %v3430_v1 = vrot.slane %v3428_v12, 3 }
0x33a5   : > { %6406 = vmatmul.mubr.msk.bf16.vlgmr.msra.gmra.mrb[72].mxu0 %vm559_vm0, %v3430_v1 }
0x33a6   : > { %6425 = vmatprep.mubr.msk.bf16.mxu0 %vm7071_vm1, %v7070_v5  ;;  %6422 = vmatpush3.bf16.msra.mxu0 %v6764_v42 }
0x33a7   : > { %6423 = vmatprep.subr.bf16.mxu0 %v7070_v5 }
0x33aa   : > { %6424 = vmatpush3.bf16.msra.mxu0 %v6765_v59 }
0x33ab   : > { %6429 = vmatprep.subr.bf16.mxu0 %v7070_v5 }
0x3478   : > { %v3480_v21 = vpop.f32.mrb[72].mxu0 }
0x3479   : > { %3493 = vrot.lane.b32.xlu1 %v3480_v21, %s8615_s30  ;;  %v6407_v16 = vpop.f32.mrb[73].mxu0  ;;  %v3486_v24 = vsub.f32 0.0, %v3480_v21 }
0x347a   : > { %v3483_v22 = vpop.f32.mrb[74].mxu0 }
0x347b   : > { %v6408_v23 = vpop.f32.mrb[75].mxu0  ;;  %v3487_v37 = vmul.f32 1.442695, %v3486_v24  ;;  %v8146_v24 = vld [vmem:[%s7418_s25 + $0x10] sm:$0xff] }
0x347d   : > { %6874 = vpow2.f32 %v3487_v37 }
0x3487   : > { %v6875_v49 = vpop.eup %6874 }
0x3488   : > { %v3489_v32 = vadd.f32 1.0, %v6875_v49 }
0x348a   : > { %6876 = vrcp.f32 %v3489_v32 }
0x3494   : > { %v6877_v34 = vpop.eup %6876 }
0x3495   : > { %v3491_v30 = vmul.f32 %v6877_v34, %v3480_v21 }
0x34eb   : > { %v3494_v31 = vpop.permute.xlu1 %3493 }
0x34ec   : > { %v3496_v33 = vmul.f32 %v3494_v31, %v3491_v30 }
0x34ee   : > { %v3497_v35 = vpack.c.bf16 %v3496_v33, %v3496_v33 }
0x34f0   : > { %6418 = vmatmul.mubr.msk.bf16.vlgmr.msra.gmra.mrb[80].mxu1 %vm1127_vm6, %v3497_v35 }
0x34f1   : > { %6437 = vmatprep.mubr.msk.bf16.mxu1 %vm7071_vm1, %v7070_v5 }
0x35c3   : > { %v3567_v36 = vpop.f32.mrb[80].mxu1 }
0x35c4   : > { %v3574_v38 = vrot.slane %v3567_v36, 1  ;;  %v6419_v39 = vpop.f32.mrb[81].mxu1 }
0x35c5   : > { %v3570_v40 = vpop.f32.mrb[82].mxu1 }
0x35c6   : > { %v8099_v3 = vadd.f32 %v3574_v38, %v3404_v57  ;;  %v6420_v28 = vpop.f32.mrb[83].mxu1 }
0x35c8   : > { %v3578_v43 = vmul.f32 %v8099_v3, %v8099_v3 }
0x35ca   : > { %v3579_v44 = vsel %vm1780_vm7, %v3578_v43, 0.0 }
0x35cb   : > { %3580 = vadd.xlane.f32.xlu1 %v3579_v44 }
0x3658   : > { %v3581_v45 = vpop.xlane.xlu1 %3580 }
0x3659   : > { %v3582_v47 = vmul.f32 0.03125, %v3581_v45 }
0x365b   : > { %v3583_v48 = vadd.f32 1e-06, %v3582_v47 }
0x365d   : > { %6878 = vrsqrt.f32 %v3583_v48 }
0x3667   : > { %v6879_v56 = vpop.eup %6878 }
0x3668   : > { %v3585_v57 = vmul.f32 %v6879_v56, %v8099_v3 }
0x366a   : > { %v3593_v6 = vmul.f32 %v3591_v55, %v3585_v57 }
0x366c   : > { %v3594_v60 = vpack.c.bf16 %v3593_v6, %v3593_v6 }
0x366e   : > { %v3600_v46 = vshrl.u32 %v3594_v60, 16 }
0x3670   : > { %v3602_v62 = vrot.slane %v3600_v46, 3 }
0x3672   : > { %6426 = vmatmul.mubr.msk.bf16.vlgmr.msra.gmra.mrb[76].mxu0 %vm559_vm0, %v3602_v62  ;;  %v8172_v62 = vld [vmem:[%s7494_s15 + $0x10] sm:$0xff] }
0x3673   : > { %6431 = vmatprep.mubr.msk.bf16.mxu0 %vm7071_vm1, %v7070_v5 }
0x3745   : > { %v8120_v0 = vpop.f32.mrb[76].mxu0 }
0x3746   : > { %3677 = vrot.lane.b32.xlu1 %v8120_v0, %s8616_s0  ;;  %v6427_v2 = vpop.f32.mrb[77].mxu0  ;;  %v3659_v63 = vsub.f32 0.0, %v8120_v0  ;;  %v3673_v12 = vmul.f32 %v8120_v0, %v7996_v20  ;;  %v3658_v20 = vmul.f32 %v8120_v0, %v7990_v27 }
0x3747   : > { %v3655_v4 = vpop.f32.mrb[78].mxu0 }
0x3748   : > { %3674 = vrot.lane.b32.xlu0 %v3659_v63, %s8617_s19  ;;  %v6428_v54 = vpop.f32.mrb[79].mxu0 }
0x374a   : > { %3661 = vrot.lane.b32.xlu1 %v3659_v63, %s8618_s17 }
0x37b8   : > { %v3678_v26 = vpop.permute.xlu1 %3677 }
0x37ba   : > { %v3675_v7 = vpop.permute.xlu0 %3674 }
0x37bb   : > { %v3680_v29 = vsel %vm683_vm2, %v3675_v7, %v3678_v26 }
0x37bc   : > { %v3681_v8 = vsel %vm577_vm3, %v3680_v29, %v3675_v7  ;;  %v3662_v17 = vpop.permute.xlu1 %3661 }
0x37bd   : > { %v3682_v9 = vsel %vm686_vm4, %v3681_v8, %v3678_v26 }
0x37be   : > { %v3683_v10 = vmul.f32 %v3682_v9, %v7986_v25 }
0x37c0   : > { %3685 = vrot.lane.b32.xlu0 %v3683_v10, %s8619_s12 }
0x3832   : > { %v3686_v1 = vpop.permute.xlu0 %3685 }
0x3833   : > { %v3688_v14 = vadd.f32 %v3686_v1, %v3673_v12 }
0x3835   : > { %3690 = vrot.lane.b32.xlu0 %v3688_v14, %s8620_s20  ;;  %v6766_v14 = vld [vmem:[#allocation5 + $0x10] sm:$0xff]  }
0x3839   : > { %3665 = vrot.lane.b32.xlu0 %v8120_v0, %s8621_s16 }
0x38a7   : > { %v3691_v15 = vpop.permute.xlu0 %3690 }
0x38a8   : > { %5846 = vst.msk [vmem:[%s7418_s25 + $0x19] sm:$0x1] %vm1899_vm8, %v3691_v15 }
0x38ab   : > { %v3666_v18 = vpop.permute.xlu0 %3665 }
0x38ac   : > { %v3668_v21 = vsel %vm683_vm2, %v3662_v17, %v3666_v18 }
0x38ad   : > { %v3669_v16 = vsel %vm577_vm3, %v3668_v21, %v3662_v17 }
0x38ae   : > { %v3670_v22 = vsel %vm686_vm4, %v3669_v16, %v3666_v18  ;;  %v6767_v16 = vld [vmem:[#allocation5 + $0x18] sm:$0xff]  }
0x38af   : > { %v3671_v23 = vmul.f32 %v3670_v22, %v7986_v25  ;;  %v5849_v37 = vld [vmem:[%s7418_s25 + $0x18] sm:$0xff] }
0x38b0   : > { %v3703_v49 = vpack.c.bf16 %v5849_v37, %v8146_v24 }
0x38b1   : > { %v3672_v32 = vadd.f32 %v3671_v23, %v3658_v20 }
0x38b2   : > { %3812 = vrot.lane.b32.xlu1 %v3703_v49, %s8622_s1  ;;  %v3708_v34 = vsel %vm577_vm3, %v3703_v49, 0 }
0x38b3   : > { %v3702_v30 = vpack.c.bf16 %v3672_v32, %v3672_v32  ;;  %6430 = vmatpush3.bf16.xpose.msra.mxu0 %v3708_v34 }
0x38b4   : > { %6441 = vmatprep.subr.bf16.mxu0 %v7070_v5 }
0x38b5   : > { %3809 = vrot.lane.b32.xlu0 %v3702_v30, %s8622_s1 }
0x38ba   : > { %6432 = vmatmul.mubr.msk.bf16.vlgmr.msra.gmra.mrb[80].mxu0 %vm577_vm3, %v3702_v30 }
0x38bb   : > { %6443 = vmatprep.mubr.msk.bf16.mxu0 %vm7071_vm1, %v7070_v5 }
0x3924   : > { %v3813_v25 = vpop.permute.xlu1 %3812 }
0x3925   : > { %v3818_v27 = vsel %vm577_vm3, %v3813_v25, 0 }
0x3926   : > { %6442 = vmatpush3.bf16.xpose.msra.mxu0 %v3818_v27 }
0x3927   : > { %6453 = vmatprep.subr.bf16.mxu0 %v7070_v5  ;;  %v3810_v31 = vpop.permute.xlu0 %3809 }
0x392d   : > { %6444 = vmatmul.mubr.msk.bf16.vlgmr.msra.gmra.mrb[84].mxu0 %vm577_vm3, %v3810_v31 }
0x392e   : > { %6457 = vmatprep.mubr.msk.bf16.mxu0 %vm7071_vm1, %v7070_v5  ;;  %6454 = vmatpush3.bf16.msra.mxu0 %v6766_v14 }
0x392f   : > { %6455 = vmatprep.subr.bf16.mxu0 %v7070_v5 }
0x3932   : > { %6456 = vmatpush3.bf16.msra.mxu0 %v6767_v16 }
0x3933   : > { %6469 = vmatprep.subr.bf16.mxu0 %v7070_v5 }
0x398d   : > { %v3744_v33 = vpop.f32.mrb[80].mxu0 }
0x398e   : > { %v3750_v35 = vmul.f32 0.25, %v3744_v33  ;;  %v6433_v36 = vpop.f32.mrb[81].mxu0 }
0x398f   : > { %v3747_v38 = vpop.f32.mrb[82].mxu0 }
0x3990   : > { %v3751_v39 = vadd.f32 %v3750_v35, %v8035_v53  ;;  %v6434_v40 = vpop.f32.mrb[83].mxu0 }
0x3991   : > { %v6769_v40 = vld [vmem:[#allocation7 + $0x18] sm:$0xff]  }
0x3992   : > { %v3752_v28 = vsel %vm1959_vm10, %v3751_v39, -inf }
0x3993   : > { %3753 = vmax.xlane.f32.xlu1 %v3752_v28 }
0x3a00   : > { %v3854_v43 = vpop.f32.mrb[84].mxu0 }
0x3a01   : > { %v3860_v44 = vmul.f32 0.25, %v3854_v43  ;;  %v6445_v42 = vpop.f32.mrb[85].mxu0 }
0x3a02   : > { %v3857_v59 = vpop.f32.mrb[86].mxu0 }
0x3a03   : > { %v3861_v45 = vadd.f32 %v3860_v44, %v8035_v53  ;;  %v6446_v47 = vpop.f32.mrb[87].mxu0 }
0x3a05   : > { %v3862_v48 = vsel %vm1959_vm10, %v3861_v45, -inf }
0x3a06   : > { %3863 = vmax.xlane.f32.xlu0 %v3862_v48 }
0x3a1c   : > { %3694 = vrot.lane.b32.xlu0 %v8120_v0, %s8615_s30 }
0x3a20   : > { %v3754_v50 = vpop.xlane.xlu1 %3753 }
0x3a21   : > { %v3755_v51 = vsub.f32 %v3751_v39, %v3754_v50  ;;  %v6768_v39 = vld [vmem:[#allocation7 + $0x10] sm:$0xff]  }
0x3a23   : > { %v3756_v55 = vmul.f32 1.442695, %v3755_v51 }
0x3a25   : > { %6880 = vpow2.f32 %v3756_v55 }
0x3a2f   : > { %v6881_v56 = vpop.eup %6880 }
0x3a30   : > { %v3758_v57 = vsel %vm1959_vm10, %v6881_v56, 0.0 }
0x3a31   : > { %3759 = vadd.xlane.f32.xlu1 %v3758_v57  ;;  %v6771_v57 = vld [vmem:[%s8552_s9 + $0x28] sm:$0xff]  }
0x3a93   : > { %v3864_v6 = vpop.xlane.xlu0 %3863 }
0x3a94   : > { %v3865_v53 = vsub.f32 %v3861_v45, %v3864_v6  ;;  %v6772_v6 = vld [vmem:[%s8552_s9 + $0x30] sm:$0xff]  }
0x3a96   : > { %v3866_v60 = vmul.f32 1.442695, %v3865_v53  ;;  %v6773_v53 = vld [vmem:[%s8552_s9 + $0x38] sm:$0xff]  }
0x3a97   : > { %v3695_v46 = vpop.permute.xlu0 %3694 }
0x3a98   : > { %6882 = vpow2.f32 %v3866_v60  ;;  %5847 = vst.msk [vmem:[%s7494_s15 + $0x19] sm:$0x1] %vm1899_vm8, %v3695_v46 }
0x3a9f   : > { %v5851_v2 = vld [vmem:[%s7494_s15 + $0x18] sm:$0xff] }
0x3aa0   : > { %v3764_v0 = vpack.c.bf16 %v5851_v2, %v8172_v62 }
0x3aa2   : > { %v6883_v63 = vpop.eup %6882  ;;  %6436 = vmatpush3.bf16.msra.mxu1 %v3764_v0 }
0x3aa3   : > { %v3868_v4 = vsel %vm1959_vm10, %v6883_v63, 0.0  ;;  %6447 = vmatprep.subr.bf16.mxu1 %v7070_v5 }
0x3aa4   : > { %3869 = vadd.xlane.f32.xlu1 %v3868_v4 }
0x3ab5   : > { %3875 = vrot.lane.b32.xlu1 %v3764_v0, %s8622_s1 }
0x3abe   : > { %v3760_v54 = vpop.xlane.xlu1 %3759 }
0x3abf   : > { %6884 = vrcp.f32 %v3760_v54 }
0x3ac9   : > { %v6885_v26 = vpop.eup %6884 }
0x3aca   : > { %v3762_v7 = vmul.f32 %v6885_v26, %v6881_v56  ;;  %v6770_v56 = vld [vmem:[%s8552_s9 + $0x20] sm:$0xff]  }
0x3acc   : > { %v3763_v29 = vpack.c.bf16 %v3762_v7, %v3762_v7 }
0x3ace   : > { %6438 = vmatmul.mubr.msk.bf16.vlgmr.msra.gmra.mrb[84].mxu1 %vm577_vm3, %v3763_v29 }
0x3acf   : > { %6449 = vmatprep.mubr.msk.bf16.mxu1 %vm7071_vm1, %v7070_v5 }
0x3b31   : > { %v3870_v8 = vpop.xlane.xlu1 %3869 }
0x3b32   : > { %6886 = vrcp.f32 %v3870_v8 }
0x3b35   : > { %v3876_v9 = vpop.permute.xlu1 %3875 }
0x3b36   : > { %6448 = vmatpush3.bf16.msra.mxu1 %v3876_v9 }
0x3b37   : > { %6461 = vmatprep.subr.bf16.mxu1 %v7070_v5 }
0x3b3c   : > { %v6887_v10 = vpop.eup %6886 }
0x3b3d   : > { %v3872_v12 = vmul.f32 %v6887_v10, %v6883_v63 }
0x3b3f   : > { %v3873_v1 = vpack.c.bf16 %v3872_v12, %v3872_v12 }
0x3b41   : > { %6450 = vmatmul.mubr.msk.bf16.vlgmr.msra.gmra.mrb[88].mxu1 %vm577_vm3, %v3873_v1 }
0x3b42   : > { %6465 = vmatprep.mubr.msk.bf16.mxu1 %vm7071_vm1, %v7070_v5  ;;  %6462 = vmatpush3.bf16.msra.mxu1 %v6768_v39 }
0x3b43   : > { %6463 = vmatprep.subr.bf16.mxu1 %v7070_v5 }
0x3b46   : > { %6464 = vmatpush3.bf16.msra.mxu1 %v6769_v40  ;;  %v4195_v40 = vld [vmem:[%s8547_s4] sm:$0x1] }
0x3b47   : > { %6481 = vmatprep.subr.bf16.mxu1 %v7070_v5 }
0x3ba1   : > { %v3802_v15 = vpop.f32.mrb[84].mxu1 }
0x3ba2   : > { %v6439_v17 = vpop.f32.mrb[85].mxu1 }
0x3ba3   : > { %v3805_v18 = vpop.f32.mrb[86].mxu1 }
0x3ba4   : > { %v6440_v21 = vpop.f32.mrb[87].mxu1 }
0x3c14   : > { %v3915_v22 = vpop.f32.mrb[88].mxu1 }
0x3c15   : > { %3922 = vrot.lane.b32.xlu0 %v3915_v22, %s8623_s2  ;;  %v6451_v20 = vpop.f32.mrb[89].mxu1 }
0x3c16   : > { %v3918_v23 = vpop.f32.mrb[90].mxu1 }
0x3c17   : > { %v6452_v37 = vpop.f32.mrb[91].mxu1 }
0x3c18   : > { %v4162_v37 = vld [vmem:[%s8553_s10] sm:$0x1] }
0x3c87   : > { %v3923_v49 = vpop.permute.xlu0 %3922 }
0x3c88   : > { %v3925_v32 = vsel %vm577_vm3, %v3802_v15, %v3923_v49  ;;  %v4171_v49 = vunpack.c.l.bf16 %v4162_v37 }
0x3c89   : > { %v3926_v34 = vpack.c.bf16 %v3925_v32, %v3925_v32 }
0x3c8a   : > { %v4176_v32 = vrot.slane %v4171_v49, %v7374_v13 }
0x3c8b   : > { %6458 = vmatmul.mubr.msk.bf16.vlgmr.msra.gmra.mrb[88].mxu0 %vm559_vm0, %v3926_v34 }
0x3c8c   : > { %6477 = vmatprep.mubr.msk.bf16.mxu0 %vm7071_vm1, %v7070_v5  ;;  %6470 = vmatpush3.bf16.msra.mxu0 %v6770_v56  ;;  %v4180_v56 = vld [vmem:[%s7401_s11 + $0xa] sm:$0x1]  ;;  %s8624_s11 = sld [smem:[#allocation31_spill]] }
0x3c8d   : > { %6471 = vmatprep.subr.bf16.mxu0 %v7070_v5 }
0x3c90   : > { %6472 = vmatpush3.bf16.msra.mxu0 %v6771_v57 }
0x3c91   : > { %6473 = vmatprep.subr.bf16.mxu0 %v7070_v5 }
0x3c92   : > { %s557_s27 = scalar_lea.vmem %s8624_s11, %s7383_s21 }
0x3c94   : > { %6474 = vmatpush3.bf16.msra.mxu0 %v6772_v6  ;;  %v4179_v6 = vld [vmem:[%s7389_s18 + $0xa] sm:$0x1] }
0x3c95   : > { %6475 = vmatprep.subr.bf16.mxu0 %v7070_v5 }
0x3c98   : > { %6476 = vmatpush3.bf16.msra.mxu0 %v6773_v53 }
0x3c99   : > { %6495 = vmatprep.subr.bf16.mxu0 %v7070_v5 }
0x3d5e   : > { %v3980_v30 = vpop.f32.mrb[88].mxu0 }
0x3d5f   : > { %v3987_v25 = vrot.slane %v3980_v30, 1  ;;  %v6459_v27 = vpop.f32.mrb[89].mxu0 }
0x3d60   : > { %v3983_v31 = vpop.f32.mrb[90].mxu0 }
0x3d61   : > { %v3989_v33 = vadd.f32 %v3987_v25, %v8099_v3  ;;  %v6460_v35 = vpop.f32.mrb[91].mxu0  ;;  %v5859_v3 = vld [vmem:[%s8550_s7 + $0x1] sm:$0x1] }
0x3d62   : > { %v3999_v42 = vunpack.c.l.bf16 %v5859_v3  ;;  %v6775_v35 = vld [vmem:[%s8548_s5 + $0x8] sm:$0xff]  }
0x3d63   : > { %v3991_v36 = vmul.f32 %v3989_v33, %v3989_v33 }
0x3d64   : > { %v4004_v59 = vrot.slane %v3999_v42, %v7374_v13 }
0x3d65   : > { %v3992_v38 = vsel %vm1780_vm7, %v3991_v36, 0.0 }
0x3d66   : > { %3993 = vadd.xlane.f32.xlu0 %v3992_v38 }
0x3df3   : > { %v3994_v28 = vpop.xlane.xlu0 %3993 }
0x3df4   : > { %v3995_v43 = vmul.f32 0.03125, %v3994_v28  ;;  %v4204_v28 = vunpack.c.l.bf16 %v4195_v40 }
0x3df6   : > { %v3996_v44 = vadd.f32 1e-06, %v3995_v43  ;;  %v4209_v43 = vrot.slane %v4204_v28, %v7374_v13 }
0x3df8   : > { %6888 = vrsqrt.f32 %v3996_v44 }
0x3e02   : > { %v6889_v45 = vpop.eup %6888 }
0x3e03   : > { %v3998_v47 = vmul.f32 %v6889_v45, %v3989_v33 }
0x3e05   : > { %v4006_v48 = vmul.f32 %v4004_v59, %v3998_v47 }
0x3e07   : > { %v4007_v50 = vpack.c.bf16 %v4006_v48, %v4006_v48 }
0x3e09   : > { %v4013_v51 = vshrl.u32 %v4007_v50, 16 }
0x3e0b   : > { %v4015_v55 = vrot.slane %v4013_v51, 3 }
0x3e0d   : > { %6466 = vmatmul.mubr.msk.bf16.vlgmr.msra.gmra.mrb[92].mxu1 %vm559_vm0, %v4015_v55 }
0x3e0e   : > { %6485 = vmatprep.mubr.msk.bf16.mxu1 %vm7071_vm1, %v7070_v5 }
0x3ee0   : > { %v4065_v60 = vpop.f32.mrb[92].mxu1 }
0x3ee1   : > { %4078 = vrot.lane.b32.xlu1 %v4065_v60, %s8615_s30  ;;  %v6467_v46 = vpop.f32.mrb[93].mxu1  ;;  %v4071_v63 = vsub.f32 0.0, %v4065_v60 }
0x3ee2   : > { %v4068_v2 = vpop.f32.mrb[94].mxu1 }
0x3ee3   : > { %v6468_v0 = vpop.f32.mrb[95].mxu1  ;;  %v4072_v4 = vmul.f32 1.442695, %v4071_v63 }
0x3ee5   : > { %6890 = vpow2.f32 %v4072_v4 }
0x3eef   : > { %v6891_v54 = vpop.eup %6890 }
0x3ef0   : > { %v4074_v26 = vadd.f32 1.0, %v6891_v54 }
0x3ef2   : > { %6892 = vrcp.f32 %v4074_v26 }
0x3efc   : > { %v6893_v7 = vpop.eup %6892 }
0x3efd   : > { %v4076_v29 = vmul.f32 %v6893_v7, %v4065_v60 }
0x3f53   : > { %v4079_v8 = vpop.permute.xlu1 %4078 }
0x3f54   : > { %v4081_v9 = vmul.f32 %v4079_v8, %v4076_v29 }
0x3f56   : > { %v4082_v10 = vpack.c.bf16 %v4081_v9, %v4081_v9 }
0x3f58   : > { %6478 = vmatmul.mubr.msk.bf16.vlgmr.msra.gmra.mrb[92].mxu0 %vm1127_vm6, %v4082_v10 }
0x3f59   : > { %6497 = vmatprep.mubr.msk.bf16.mxu0 %vm7071_vm1, %v7070_v5 }
0x402b   : > { %v4152_v12 = vpop.f32.mrb[92].mxu0 }
0x402c   : > { %v4159_v1 = vrot.slane %v4152_v12, 1  ;;  %v6479_v14 = vpop.f32.mrb[93].mxu0 }
0x402d   : > { %v4155_v15 = vpop.f32.mrb[94].mxu0 }
0x402e   : > { %v4161_v17 = vadd.f32 %v4159_v1, %v3989_v33  ;;  %v6480_v18 = vpop.f32.mrb[95].mxu0  ;;  %v6774_v33 = vld [vmem:[%s8548_s5] sm:$0xff]  }
0x402f   : > { %6482 = vmatpush3.bf16.msra.mxu1 %v6774_v33 }
0x4030   : > { %v4163_v21 = vmul.f32 %v4161_v17, %v4161_v17  ;;  %6483 = vmatprep.subr.bf16.mxu1 %v7070_v5 }
0x4032   : > { %v4164_v16 = vsel %vm1780_vm7, %v4163_v21, 0.0 }
0x4033   : > { %4165 = vadd.xlane.f32.xlu1 %v4164_v16  ;;  %6484 = vmatpush3.bf16.msra.mxu1 %v6775_v35 }
0x4034   : > { %6489 = vmatprep.subr.bf16.mxu1 %v7070_v5 }
0x40c0   : > { %v4166_v22 = vpop.xlane.xlu1 %4165 }
0x40c1   : > { %v4167_v20 = vmul.f32 0.03125, %v4166_v22 }
0x40c3   : > { %v4168_v23 = vadd.f32 1e-06, %v4167_v20 }
0x40c5   : > { %6894 = vrsqrt.f32 %v4168_v23 }
0x40cf   : > { %v6895_v34 = vpop.eup %6894 }
0x40d0   : > { %v4170_v30 = vmul.f32 %v6895_v34, %v4161_v17 }
0x40d2   : > { %v8229_v25 = vmul.f32 %v4176_v32, %v4170_v30  ;;  %v4191_v30 = vadd.s32 10, %v7368_v11 }
0x40d4   : > { %v4196_v27 = vmul.f32 %v8229_v25, %v8229_v25  ;;  %vm4192_vm12 = vcmp.le.s32.totalorder %v7476_v58, %v4191_v30 }
0x40d6   : > { %v4197_v31 = vsel %vm1780_vm7, %v4196_v27, 0.0  ;;  %v4193_v27 = vsel %vm4192_vm12, 0.0, %v7080_v61 }
0x40d7   : > { %4198 = vadd.xlane.f32.xlu0 %v4197_v31  ;;  %v8307_v31 = vadd.f32 %v8032_v52, %v4193_v27 }
0x4164   : > { %v4199_v36 = vpop.xlane.xlu0 %4198 }
0x4165   : > { %v4200_v38 = vmul.f32 0.03125, %v4199_v36 }
0x4167   : > { %v4201_v39 = vadd.f32 1e-06, %v4200_v38 }
0x4169   : > { %6896 = vrsqrt.f32 %v4201_v39 }
0x4173   : > { %v6897_v44 = vpop.eup %6896 }
0x4174   : > { %v4203_v3 = vmul.f32 %v6897_v44, %v8229_v25 }
0x4176   : > { %v4211_v42 = vmul.f32 %v4209_v43, %v4203_v3 }
0x4178   : > { %v4212_v59 = vpack.c.bf16 %v4211_v42, %v4211_v42 }
0x417a   : > { %v4218_v45 = vshrl.u32 %v4212_v59, 16 }
0x417c   : > { %v4220_v47 = vrot.slane %v4218_v45, 3 }
0x417e   : > { %6486 = vmatmul.mubr.msk.bf16.vlgmr.msra.gmra.mrb[96].mxu1 %vm559_vm0, %v4220_v47 }
0x417f   : > { %6491 = vmatprep.mubr.msk.bf16.mxu1 %vm7071_vm1, %v7070_v5 }
0x4251   : > { %v8250_v48 = vpop.f32.mrb[96].mxu1 }
0x4252   : > { %4299 = vrot.lane.b32.xlu1 %v8250_v48, %s8616_s0  ;;  %v6487_v50 = vpop.f32.mrb[97].mxu1  ;;  %v4277_v51 = vsub.f32 0.0, %v8250_v48 }
0x4253   : > { %v4273_v55 = vpop.f32.mrb[98].mxu1 }
0x4254   : > { %4296 = vrot.lane.b32.xlu0 %v4277_v51, %s8617_s19  ;;  %v6488_v57 = vpop.f32.mrb[99].mxu1 }
0x4256   : > { %4187 = vrot.lane.b32.xlu1 %v4180_v56, %s8623_s2 }
0x4258   : > { %4182 = vrot.lane.b32.xlu0 %v4179_v6, %s8623_s2 }
0x42c4   : > { %v4300_v53 = vpop.permute.xlu1 %4299 }
0x42c6   : > { %v4297_v60 = vpop.permute.xlu0 %4296 }
0x42c7   : > { %v4302_v46 = vsel %vm683_vm2, %v4297_v60, %v4300_v53 }
0x42c8   : > { %v4303_v2 = vsel %vm577_vm3, %v4302_v46, %v4297_v60  ;;  %v4188_v0 = vpop.permute.xlu1 %4187 }
0x42c9   : > { %v4304_v63 = vsel %vm686_vm4, %v4303_v2, %v4300_v53  ;;  %v8264_v4 = vsel %vm577_vm3, %v4180_v56, %v4188_v0 }
0x42ca   : > { %v4305_v54 = vmul.f32 %v4304_v63, %v8264_v4  ;;  %v4183_v26 = vpop.permute.xlu0 %4182 }
0x42cb   : > { %v8268_v7 = vsel %vm577_vm3, %v4179_v6, %v4183_v26 }
0x42cc   : > { %4307 = vrot.lane.b32.xlu1 %v4305_v54, %s8619_s12  ;;  %4292 = vrot.lane.b32.xlu0 %v8268_v7, %s8619_s12  ;;  %v4276_v21 = vmul.f32 %v8250_v48, %v8268_v7 }
0x42d0   : > { %4279 = vrot.lane.b32.xlu1 %v4277_v51, %s8618_s17 }
0x433e   : > { %v8274_v29 = vpop.permute.xlu0 %4292  ;;  %v4308_v9 = vpop.permute.xlu1 %4307 }
0x433f   : > { %v4295_v8 = vmul.f32 %v8274_v29, %v8250_v48 }
0x4341   : > { %v4310_v10 = vadd.f32 %v4308_v9, %v4295_v8 }
0x4342   : > { %v4280_v1 = vpop.permute.xlu1 %4279 }
0x4343   : > { %4312 = vrot.lane.b32.xlu0 %v4310_v10, %s8620_s20 }
0x4347   : > { %4283 = vrot.lane.b32.xlu0 %v8250_v48, %s8621_s16 }
0x43b5   : > { %v4313_v12 = vpop.permute.xlu0 %4312 }
0x43b6   : > { %4315 = vst.msk [vmem:[%s7418_s25 + $0xa] sm:$0x1] %vm1899_vm8, %v4313_v12  ;;  %v6776_v12 = vld [vmem:[#allocation5] sm:$0xff]  }
0x43b9   : > { %v4284_v14 = vpop.permute.xlu0 %4283 }
0x43ba   : > { %v4286_v15 = vsel %vm683_vm2, %v4280_v1, %v4284_v14 }
0x43bb   : > { %v4287_v17 = vsel %vm577_vm3, %v4286_v15, %v4280_v1 }
0x43bc   : > { %v4288_v18 = vsel %vm686_vm4, %v4287_v17, %v4284_v14 }
0x43bd   : > { %v4289_v16 = vmul.f32 %v4288_v18, %v8264_v4  ;;  %v4321_v22 = vld [vmem:[%s7418_s25 + $0x8] sm:$0xff] }
0x43be   : > { %v4325_v20 = vpack.c.bf16 %v4321_v22, %v8012_v41  ;;  %v6777_v18 = vld [vmem:[#allocation5 + $0x8] sm:$0xff]  }
0x43bf   : > { %v4290_v23 = vadd.f32 %v4289_v16, %v4276_v21 }
0x43c0   : > { %4434 = vrot.lane.b32.xlu1 %v4325_v20, %s8622_s1  ;;  %v4330_v37 = vsel %vm577_vm3, %v4325_v20, 0 }
0x43c1   : > { %v4324_v49 = vpack.c.bf16 %v4290_v23, %v4290_v23  ;;  %6490 = vmatpush3.bf16.xpose.msra.mxu1 %v4330_v37 }
0x43c2   : > { %6501 = vmatprep.subr.bf16.mxu1 %v7070_v5 }
0x43c3   : > { %4431 = vrot.lane.b32.xlu0 %v4324_v49, %s8622_s1 }
0x43c8   : > { %6492 = vmatmul.mubr.msk.bf16.vlgmr.msra.gmra.mrb[100].mxu1 %vm577_vm3, %v4324_v49 }
0x43c9   : > { %6503 = vmatprep.mubr.msk.bf16.mxu1 %vm7071_vm1, %v7070_v5 }
0x4432   : > { %v4435_v32 = vpop.permute.xlu1 %4434 }
0x4433   : > { %v4440_v34 = vsel %vm577_vm3, %v4435_v32, 0 }
0x4434   : > { %6502 = vmatpush3.bf16.xpose.msra.mxu1 %v4440_v34 }
0x4435   : > { %6513 = vmatprep.subr.bf16.mxu1 %v7070_v5  ;;  %v4432_v41 = vpop.permute.xlu0 %4431 }
0x443b   : > { %6504 = vmatmul.mubr.msk.bf16.vlgmr.msra.gmra.mrb[104].mxu1 %vm577_vm3, %v4432_v41 }
0x443c   : > { %6517 = vmatprep.mubr.msk.bf16.mxu1 %vm7071_vm1, %v7070_v5  ;;  %6514 = vmatpush3.bf16.msra.mxu1 %v6776_v12 }
0x443d   : > { %6515 = vmatprep.subr.bf16.mxu1 %v7070_v5 }
0x4440   : > { %6516 = vmatpush3.bf16.msra.mxu1 %v6777_v18  ;;  %v6784_v18 = vld [vmem:[%s8548_s5 + $0x10] sm:$0xff]  }
0x4441   : > { %6529 = vmatprep.subr.bf16.mxu1 %v7070_v5 }
0x449b   : > { %v4366_v33 = vpop.f32.mrb[100].mxu1 }
0x449c   : > { %v4372_v35 = vmul.f32 0.25, %v4366_v33  ;;  %v6493_v36 = vpop.f32.mrb[101].mxu1 }
0x449d   : > { %v4369_v38 = vpop.f32.mrb[102].mxu1 }
0x449e   : > { %v4373_v39 = vadd.f32 %v4372_v35, %v8307_v31  ;;  %v6494_v40 = vpop.f32.mrb[103].mxu1  ;;  %v6778_v38 = vld [vmem:[#allocation7] sm:$0xff]  }
0x44a0   : > { %v4374_v28 = vsel %vm1959_vm10, %v4373_v39, -inf }
0x44a1   : > { %4375 = vmax.xlane.f32.xlu1 %v4374_v28 }
0x450e   : > { %v4476_v43 = vpop.f32.mrb[104].mxu1 }
0x450f   : > { %v4482_v44 = vmul.f32 0.25, %v4476_v43  ;;  %v6505_v3 = vpop.f32.mrb[105].mxu1 }
0x4510   : > { %v4479_v42 = vpop.f32.mrb[106].mxu1 }
0x4511   : > { %v4483_v58 = vadd.f32 %v4482_v44, %v8307_v31  ;;  %v6506_v61 = vpop.f32.mrb[107].mxu1 }
0x4513   : > { %v4484_v52 = vsel %vm1959_vm10, %v4483_v58, -inf }
0x4514   : > { %4485 = vmax.xlane.f32.xlu0 %v4484_v52 }
0x452a   : > { %4316 = vrot.lane.b32.xlu0 %v8250_v48, %s8615_s30 }
0x452e   : > { %v4376_v59 = vpop.xlane.xlu1 %4375 }
0x452f   : > { %v4377_v45 = vsub.f32 %v4373_v39, %v4376_v59  ;;  %v6779_v39 = vld [vmem:[#allocation7 + $0x8] sm:$0xff]  }
0x4531   : > { %v4378_v47 = vmul.f32 1.442695, %v4377_v45 }
0x4533   : > { %6898 = vpow2.f32 %v4378_v47  ;;  %v6780_v47 = vld [vmem:[%s8552_s9] sm:$0xff]  }
0x453d   : > { %v6899_v50 = vpop.eup %6898 }
0x453e   : > { %v4380_v51 = vsel %vm1959_vm10, %v6899_v50, 0.0 }
0x453f   : > { %4381 = vadd.xlane.f32.xlu1 %v4380_v51  ;;  %v6782_v51 = vld [vmem:[%s8552_s9 + $0x10] sm:$0xff]  }
0x45a1   : > { %v4486_v55 = vpop.xlane.xlu0 %4485 }
0x45a2   : > { %v4487_v56 = vsub.f32 %v4483_v58, %v4486_v55  ;;  %v6783_v55 = vld [vmem:[%s8552_s9 + $0x18] sm:$0xff]  }
0x45a4   : > { %v4488_v57 = vmul.f32 1.442695, %v4487_v56 }
0x45a5   : > { %v4317_v6 = vpop.permute.xlu0 %4316 }
0x45a6   : > { %6900 = vpow2.f32 %v4488_v57  ;;  %4319 = vst.msk [vmem:[%s7494_s15 + $0xa] sm:$0x1] %vm1899_vm8, %v4317_v6 }
0x45ad   : > { %v4323_v53 = vld [vmem:[%s7494_s15 + $0x8] sm:$0xff] }
0x45ae   : > { %v4386_v60 = vpack.c.bf16 %v4323_v53, %v8047_v19 }
0x45b0   : > { %v6901_v46 = vpop.eup %6900  ;;  %6496 = vmatpush3.bf16.msra.mxu0 %v4386_v60 }
0x45b1   : > { %v4490_v48 = vsel %vm1959_vm10, %v6901_v46, 0.0  ;;  %6507 = vmatprep.subr.bf16.mxu0 %v7070_v5 }
0x45b2   : > { %4491 = vadd.xlane.f32.xlu1 %v4490_v48 }
0x45c3   : > { %4497 = vrot.lane.b32.xlu1 %v4386_v60, %s8622_s1 }
0x45cc   : > { %v4382_v2 = vpop.xlane.xlu1 %4381 }
0x45cd   : > { %6902 = vrcp.f32 %v4382_v2 }
0x45d7   : > { %v6903_v0 = vpop.eup %6902 }
0x45d8   : > { %v4384_v63 = vmul.f32 %v6903_v0, %v6899_v50  ;;  %v6781_v50 = vld [vmem:[%s8552_s9 + $0x8] sm:$0xff]  }
0x45da   : > { %v4385_v54 = vpack.c.bf16 %v4384_v63, %v4384_v63 }
0x45dc   : > { %6498 = vmatmul.mubr.msk.bf16.vlgmr.msra.gmra.mrb[96].mxu0 %vm577_vm3, %v4385_v54 }
0x45dd   : > { %6509 = vmatprep.mubr.msk.bf16.mxu0 %vm7071_vm1, %v7070_v5 }
0x463f   : > { %v4492_v19 = vpop.xlane.xlu1 %4491 }
0x4640   : > { %6904 = vrcp.f32 %v4492_v19 }
0x4643   : > { %v4498_v26 = vpop.permute.xlu1 %4497 }
0x4644   : > { %6508 = vmatpush3.bf16.msra.mxu0 %v4498_v26 }
0x4645   : > { %6521 = vmatprep.subr.bf16.mxu0 %v7070_v5 }
0x464a   : > { %v6905_v8 = vpop.eup %6904 }
0x464b   : > { %v4494_v9 = vmul.f32 %v6905_v8, %v6901_v46 }
0x464d   : > { %v4495_v10 = vpack.c.bf16 %v4494_v9, %v4494_v9 }
0x464f   : > { %6510 = vmatmul.mubr.msk.bf16.vlgmr.msra.gmra.mrb[100].mxu0 %vm577_vm3, %v4495_v10 }
0x4650   : > { %6525 = vmatprep.mubr.msk.bf16.mxu0 %vm7071_vm1, %v7070_v5  ;;  %6522 = vmatpush3.bf16.msra.mxu0 %v6778_v38 }
0x4651   : > { %6523 = vmatprep.subr.bf16.mxu0 %v7070_v5 }
0x4654   : > { %6524 = vmatpush3.bf16.msra.mxu0 %v6779_v39 }
0x4655   : > { %6541 = vmatprep.subr.bf16.mxu0 %v7070_v5 }
0x46af   : > { %v4424_v1 = vpop.f32.mrb[96].mxu0 }
0x46b0   : > { %v6499_v14 = vpop.f32.mrb[97].mxu0 }
0x46b1   : > { %v4427_v15 = vpop.f32.mrb[98].mxu0 }
0x46b2   : > { %v6500_v17 = vpop.f32.mrb[99].mxu0 }
0x4722   : > { %v4537_v21 = vpop.f32.mrb[100].mxu0 }
0x4723   : > { %4544 = vrot.lane.b32.xlu0 %v4537_v21, %s8623_s2  ;;  %v6511_v16 = vpop.f32.mrb[101].mxu0  ;;  %v6785_v21 = vld [vmem:[%s8548_s5 + $0x18] sm:$0xff]  }
0x4724   : > { %v4540_v22 = vpop.f32.mrb[102].mxu0 }
0x4725   : > { %v6512_v20 = vpop.f32.mrb[103].mxu0 }
0x4795   : > { %v4545_v23 = vpop.permute.xlu0 %4544 }
0x4796   : > { %v4547_v37 = vsel %vm577_vm3, %v4424_v1, %v4545_v23  ;;  %v5894_v23 = vld [vmem:[%s8547_s4 + $0x1] sm:$0x1] }
0x4797   : > { %v4548_v49 = vpack.c.bf16 %v4547_v37, %v4547_v37  ;;  %v4793_v37 = vunpack.c.l.bf16 %v5894_v23 }
0x4799   : > { %6518 = vmatmul.mubr.msk.bf16.vlgmr.msra.gmra.mrb[108].mxu1 %vm559_vm0, %v4548_v49  ;;  %v4798_v49 = vrot.slane %v4793_v37, %v7374_v13 }
0x479a   : > { %6537 = vmatprep.mubr.msk.bf16.mxu1 %vm7071_vm1, %v7070_v5  ;;  %6530 = vmatpush3.bf16.msra.mxu1 %v6780_v47 }
0x479b   : > { %6531 = vmatprep.subr.bf16.mxu1 %v7070_v5 }
0x479e   : > { %6532 = vmatpush3.bf16.msra.mxu1 %v6781_v50 }
0x479f   : > { %6533 = vmatprep.subr.bf16.mxu1 %v7070_v5 }
0x47a2   : > { %6534 = vmatpush3.bf16.msra.mxu1 %v6782_v51 }
0x47a3   : > { %6535 = vmatprep.subr.bf16.mxu1 %v7070_v5 }
0x47a6   : > { %6536 = vmatpush3.bf16.msra.mxu1 %v6783_v55 }
0x47a7   : > { %6555 = vmatprep.subr.bf16.mxu1 %v7070_v5 }
0x486c   : > { %v4602_v32 = vpop.f32.mrb[108].mxu1 }
0x486d   : > { %v4609_v34 = vrot.slane %v4602_v32, 1  ;;  %v6519_v41 = vpop.f32.mrb[109].mxu1 }
0x486e   : > { %v4605_v30 = vpop.f32.mrb[110].mxu1 }
0x486f   : > { %v4611_v27 = vadd.f32 %v4609_v34, %v8229_v25  ;;  %v6520_v33 = vpop.f32.mrb[111].mxu1  ;;  %v4612_v25 = vld [vmem:[%s8550_s7] sm:$0x1] }
0x4870   : > { %v4621_v44 = vunpack.c.l.bf16 %v4612_v25 }
0x4871   : > { %v4613_v35 = vmul.f32 %v4611_v27, %v4611_v27 }
0x4872   : > { %v4626_v3 = vrot.slane %v4621_v44, %v7374_v13 }
0x4873   : > { %v4614_v36 = vsel %vm1780_vm7, %v4613_v35, 0.0 }
0x4874   : > { %4615 = vadd.xlane.f32.xlu0 %v4614_v36 }
0x4901   : > { %v4616_v40 = vpop.xlane.xlu0 %4615 }
0x4902   : > { %v4617_v28 = vmul.f32 0.03125, %v4616_v40 }
0x4904   : > { %v4618_v43 = vadd.f32 1e-06, %v4617_v28 }
0x4906   : > { %6906 = vrsqrt.f32 %v4618_v43 }
0x4910   : > { %v6907_v42 = vpop.eup %6906 }
0x4911   : > { %v4620_v58 = vmul.f32 %v6907_v42, %v4611_v27 }
0x4913   : > { %v4628_v61 = vmul.f32 %v4626_v3, %v4620_v58 }
0x4915   : > { %v4629_v52 = vpack.c.bf16 %v4628_v61, %v4628_v61 }
0x4917   : > { %v4635_v59 = vshrl.u32 %v4629_v52, 16 }
0x4919   : > { %v4637_v45 = vrot.slane %v4635_v59, 3 }
0x491b   : > { %6526 = vmatmul.mubr.msk.bf16.vlgmr.msra.gmra.mrb[104].mxu0 %vm559_vm0, %v4637_v45 }
0x491c   : > { %6545 = vmatprep.mubr.msk.bf16.mxu0 %vm7071_vm1, %v7070_v5  ;;  %6542 = vmatpush3.bf16.msra.mxu0 %v6784_v18 }
0x491d   : > { %6543 = vmatprep.subr.bf16.mxu0 %v7070_v5 }
0x4920   : > { %6544 = vmatpush3.bf16.msra.mxu0 %v6785_v21 }
0x4921   : > { %6549 = vmatprep.subr.bf16.mxu0 %v7070_v5 }
0x49ee   : > { %v4687_v56 = vpop.f32.mrb[104].mxu0 }
0x49ef   : > { %4700 = vrot.lane.b32.xlu1 %v4687_v56, %s8615_s30  ;;  %v6527_v57 = vpop.f32.mrb[105].mxu0  ;;  %v4693_v60 = vsub.f32 0.0, %v4687_v56 }
0x49f0   : > { %v4690_v6 = vpop.f32.mrb[106].mxu0 }
0x49f1   : > { %v6528_v53 = vpop.f32.mrb[107].mxu0  ;;  %v4694_v46 = vmul.f32 1.442695, %v4693_v60 }
0x49f3   : > { %6908 = vpow2.f32 %v4694_v46 }
0x49fd   : > { %v6909_v48 = vpop.eup %6908 }
0x49fe   : > { %v4696_v2 = vadd.f32 1.0, %v6909_v48 }
0x4a00   : > { %6910 = vrcp.f32 %v4696_v2 }
0x4a0a   : > { %v6911_v0 = vpop.eup %6910 }
0x4a0b   : > { %v4698_v63 = vmul.f32 %v6911_v0, %v4687_v56 }
0x4a61   : > { %v4701_v54 = vpop.permute.xlu1 %4700 }
0x4a62   : > { %v4703_v19 = vmul.f32 %v4701_v54, %v4698_v63 }
0x4a64   : > { %v4704_v26 = vpack.c.bf16 %v4703_v19, %v4703_v19 }
0x4a66   : > { %6538 = vmatmul.mubr.msk.bf16.vlgmr.msra.gmra.mrb[112].mxu1 %vm1127_vm6, %v4704_v26 }
0x4a67   : > { %6557 = vmatprep.mubr.msk.bf16.mxu1 %vm7071_vm1, %v7070_v5 }
0x4b39   : > { %v4774_v8 = vpop.f32.mrb[112].mxu1 }
0x4b3a   : > { %v4781_v9 = vrot.slane %v4774_v8, 1  ;;  %v6539_v10 = vpop.f32.mrb[113].mxu1 }
0x4b3b   : > { %v4777_v12 = vpop.f32.mrb[114].mxu1 }
0x4b3c   : > { %v8368_v1 = vadd.f32 %v4781_v9, %v4611_v27  ;;  %v6540_v14 = vpop.f32.mrb[115].mxu1 }
0x4b3e   : > { %v4785_v15 = vmul.f32 %v8368_v1, %v8368_v1 }
0x4b40   : > { %v4786_v17 = vsel %vm1780_vm7, %v4785_v15, 0.0 }
0x4b41   : > { %4787 = vadd.xlane.f32.xlu1 %v4786_v17 }
0x4bce   : > { %v4788_v16 = vpop.xlane.xlu1 %4787 }
0x4bcf   : > { %v4789_v22 = vmul.f32 0.03125, %v4788_v16 }
0x4bd1   : > { %v4790_v20 = vadd.f32 1e-06, %v4789_v22 }
0x4bd3   : > { %6912 = vrsqrt.f32 %v4790_v20 }
0x4bdd   : > { %v6913_v32 = vpop.eup %6912 }
0x4bde   : > { %v4792_v34 = vmul.f32 %v6913_v32, %v8368_v1 }
0x4be0   : > { %v4800_v41 = vmul.f32 %v4798_v49, %v4792_v34 }
0x4be2   : > { %v4801_v30 = vpack.c.bf16 %v4800_v41, %v4800_v41 }
0x4be4   : > { %v4807_v27 = vshrl.u32 %v4801_v30, 16 }
0x4be6   : > { %v4809_v33 = vrot.slane %v4807_v27, 3 }
0x4be8   : > { %6546 = vmatmul.mubr.msk.bf16.vlgmr.msra.gmra.mrb[108].mxu0 %vm559_vm0, %v4809_v33 }
0x4be9   : > { %6551 = vmatprep.mubr.msk.bf16.mxu0 %vm7071_vm1, %v7070_v5 }
0x4cbb   : > { %v4859_v35 = vpop.f32.mrb[108].mxu0 }
0x4cbc   : > { %4884 = vrot.lane.b32.xlu1 %v4859_v35, %s8616_s0  ;;  %v6547_v36 = vpop.f32.mrb[109].mxu0  ;;  %v4866_v38 = vsub.f32 0.0, %v4859_v35  ;;  %v4880_v58 = vmul.f32 %v4859_v35, %v8274_v29  ;;  %v4865_v56 = vmul.f32 %v4859_v35, %v8268_v7 }
0x4cbd   : > { %v4862_v39 = vpop.f32.mrb[110].mxu0 }
0x4cbe   : > { %4881 = vrot.lane.b32.xlu0 %v4866_v38, %s8617_s19  ;;  %v6548_v40 = vpop.f32.mrb[111].mxu0 }
0x4cc0   : > { %4868 = vrot.lane.b32.xlu1 %v4866_v38, %s8618_s17 }
0x4d2e   : > { %v4885_v28 = vpop.permute.xlu1 %4884 }
0x4d30   : > { %v4882_v43 = vpop.permute.xlu0 %4881 }
0x4d31   : > { %v4887_v25 = vsel %vm683_vm2, %v4882_v43, %v4885_v28 }
0x4d32   : > { %v4888_v44 = vsel %vm577_vm3, %v4887_v25, %v4882_v43  ;;  %v4869_v45 = vpop.permute.xlu1 %4868  ;;  %v6786_v43 = vld [vmem:[#allocation5 + $0x10] sm:$0xff]  }
0x4d33   : > { %v4889_v3 = vsel %vm686_vm4, %v4888_v44, %v4885_v28 }
0x4d34   : > { %v4890_v42 = vmul.f32 %v4889_v3, %v8264_v4 }
0x4d36   : > { %4892 = vrot.lane.b32.xlu0 %v4890_v42, %s8619_s12 }
0x4da8   : > { %v4893_v61 = vpop.permute.xlu0 %4892 }
0x4da9   : > { %v4895_v52 = vadd.f32 %v4893_v61, %v4880_v58  ;;  %v6787_v58 = vld [vmem:[#allocation5 + $0x18] sm:$0xff]  }
0x4dab   : > { %4897 = vrot.lane.b32.xlu0 %v4895_v52, %s8620_s20 }
0x4daf   : > { %4872 = vrot.lane.b32.xlu0 %v4859_v35, %s8621_s16 }
0x4e1d   : > { %v4898_v59 = vpop.permute.xlu0 %4897 }
0x4e1e   : > { %5902 = vst.msk [vmem:[%s7418_s25 + $0x1a] sm:$0x1] %vm1899_vm8, %v4898_v59 }
0x4e21   : > { %v4873_v47 = vpop.permute.xlu0 %4872 }
0x4e22   : > { %v4875_v50 = vsel %vm683_vm2, %v4869_v45, %v4873_v47 }
0x4e23   : > { %v4876_v51 = vsel %vm577_vm3, %v4875_v50, %v4869_v45 }
0x4e24   : > { %v4877_v55 = vsel %vm686_vm4, %v4876_v51, %v4873_v47 }
0x4e25   : > { %v4878_v29 = vmul.f32 %v4877_v55, %v8264_v4  ;;  %v5905_v57 = vld [vmem:[%s7418_s25 + $0x18] sm:$0xff] }
0x4e26   : > { %v4910_v6 = vpack.c.bf16 %v5905_v57, %v8146_v24 }
0x4e27   : > { %v4879_v53 = vadd.f32 %v4878_v29, %v4865_v56 }
0x4e28   : > { %5019 = vrot.lane.b32.xlu1 %v4910_v6, %s8622_s1  ;;  %v4915_v60 = vsel %vm577_vm3, %v4910_v6, 0 }
0x4e29   : > { %v4909_v46 = vpack.c.bf16 %v4879_v53, %v4879_v53  ;;  %6550 = vmatpush3.bf16.xpose.msra.mxu0 %v4915_v60 }
0x4e2a   : > { %6561 = vmatprep.subr.bf16.mxu0 %v7070_v5 }
0x4e2b   : > { %5016 = vrot.lane.b32.xlu0 %v4909_v46, %s8622_s1 }
0x4e30   : > { %6552 = vmatmul.mubr.msk.bf16.vlgmr.msra.gmra.mrb[112].mxu0 %vm577_vm3, %v4909_v46 }
0x4e31   : > { %6563 = vmatprep.mubr.msk.bf16.mxu0 %vm7071_vm1, %v7070_v5 }
0x4e9a   : > { %v5020_v4 = vpop.permute.xlu1 %5019 }
0x4e9b   : > { %v5025_v7 = vsel %vm577_vm3, %v5020_v4, 0  ;;  %v6788_v4 = vld [vmem:[#allocation7 + $0x10] sm:$0xff]  }
0x4e9c   : > { %6562 = vmatpush3.bf16.xpose.msra.mxu0 %v5025_v7  ;;  %v6789_v7 = vld [vmem:[#allocation7 + $0x18] sm:$0xff]  }
0x4e9d   : > { %6573 = vmatprep.subr.bf16.mxu0 %v7070_v5  ;;  %v5017_v24 = vpop.permute.xlu0 %5016 }
0x4ea3   : > { %6564 = vmatmul.mubr.msk.bf16.vlgmr.msra.gmra.mrb[116].mxu0 %vm577_vm3, %v5017_v24 }
0x4ea4   : > { %6577 = vmatprep.mubr.msk.bf16.mxu0 %vm7071_vm1, %v7070_v5  ;;  %6574 = vmatpush3.bf16.msra.mxu0 %v6786_v43 }
0x4ea5   : > { %6575 = vmatprep.subr.bf16.mxu0 %v7070_v5 }
0x4ea8   : > { %6576 = vmatpush3.bf16.msra.mxu0 %v6787_v58 }
0x4ea9   : > { %6589 = vmatprep.subr.bf16.mxu0 %v7070_v5 }
0x4f03   : > { %v4951_v48 = vpop.f32.mrb[112].mxu0 }
0x4f04   : > { %v4957_v2 = vmul.f32 0.25, %v4951_v48  ;;  %v6553_v0 = vpop.f32.mrb[113].mxu0 }
0x4f05   : > { %v4954_v63 = vpop.f32.mrb[114].mxu0  ;;  %v5915_v0 = vld [vmem:[%s8550_s7 + $0x1] sm:$0x1] }
0x4f06   : > { %v4958_v54 = vadd.f32 %v4957_v2, %v8307_v31  ;;  %v6554_v19 = vpop.f32.mrb[115].mxu0 }
0x4f08   : > { %v4959_v26 = vsel %vm1959_vm10, %v4958_v54, -inf }
0x4f09   : > { %4960 = vmax.xlane.f32.xlu1 %v4959_v26 }
0x4f76   : > { %v5061_v8 = vpop.f32.mrb[116].mxu0 }
0x4f77   : > { %v5067_v9 = vmul.f32 0.25, %v5061_v8  ;;  %v6565_v10 = vpop.f32.mrb[117].mxu0 }
0x4f78   : > { %v5064_v12 = vpop.f32.mrb[118].mxu0 }
0x4f79   : > { %v5068_v14 = vadd.f32 %v5067_v9, %v8307_v31  ;;  %v6566_v15 = vpop.f32.mrb[119].mxu0  ;;  %v6790_v12 = vld [vmem:[%s8552_s9 + $0x20] sm:$0xff]  }
0x4f7a   : > { %v6792_v15 = vld [vmem:[%s8552_s9 + $0x30] sm:$0xff]  }
0x4f7b   : > { %v5069_v17 = vsel %vm1959_vm10, %v5068_v14, -inf }
0x4f7c   : > { %5070 = vmax.xlane.f32.xlu0 %v5069_v17  ;;  %v6793_v17 = vld [vmem:[%s8552_s9 + $0x38] sm:$0xff]  }
0x4f92   : > { %4901 = vrot.lane.b32.xlu0 %v4859_v35, %s8615_s30 }
0x4f96   : > { %v4961_v18 = vpop.xlane.xlu1 %4960 }
0x4f97   : > { %v4962_v21 = vsub.f32 %v4958_v54, %v4961_v18 }
0x4f99   : > { %v4963_v16 = vmul.f32 1.442695, %v4962_v21 }
0x4f9b   : > { %6914 = vpow2.f32 %v4963_v16 }
0x4fa5   : > { %v6915_v22 = vpop.eup %6914 }
0x4fa6   : > { %v4965_v20 = vsel %vm1959_vm10, %v6915_v22, 0.0 }
0x4fa7   : > { %4966 = vadd.xlane.f32.xlu1 %v4965_v20 }
0x5009   : > { %v5071_v23 = vpop.xlane.xlu0 %5070 }
0x500a   : > { %v5072_v37 = vsub.f32 %v5068_v14, %v5071_v23  ;;  %v6791_v14 = vld [vmem:[%s8552_s9 + $0x28] sm:$0xff]  }
0x500c   : > { %v5073_v49 = vmul.f32 1.442695, %v5072_v37 }
0x500d   : > { %v4902_v31 = vpop.permute.xlu0 %4901 }
0x500e   : > { %6916 = vpow2.f32 %v5073_v49  ;;  %5903 = vst.msk [vmem:[%s7494_s15 + $0x1a] sm:$0x1] %vm1899_vm8, %v4902_v31 }
0x5015   : > { %v5907_v32 = vld [vmem:[%s7494_s15 + $0x18] sm:$0xff] }
0x5016   : > { %v4971_v34 = vpack.c.bf16 %v5907_v32, %v8172_v62 }
0x5018   : > { %v6917_v41 = vpop.eup %6916  ;;  %6556 = vmatpush3.bf16.msra.mxu1 %v4971_v34 }
0x5019   : > { %v5075_v30 = vsel %vm1959_vm10, %v6917_v41, 0.0  ;;  %6567 = vmatprep.subr.bf16.mxu1 %v7070_v5 }
0x501a   : > { %5076 = vadd.xlane.f32.xlu1 %v5075_v30 }
0x502b   : > { %5082 = vrot.lane.b32.xlu1 %v4971_v34, %s8622_s1 }
0x5034   : > { %v4967_v27 = vpop.xlane.xlu1 %4966 }
0x5035   : > { %6918 = vrcp.f32 %v4967_v27 }
0x503f   : > { %v6919_v33 = vpop.eup %6918 }
0x5040   : > { %v4969_v35 = vmul.f32 %v6919_v33, %v6915_v22 }
0x5042   : > { %v4970_v36 = vpack.c.bf16 %v4969_v35, %v4969_v35 }
0x5044   : > { %6558 = vmatmul.mubr.msk.bf16.vlgmr.msra.gmra.mrb[116].mxu1 %vm577_vm3, %v4970_v36 }
0x5045   : > { %6569 = vmatprep.mubr.msk.bf16.mxu1 %vm7071_vm1, %v7070_v5 }
0x50a7   : > { %v5077_v62 = vpop.xlane.xlu1 %5076 }
0x50a8   : > { %6920 = vrcp.f32 %v5077_v62 }
0x50ab   : > { %v5083_v38 = vpop.permute.xlu1 %5082 }
0x50ac   : > { %6568 = vmatpush3.bf16.msra.mxu1 %v5083_v38 }
0x50ad   : > { %6581 = vmatprep.subr.bf16.mxu1 %v7070_v5 }
0x50b2   : > { %v6921_v39 = vpop.eup %6920 }
0x50b3   : > { %v5079_v40 = vmul.f32 %v6921_v39, %v6917_v41 }
0x50b5   : > { %v5080_v28 = vpack.c.bf16 %v5079_v40, %v5079_v40 }
0x50b7   : > { %6570 = vmatmul.mubr.msk.bf16.vlgmr.msra.gmra.mrb[120].mxu1 %vm577_vm3, %v5080_v28 }
0x50b8   : > { %6585 = vmatprep.mubr.msk.bf16.mxu1 %vm7071_vm1, %v7070_v5  ;;  %6582 = vmatpush3.bf16.msra.mxu1 %v6788_v4 }
0x50b9   : > { %6583 = vmatprep.subr.bf16.mxu1 %v7070_v5 }
0x50bc   : > { %6584 = vmatpush3.bf16.msra.mxu1 %v6789_v7 }
0x5117   : > { %v5009_v25 = vpop.f32.mrb[116].mxu1 }
0x5118   : > { %v6559_v44 = vpop.f32.mrb[117].mxu1 }
0x5119   : > { %v5012_v3 = vpop.f32.mrb[118].mxu1 }
0x511a   : > { %v6560_v42 = vpop.f32.mrb[119].mxu1  ;;  %v7082_v3 = vmov 1966171168  }
0x511b   : > { %v5389_v42 = vunpack.c.l.s4 %v7082_v3 }
0x518a   : > { %v5122_v61 = vpop.f32.mrb[120].mxu1 }
0x518b   : > { %5129 = vrot.lane.b32.xlu0 %v5122_v61, %s8623_s2  ;;  %v6571_v52 = vpop.f32.mrb[121].mxu1  ;;  %v5390_v61 = vunpack.c.0.s8 %v5389_v42 }
0x518c   : > { %v5125_v59 = vpop.f32.mrb[122].mxu1 }
0x518d   : > { %v6572_v45 = vpop.f32.mrb[123].mxu1 }
0x518e   : > { %v5393_v45 = vsub.s32 %v5390_v61, %v7368_v11 }
0x51fd   : > { %v5130_v47 = vpop.permute.xlu0 %5129 }
0x51fe   : > { %v5132_v50 = vsel %vm577_vm3, %v5009_v25, %v5130_v47  ;;  %v5369_v25 = vld [vmem:[%s8553_s10] sm:$0x1] }
0x51ff   : > { %v5133_v51 = vpack.c.bf16 %v5132_v50, %v5132_v50  ;;  %v5378_v44 = vunpack.c.l.bf16 %v5369_v25 }
0x5201   : > { %6578 = vmatmul.mubr.msk.bf16.vlgmr.msra.gmra.mrb[120].mxu0 %vm559_vm0, %v5133_v51  ;;  %v5383_v58 = vrot.slane %v5378_v44, %v7374_v13 }
0x5202   : > { %6597 = vmatprep.mubr.msk.bf16.mxu0 %vm7071_vm1, %v7070_v5  ;;  %6590 = vmatpush3.bf16.msra.mxu0 %v6790_v12 }
0x5203   : > { %6591 = vmatprep.subr.bf16.mxu0 %v7070_v5 }
0x5206   : > { %6592 = vmatpush3.bf16.msra.mxu0 %v6791_v14 }
0x5207   : > { %6593 = vmatprep.subr.bf16.mxu0 %v7070_v5 }
0x520a   : > { %6594 = vmatpush3.bf16.msra.mxu0 %v6792_v15 }
0x520b   : > { %6595 = vmatprep.subr.bf16.mxu0 %v7070_v5 }
0x520e   : > { %6596 = vmatpush3.bf16.msra.mxu0 %v6793_v17 }
0x52d4   : > { %v5187_v55 = vpop.f32.mrb[120].mxu0 }
0x52d5   : > { %v5194_v56 = vrot.slane %v5187_v55, 1  ;;  %v6579_v29 = vpop.f32.mrb[121].mxu0 }
0x52d6   : > { %v5190_v57 = vpop.f32.mrb[122].mxu0 }
0x52d7   : > { %v5196_v6 = vadd.f32 %v5194_v56, %v8368_v1  ;;  %v6580_v53 = vpop.f32.mrb[123].mxu0  ;;  %v5206_v1 = vunpack.c.l.bf16 %v5915_v0  ;;  %v5413_v57 = vld [vmem:[%s557_s27] sm:$0x1] }
0x52d9   : > { %v5198_v60 = vmul.f32 %v5196_v6, %v5196_v6  ;;  %v5211_v63 = vrot.slane %v5206_v1, %v7374_v13 }
0x52db   : > { %v5199_v46 = vsel %vm1780_vm7, %v5198_v60, 0.0 }
0x52dc   : > { %5200 = vadd.xlane.f32.xlu0 %v5199_v46 }
0x5369   : > { %v5201_v24 = vpop.xlane.xlu0 %5200 }
0x536a   : > { %v5202_v48 = vmul.f32 0.03125, %v5201_v24 }
0x536c   : > { %v5203_v2 = vadd.f32 1e-06, %v5202_v48 }
0x536e   : > { %6922 = vrsqrt.f32 %v5203_v2 }
0x5378   : > { %v6923_v54 = vpop.eup %6922 }
0x5379   : > { %v5205_v19 = vmul.f32 %v6923_v54, %v5196_v6 }
0x537b   : > { %v5213_v26 = vmul.f32 %v5211_v63, %v5205_v19 }
0x537d   : > { %v5214_v8 = vpack.c.bf16 %v5213_v26, %v5213_v26 }
0x537f   : > { %v5220_v9 = vshrl.u32 %v5214_v8, 16 }
0x5381   : > { %v5222_v10 = vrot.slane %v5220_v9, 3 }
0x5383   : > { %6586 = vmatmul.mubr.msk.bf16.vlgmr.msra.gmra.mrb[124].mxu1 %vm559_vm0, %v5222_v10 }
0x5456   : > { %v5272_v18 = vpop.f32.mrb[124].mxu1 }
0x5457   : > { %5285 = vrot.lane.b32.xlu1 %v5272_v18, %s8615_s30  ;;  %v6587_v21 = vpop.f32.mrb[125].mxu1  ;;  %v5278_v20 = vsub.f32 0.0, %v5272_v18 }
0x5458   : > { %v5275_v16 = vpop.f32.mrb[126].mxu1 }
0x5459   : > { %v6588_v22 = vpop.f32.mrb[127].mxu1  ;;  %v5279_v23 = vmul.f32 1.442695, %v5278_v20 }
0x545b   : > { %6924 = vpow2.f32 %v5279_v23 }
0x5465   : > { %v6925_v37 = vpop.eup %6924 }
0x5466   : > { %v5281_v49 = vadd.f32 1.0, %v6925_v37 }
0x5468   : > { %6926 = vrcp.f32 %v5281_v49 }
0x5472   : > { %v6927_v31 = vpop.eup %6926 }
0x5473   : > { %v5283_v32 = vmul.f32 %v6927_v31, %v5272_v18 }
0x54c9   : > { %v5286_v5 = vpop.permute.xlu1 %5285 }
0x54ca   : > { %v5288_v34 = vmul.f32 %v5286_v5, %v5283_v32 }
0x54cc   : > { %v5289_v41 = vpack.c.bf16 %v5288_v34, %v5288_v34 }
0x54ce   : > { %6598 = vmatmul.mubr.msk.bf16.vlgmr.msra.gmra.mrb[124].mxu0 %vm1127_vm6, %v5289_v41 }
0x55a1   : > { %v5359_v30 = vpop.f32.mrb[124].mxu0 }
0x55a2   : > { %v5366_v27 = vrot.slane %v5359_v30, 1  ;;  %v6599_v33 = vpop.f32.mrb[125].mxu0 }
0x55a3   : > { %v5362_v35 = vpop.f32.mrb[126].mxu0 }
0x55a4   : > { %v5368_v36 = vadd.f32 %v5366_v27, %v5196_v6  ;;  %v6600_v62 = vpop.f32.mrb[127].mxu0 }
0x55a6   : > { %v5370_v38 = vmul.f32 %v5368_v36, %v5368_v36 }
0x55a8   : > { %v5371_v39 = vsel %vm1780_vm7, %v5370_v38, 0.0 }
0x55a9   : > { %5372 = vadd.xlane.f32.xlu1 %v5371_v39 }
0x5636   : > { %v5373_v40 = vpop.xlane.xlu1 %5372 }
0x5637   : > { %v5374_v28 = vmul.f32 0.03125, %v5373_v40 }
0x5639   : > { %v5375_v43 = vadd.f32 1e-06, %v5374_v28 }
0x563b   : > { %6928 = vrsqrt.f32 %v5375_v43 }
0x5645   : > { %v6929_v52 = vpop.eup %6928 }
0x5646   : > { %v5377_v59 = vmul.f32 %v6929_v52, %v5368_v36 }
0x5648   : > { %v5385_v47 = vmul.f32 %v5383_v58, %v5377_v59 }
0x564a   : > { %v5386_v50 = vpack.c.bf16 %v5385_v47, %v5385_v47 }
0x564c   : > { %v5394_v51 = vrot.slane %v5386_v50, %v5393_v45 }
0x564e   : > { %v5395_v55 = vcombine.high %v5394_v51, %v5394_v51 }
0x5650   : > { %v5402_v56 = vrot.slane %v5395_v55, %v5393_v45 }
0x5652   : > { %v5403_v29 = vcombine.high %v5402_v56, %v5402_v56 }
0x5654   : > { %v5405_v13 = vshrl.u32 %v5403_v29, 16 }
0x5656   : > { %v5414_v6 = vsel %vm5412_vm14, %v5405_v13, %v5413_v57 }
0x5657   : > { %5415 = vst [vmem:[%s557_s27] sm:$0x1] %v5414_v6 }
0x5658   : > { %s5943_s21 = sshll.u32 %s7188_s29, 8  ;;  %s5457_s3 = sshll.u32 %s7418_s25, 4  ;;  %s5458_s3 = int_to_ptr.vmem [resolvable:$true] %s5457_s3 }
0x5659   : > { %s8625_s0 = sld [smem:[#allocation32_spill]]  ;;  %s7083_s17 = smov 256  }
0x565a   : > { %p8626_p0 = scmp.ne.s32.totalorder %s8605_s23, 0  ;;  %s7084_s12 = smov 512  }
0x565b   : > { %s7085_s20 = smov 2   ;;  %s7086_s16 = smov 128  }
0x565c   : > { %6611 = sst [smem:[#allocation12]] (%p8626_p0), %s7083_s17  ;;  %s7087_s29 = smov 8  }
0x565d   : > { %6612 = sst [smem:[#allocation12 + $0x1]] (%p8626_p0), %s7084_s12  ;;  %s7088_s25 = smov [#allocation11]  }
0x565e   : > { %6613 = sst [smem:[#allocation12 + $0x2]] (%p8626_p0), %s7085_s20  ;;  %s7089_s6 = smov 0  }
0x565f   : > { %s5440_s19 = scalar_lea.hbm %s8625_s0, %s5943_s21  ;;  %6614 = sst [smem:[#allocation12 + $0x3]] (%p8626_p0), %s7086_s16 }
0x5660   : > { %6615 = sst [smem:[#allocation12 + $0x4]] (%p8626_p0), %s7086_s16 }
0x5661   : > { %6616 = sst [smem:[#allocation12 + $0x5]] (%p8626_p0), %s7087_s29 }
0x5662   : > { %6617 = dma.general (%p8626_p0), %s5458_s3, 512, %s5440_s19, %s5420_s13, %s7088_s25, [#allocation12], %s7089_s6, 0  }
0x5663   : > { %s8627_s14 = sld [smem:[#allocation33_spill]]  ;;  %s5502_s18 = sshll.u32 %s7494_s15, 4  ;;  %s5503_s18 = int_to_ptr.vmem [resolvable:$true] %s5502_s18 }
0x5664   : > { %s7090_s11 = smov 256   ;;  %s7091_s27 = smov 512  }
0x5665   : > { %6618 = sst [smem:[#allocation14]] (%p8626_p0), %s7090_s11  ;;  %s7092_s13 = smov 2  }
0x5666   : > { %6619 = sst [smem:[#allocation14 + $0x1]] (%p8626_p0), %s7091_s27  ;;  %s7093_s3 = smov 128  }
0x5667   : > { %6620 = sst [smem:[#allocation14 + $0x2]] (%p8626_p0), %s7092_s13  ;;  %s7094_s1 = smov 8  }
0x5668   : > { %6621 = sst [smem:[#allocation14 + $0x3]] (%p8626_p0), %s7093_s3  ;;  %s7096_s15 = smov 0  }
0x5669   : > { %s5485_s26 = scalar_lea.hbm %s8627_s14, %s5943_s21  ;;  %6622 = sst [smem:[#allocation14 + $0x4]] (%p8626_p0), %s7093_s3 }
0x566a   : > { %6623 = sst [smem:[#allocation14 + $0x5]] (%p8626_p0), %s7094_s1  ;;  %s7095_s21 = smov [#allocation13]  }
0x566b   : > { %6624 = dma.general (%p8626_p0), %s5503_s18, 512, %s5485_s26, %s5425_s24, %s7095_s21, [#allocation14], %s7096_s15, 0  }
0x566c PF: > { %s8628_s2 = sld [smem:[#allocation19_spill]]  ;;  %s8629_s0 = sld [smem:[#allocation22_spill]] }
0x566d   : > { %p8631_p3 = scmp.ge.s32.totalorder %s7063_s28, 2 }
0x5672   : > { %s5536_s19 = sand.u32 1, %s8628_s2   ;;  %p8630_p1 = scmp.ne.s32.totalorder %s8629_s0, 0 }
0x5673   : > { %s5537_s17 = scalar_lea.sflag [#allocation4], %s5536_s19 }
0x5674   : > { %p6639_p7 = pnand %p8631_p3, %p8630_p1 }
0x5676   : > { %7042 = dma.done.wait (!%p6639_p7), %s5537_s17, 512  }
0x5677   : > { %7044 = vsyncadd (!%p6639_p7), %s5537_s17, 4294966784  ;;  %s5546_s12 = scalar_lea.sflag [#allocation10], %s5536_s19 }
0x5678   : > { %7046 = dma.done.wait (!%p6639_p7), %s5546_s12, 512  }
0x5679   : > { %7048 = vsyncadd (!%p6639_p7), %s5546_s12, 4294966784  ;;  %s8632_s28 = sld [smem:[#allocation23_spill]]  ;;  %s8633_s25 = sld [smem:[#allocation20_spill]] }
0x567a   : > { %s8634_s26 = sld [smem:[#allocation21_spill]]  ;;  %s8635_s27 = sld [smem:[#allocation24_spill]] }
0x567f   : > { %p31_p9 = scmp.ge.s32.totalorder %s8632_s28, 4  }
0x5681   :  { %33 = sbr.rel (!%p31_p9) target bundleno = 18 (0x12), region = 173 }
0x5688   :  { %5551 = vsyncpa [#allocation3], 1 }
0x5689   :  { %5553 = vsyncpa [#allocation3 + $0x1], 1 }
0x568a   :  { %5554 = vsyncpa [#allocation6], 1 }
0x568b   :  { %5555 = vsyncpa [#allocation4], 1 }
0x568c   :  { %5557 = vsyncpa [#allocation4 + $0x1], 1 }
0x568d   :  { %5558 = vsyncpa [#allocation10], 1 }
0x568e   :  { %5560 = vsyncpa [#allocation10 + $0x1], 1 }

</bundles_post_ra>
